<compile_context>
chip_gen: v5e
topology: v5e:2x2
jax: 0.10.0
libtpu: 0.0.40
codegen_flags: <defaults>
</compile_context>

<pallas_src>
import functools
import math

import jax
import jax.numpy as jnp
from jax import lax
from jax.experimental import pallas as pl
from jax.experimental.pallas import tpu as pltpu


CDT = jnp.bfloat16          # matmul-input / weight / bias-tensor storage dtype
NEG_INF = -1e9


def _gelu(x):
    return jax.nn.gelu(x, approximate=True)


def _layernorm(v, g, b, eps=1e-5):
    mu = jnp.mean(v, axis=-1, keepdims=True)
    var = jnp.mean(jnp.square(v - mu), axis=-1, keepdims=True)
    return (v - mu) * lax.rsqrt(var + eps) * g + b


@functools.lru_cache(maxsize=None)
def _vmem_limit_bytes():
    cap = 64 * 1024 * 1024
    try:
        info = pltpu.get_tpu_info()
        cap = int(getattr(info, "vmem_capacity_bytes", cap))
    except Exception:
        pass
    # Leave headroom for Mosaic internal scratch; ~100 MiB on 128 MiB parts
    # (v5e/v6e), ~48 MiB on v7x (64 MiB physical per TensorCore).
    return int(min(100 * 1024 * 1024, max(32 * 1024 * 1024, cap - 16 * 1024 * 1024)))


def _row_tile(L):
    big = _vmem_limit_bytes() >= 96 * 1024 * 1024
    cands = (256, 128, 64, 32, 16, 8) if big else (128, 64, 32, 16, 8)
    for t in cands:
        if t <= L and L % t == 0:
            return t
    return L


def _full(shape):
    zeros = (0,) * len(shape)
    return pl.BlockSpec(shape, lambda *_: zeros)


# ---------------------------------------------------------------------------
# Kernel 1: POV attention bias — fused rel-frame math + tiny MLP + mask add.
#   grid = (B, L//TI, L//TJ); output block (1, H, TI, TJ) bf16 (lane-dense j).
# ---------------------------------------------------------------------------
def _pov_bias_kernel(ci_ref, rot_ref, cj_ref, mask_ref,
                     w1_ref, b1_ref, w2_ref, b2_ref,
                     out_ref, *, pov_hidden, n_heads, has_mask):
    ci = ci_ref[0]                       # (TI, 3)   coords of the i-tile
    rot = rot_ref[0]                     # (TI, 3, 3) local frames of the i-tile
    cj = cj_ref[0]                       # (3, TJ)   coords, j on the lane axis

    # diff[q](i, j) = coords[j, q] - coords[i, q]           (TI, TJ)
    d = [cj[q:q + 1, :] - ci[:, q:q + 1] for q in range(3)]
    # rel[p](i, j) = sum_q rot[i, p, q] * diff[q](i, j)      local-frame coords
    # TODO(synk): verify R·d vs Rᵀ·(x_j - x_i) against the PeTriBOX reference.
    rel = [sum(rot[:, p, q:q + 1] * d[q] for q in range(3)) for p in range(3)]

    # tiny MLP 3 -> pov_hidden -> n_heads, loop-interchanged: only the H head
    # accumulators (plus one hidden plane) stay live.  head_w / b2 pre-folded.
    accs = [None] * n_heads
    for m in range(pov_hidden):
        hm = _gelu(rel[0] * w1_ref[0, m] + rel[1] * w1_ref[1, m]
                   + rel[2] * w1_ref[2, m] + b1_ref[m])
        for h in range(n_heads):
            t = hm * w2_ref[m, h]
            accs[h] = t if accs[h] is None else accs[h] + t

    madd = mask_ref[0] if has_mask else None               # (1, TJ), broadcasts
    for h in range(n_heads):
        val = accs[h] + b2_ref[h]
        if has_mask:
            val = val + madd
        out_ref[0, h] = val.astype(out_ref.dtype)


def pov_attention_bias(coords, rots, pov_params, attention_mask=None):
    """coords (B,L,3), rots (B,L,3,3) -> additive attention bias (B,H,L,L) bf16."""
    B, L, _ = coords.shape
    hid = pov_params["w1"].shape[1]
    H = pov_params["w2"].shape[1]
    TI = _row_tile(L)
    TJ = _row_tile(L)

    coords = coords.astype(jnp.float32)
    rots = rots.astype(jnp.float32)
    coords_j = jnp.transpose(coords, (0, 2, 1))            # (B, 3, L), tiny

    # fold the learnable per-head weights into the MLP output layer (host side)
    head_w = pov_params["head_w"].astype(jnp.float32)
    w2_eff = pov_params["w2"].astype(jnp.float32) * head_w[None, :]
    b2_eff = pov_params["b2"].astype(jnp.float32) * head_w

    has_mask = attention_mask is not None
    if has_mask:
        mask_add = (NEG_INF * (1.0 - attention_mask.astype(jnp.float32)))[:, None, :]
    else:
        mask_add = jnp.zeros((B, 1, L), jnp.float32)

    kernel = functools.partial(_pov_bias_kernel, pov_hidden=hid, n_heads=H,
                               has_mask=has_mask)
    smem = pl.BlockSpec(memory_space=pltpu.MemorySpace.SMEM)
    return pl.pallas_call(
        kernel,
        out_shape=jax.ShapeDtypeStruct((B, H, L, L), CDT),
        grid=(B, L // TI, L // TJ),
        in_specs=[
            pl.BlockSpec((1, TI, 3), lambda b, i, j: (b, i, 0)),        # coords_i
            pl.BlockSpec((1, TI, 3, 3), lambda b, i, j: (b, i, 0, 0)),  # rots_i
            pl.BlockSpec((1, 3, TJ), lambda b, i, j: (b, 0, j)),        # coords_j
            pl.BlockSpec((1, 1, TJ), lambda b, i, j: (b, 0, j)),        # mask add
            smem, smem, smem, smem,                                     # MLP params
        ],
        out_specs=pl.BlockSpec((1, H, TI, TJ), lambda b, i, j: (b, 0, i, j)),
        compiler_params=pltpu.CompilerParams(
            dimension_semantics=("parallel", "parallel", "parallel"),
            vmem_limit_bytes=_vmem_limit_bytes()),
    )(coords, rots, coords_j, mask_add,
      pov_params["w1"].astype(jnp.float32), pov_params["b1"].astype(jnp.float32),
      w2_eff, b2_eff)


# ---------------------------------------------------------------------------
# Kernel 2: LN1 + fused QKV projection -> q/k/v as lane-dense (B, L, D) bf16.
#   grid = (B, L // TM); 1/sqrt(d_head) folded into q at store time.
# ---------------------------------------------------------------------------
def _qkv_kernel(x_ref, ln_g_ref, ln_b_ref, wqkv_ref, bqkv_ref,
                q_ref, k_ref, v_ref, *, d_model, inv_sqrt_dk):
    D = d_model
    h = _layernorm(x_ref[0], ln_g_ref[...], ln_b_ref[...])
    qkv = jnp.dot(h.astype(CDT), wqkv_ref[...],
                  preferred_element_type=jnp.float32) + bqkv_ref[...]
    q_ref[0] = (qkv[:, :D] * inv_sqrt_dk).astype(q_ref.dtype)   # lane-dense stores
    k_ref[0] = qkv[:, D:2 * D].astype(k_ref.dtype)
    v_ref[0] = qkv[:, 2 * D:3 * D].astype(v_ref.dtype)


# ---------------------------------------------------------------------------
# Kernel 3: biased attention + head-partitioned Wo + residual + LN2 + FFN.
#   grid = (B, L // TQ); bias streamed in (H, TQ, L) bf16 tiles.
# ---------------------------------------------------------------------------
def _attn_ffn_kernel(x_ref, q_ref, k_ref, v_ref, bias_ref,
                     wo_ref, bo_ref, ln2g_ref, ln2b_ref,
                     wf1_ref, bf1_ref, wf2_ref, bf2_ref,
                     out_ref, *, n_heads, d_head):
    x = x_ref[0]                         # (TQ, D) f32
    q = q_ref[0]                         # (TQ, D) bf16  (pre-scaled by 1/sqrt(dh))
    k = k_ref[0]                         # (L, D)  bf16
    v = v_ref[0]                         # (L, D)  bf16

    attn = None
    for h in range(n_heads):
        lo = h * d_head
        qh = q[:, lo:lo + d_head]
        kh = k[:, lo:lo + d_head]
        vh = v[:, lo:lo + d_head]
        s = lax.dot_general(qh, kh, (((1,), (1,)), ((), ())),
                            preferred_element_type=jnp.float32)     # (TQ, L)
        s = s + bias_ref[0, h].astype(jnp.float32)
        m = jnp.max(s, axis=-1, keepdims=True)
        e = jnp.exp(s - m)
        p = e * pl.reciprocal(jnp.sum(e, axis=-1, keepdims=True), approx=True)
        ctx = jnp.dot(p.astype(CDT), vh, preferred_element_type=jnp.float32)
        # head-partitioned Wo absorbs the head re-pack (no scratch / repack stores)
        part = jnp.dot(ctx.astype(CDT), wo_ref[h],
                       preferred_element_type=jnp.float32)           # (TQ, D)
        attn = part if attn is None else attn + part

    y = x + attn + bo_ref[...]                                       # residual 1
    h2 = _layernorm(y, ln2g_ref[...], ln2b_ref[...])
    f = _gelu(jnp.dot(h2.astype(CDT), wf1_ref[...],
                      preferred_element_type=jnp.float32) + bf1_ref[...])
    f = jnp.dot(f.astype(CDT), wf2_ref[...],
                preferred_element_type=jnp.float32) + bf2_ref[...]
    out_ref[0] = y + f                                               # residual 2


def transformer_layer(x, bias, lp, n_heads, d_head):
    B, L, D = x.shape
    H, dh = n_heads, d_head
    F_dim = lp["wf1"].shape[1]
    TM = _row_tile(L)
    cparams = pltpu.CompilerParams(
        dimension_semantics=("parallel", "parallel"),
        vmem_limit_bytes=_vmem_limit_bytes())

    # ---- LN1 + fused QKV projection ---------------------------------------
    qkv_kernel = functools.partial(_qkv_kernel, d_model=D,
                                   inv_sqrt_dk=1.0 / math.sqrt(dh))
    ld_shape = jax.ShapeDtypeStruct((B, L, D), CDT)
    q, k, v = pl.pallas_call(
        qkv_kernel,
        out_shape=(ld_shape, ld_shape, ld_shape),
        grid=(B, L // TM),
        in_specs=[
            pl.BlockSpec((1, TM, D), lambda b, mi: (b, mi, 0)),
            _full((D,)), _full((D,)),
            _full((D, 3 * D)), _full((3 * D,)),
        ],
        out_specs=(pl.BlockSpec((1, TM, D), lambda b, mi: (b, mi, 0)),) * 3,
        compiler_params=cparams,
    )(x, lp["ln1g"], lp["ln1b"], lp["wqkv"], lp["bqkv"])

    # ---- attention + output proj + FFN ------------------------------------
    TQ = TM
    attn_kernel = functools.partial(_attn_ffn_kernel, n_heads=H, d_head=dh)
    flops = (4 * B * H * L * L * dh          # QK^T + PV
             + 2 * B * L * D * D             # Wo
             + 4 * B * L * D * F_dim)        # FFN
    transc = B * (H * L * L + L * F_dim)
    bytes_acc = (4 * 2 * B * L * D                       # x in / out f32
                 + 2 * B * H * L * L                     # bias bf16
                 + 2 * 3 * B * L * D                     # q/k/v bf16
                 + 2 * (H * dh * D + 2 * D * F_dim)      # weights bf16
                 + 4 * (4 * D + 2 * F_dim))
    out = pl.pallas_call(
        attn_kernel,
        out_shape=jax.ShapeDtypeStruct((B, L, D), jnp.float32),
        grid=(B, L // TQ),
        in_specs=[
            pl.BlockSpec((1, TQ, D), lambda b, qi: (b, qi, 0)),        # x (resid)
            pl.BlockSpec((1, TQ, D), lambda b, qi: (b, qi, 0)),        # q tile
            pl.BlockSpec((1, L, D), lambda b, qi: (b, 0, 0)),          # k
            pl.BlockSpec((1, L, D), lambda b, qi: (b, 0, 0)),          # v
            pl.BlockSpec((1, H, TQ, L), lambda b, qi: (b, 0, qi, 0)),  # bias tile
            _full((H, dh, D)), _full((D,)),                            # Wo_h, bo
            _full((D,)), _full((D,)),                                  # ln2
            _full((D, F_dim)), _full((F_dim,)),                        # Wf1, bf1
            _full((F_dim, D)), _full((D,)),                            # Wf2, bf2
        ],
        out_specs=pl.BlockSpec((1, TQ, D), lambda b, qi: (b, qi, 0)),
        compiler_params=cparams,
        cost_estimate=pl.CostEstimate(flops=int(flops),
                                      transcendentals=int(transc),
                                      bytes_accessed=int(bytes_acc)),
    )(x, q, k, v, bias,
      lp["wo_h"], lp["bo"], lp["ln2g"], lp["ln2b"],
      lp["wf1"], lp["bf1"], lp["wf2"], lp["bf2"])
    return out


# ---------------------------------------------------------------------------
# Full PeTriPOV forward
# ---------------------------------------------------------------------------
def petri_pov_forward(params, seqs, coords=None, rots=None,
                      attention_mask=None, segment_info=None):
    # embedding gather = glue (no clean Pallas win for a small-vocab gather)
    x = jnp.take(params["tok_emb"], seqs, axis=0)                 # (B, L, D)
    if segment_info is not None:
        x = x + jnp.take(params["seg_emb"], segment_info, axis=0)

    bias = pov_attention_bias(coords, rots, params["pov"], attention_mask)
    for lp in params["layers"]:
        x = transformer_layer(x, bias, lp, params["n_heads"], params["d_head"])
    return x


# ---------------------------------------------------------------------------
# Deterministic parameter init (synthetic weights, shapes per module __init__)
# ---------------------------------------------------------------------------
def init_params(key, vocab_size, d_model, n_heads, d_head, ff_dim, n_layers,
                pov_hidden):
    keys = jax.random.split(key, 8 + n_layers)

    def dense(k, fan_in, shape):
        return jax.random.normal(k, shape, jnp.float32) / math.sqrt(fan_in)

    params = {
        "n_heads": n_heads,
        "d_head": d_head,
        "tok_emb": 0.02 * jax.random.normal(keys[0], (vocab_size, d_model), jnp.float32),
        "seg_emb": 0.02 * jax.random.normal(keys[1], (3, d_model), jnp.float32),
        "pov": {
            "w1": dense(keys[2], 3, (3, pov_hidden)),
            "b1": jnp.zeros((pov_hidden,), jnp.float32),
            "w2": dense(keys[3], pov_hidden, (pov_hidden, n_heads)),
            "b2": jnp.zeros((n_heads,), jnp.float32),
            "head_w": jnp.ones((n_heads,), jnp.float32),  # 'learnable_weights_and_MLP'
        },
        "layers": [],
    }
    for i in range(n_layers):
        lk = jax.random.split(keys[8 + i], 6)
        wq = dense(lk[0], d_model, (d_model, d_model))
        wk = dense(lk[1], d_model, (d_model, d_model))
        wv = dense(lk[2], d_model, (d_model, d_model))
        wo = dense(lk[3], d_model, (d_model, d_model))
        lp = {
            "ln1g": jnp.ones((d_model,), jnp.float32),
            "ln1b": jnp.zeros((d_model,), jnp.float32),
            # large weights stored in bf16 (f32 accumulation at matmul time)
            "wqkv": jnp.concatenate([wq, wk, wv], axis=1).astype(CDT),   # (D, 3D)
            "bqkv": jnp.zeros((3 * d_model,), jnp.float32),
            "wo_h": wo.reshape(n_heads, d_head, d_model).astype(CDT),    # (H, dh, D)
            "bo": jnp.zeros((d_model,), jnp.float32),
            "ln2g": jnp.ones((d_model,), jnp.float32),
            "ln2b": jnp.zeros((d_model,), jnp.float32),
            "wf1": dense(lk[4], d_model, (d_model, ff_dim)).astype(CDT),
            "bf1": jnp.zeros((ff_dim,), jnp.float32),
            "wf2": dense(lk[5], ff_dim, (ff_dim, d_model)).astype(CDT),
            "bf2": jnp.zeros((d_model,), jnp.float32),
        }
        params["layers"].append(lp)
    return params


if __name__ == "__main__":
    # Small config consistent with PeTriPOV(vocab_size, seq_len, ...):
    vocab_size, seq_len = 20, 8
    n_layers, n_heads, query_dim = 2, 4, 8          # n_layers >= 2 per assert
    feed_forward_dim = 32
    d_model = n_heads * query_dim                   # 32
    B = 2

    key = jax.random.PRNGKey(0)
    k_param, k_seq, k_coord, k_rot = jax.random.split(key, 4)

    params = init_params(k_param, vocab_size, d_model, n_heads, query_dim,
                         feed_forward_dim, n_layers, pov_hidden=16)

    seqs = jax.random.randint(k_seq, (B, seq_len), 0, vocab_size)
    coords = jax.random.normal(k_coord, (B, seq_len, 3), jnp.float32)
    # random rotation matrices (point_dimensions = 1 -> one frame per residue)
    rots, _ = jnp.linalg.qr(jax.random.normal(k_rot, (B, seq_len, 3, 3), jnp.float32))
    attention_mask = jnp.ones((B, seq_len), jnp.float32)

    out = petri_pov_forward(params, seqs, coords=coords, rots=rots,
                            attention_mask=attention_mask)
    out = jax.block_until_ready(out)
    assert out.shape == (B, seq_len, d_model) and out.dtype == jnp.float32
    assert bool(jnp.all(jnp.isfinite(out)))
    print("KERNEL_OK")
</pallas_src>

<mosaic_0001>
module attributes {stable_mosaic.version = 11 : i64} {
  func.func @_pov_bias_kernel(%arg0: i32, %arg1: i32, %arg2: i32, %arg3: memref<1x8x3xf32, #tpu.memory_space<vmem>>, %arg4: memref<1x8x3x3xf32, #tpu.memory_space<vmem>>, %arg5: memref<1x3x8xf32, #tpu.memory_space<vmem>>, %arg6: memref<1x1x8xf32, #tpu.memory_space<vmem>>, %arg7: memref<3x16xf32, #tpu.memory_space<smem>>, %arg8: memref<16xf32, #tpu.memory_space<smem>>, %arg9: memref<16x4xf32, #tpu.memory_space<smem>>, %arg10: memref<4xf32, #tpu.memory_space<smem>>, %arg11: memref<1x4x8x8xbf16, #tpu.memory_space<vmem>>) attributes {dimension_semantics = [#tpu.dimension_semantics<parallel>, #tpu.dimension_semantics<parallel>, #tpu.dimension_semantics<parallel>], iteration_bounds = array<i64: 2, 1, 1>, scalar_prefetch = 0 : i64, scratch_operands = 0 : i64, tpu.core_type = #tpu.core_type<tc>, window_params = [{transform_indices = @transform_0, window_bounds = array<i64: 1, 8, 3>}, {transform_indices = @transform_1, window_bounds = array<i64: 1, 8, 3, 3>}, {transform_indices = @transform_2, window_bounds = array<i64: 1, 3, 8>}, {transform_indices = @transform_3, window_bounds = array<i64: 1, 1, 8>}, {transform_indices = @transform_4, window_bounds = array<i64: 3, 16>}, {transform_indices = @transform_5, window_bounds = array<i64: 16>}, {transform_indices = @transform_6, window_bounds = array<i64: 16, 4>}, {transform_indices = @transform_7, window_bounds = array<i64: 4>}, {transform_indices = @transform_8, window_bounds = array<i64: 1, 4, 8, 8>}]} {
    %c0 = arith.constant 0 : index
    %c0_0 = arith.constant 0 : index
    %c0_1 = arith.constant 0 : index
    %0 = vector.load %arg3[%c0, %c0_0, %c0_1] : memref<1x8x3xf32, #tpu.memory_space<vmem>>, vector<1x8x3xf32>
    %1 = vector.shape_cast %0 : vector<1x8x3xf32> to vector<8x3xf32>
    %c0_2 = arith.constant 0 : index
    %c0_3 = arith.constant 0 : index
    %c0_4 = arith.constant 0 : index
    %c0_5 = arith.constant 0 : index
    %2 = vector.load %arg4[%c0_2, %c0_3, %c0_4, %c0_5] : memref<1x8x3x3xf32, #tpu.memory_space<vmem>>, vector<1x8x3x3xf32>
    %3 = vector.shape_cast %2 : vector<1x8x3x3xf32> to vector<8x3x3xf32>
    %c0_6 = arith.constant 0 : index
    %c0_7 = arith.constant 0 : index
    %c0_8 = arith.constant 0 : index
    %4 = vector.load %arg5[%c0_6, %c0_7, %c0_8] : memref<1x3x8xf32, #tpu.memory_space<vmem>>, vector<1x3x8xf32>
    %5 = vector.shape_cast %4 : vector<1x3x8xf32> to vector<3x8xf32>
    %6 = vector.extract_strided_slice %5 {offsets = [0, 0], sizes = [1, 8], strides = [1, 1]} : vector<3x8xf32> to vector<1x8xf32>
    %7 = vector.extract_strided_slice %1 {offsets = [0, 0], sizes = [8, 1], strides = [1, 1]} : vector<8x3xf32> to vector<8x1xf32>
    %8 = vector.broadcast %6 : vector<1x8xf32> to vector<8x8xf32>
    %9 = vector.broadcast %7 : vector<8x1xf32> to vector<8x8xf32>
    %10 = arith.subf %8, %9 : vector<8x8xf32>
    %11 = vector.extract_strided_slice %5 {offsets = [1, 0], sizes = [1, 8], strides = [1, 1]} : vector<3x8xf32> to vector<1x8xf32>
    %12 = vector.extract_strided_slice %1 {offsets = [0, 1], sizes = [8, 1], strides = [1, 1]} : vector<8x3xf32> to vector<8x1xf32>
    %13 = vector.broadcast %11 : vector<1x8xf32> to vector<8x8xf32>
    %14 = vector.broadcast %12 : vector<8x1xf32> to vector<8x8xf32>
    %15 = arith.subf %13, %14 : vector<8x8xf32>
    %16 = vector.extract_strided_slice %5 {offsets = [2, 0], sizes = [1, 8], strides = [1, 1]} : vector<3x8xf32> to vector<1x8xf32>
    %17 = vector.extract_strided_slice %1 {offsets = [0, 2], sizes = [8, 1], strides = [1, 1]} : vector<8x3xf32> to vector<8x1xf32>
    %18 = vector.broadcast %16 : vector<1x8xf32> to vector<8x8xf32>
    %19 = vector.broadcast %17 : vector<8x1xf32> to vector<8x8xf32>
    %20 = arith.subf %18, %19 : vector<8x8xf32>
    %21 = vector.extract_strided_slice %3 {offsets = [0, 0, 0], sizes = [8, 1, 1], strides = [1, 1, 1]} : vector<8x3x3xf32> to vector<8x1x1xf32>
    %22 = vector.shape_cast %21 : vector<8x1x1xf32> to vector<8x1xf32>
    %23 = vector.broadcast %22 : vector<8x1xf32> to vector<8x8xf32>
    %24 = arith.mulf %23, %10 : vector<8x8xf32>
    %cst = arith.constant 0.000000e+00 : f32
    %25 = vector.broadcast %cst : f32 to vector<8x8xf32>
    %26 = arith.addf %25, %24 : vector<8x8xf32>
    %27 = vector.extract_strided_slice %3 {offsets = [0, 0, 1], sizes = [8, 1, 1], strides = [1, 1, 1]} : vector<8x3x3xf32> to vector<8x1x1xf32>
    %28 = vector.shape_cast %27 : vector<8x1x1xf32> to vector<8x1xf32>
    %29 = vector.broadcast %28 : vector<8x1xf32> to vector<8x8xf32>
    %30 = arith.mulf %29, %15 : vector<8x8xf32>
    %31 = arith.addf %26, %30 : vector<8x8xf32>
    %32 = vector.extract_strided_slice %3 {offsets = [0, 0, 2], sizes = [8, 1, 1], strides = [1, 1, 1]} : vector<8x3x3xf32> to vector<8x1x1xf32>
    %33 = vector.shape_cast %32 : vector<8x1x1xf32> to vector<8x1xf32>
    %34 = vector.broadcast %33 : vector<8x1xf32> to vector<8x8xf32>
    %35 = arith.mulf %34, %20 : vector<8x8xf32>
    %36 = arith.addf %31, %35 : vector<8x8xf32>
    %37 = vector.extract_strided_slice %3 {offsets = [0, 1, 0], sizes = [8, 1, 1], strides = [1, 1, 1]} : vector<8x3x3xf32> to vector<8x1x1xf32>
    %38 = vector.shape_cast %37 : vector<8x1x1xf32> to vector<8x1xf32>
    %39 = vector.broadcast %38 : vector<8x1xf32> to vector<8x8xf32>
    %40 = arith.mulf %39, %10 : vector<8x8xf32>
    %cst_9 = arith.constant 0.000000e+00 : f32
    %41 = vector.broadcast %cst_9 : f32 to vector<8x8xf32>
    %42 = arith.addf %41, %40 : vector<8x8xf32>
    %43 = vector.extract_strided_slice %3 {offsets = [0, 1, 1], sizes = [8, 1, 1], strides = [1, 1, 1]} : vector<8x3x3xf32> to vector<8x1x1xf32>
    %44 = vector.shape_cast %43 : vector<8x1x1xf32> to vector<8x1xf32>
    %45 = vector.broadcast %44 : vector<8x1xf32> to vector<8x8xf32>
    %46 = arith.mulf %45, %15 : vector<8x8xf32>
    %47 = arith.addf %42, %46 : vector<8x8xf32>
    %48 = vector.extract_strided_slice %3 {offsets = [0, 1, 2], sizes = [8, 1, 1], strides = [1, 1, 1]} : vector<8x3x3xf32> to vector<8x1x1xf32>
    %49 = vector.shape_cast %48 : vector<8x1x1xf32> to vector<8x1xf32>
    %50 = vector.broadcast %49 : vector<8x1xf32> to vector<8x8xf32>
    %51 = arith.mulf %50, %20 : vector<8x8xf32>
    %52 = arith.addf %47, %51 : vector<8x8xf32>
    %53 = vector.extract_strided_slice %3 {offsets = [0, 2, 0], sizes = [8, 1, 1], strides = [1, 1, 1]} : vector<8x3x3xf32> to vector<8x1x1xf32>
    %54 = vector.shape_cast %53 : vector<8x1x1xf32> to vector<8x1xf32>
    %55 = vector.broadcast %54 : vector<8x1xf32> to vector<8x8xf32>
    %56 = arith.mulf %55, %10 : vector<8x8xf32>
    %cst_10 = arith.constant 0.000000e+00 : f32
    %57 = vector.broadcast %cst_10 : f32 to vector<8x8xf32>
    %58 = arith.addf %57, %56 : vector<8x8xf32>
    %59 = vector.extract_strided_slice %3 {offsets = [0, 2, 1], sizes = [8, 1, 1], strides = [1, 1, 1]} : vector<8x3x3xf32> to vector<8x1x1xf32>
    %60 = vector.shape_cast %59 : vector<8x1x1xf32> to vector<8x1xf32>
    %61 = vector.broadcast %60 : vector<8x1xf32> to vector<8x8xf32>
    %62 = arith.mulf %61, %15 : vector<8x8xf32>
    %63 = arith.addf %58, %62 : vector<8x8xf32>
    %64 = vector.extract_strided_slice %3 {offsets = [0, 2, 2], sizes = [8, 1, 1], strides = [1, 1, 1]} : vector<8x3x3xf32> to vector<8x1x1xf32>
    %65 = vector.shape_cast %64 : vector<8x1x1xf32> to vector<8x1xf32>
    %66 = vector.broadcast %65 : vector<8x1xf32> to vector<8x8xf32>
    %67 = arith.mulf %66, %20 : vector<8x8xf32>
    %68 = arith.addf %63, %67 : vector<8x8xf32>
    %c0_11 = arith.constant 0 : index
    %c0_12 = arith.constant 0 : index
    %69 = memref.load %arg7[%c0_11, %c0_12] : memref<3x16xf32, #tpu.memory_space<smem>>
    %70 = vector.broadcast %69 : f32 to vector<8x8xf32>
    %71 = arith.mulf %36, %70 : vector<8x8xf32>
    %c1 = arith.constant 1 : index
    %c0_13 = arith.constant 0 : index
    %72 = memref.load %arg7[%c1, %c0_13] : memref<3x16xf32, #tpu.memory_space<smem>>
    %73 = vector.broadcast %72 : f32 to vector<8x8xf32>
    %74 = arith.mulf %52, %73 : vector<8x8xf32>
    %75 = arith.addf %71, %74 : vector<8x8xf32>
    %c2 = arith.constant 2 : index
    %c0_14 = arith.constant 0 : index
    %76 = memref.load %arg7[%c2, %c0_14] : memref<3x16xf32, #tpu.memory_space<smem>>
    %77 = vector.broadcast %76 : f32 to vector<8x8xf32>
    %78 = arith.mulf %68, %77 : vector<8x8xf32>
    %79 = arith.addf %75, %78 : vector<8x8xf32>
    %c0_15 = arith.constant 0 : index
    %80 = memref.load %arg8[%c0_15] : memref<16xf32, #tpu.memory_space<smem>>
    %81 = vector.broadcast %80 : f32 to vector<8x8xf32>
    %82 = arith.addf %79, %81 : vector<8x8xf32>
    %83 = arith.mulf %82, %82 : vector<8x8xf32>
    %84 = arith.mulf %82, %83 : vector<8x8xf32>
    %cst_16 = arith.constant 4.471500e-02 : f32
    %85 = vector.broadcast %cst_16 : f32 to vector<8x8xf32>
    %86 = arith.mulf %85, %84 : vector<8x8xf32>
    %87 = arith.addf %82, %86 : vector<8x8xf32>
    %cst_17 = arith.constant 0.797884583 : f32
    %88 = vector.broadcast %cst_17 : f32 to vector<8x8xf32>
    %89 = arith.mulf %88, %87 : vector<8x8xf32>
    %90 = math.tanh %89 : vector<8x8xf32>
    %cst_18 = arith.constant 1.000000e+00 : f32
    %91 = vector.broadcast %cst_18 : f32 to vector<8x8xf32>
    %92 = arith.addf %91, %90 : vector<8x8xf32>
    %cst_19 = arith.constant 5.000000e-01 : f32
    %93 = vector.broadcast %cst_19 : f32 to vector<8x8xf32>
    %94 = arith.mulf %93, %92 : vector<8x8xf32>
    %95 = arith.mulf %82, %94 : vector<8x8xf32>
    %c0_20 = arith.constant 0 : index
    %c0_21 = arith.constant 0 : index
    %96 = memref.load %arg9[%c0_20, %c0_21] : memref<16x4xf32, #tpu.memory_space<smem>>
    %97 = vector.broadcast %96 : f32 to vector<8x8xf32>
    %98 = arith.mulf %95, %97 : vector<8x8xf32>
    %c0_22 = arith.constant 0 : index
    %c1_23 = arith.constant 1 : index
    %99 = memref.load %arg9[%c0_22, %c1_23] : memref<16x4xf32, #tpu.memory_space<smem>>
    %100 = vector.broadcast %99 : f32 to vector<8x8xf32>
    %101 = arith.mulf %95, %100 : vector<8x8xf32>
    %c0_24 = arith.constant 0 : index
    %c2_25 = arith.constant 2 : index
    %102 = memref.load %arg9[%c0_24, %c2_25] : memref<16x4xf32, #tpu.memory_space<smem>>
    %103 = vector.broadcast %102 : f32 to vector<8x8xf32>
    %104 = arith.mulf %95, %103 : vector<8x8xf32>
    %c0_26 = arith.constant 0 : index
    %c3 = arith.constant 3 : index
    %105 = memref.load %arg9[%c0_26, %c3] : memref<16x4xf32, #tpu.memory_space<smem>>
    %106 = vector.broadcast %105 : f32 to vector<8x8xf32>
    %107 = arith.mulf %95, %106 : vector<8x8xf32>
    %c0_27 = arith.constant 0 : index
    %c1_28 = arith.constant 1 : index
    %108 = memref.load %arg7[%c0_27, %c1_28] : memref<3x16xf32, #tpu.memory_space<smem>>
    %109 = vector.broadcast %108 : f32 to vector<8x8xf32>
    %110 = arith.mulf %36, %109 : vector<8x8xf32>
    %c1_29 = arith.constant 1 : index
    %c1_30 = arith.constant 1 : index
    %111 = memref.load %arg7[%c1_29, %c1_30] : memref<3x16xf32, #tpu.memory_space<smem>>
    %112 = vector.broadcast %111 : f32 to vector<8x8xf32>
    %113 = arith.mulf %52, %112 : vector<8x8xf32>
    %114 = arith.addf %110, %113 : vector<8x8xf32>
    %c2_31 = arith.constant 2 : index
    %c1_32 = arith.constant 1 : index
    %115 = memref.load %arg7[%c2_31, %c1_32] : memref<3x16xf32, #tpu.memory_space<smem>>
    %116 = vector.broadcast %115 : f32 to vector<8x8xf32>
    %117 = arith.mulf %68, %116 : vector<8x8xf32>
    %118 = arith.addf %114, %117 : vector<8x8xf32>
    %c1_33 = arith.constant 1 : index
    %119 = memref.load %arg8[%c1_33] : memref<16xf32, #tpu.memory_space<smem>>
    %120 = vector.broadcast %119 : f32 to vector<8x8xf32>
    %121 = arith.addf %118, %120 : vector<8x8xf32>
    %122 = arith.mulf %121, %121 : vector<8x8xf32>
    %123 = arith.mulf %121, %122 : vector<8x8xf32>
    %cst_34 = arith.constant 4.471500e-02 : f32
    %124 = vector.broadcast %cst_34 : f32 to vector<8x8xf32>
    %125 = arith.mulf %124, %123 : vector<8x8xf32>
    %126 = arith.addf %121, %125 : vector<8x8xf32>
    %cst_35 = arith.constant 0.797884583 : f32
    %127 = vector.broadcast %cst_35 : f32 to vector<8x8xf32>
    %128 = arith.mulf %127, %126 : vector<8x8xf32>
    %129 = math.tanh %128 : vector<8x8xf32>
    %cst_36 = arith.constant 1.000000e+00 : f32
    %130 = vector.broadcast %cst_36 : f32 to vector<8x8xf32>
    %131 = arith.addf %130, %129 : vector<8x8xf32>
    %cst_37 = arith.constant 5.000000e-01 : f32
    %132 = vector.broadcast %cst_37 : f32 to vector<8x8xf32>
    %133 = arith.mulf %132, %131 : vector<8x8xf32>
    %134 = arith.mulf %121, %133 : vector<8x8xf32>
    %c1_38 = arith.constant 1 : index
    %c0_39 = arith.constant 0 : index
    %135 = memref.load %arg9[%c1_38, %c0_39] : memref<16x4xf32, #tpu.memory_space<smem>>
    %136 = vector.broadcast %135 : f32 to vector<8x8xf32>
    %137 = arith.mulf %134, %136 : vector<8x8xf32>
    %138 = arith.addf %98, %137 : vector<8x8xf32>
    %c1_40 = arith.constant 1 : index
    %c1_41 = arith.constant 1 : index
    %139 = memref.load %arg9[%c1_40, %c1_41] : memref<16x4xf32, #tpu.memory_space<smem>>
    %140 = vector.broadcast %139 : f32 to vector<8x8xf32>
    %141 = arith.mulf %134, %140 : vector<8x8xf32>
    %142 = arith.addf %101, %141 : vector<8x8xf32>
    %c1_42 = arith.constant 1 : index
    %c2_43 = arith.constant 2 : index
    %143 = memref.load %arg9[%c1_42, %c2_43] : memref<16x4xf32, #tpu.memory_space<smem>>
    %144 = vector.broadcast %143 : f32 to vector<8x8xf32>
    %145 = arith.mulf %134, %144 : vector<8x8xf32>
    %146 = arith.addf %104, %145 : vector<8x8xf32>
    %c1_44 = arith.constant 1 : index
    %c3_45 = arith.constant 3 : index
    %147 = memref.load %arg9[%c1_44, %c3_45] : memref<16x4xf32, #tpu.memory_space<smem>>
    %148 = vector.broadcast %147 : f32 to vector<8x8xf32>
    %149 = arith.mulf %134, %148 : vector<8x8xf32>
    %150 = arith.addf %107, %149 : vector<8x8xf32>
    %c0_46 = arith.constant 0 : index
    %c2_47 = arith.constant 2 : index
    %151 = memref.load %arg7[%c0_46, %c2_47] : memref<3x16xf32, #tpu.memory_space<smem>>
    %152 = vector.broadcast %151 : f32 to vector<8x8xf32>
    %153 = arith.mulf %36, %152 : vector<8x8xf32>
    %c1_48 = arith.constant 1 : index
    %c2_49 = arith.constant 2 : index
    %154 = memref.load %arg7[%c1_48, %c2_49] : memref<3x16xf32, #tpu.memory_space<smem>>
    %155 = vector.broadcast %154 : f32 to vector<8x8xf32>
    %156 = arith.mulf %52, %155 : vector<8x8xf32>
    %157 = arith.addf %153, %156 : vector<8x8xf32>
    %c2_50 = arith.constant 2 : index
    %c2_51 = arith.constant 2 : index
    %158 = memref.load %arg7[%c2_50, %c2_51] : memref<3x16xf32, #tpu.memory_space<smem>>
    %159 = vector.broadcast %158 : f32 to vector<8x8xf32>
    %160 = arith.mulf %68, %159 : vector<8x8xf32>
    %161 = arith.addf %157, %160 : vector<8x8xf32>
    %c2_52 = arith.constant 2 : index
    %162 = memref.load %arg8[%c2_52] : memref<16xf32, #tpu.memory_space<smem>>
    %163 = vector.broadcast %162 : f32 to vector<8x8xf32>
    %164 = arith.addf %161, %163 : vector<8x8xf32>
    %165 = arith.mulf %164, %164 : vector<8x8xf32>
    %166 = arith.mulf %164, %165 : vector<8x8xf32>
    %cst_53 = arith.constant 4.471500e-02 : f32
    %167 = vector.broadcast %cst_53 : f32 to vector<8x8xf32>
    %168 = arith.mulf %167, %166 : vector<8x8xf32>
    %169 = arith.addf %164, %168 : vector<8x8xf32>
    %cst_54 = arith.constant 0.797884583 : f32
    %170 = vector.broadcast %cst_54 : f32 to vector<8x8xf32>
    %171 = arith.mulf %170, %169 : vector<8x8xf32>
    %172 = math.tanh %171 : vector<8x8xf32>
    %cst_55 = arith.constant 1.000000e+00 : f32
    %173 = vector.broadcast %cst_55 : f32 to vector<8x8xf32>
    %174 = arith.addf %173, %172 : vector<8x8xf32>
    %cst_56 = arith.constant 5.000000e-01 : f32
    %175 = vector.broadcast %cst_56 : f32 to vector<8x8xf32>
    %176 = arith.mulf %175, %174 : vector<8x8xf32>
    %177 = arith.mulf %164, %176 : vector<8x8xf32>
    %c2_57 = arith.constant 2 : index
    %c0_58 = arith.constant 0 : index
    %178 = memref.load %arg9[%c2_57, %c0_58] : memref<16x4xf32, #tpu.memory_space<smem>>
    %179 = vector.broadcast %178 : f32 to vector<8x8xf32>
    %180 = arith.mulf %177, %179 : vector<8x8xf32>
    %181 = arith.addf %138, %180 : vector<8x8xf32>
    %c2_59 = arith.constant 2 : index
    %c1_60 = arith.constant 1 : index
    %182 = memref.load %arg9[%c2_59, %c1_60] : memref<16x4xf32, #tpu.memory_space<smem>>
    %183 = vector.broadcast %182 : f32 to vector<8x8xf32>
    %184 = arith.mulf %177, %183 : vector<8x8xf32>
    %185 = arith.addf %142, %184 : vector<8x8xf32>
    %c2_61 = arith.constant 2 : index
    %c2_62 = arith.constant 2 : index
    %186 = memref.load %arg9[%c2_61, %c2_62] : memref<16x4xf32, #tpu.memory_space<smem>>
    %187 = vector.broadcast %186 : f32 to vector<8x8xf32>
    %188 = arith.mulf %177, %187 : vector<8x8xf32>
    %189 = arith.addf %146, %188 : vector<8x8xf32>
    %c2_63 = arith.constant 2 : index
    %c3_64 = arith.constant 3 : index
    %190 = memref.load %arg9[%c2_63, %c3_64] : memref<16x4xf32, #tpu.memory_space<smem>>
    %191 = vector.broadcast %190 : f32 to vector<8x8xf32>
    %192 = arith.mulf %177, %191 : vector<8x8xf32>
    %193 = arith.addf %150, %192 : vector<8x8xf32>
    %c0_65 = arith.constant 0 : index
    %c3_66 = arith.constant 3 : index
    %194 = memref.load %arg7[%c0_65, %c3_66] : memref<3x16xf32, #tpu.memory_space<smem>>
    %195 = vector.broadcast %194 : f32 to vector<8x8xf32>
    %196 = arith.mulf %36, %195 : vector<8x8xf32>
    %c1_67 = arith.constant 1 : index
    %c3_68 = arith.constant 3 : index
    %197 = memref.load %arg7[%c1_67, %c3_68] : memref<3x16xf32, #tpu.memory_space<smem>>
    %198 = vector.broadcast %197 : f32 to vector<8x8xf32>
    %199 = arith.mulf %52, %198 : vector<8x8xf32>
    %200 = arith.addf %196, %199 : vector<8x8xf32>
    %c2_69 = arith.constant 2 : index
    %c3_70 = arith.constant 3 : index
    %201 = memref.load %arg7[%c2_69, %c3_70] : memref<3x16xf32, #tpu.memory_space<smem>>
    %202 = vector.broadcast %201 : f32 to vector<8x8xf32>
    %203 = arith.mulf %68, %202 : vector<8x8xf32>
    %204 = arith.addf %200, %203 : vector<8x8xf32>
    %c3_71 = arith.constant 3 : index
    %205 = memref.load %arg8[%c3_71] : memref<16xf32, #tpu.memory_space<smem>>
    %206 = vector.broadcast %205 : f32 to vector<8x8xf32>
    %207 = arith.addf %204, %206 : vector<8x8xf32>
    %208 = arith.mulf %207, %207 : vector<8x8xf32>
    %209 = arith.mulf %207, %208 : vector<8x8xf32>
    %cst_72 = arith.constant 4.471500e-02 : f32
    %210 = vector.broadcast %cst_72 : f32 to vector<8x8xf32>
    %211 = arith.mulf %210, %209 : vector<8x8xf32>
    %212 = arith.addf %207, %211 : vector<8x8xf32>
    %cst_73 = arith.constant 0.797884583 : f32
    %213 = vector.broadcast %cst_73 : f32 to vector<8x8xf32>
    %214 = arith.mulf %213, %212 : vector<8x8xf32>
    %215 = math.tanh %214 : vector<8x8xf32>
    %cst_74 = arith.constant 1.000000e+00 : f32
    %216 = vector.broadcast %cst_74 : f32 to vector<8x8xf32>
    %217 = arith.addf %216, %215 : vector<8x8xf32>
    %cst_75 = arith.constant 5.000000e-01 : f32
    %218 = vector.broadcast %cst_75 : f32 to vector<8x8xf32>
    %219 = arith.mulf %218, %217 : vector<8x8xf32>
    %220 = arith.mulf %207, %219 : vector<8x8xf32>
    %c3_76 = arith.constant 3 : index
    %c0_77 = arith.constant 0 : index
    %221 = memref.load %arg9[%c3_76, %c0_77] : memref<16x4xf32, #tpu.memory_space<smem>>
    %222 = vector.broadcast %221 : f32 to vector<8x8xf32>
    %223 = arith.mulf %220, %222 : vector<8x8xf32>
    %224 = arith.addf %181, %223 : vector<8x8xf32>
    %c3_78 = arith.constant 3 : index
    %c1_79 = arith.constant 1 : index
    %225 = memref.load %arg9[%c3_78, %c1_79] : memref<16x4xf32, #tpu.memory_space<smem>>
    %226 = vector.broadcast %225 : f32 to vector<8x8xf32>
    %227 = arith.mulf %220, %226 : vector<8x8xf32>
    %228 = arith.addf %185, %227 : vector<8x8xf32>
    %c3_80 = arith.constant 3 : index
    %c2_81 = arith.constant 2 : index
    %229 = memref.load %arg9[%c3_80, %c2_81] : memref<16x4xf32, #tpu.memory_space<smem>>
    %230 = vector.broadcast %229 : f32 to vector<8x8xf32>
    %231 = arith.mulf %220, %230 : vector<8x8xf32>
    %232 = arith.addf %189, %231 : vector<8x8xf32>
    %c3_82 = arith.constant 3 : index
    %c3_83 = arith.constant 3 : index
    %233 = memref.load %arg9[%c3_82, %c3_83] : memref<16x4xf32, #tpu.memory_space<smem>>
    %234 = vector.broadcast %233 : f32 to vector<8x8xf32>
    %235 = arith.mulf %220, %234 : vector<8x8xf32>
    %236 = arith.addf %193, %235 : vector<8x8xf32>
    %c0_84 = arith.constant 0 : index
    %c4 = arith.constant 4 : index
    %237 = memref.load %arg7[%c0_84, %c4] : memref<3x16xf32, #tpu.memory_space<smem>>
    %238 = vector.broadcast %237 : f32 to vector<8x8xf32>
    %239 = arith.mulf %36, %238 : vector<8x8xf32>
    %c1_85 = arith.constant 1 : index
    %c4_86 = arith.constant 4 : index
    %240 = memref.load %arg7[%c1_85, %c4_86] : memref<3x16xf32, #tpu.memory_space<smem>>
    %241 = vector.broadcast %240 : f32 to vector<8x8xf32>
    %242 = arith.mulf %52, %241 : vector<8x8xf32>
    %243 = arith.addf %239, %242 : vector<8x8xf32>
    %c2_87 = arith.constant 2 : index
    %c4_88 = arith.constant 4 : index
    %244 = memref.load %arg7[%c2_87, %c4_88] : memref<3x16xf32, #tpu.memory_space<smem>>
    %245 = vector.broadcast %244 : f32 to vector<8x8xf32>
    %246 = arith.mulf %68, %245 : vector<8x8xf32>
    %247 = arith.addf %243, %246 : vector<8x8xf32>
    %c4_89 = arith.constant 4 : index
    %248 = memref.load %arg8[%c4_89] : memref<16xf32, #tpu.memory_space<smem>>
    %249 = vector.broadcast %248 : f32 to vector<8x8xf32>
    %250 = arith.addf %247, %249 : vector<8x8xf32>
    %251 = arith.mulf %250, %250 : vector<8x8xf32>
    %252 = arith.mulf %250, %251 : vector<8x8xf32>
    %cst_90 = arith.constant 4.471500e-02 : f32
    %253 = vector.broadcast %cst_90 : f32 to vector<8x8xf32>
    %254 = arith.mulf %253, %252 : vector<8x8xf32>
    %255 = arith.addf %250, %254 : vector<8x8xf32>
    %cst_91 = arith.constant 0.797884583 : f32
    %256 = vector.broadcast %cst_91 : f32 to vector<8x8xf32>
    %257 = arith.mulf %256, %255 : vector<8x8xf32>
    %258 = math.tanh %257 : vector<8x8xf32>
    %cst_92 = arith.constant 1.000000e+00 : f32
    %259 = vector.broadcast %cst_92 : f32 to vector<8x8xf32>
    %260 = arith.addf %259, %258 : vector<8x8xf32>
    %cst_93 = arith.constant 5.000000e-01 : f32
    %261 = vector.broadcast %cst_93 : f32 to vector<8x8xf32>
    %262 = arith.mulf %261, %260 : vector<8x8xf32>
    %263 = arith.mulf %250, %262 : vector<8x8xf32>
    %c4_94 = arith.constant 4 : index
    %c0_95 = arith.constant 0 : index
    %264 = memref.load %arg9[%c4_94, %c0_95] : memref<16x4xf32, #tpu.memory_space<smem>>
    %265 = vector.broadcast %264 : f32 to vector<8x8xf32>
    %266 = arith.mulf %263, %265 : vector<8x8xf32>
    %267 = arith.addf %224, %266 : vector<8x8xf32>
    %c4_96 = arith.constant 4 : index
    %c1_97 = arith.constant 1 : index
    %268 = memref.load %arg9[%c4_96, %c1_97] : memref<16x4xf32, #tpu.memory_space<smem>>
    %269 = vector.broadcast %268 : f32 to vector<8x8xf32>
    %270 = arith.mulf %263, %269 : vector<8x8xf32>
    %271 = arith.addf %228, %270 : vector<8x8xf32>
    %c4_98 = arith.constant 4 : index
    %c2_99 = arith.constant 2 : index
    %272 = memref.load %arg9[%c4_98, %c2_99] : memref<16x4xf32, #tpu.memory_space<smem>>
    %273 = vector.broadcast %272 : f32 to vector<8x8xf32>
    %274 = arith.mulf %263, %273 : vector<8x8xf32>
    %275 = arith.addf %232, %274 : vector<8x8xf32>
    %c4_100 = arith.constant 4 : index
    %c3_101 = arith.constant 3 : index
    %276 = memref.load %arg9[%c4_100, %c3_101] : memref<16x4xf32, #tpu.memory_space<smem>>
    %277 = vector.broadcast %276 : f32 to vector<8x8xf32>
    %278 = arith.mulf %263, %277 : vector<8x8xf32>
    %279 = arith.addf %236, %278 : vector<8x8xf32>
    %c0_102 = arith.constant 0 : index
    %c5 = arith.constant 5 : index
    %280 = memref.load %arg7[%c0_102, %c5] : memref<3x16xf32, #tpu.memory_space<smem>>
    %281 = vector.broadcast %280 : f32 to vector<8x8xf32>
    %282 = arith.mulf %36, %281 : vector<8x8xf32>
    %c1_103 = arith.constant 1 : index
    %c5_104 = arith.constant 5 : index
    %283 = memref.load %arg7[%c1_103, %c5_104] : memref<3x16xf32, #tpu.memory_space<smem>>
    %284 = vector.broadcast %283 : f32 to vector<8x8xf32>
    %285 = arith.mulf %52, %284 : vector<8x8xf32>
    %286 = arith.addf %282, %285 : vector<8x8xf32>
    %c2_105 = arith.constant 2 : index
    %c5_106 = arith.constant 5 : index
    %287 = memref.load %arg7[%c2_105, %c5_106] : memref<3x16xf32, #tpu.memory_space<smem>>
    %288 = vector.broadcast %287 : f32 to vector<8x8xf32>
    %289 = arith.mulf %68, %288 : vector<8x8xf32>
    %290 = arith.addf %286, %289 : vector<8x8xf32>
    %c5_107 = arith.constant 5 : index
    %291 = memref.load %arg8[%c5_107] : memref<16xf32, #tpu.memory_space<smem>>
    %292 = vector.broadcast %291 : f32 to vector<8x8xf32>
    %293 = arith.addf %290, %292 : vector<8x8xf32>
    %294 = arith.mulf %293, %293 : vector<8x8xf32>
    %295 = arith.mulf %293, %294 : vector<8x8xf32>
    %cst_108 = arith.constant 4.471500e-02 : f32
    %296 = vector.broadcast %cst_108 : f32 to vector<8x8xf32>
    %297 = arith.mulf %296, %295 : vector<8x8xf32>
    %298 = arith.addf %293, %297 : vector<8x8xf32>
    %cst_109 = arith.constant 0.797884583 : f32
    %299 = vector.broadcast %cst_109 : f32 to vector<8x8xf32>
    %300 = arith.mulf %299, %298 : vector<8x8xf32>
    %301 = math.tanh %300 : vector<8x8xf32>
    %cst_110 = arith.constant 1.000000e+00 : f32
    %302 = vector.broadcast %cst_110 : f32 to vector<8x8xf32>
    %303 = arith.addf %302, %301 : vector<8x8xf32>
    %cst_111 = arith.constant 5.000000e-01 : f32
    %304 = vector.broadcast %cst_111 : f32 to vector<8x8xf32>
    %305 = arith.mulf %304, %303 : vector<8x8xf32>
    %306 = arith.mulf %293, %305 : vector<8x8xf32>
    %c5_112 = arith.constant 5 : index
    %c0_113 = arith.constant 0 : index
    %307 = memref.load %arg9[%c5_112, %c0_113] : memref<16x4xf32, #tpu.memory_space<smem>>
    %308 = vector.broadcast %307 : f32 to vector<8x8xf32>
    %309 = arith.mulf %306, %308 : vector<8x8xf32>
    %310 = arith.addf %267, %309 : vector<8x8xf32>
    %c5_114 = arith.constant 5 : index
    %c1_115 = arith.constant 1 : index
    %311 = memref.load %arg9[%c5_114, %c1_115] : memref<16x4xf32, #tpu.memory_space<smem>>
    %312 = vector.broadcast %311 : f32 to vector<8x8xf32>
    %313 = arith.mulf %306, %312 : vector<8x8xf32>
    %314 = arith.addf %271, %313 : vector<8x8xf32>
    %c5_116 = arith.constant 5 : index
    %c2_117 = arith.constant 2 : index
    %315 = memref.load %arg9[%c5_116, %c2_117] : memref<16x4xf32, #tpu.memory_space<smem>>
    %316 = vector.broadcast %315 : f32 to vector<8x8xf32>
    %317 = arith.mulf %306, %316 : vector<8x8xf32>
    %318 = arith.addf %275, %317 : vector<8x8xf32>
    %c5_118 = arith.constant 5 : index
    %c3_119 = arith.constant 3 : index
    %319 = memref.load %arg9[%c5_118, %c3_119] : memref<16x4xf32, #tpu.memory_space<smem>>
    %320 = vector.broadcast %319 : f32 to vector<8x8xf32>
    %321 = arith.mulf %306, %320 : vector<8x8xf32>
    %322 = arith.addf %279, %321 : vector<8x8xf32>
    %c0_120 = arith.constant 0 : index
    %c6 = arith.constant 6 : index
    %323 = memref.load %arg7[%c0_120, %c6] : memref<3x16xf32, #tpu.memory_space<smem>>
    %324 = vector.broadcast %323 : f32 to vector<8x8xf32>
    %325 = arith.mulf %36, %324 : vector<8x8xf32>
    %c1_121 = arith.constant 1 : index
    %c6_122 = arith.constant 6 : index
    %326 = memref.load %arg7[%c1_121, %c6_122] : memref<3x16xf32, #tpu.memory_space<smem>>
    %327 = vector.broadcast %326 : f32 to vector<8x8xf32>
    %328 = arith.mulf %52, %327 : vector<8x8xf32>
    %329 = arith.addf %325, %328 : vector<8x8xf32>
    %c2_123 = arith.constant 2 : index
    %c6_124 = arith.constant 6 : index
    %330 = memref.load %arg7[%c2_123, %c6_124] : memref<3x16xf32, #tpu.memory_space<smem>>
    %331 = vector.broadcast %330 : f32 to vector<8x8xf32>
    %332 = arith.mulf %68, %331 : vector<8x8xf32>
    %333 = arith.addf %329, %332 : vector<8x8xf32>
    %c6_125 = arith.constant 6 : index
    %334 = memref.load %arg8[%c6_125] : memref<16xf32, #tpu.memory_space<smem>>
    %335 = vector.broadcast %334 : f32 to vector<8x8xf32>
    %336 = arith.addf %333, %335 : vector<8x8xf32>
    %337 = arith.mulf %336, %336 : vector<8x8xf32>
    %338 = arith.mulf %336, %337 : vector<8x8xf32>
    %cst_126 = arith.constant 4.471500e-02 : f32
    %339 = vector.broadcast %cst_126 : f32 to vector<8x8xf32>
    %340 = arith.mulf %339, %338 : vector<8x8xf32>
    %341 = arith.addf %336, %340 : vector<8x8xf32>
    %cst_127 = arith.constant 0.797884583 : f32
    %342 = vector.broadcast %cst_127 : f32 to vector<8x8xf32>
    %343 = arith.mulf %342, %341 : vector<8x8xf32>
    %344 = math.tanh %343 : vector<8x8xf32>
    %cst_128 = arith.constant 1.000000e+00 : f32
    %345 = vector.broadcast %cst_128 : f32 to vector<8x8xf32>
    %346 = arith.addf %345, %344 : vector<8x8xf32>
    %cst_129 = arith.constant 5.000000e-01 : f32
    %347 = vector.broadcast %cst_129 : f32 to vector<8x8xf32>
    %348 = arith.mulf %347, %346 : vector<8x8xf32>
    %349 = arith.mulf %336, %348 : vector<8x8xf32>
    %c6_130 = arith.constant 6 : index
    %c0_131 = arith.constant 0 : index
    %350 = memref.load %arg9[%c6_130, %c0_131] : memref<16x4xf32, #tpu.memory_space<smem>>
    %351 = vector.broadcast %350 : f32 to vector<8x8xf32>
    %352 = arith.mulf %349, %351 : vector<8x8xf32>
    %353 = arith.addf %310, %352 : vector<8x8xf32>
    %c6_132 = arith.constant 6 : index
    %c1_133 = arith.constant 1 : index
    %354 = memref.load %arg9[%c6_132, %c1_133] : memref<16x4xf32, #tpu.memory_space<smem>>
    %355 = vector.broadcast %354 : f32 to vector<8x8xf32>
    %356 = arith.mulf %349, %355 : vector<8x8xf32>
    %357 = arith.addf %314, %356 : vector<8x8xf32>
    %c6_134 = arith.constant 6 : index
    %c2_135 = arith.constant 2 : index
    %358 = memref.load %arg9[%c6_134, %c2_135] : memref<16x4xf32, #tpu.memory_space<smem>>
    %359 = vector.broadcast %358 : f32 to vector<8x8xf32>
    %360 = arith.mulf %349, %359 : vector<8x8xf32>
    %361 = arith.addf %318, %360 : vector<8x8xf32>
    %c6_136 = arith.constant 6 : index
    %c3_137 = arith.constant 3 : index
    %362 = memref.load %arg9[%c6_136, %c3_137] : memref<16x4xf32, #tpu.memory_space<smem>>
    %363 = vector.broadcast %362 : f32 to vector<8x8xf32>
    %364 = arith.mulf %349, %363 : vector<8x8xf32>
    %365 = arith.addf %322, %364 : vector<8x8xf32>
    %c0_138 = arith.constant 0 : index
    %c7 = arith.constant 7 : index
    %366 = memref.load %arg7[%c0_138, %c7] : memref<3x16xf32, #tpu.memory_space<smem>>
    %367 = vector.broadcast %366 : f32 to vector<8x8xf32>
    %368 = arith.mulf %36, %367 : vector<8x8xf32>
    %c1_139 = arith.constant 1 : index
    %c7_140 = arith.constant 7 : index
    %369 = memref.load %arg7[%c1_139, %c7_140] : memref<3x16xf32, #tpu.memory_space<smem>>
    %370 = vector.broadcast %369 : f32 to vector<8x8xf32>
    %371 = arith.mulf %52, %370 : vector<8x8xf32>
    %372 = arith.addf %368, %371 : vector<8x8xf32>
    %c2_141 = arith.constant 2 : index
    %c7_142 = arith.constant 7 : index
    %373 = memref.load %arg7[%c2_141, %c7_142] : memref<3x16xf32, #tpu.memory_space<smem>>
    %374 = vector.broadcast %373 : f32 to vector<8x8xf32>
    %375 = arith.mulf %68, %374 : vector<8x8xf32>
    %376 = arith.addf %372, %375 : vector<8x8xf32>
    %c7_143 = arith.constant 7 : index
    %377 = memref.load %arg8[%c7_143] : memref<16xf32, #tpu.memory_space<smem>>
    %378 = vector.broadcast %377 : f32 to vector<8x8xf32>
    %379 = arith.addf %376, %378 : vector<8x8xf32>
    %380 = arith.mulf %379, %379 : vector<8x8xf32>
    %381 = arith.mulf %379, %380 : vector<8x8xf32>
    %cst_144 = arith.constant 4.471500e-02 : f32
    %382 = vector.broadcast %cst_144 : f32 to vector<8x8xf32>
    %383 = arith.mulf %382, %381 : vector<8x8xf32>
    %384 = arith.addf %379, %383 : vector<8x8xf32>
    %cst_145 = arith.constant 0.797884583 : f32
    %385 = vector.broadcast %cst_145 : f32 to vector<8x8xf32>
    %386 = arith.mulf %385, %384 : vector<8x8xf32>
    %387 = math.tanh %386 : vector<8x8xf32>
    %cst_146 = arith.constant 1.000000e+00 : f32
    %388 = vector.broadcast %cst_146 : f32 to vector<8x8xf32>
    %389 = arith.addf %388, %387 : vector<8x8xf32>
    %cst_147 = arith.constant 5.000000e-01 : f32
    %390 = vector.broadcast %cst_147 : f32 to vector<8x8xf32>
    %391 = arith.mulf %390, %389 : vector<8x8xf32>
    %392 = arith.mulf %379, %391 : vector<8x8xf32>
    %c7_148 = arith.constant 7 : index
    %c0_149 = arith.constant 0 : index
    %393 = memref.load %arg9[%c7_148, %c0_149] : memref<16x4xf32, #tpu.memory_space<smem>>
    %394 = vector.broadcast %393 : f32 to vector<8x8xf32>
    %395 = arith.mulf %392, %394 : vector<8x8xf32>
    %396 = arith.addf %353, %395 : vector<8x8xf32>
    %c7_150 = arith.constant 7 : index
    %c1_151 = arith.constant 1 : index
    %397 = memref.load %arg9[%c7_150, %c1_151] : memref<16x4xf32, #tpu.memory_space<smem>>
    %398 = vector.broadcast %397 : f32 to vector<8x8xf32>
    %399 = arith.mulf %392, %398 : vector<8x8xf32>
    %400 = arith.addf %357, %399 : vector<8x8xf32>
    %c7_152 = arith.constant 7 : index
    %c2_153 = arith.constant 2 : index
    %401 = memref.load %arg9[%c7_152, %c2_153] : memref<16x4xf32, #tpu.memory_space<smem>>
    %402 = vector.broadcast %401 : f32 to vector<8x8xf32>
    %403 = arith.mulf %392, %402 : vector<8x8xf32>
    %404 = arith.addf %361, %403 : vector<8x8xf32>
    %c7_154 = arith.constant 7 : index
    %c3_155 = arith.constant 3 : index
    %405 = memref.load %arg9[%c7_154, %c3_155] : memref<16x4xf32, #tpu.memory_space<smem>>
    %406 = vector.broadcast %405 : f32 to vector<8x8xf32>
    %407 = arith.mulf %392, %406 : vector<8x8xf32>
    %408 = arith.addf %365, %407 : vector<8x8xf32>
    %c0_156 = arith.constant 0 : index
    %c8 = arith.constant 8 : index
    %409 = memref.load %arg7[%c0_156, %c8] : memref<3x16xf32, #tpu.memory_space<smem>>
    %410 = vector.broadcast %409 : f32 to vector<8x8xf32>
    %411 = arith.mulf %36, %410 : vector<8x8xf32>
    %c1_157 = arith.constant 1 : index
    %c8_158 = arith.constant 8 : index
    %412 = memref.load %arg7[%c1_157, %c8_158] : memref<3x16xf32, #tpu.memory_space<smem>>
    %413 = vector.broadcast %412 : f32 to vector<8x8xf32>
    %414 = arith.mulf %52, %413 : vector<8x8xf32>
    %415 = arith.addf %411, %414 : vector<8x8xf32>
    %c2_159 = arith.constant 2 : index
    %c8_160 = arith.constant 8 : index
    %416 = memref.load %arg7[%c2_159, %c8_160] : memref<3x16xf32, #tpu.memory_space<smem>>
    %417 = vector.broadcast %416 : f32 to vector<8x8xf32>
    %418 = arith.mulf %68, %417 : vector<8x8xf32>
    %419 = arith.addf %415, %418 : vector<8x8xf32>
    %c8_161 = arith.constant 8 : index
    %420 = memref.load %arg8[%c8_161] : memref<16xf32, #tpu.memory_space<smem>>
    %421 = vector.broadcast %420 : f32 to vector<8x8xf32>
    %422 = arith.addf %419, %421 : vector<8x8xf32>
    %423 = arith.mulf %422, %422 : vector<8x8xf32>
    %424 = arith.mulf %422, %423 : vector<8x8xf32>
    %cst_162 = arith.constant 4.471500e-02 : f32
    %425 = vector.broadcast %cst_162 : f32 to vector<8x8xf32>
    %426 = arith.mulf %425, %424 : vector<8x8xf32>
    %427 = arith.addf %422, %426 : vector<8x8xf32>
    %cst_163 = arith.constant 0.797884583 : f32
    %428 = vector.broadcast %cst_163 : f32 to vector<8x8xf32>
    %429 = arith.mulf %428, %427 : vector<8x8xf32>
    %430 = math.tanh %429 : vector<8x8xf32>
    %cst_164 = arith.constant 1.000000e+00 : f32
    %431 = vector.broadcast %cst_164 : f32 to vector<8x8xf32>
    %432 = arith.addf %431, %430 : vector<8x8xf32>
    %cst_165 = arith.constant 5.000000e-01 : f32
    %433 = vector.broadcast %cst_165 : f32 to vector<8x8xf32>
    %434 = arith.mulf %433, %432 : vector<8x8xf32>
    %435 = arith.mulf %422, %434 : vector<8x8xf32>
    %c8_166 = arith.constant 8 : index
    %c0_167 = arith.constant 0 : index
    %436 = memref.load %arg9[%c8_166, %c0_167] : memref<16x4xf32, #tpu.memory_space<smem>>
    %437 = vector.broadcast %436 : f32 to vector<8x8xf32>
    %438 = arith.mulf %435, %437 : vector<8x8xf32>
    %439 = arith.addf %396, %438 : vector<8x8xf32>
    %c8_168 = arith.constant 8 : index
    %c1_169 = arith.constant 1 : index
    %440 = memref.load %arg9[%c8_168, %c1_169] : memref<16x4xf32, #tpu.memory_space<smem>>
    %441 = vector.broadcast %440 : f32 to vector<8x8xf32>
    %442 = arith.mulf %435, %441 : vector<8x8xf32>
    %443 = arith.addf %400, %442 : vector<8x8xf32>
    %c8_170 = arith.constant 8 : index
    %c2_171 = arith.constant 2 : index
    %444 = memref.load %arg9[%c8_170, %c2_171] : memref<16x4xf32, #tpu.memory_space<smem>>
    %445 = vector.broadcast %444 : f32 to vector<8x8xf32>
    %446 = arith.mulf %435, %445 : vector<8x8xf32>
    %447 = arith.addf %404, %446 : vector<8x8xf32>
    %c8_172 = arith.constant 8 : index
    %c3_173 = arith.constant 3 : index
    %448 = memref.load %arg9[%c8_172, %c3_173] : memref<16x4xf32, #tpu.memory_space<smem>>
    %449 = vector.broadcast %448 : f32 to vector<8x8xf32>
    %450 = arith.mulf %435, %449 : vector<8x8xf32>
    %451 = arith.addf %408, %450 : vector<8x8xf32>
    %c0_174 = arith.constant 0 : index
    %c9 = arith.constant 9 : index
    %452 = memref.load %arg7[%c0_174, %c9] : memref<3x16xf32, #tpu.memory_space<smem>>
    %453 = vector.broadcast %452 : f32 to vector<8x8xf32>
    %454 = arith.mulf %36, %453 : vector<8x8xf32>
    %c1_175 = arith.constant 1 : index
    %c9_176 = arith.constant 9 : index
    %455 = memref.load %arg7[%c1_175, %c9_176] : memref<3x16xf32, #tpu.memory_space<smem>>
    %456 = vector.broadcast %455 : f32 to vector<8x8xf32>
    %457 = arith.mulf %52, %456 : vector<8x8xf32>
    %458 = arith.addf %454, %457 : vector<8x8xf32>
    %c2_177 = arith.constant 2 : index
    %c9_178 = arith.constant 9 : index
    %459 = memref.load %arg7[%c2_177, %c9_178] : memref<3x16xf32, #tpu.memory_space<smem>>
    %460 = vector.broadcast %459 : f32 to vector<8x8xf32>
    %461 = arith.mulf %68, %460 : vector<8x8xf32>
    %462 = arith.addf %458, %461 : vector<8x8xf32>
    %c9_179 = arith.constant 9 : index
    %463 = memref.load %arg8[%c9_179] : memref<16xf32, #tpu.memory_space<smem>>
    %464 = vector.broadcast %463 : f32 to vector<8x8xf32>
    %465 = arith.addf %462, %464 : vector<8x8xf32>
    %466 = arith.mulf %465, %465 : vector<8x8xf32>
    %467 = arith.mulf %465, %466 : vector<8x8xf32>
    %cst_180 = arith.constant 4.471500e-02 : f32
    %468 = vector.broadcast %cst_180 : f32 to vector<8x8xf32>
    %469 = arith.mulf %468, %467 : vector<8x8xf32>
    %470 = arith.addf %465, %469 : vector<8x8xf32>
    %cst_181 = arith.constant 0.797884583 : f32
    %471 = vector.broadcast %cst_181 : f32 to vector<8x8xf32>
    %472 = arith.mulf %471, %470 : vector<8x8xf32>
    %473 = math.tanh %472 : vector<8x8xf32>
    %cst_182 = arith.constant 1.000000e+00 : f32
    %474 = vector.broadcast %cst_182 : f32 to vector<8x8xf32>
    %475 = arith.addf %474, %473 : vector<8x8xf32>
    %cst_183 = arith.constant 5.000000e-01 : f32
    %476 = vector.broadcast %cst_183 : f32 to vector<8x8xf32>
    %477 = arith.mulf %476, %475 : vector<8x8xf32>
    %478 = arith.mulf %465, %477 : vector<8x8xf32>
    %c9_184 = arith.constant 9 : index
    %c0_185 = arith.constant 0 : index
    %479 = memref.load %arg9[%c9_184, %c0_185] : memref<16x4xf32, #tpu.memory_space<smem>>
    %480 = vector.broadcast %479 : f32 to vector<8x8xf32>
    %481 = arith.mulf %478, %480 : vector<8x8xf32>
    %482 = arith.addf %439, %481 : vector<8x8xf32>
    %c9_186 = arith.constant 9 : index
    %c1_187 = arith.constant 1 : index
    %483 = memref.load %arg9[%c9_186, %c1_187] : memref<16x4xf32, #tpu.memory_space<smem>>
    %484 = vector.broadcast %483 : f32 to vector<8x8xf32>
    %485 = arith.mulf %478, %484 : vector<8x8xf32>
    %486 = arith.addf %443, %485 : vector<8x8xf32>
    %c9_188 = arith.constant 9 : index
    %c2_189 = arith.constant 2 : index
    %487 = memref.load %arg9[%c9_188, %c2_189] : memref<16x4xf32, #tpu.memory_space<smem>>
    %488 = vector.broadcast %487 : f32 to vector<8x8xf32>
    %489 = arith.mulf %478, %488 : vector<8x8xf32>
    %490 = arith.addf %447, %489 : vector<8x8xf32>
    %c9_190 = arith.constant 9 : index
    %c3_191 = arith.constant 3 : index
    %491 = memref.load %arg9[%c9_190, %c3_191] : memref<16x4xf32, #tpu.memory_space<smem>>
    %492 = vector.broadcast %491 : f32 to vector<8x8xf32>
    %493 = arith.mulf %478, %492 : vector<8x8xf32>
    %494 = arith.addf %451, %493 : vector<8x8xf32>
    %c0_192 = arith.constant 0 : index
    %c10 = arith.constant 10 : index
    %495 = memref.load %arg7[%c0_192, %c10] : memref<3x16xf32, #tpu.memory_space<smem>>
    %496 = vector.broadcast %495 : f32 to vector<8x8xf32>
    %497 = arith.mulf %36, %496 : vector<8x8xf32>
    %c1_193 = arith.constant 1 : index
    %c10_194 = arith.constant 10 : index
    %498 = memref.load %arg7[%c1_193, %c10_194] : memref<3x16xf32, #tpu.memory_space<smem>>
    %499 = vector.broadcast %498 : f32 to vector<8x8xf32>
    %500 = arith.mulf %52, %499 : vector<8x8xf32>
    %501 = arith.addf %497, %500 : vector<8x8xf32>
    %c2_195 = arith.constant 2 : index
    %c10_196 = arith.constant 10 : index
    %502 = memref.load %arg7[%c2_195, %c10_196] : memref<3x16xf32, #tpu.memory_space<smem>>
    %503 = vector.broadcast %502 : f32 to vector<8x8xf32>
    %504 = arith.mulf %68, %503 : vector<8x8xf32>
    %505 = arith.addf %501, %504 : vector<8x8xf32>
    %c10_197 = arith.constant 10 : index
    %506 = memref.load %arg8[%c10_197] : memref<16xf32, #tpu.memory_space<smem>>
    %507 = vector.broadcast %506 : f32 to vector<8x8xf32>
    %508 = arith.addf %505, %507 : vector<8x8xf32>
    %509 = arith.mulf %508, %508 : vector<8x8xf32>
    %510 = arith.mulf %508, %509 : vector<8x8xf32>
    %cst_198 = arith.constant 4.471500e-02 : f32
    %511 = vector.broadcast %cst_198 : f32 to vector<8x8xf32>
    %512 = arith.mulf %511, %510 : vector<8x8xf32>
    %513 = arith.addf %508, %512 : vector<8x8xf32>
    %cst_199 = arith.constant 0.797884583 : f32
    %514 = vector.broadcast %cst_199 : f32 to vector<8x8xf32>
    %515 = arith.mulf %514, %513 : vector<8x8xf32>
    %516 = math.tanh %515 : vector<8x8xf32>
    %cst_200 = arith.constant 1.000000e+00 : f32
    %517 = vector.broadcast %cst_200 : f32 to vector<8x8xf32>
    %518 = arith.addf %517, %516 : vector<8x8xf32>
    %cst_201 = arith.constant 5.000000e-01 : f32
    %519 = vector.broadcast %cst_201 : f32 to vector<8x8xf32>
    %520 = arith.mulf %519, %518 : vector<8x8xf32>
    %521 = arith.mulf %508, %520 : vector<8x8xf32>
    %c10_202 = arith.constant 10 : index
    %c0_203 = arith.constant 0 : index
    %522 = memref.load %arg9[%c10_202, %c0_203] : memref<16x4xf32, #tpu.memory_space<smem>>
    %523 = vector.broadcast %522 : f32 to vector<8x8xf32>
    %524 = arith.mulf %521, %523 : vector<8x8xf32>
    %525 = arith.addf %482, %524 : vector<8x8xf32>
    %c10_204 = arith.constant 10 : index
    %c1_205 = arith.constant 1 : index
    %526 = memref.load %arg9[%c10_204, %c1_205] : memref<16x4xf32, #tpu.memory_space<smem>>
    %527 = vector.broadcast %526 : f32 to vector<8x8xf32>
    %528 = arith.mulf %521, %527 : vector<8x8xf32>
    %529 = arith.addf %486, %528 : vector<8x8xf32>
    %c10_206 = arith.constant 10 : index
    %c2_207 = arith.constant 2 : index
    %530 = memref.load %arg9[%c10_206, %c2_207] : memref<16x4xf32, #tpu.memory_space<smem>>
    %531 = vector.broadcast %530 : f32 to vector<8x8xf32>
    %532 = arith.mulf %521, %531 : vector<8x8xf32>
    %533 = arith.addf %490, %532 : vector<8x8xf32>
    %c10_208 = arith.constant 10 : index
    %c3_209 = arith.constant 3 : index
    %534 = memref.load %arg9[%c10_208, %c3_209] : memref<16x4xf32, #tpu.memory_space<smem>>
    %535 = vector.broadcast %534 : f32 to vector<8x8xf32>
    %536 = arith.mulf %521, %535 : vector<8x8xf32>
    %537 = arith.addf %494, %536 : vector<8x8xf32>
    %c0_210 = arith.constant 0 : index
    %c11 = arith.constant 11 : index
    %538 = memref.load %arg7[%c0_210, %c11] : memref<3x16xf32, #tpu.memory_space<smem>>
    %539 = vector.broadcast %538 : f32 to vector<8x8xf32>
    %540 = arith.mulf %36, %539 : vector<8x8xf32>
    %c1_211 = arith.constant 1 : index
    %c11_212 = arith.constant 11 : index
    %541 = memref.load %arg7[%c1_211, %c11_212] : memref<3x16xf32, #tpu.memory_space<smem>>
    %542 = vector.broadcast %541 : f32 to vector<8x8xf32>
    %543 = arith.mulf %52, %542 : vector<8x8xf32>
    %544 = arith.addf %540, %543 : vector<8x8xf32>
    %c2_213 = arith.constant 2 : index
    %c11_214 = arith.constant 11 : index
    %545 = memref.load %arg7[%c2_213, %c11_214] : memref<3x16xf32, #tpu.memory_space<smem>>
    %546 = vector.broadcast %545 : f32 to vector<8x8xf32>
    %547 = arith.mulf %68, %546 : vector<8x8xf32>
    %548 = arith.addf %544, %547 : vector<8x8xf32>
    %c11_215 = arith.constant 11 : index
    %549 = memref.load %arg8[%c11_215] : memref<16xf32, #tpu.memory_space<smem>>
    %550 = vector.broadcast %549 : f32 to vector<8x8xf32>
    %551 = arith.addf %548, %550 : vector<8x8xf32>
    %552 = arith.mulf %551, %551 : vector<8x8xf32>
    %553 = arith.mulf %551, %552 : vector<8x8xf32>
    %cst_216 = arith.constant 4.471500e-02 : f32
    %554 = vector.broadcast %cst_216 : f32 to vector<8x8xf32>
    %555 = arith.mulf %554, %553 : vector<8x8xf32>
    %556 = arith.addf %551, %555 : vector<8x8xf32>
    %cst_217 = arith.constant 0.797884583 : f32
    %557 = vector.broadcast %cst_217 : f32 to vector<8x8xf32>
    %558 = arith.mulf %557, %556 : vector<8x8xf32>
    %559 = math.tanh %558 : vector<8x8xf32>
    %cst_218 = arith.constant 1.000000e+00 : f32
    %560 = vector.broadcast %cst_218 : f32 to vector<8x8xf32>
    %561 = arith.addf %560, %559 : vector<8x8xf32>
    %cst_219 = arith.constant 5.000000e-01 : f32
    %562 = vector.broadcast %cst_219 : f32 to vector<8x8xf32>
    %563 = arith.mulf %562, %561 : vector<8x8xf32>
    %564 = arith.mulf %551, %563 : vector<8x8xf32>
    %c11_220 = arith.constant 11 : index
    %c0_221 = arith.constant 0 : index
    %565 = memref.load %arg9[%c11_220, %c0_221] : memref<16x4xf32, #tpu.memory_space<smem>>
    %566 = vector.broadcast %565 : f32 to vector<8x8xf32>
    %567 = arith.mulf %564, %566 : vector<8x8xf32>
    %568 = arith.addf %525, %567 : vector<8x8xf32>
    %c11_222 = arith.constant 11 : index
    %c1_223 = arith.constant 1 : index
    %569 = memref.load %arg9[%c11_222, %c1_223] : memref<16x4xf32, #tpu.memory_space<smem>>
    %570 = vector.broadcast %569 : f32 to vector<8x8xf32>
    %571 = arith.mulf %564, %570 : vector<8x8xf32>
    %572 = arith.addf %529, %571 : vector<8x8xf32>
    %c11_224 = arith.constant 11 : index
    %c2_225 = arith.constant 2 : index
    %573 = memref.load %arg9[%c11_224, %c2_225] : memref<16x4xf32, #tpu.memory_space<smem>>
    %574 = vector.broadcast %573 : f32 to vector<8x8xf32>
    %575 = arith.mulf %564, %574 : vector<8x8xf32>
    %576 = arith.addf %533, %575 : vector<8x8xf32>
    %c11_226 = arith.constant 11 : index
    %c3_227 = arith.constant 3 : index
    %577 = memref.load %arg9[%c11_226, %c3_227] : memref<16x4xf32, #tpu.memory_space<smem>>
    %578 = vector.broadcast %577 : f32 to vector<8x8xf32>
    %579 = arith.mulf %564, %578 : vector<8x8xf32>
    %580 = arith.addf %537, %579 : vector<8x8xf32>
    %c0_228 = arith.constant 0 : index
    %c12 = arith.constant 12 : index
    %581 = memref.load %arg7[%c0_228, %c12] : memref<3x16xf32, #tpu.memory_space<smem>>
    %582 = vector.broadcast %581 : f32 to vector<8x8xf32>
    %583 = arith.mulf %36, %582 : vector<8x8xf32>
    %c1_229 = arith.constant 1 : index
    %c12_230 = arith.constant 12 : index
    %584 = memref.load %arg7[%c1_229, %c12_230] : memref<3x16xf32, #tpu.memory_space<smem>>
    %585 = vector.broadcast %584 : f32 to vector<8x8xf32>
    %586 = arith.mulf %52, %585 : vector<8x8xf32>
    %587 = arith.addf %583, %586 : vector<8x8xf32>
    %c2_231 = arith.constant 2 : index
    %c12_232 = arith.constant 12 : index
    %588 = memref.load %arg7[%c2_231, %c12_232] : memref<3x16xf32, #tpu.memory_space<smem>>
    %589 = vector.broadcast %588 : f32 to vector<8x8xf32>
    %590 = arith.mulf %68, %589 : vector<8x8xf32>
    %591 = arith.addf %587, %590 : vector<8x8xf32>
    %c12_233 = arith.constant 12 : index
    %592 = memref.load %arg8[%c12_233] : memref<16xf32, #tpu.memory_space<smem>>
    %593 = vector.broadcast %592 : f32 to vector<8x8xf32>
    %594 = arith.addf %591, %593 : vector<8x8xf32>
    %595 = arith.mulf %594, %594 : vector<8x8xf32>
    %596 = arith.mulf %594, %595 : vector<8x8xf32>
    %cst_234 = arith.constant 4.471500e-02 : f32
    %597 = vector.broadcast %cst_234 : f32 to vector<8x8xf32>
    %598 = arith.mulf %597, %596 : vector<8x8xf32>
    %599 = arith.addf %594, %598 : vector<8x8xf32>
    %cst_235 = arith.constant 0.797884583 : f32
    %600 = vector.broadcast %cst_235 : f32 to vector<8x8xf32>
    %601 = arith.mulf %600, %599 : vector<8x8xf32>
    %602 = math.tanh %601 : vector<8x8xf32>
    %cst_236 = arith.constant 1.000000e+00 : f32
    %603 = vector.broadcast %cst_236 : f32 to vector<8x8xf32>
    %604 = arith.addf %603, %602 : vector<8x8xf32>
    %cst_237 = arith.constant 5.000000e-01 : f32
    %605 = vector.broadcast %cst_237 : f32 to vector<8x8xf32>
    %606 = arith.mulf %605, %604 : vector<8x8xf32>
    %607 = arith.mulf %594, %606 : vector<8x8xf32>
    %c12_238 = arith.constant 12 : index
    %c0_239 = arith.constant 0 : index
    %608 = memref.load %arg9[%c12_238, %c0_239] : memref<16x4xf32, #tpu.memory_space<smem>>
    %609 = vector.broadcast %608 : f32 to vector<8x8xf32>
    %610 = arith.mulf %607, %609 : vector<8x8xf32>
    %611 = arith.addf %568, %610 : vector<8x8xf32>
    %c12_240 = arith.constant 12 : index
    %c1_241 = arith.constant 1 : index
    %612 = memref.load %arg9[%c12_240, %c1_241] : memref<16x4xf32, #tpu.memory_space<smem>>
    %613 = vector.broadcast %612 : f32 to vector<8x8xf32>
    %614 = arith.mulf %607, %613 : vector<8x8xf32>
    %615 = arith.addf %572, %614 : vector<8x8xf32>
    %c12_242 = arith.constant 12 : index
    %c2_243 = arith.constant 2 : index
    %616 = memref.load %arg9[%c12_242, %c2_243] : memref<16x4xf32, #tpu.memory_space<smem>>
    %617 = vector.broadcast %616 : f32 to vector<8x8xf32>
    %618 = arith.mulf %607, %617 : vector<8x8xf32>
    %619 = arith.addf %576, %618 : vector<8x8xf32>
    %c12_244 = arith.constant 12 : index
    %c3_245 = arith.constant 3 : index
    %620 = memref.load %arg9[%c12_244, %c3_245] : memref<16x4xf32, #tpu.memory_space<smem>>
    %621 = vector.broadcast %620 : f32 to vector<8x8xf32>
    %622 = arith.mulf %607, %621 : vector<8x8xf32>
    %623 = arith.addf %580, %622 : vector<8x8xf32>
    %c0_246 = arith.constant 0 : index
    %c13 = arith.constant 13 : index
    %624 = memref.load %arg7[%c0_246, %c13] : memref<3x16xf32, #tpu.memory_space<smem>>
    %625 = vector.broadcast %624 : f32 to vector<8x8xf32>
    %626 = arith.mulf %36, %625 : vector<8x8xf32>
    %c1_247 = arith.constant 1 : index
    %c13_248 = arith.constant 13 : index
    %627 = memref.load %arg7[%c1_247, %c13_248] : memref<3x16xf32, #tpu.memory_space<smem>>
    %628 = vector.broadcast %627 : f32 to vector<8x8xf32>
    %629 = arith.mulf %52, %628 : vector<8x8xf32>
    %630 = arith.addf %626, %629 : vector<8x8xf32>
    %c2_249 = arith.constant 2 : index
    %c13_250 = arith.constant 13 : index
    %631 = memref.load %arg7[%c2_249, %c13_250] : memref<3x16xf32, #tpu.memory_space<smem>>
    %632 = vector.broadcast %631 : f32 to vector<8x8xf32>
    %633 = arith.mulf %68, %632 : vector<8x8xf32>
    %634 = arith.addf %630, %633 : vector<8x8xf32>
    %c13_251 = arith.constant 13 : index
    %635 = memref.load %arg8[%c13_251] : memref<16xf32, #tpu.memory_space<smem>>
    %636 = vector.broadcast %635 : f32 to vector<8x8xf32>
    %637 = arith.addf %634, %636 : vector<8x8xf32>
    %638 = arith.mulf %637, %637 : vector<8x8xf32>
    %639 = arith.mulf %637, %638 : vector<8x8xf32>
    %cst_252 = arith.constant 4.471500e-02 : f32
    %640 = vector.broadcast %cst_252 : f32 to vector<8x8xf32>
    %641 = arith.mulf %640, %639 : vector<8x8xf32>
    %642 = arith.addf %637, %641 : vector<8x8xf32>
    %cst_253 = arith.constant 0.797884583 : f32
    %643 = vector.broadcast %cst_253 : f32 to vector<8x8xf32>
    %644 = arith.mulf %643, %642 : vector<8x8xf32>
    %645 = math.tanh %644 : vector<8x8xf32>
    %cst_254 = arith.constant 1.000000e+00 : f32
    %646 = vector.broadcast %cst_254 : f32 to vector<8x8xf32>
    %647 = arith.addf %646, %645 : vector<8x8xf32>
    %cst_255 = arith.constant 5.000000e-01 : f32
    %648 = vector.broadcast %cst_255 : f32 to vector<8x8xf32>
    %649 = arith.mulf %648, %647 : vector<8x8xf32>
    %650 = arith.mulf %637, %649 : vector<8x8xf32>
    %c13_256 = arith.constant 13 : index
    %c0_257 = arith.constant 0 : index
    %651 = memref.load %arg9[%c13_256, %c0_257] : memref<16x4xf32, #tpu.memory_space<smem>>
    %652 = vector.broadcast %651 : f32 to vector<8x8xf32>
    %653 = arith.mulf %650, %652 : vector<8x8xf32>
    %654 = arith.addf %611, %653 : vector<8x8xf32>
    %c13_258 = arith.constant 13 : index
    %c1_259 = arith.constant 1 : index
    %655 = memref.load %arg9[%c13_258, %c1_259] : memref<16x4xf32, #tpu.memory_space<smem>>
    %656 = vector.broadcast %655 : f32 to vector<8x8xf32>
    %657 = arith.mulf %650, %656 : vector<8x8xf32>
    %658 = arith.addf %615, %657 : vector<8x8xf32>
    %c13_260 = arith.constant 13 : index
    %c2_261 = arith.constant 2 : index
    %659 = memref.load %arg9[%c13_260, %c2_261] : memref<16x4xf32, #tpu.memory_space<smem>>
    %660 = vector.broadcast %659 : f32 to vector<8x8xf32>
    %661 = arith.mulf %650, %660 : vector<8x8xf32>
    %662 = arith.addf %619, %661 : vector<8x8xf32>
    %c13_262 = arith.constant 13 : index
    %c3_263 = arith.constant 3 : index
    %663 = memref.load %arg9[%c13_262, %c3_263] : memref<16x4xf32, #tpu.memory_space<smem>>
    %664 = vector.broadcast %663 : f32 to vector<8x8xf32>
    %665 = arith.mulf %650, %664 : vector<8x8xf32>
    %666 = arith.addf %623, %665 : vector<8x8xf32>
    %c0_264 = arith.constant 0 : index
    %c14 = arith.constant 14 : index
    %667 = memref.load %arg7[%c0_264, %c14] : memref<3x16xf32, #tpu.memory_space<smem>>
    %668 = vector.broadcast %667 : f32 to vector<8x8xf32>
    %669 = arith.mulf %36, %668 : vector<8x8xf32>
    %c1_265 = arith.constant 1 : index
    %c14_266 = arith.constant 14 : index
    %670 = memref.load %arg7[%c1_265, %c14_266] : memref<3x16xf32, #tpu.memory_space<smem>>
    %671 = vector.broadcast %670 : f32 to vector<8x8xf32>
    %672 = arith.mulf %52, %671 : vector<8x8xf32>
    %673 = arith.addf %669, %672 : vector<8x8xf32>
    %c2_267 = arith.constant 2 : index
    %c14_268 = arith.constant 14 : index
    %674 = memref.load %arg7[%c2_267, %c14_268] : memref<3x16xf32, #tpu.memory_space<smem>>
    %675 = vector.broadcast %674 : f32 to vector<8x8xf32>
    %676 = arith.mulf %68, %675 : vector<8x8xf32>
    %677 = arith.addf %673, %676 : vector<8x8xf32>
    %c14_269 = arith.constant 14 : index
    %678 = memref.load %arg8[%c14_269] : memref<16xf32, #tpu.memory_space<smem>>
    %679 = vector.broadcast %678 : f32 to vector<8x8xf32>
    %680 = arith.addf %677, %679 : vector<8x8xf32>
    %681 = arith.mulf %680, %680 : vector<8x8xf32>
    %682 = arith.mulf %680, %681 : vector<8x8xf32>
    %cst_270 = arith.constant 4.471500e-02 : f32
    %683 = vector.broadcast %cst_270 : f32 to vector<8x8xf32>
    %684 = arith.mulf %683, %682 : vector<8x8xf32>
    %685 = arith.addf %680, %684 : vector<8x8xf32>
    %cst_271 = arith.constant 0.797884583 : f32
    %686 = vector.broadcast %cst_271 : f32 to vector<8x8xf32>
    %687 = arith.mulf %686, %685 : vector<8x8xf32>
    %688 = math.tanh %687 : vector<8x8xf32>
    %cst_272 = arith.constant 1.000000e+00 : f32
    %689 = vector.broadcast %cst_272 : f32 to vector<8x8xf32>
    %690 = arith.addf %689, %688 : vector<8x8xf32>
    %cst_273 = arith.constant 5.000000e-01 : f32
    %691 = vector.broadcast %cst_273 : f32 to vector<8x8xf32>
    %692 = arith.mulf %691, %690 : vector<8x8xf32>
    %693 = arith.mulf %680, %692 : vector<8x8xf32>
    %c14_274 = arith.constant 14 : index
    %c0_275 = arith.constant 0 : index
    %694 = memref.load %arg9[%c14_274, %c0_275] : memref<16x4xf32, #tpu.memory_space<smem>>
    %695 = vector.broadcast %694 : f32 to vector<8x8xf32>
    %696 = arith.mulf %693, %695 : vector<8x8xf32>
    %697 = arith.addf %654, %696 : vector<8x8xf32>
    %c14_276 = arith.constant 14 : index
    %c1_277 = arith.constant 1 : index
    %698 = memref.load %arg9[%c14_276, %c1_277] : memref<16x4xf32, #tpu.memory_space<smem>>
    %699 = vector.broadcast %698 : f32 to vector<8x8xf32>
    %700 = arith.mulf %693, %699 : vector<8x8xf32>
    %701 = arith.addf %658, %700 : vector<8x8xf32>
    %c14_278 = arith.constant 14 : index
    %c2_279 = arith.constant 2 : index
    %702 = memref.load %arg9[%c14_278, %c2_279] : memref<16x4xf32, #tpu.memory_space<smem>>
    %703 = vector.broadcast %702 : f32 to vector<8x8xf32>
    %704 = arith.mulf %693, %703 : vector<8x8xf32>
    %705 = arith.addf %662, %704 : vector<8x8xf32>
    %c14_280 = arith.constant 14 : index
    %c3_281 = arith.constant 3 : index
    %706 = memref.load %arg9[%c14_280, %c3_281] : memref<16x4xf32, #tpu.memory_space<smem>>
    %707 = vector.broadcast %706 : f32 to vector<8x8xf32>
    %708 = arith.mulf %693, %707 : vector<8x8xf32>
    %709 = arith.addf %666, %708 : vector<8x8xf32>
    %c0_282 = arith.constant 0 : index
    %c15 = arith.constant 15 : index
    %710 = memref.load %arg7[%c0_282, %c15] : memref<3x16xf32, #tpu.memory_space<smem>>
    %711 = vector.broadcast %710 : f32 to vector<8x8xf32>
    %712 = arith.mulf %36, %711 : vector<8x8xf32>
    %c1_283 = arith.constant 1 : index
    %c15_284 = arith.constant 15 : index
    %713 = memref.load %arg7[%c1_283, %c15_284] : memref<3x16xf32, #tpu.memory_space<smem>>
    %714 = vector.broadcast %713 : f32 to vector<8x8xf32>
    %715 = arith.mulf %52, %714 : vector<8x8xf32>
    %716 = arith.addf %712, %715 : vector<8x8xf32>
    %c2_285 = arith.constant 2 : index
    %c15_286 = arith.constant 15 : index
    %717 = memref.load %arg7[%c2_285, %c15_286] : memref<3x16xf32, #tpu.memory_space<smem>>
    %718 = vector.broadcast %717 : f32 to vector<8x8xf32>
    %719 = arith.mulf %68, %718 : vector<8x8xf32>
    %720 = arith.addf %716, %719 : vector<8x8xf32>
    %c15_287 = arith.constant 15 : index
    %721 = memref.load %arg8[%c15_287] : memref<16xf32, #tpu.memory_space<smem>>
    %722 = vector.broadcast %721 : f32 to vector<8x8xf32>
    %723 = arith.addf %720, %722 : vector<8x8xf32>
    %724 = arith.mulf %723, %723 : vector<8x8xf32>
    %725 = arith.mulf %723, %724 : vector<8x8xf32>
    %cst_288 = arith.constant 4.471500e-02 : f32
    %726 = vector.broadcast %cst_288 : f32 to vector<8x8xf32>
    %727 = arith.mulf %726, %725 : vector<8x8xf32>
    %728 = arith.addf %723, %727 : vector<8x8xf32>
    %cst_289 = arith.constant 0.797884583 : f32
    %729 = vector.broadcast %cst_289 : f32 to vector<8x8xf32>
    %730 = arith.mulf %729, %728 : vector<8x8xf32>
    %731 = math.tanh %730 : vector<8x8xf32>
    %cst_290 = arith.constant 1.000000e+00 : f32
    %732 = vector.broadcast %cst_290 : f32 to vector<8x8xf32>
    %733 = arith.addf %732, %731 : vector<8x8xf32>
    %cst_291 = arith.constant 5.000000e-01 : f32
    %734 = vector.broadcast %cst_291 : f32 to vector<8x8xf32>
    %735 = arith.mulf %734, %733 : vector<8x8xf32>
    %736 = arith.mulf %723, %735 : vector<8x8xf32>
    %c15_292 = arith.constant 15 : index
    %c0_293 = arith.constant 0 : index
    %737 = memref.load %arg9[%c15_292, %c0_293] : memref<16x4xf32, #tpu.memory_space<smem>>
    %738 = vector.broadcast %737 : f32 to vector<8x8xf32>
    %739 = arith.mulf %736, %738 : vector<8x8xf32>
    %740 = arith.addf %697, %739 : vector<8x8xf32>
    %c15_294 = arith.constant 15 : index
    %c1_295 = arith.constant 1 : index
    %741 = memref.load %arg9[%c15_294, %c1_295] : memref<16x4xf32, #tpu.memory_space<smem>>
    %742 = vector.broadcast %741 : f32 to vector<8x8xf32>
    %743 = arith.mulf %736, %742 : vector<8x8xf32>
    %744 = arith.addf %701, %743 : vector<8x8xf32>
    %c15_296 = arith.constant 15 : index
    %c2_297 = arith.constant 2 : index
    %745 = memref.load %arg9[%c15_296, %c2_297] : memref<16x4xf32, #tpu.memory_space<smem>>
    %746 = vector.broadcast %745 : f32 to vector<8x8xf32>
    %747 = arith.mulf %736, %746 : vector<8x8xf32>
    %748 = arith.addf %705, %747 : vector<8x8xf32>
    %c15_298 = arith.constant 15 : index
    %c3_299 = arith.constant 3 : index
    %749 = memref.load %arg9[%c15_298, %c3_299] : memref<16x4xf32, #tpu.memory_space<smem>>
    %750 = vector.broadcast %749 : f32 to vector<8x8xf32>
    %751 = arith.mulf %736, %750 : vector<8x8xf32>
    %752 = arith.addf %709, %751 : vector<8x8xf32>
    %c0_300 = arith.constant 0 : index
    %c0_301 = arith.constant 0 : index
    %c0_302 = arith.constant 0 : index
    %753 = vector.load %arg6[%c0_300, %c0_301, %c0_302] : memref<1x1x8xf32, #tpu.memory_space<vmem>>, vector<1x1x8xf32>
    %754 = vector.shape_cast %753 : vector<1x1x8xf32> to vector<1x8xf32>
    %c0_303 = arith.constant 0 : index
    %755 = memref.load %arg10[%c0_303] : memref<4xf32, #tpu.memory_space<smem>>
    %756 = vector.broadcast %755 : f32 to vector<8x8xf32>
    %757 = arith.addf %740, %756 : vector<8x8xf32>
    %758 = vector.broadcast %754 : vector<1x8xf32> to vector<8x8xf32>
    %759 = arith.addf %757, %758 : vector<8x8xf32>
    %760 = arith.truncf %759 : vector<8x8xf32> to vector<8x8xbf16>
    %c0_304 = arith.constant 0 : index
    %c0_305 = arith.constant 0 : index
    %c0_306 = arith.constant 0 : index
    %c0_307 = arith.constant 0 : index
    %761 = vector.load %arg11[%c0_304, %c0_305, %c0_306, %c0_307] : memref<1x4x8x8xbf16, #tpu.memory_space<vmem>>, vector<1x1x8x8xbf16>
    %762 = vector.shape_cast %761 : vector<1x1x8x8xbf16> to vector<8x8xbf16>
    %763 = vector.shape_cast %760 : vector<8x8xbf16> to vector<1x1x8x8xbf16>
    tpu.vector_store %arg11[%c0_304, %c0_305, %c0_306, %c0_307], %763 {strides = array<i32>} : memref<1x4x8x8xbf16, #tpu.memory_space<vmem>>, vector<1x1x8x8xbf16>,
    %c1_308 = arith.constant 1 : index
    %764 = memref.load %arg10[%c1_308] : memref<4xf32, #tpu.memory_space<smem>>
    %765 = vector.broadcast %764 : f32 to vector<8x8xf32>
    %766 = arith.addf %744, %765 : vector<8x8xf32>
    %767 = vector.broadcast %754 : vector<1x8xf32> to vector<8x8xf32>
    %768 = arith.addf %766, %767 : vector<8x8xf32>
    %769 = arith.truncf %768 : vector<8x8xf32> to vector<8x8xbf16>
    %c0_309 = arith.constant 0 : index
    %c1_310 = arith.constant 1 : index
    %c0_311 = arith.constant 0 : index
    %c0_312 = arith.constant 0 : index
    %770 = vector.load %arg11[%c0_309, %c1_310, %c0_311, %c0_312] : memref<1x4x8x8xbf16, #tpu.memory_space<vmem>>, vector<1x1x8x8xbf16>
    %771 = vector.shape_cast %770 : vector<1x1x8x8xbf16> to vector<8x8xbf16>
    %772 = vector.shape_cast %769 : vector<8x8xbf16> to vector<1x1x8x8xbf16>
    tpu.vector_store %arg11[%c0_309, %c1_310, %c0_311, %c0_312], %772 {strides = array<i32>} : memref<1x4x8x8xbf16, #tpu.memory_space<vmem>>, vector<1x1x8x8xbf16>,
    %c2_313 = arith.constant 2 : index
    %773 = memref.load %arg10[%c2_313] : memref<4xf32, #tpu.memory_space<smem>>
    %774 = vector.broadcast %773 : f32 to vector<8x8xf32>
    %775 = arith.addf %748, %774 : vector<8x8xf32>
    %776 = vector.broadcast %754 : vector<1x8xf32> to vector<8x8xf32>
    %777 = arith.addf %775, %776 : vector<8x8xf32>
    %778 = arith.truncf %777 : vector<8x8xf32> to vector<8x8xbf16>
    %c0_314 = arith.constant 0 : index
    %c2_315 = arith.constant 2 : index
    %c0_316 = arith.constant 0 : index
    %c0_317 = arith.constant 0 : index
    %779 = vector.load %arg11[%c0_314, %c2_315, %c0_316, %c0_317] : memref<1x4x8x8xbf16, #tpu.memory_space<vmem>>, vector<1x1x8x8xbf16>
    %780 = vector.shape_cast %779 : vector<1x1x8x8xbf16> to vector<8x8xbf16>
    %781 = vector.shape_cast %778 : vector<8x8xbf16> to vector<1x1x8x8xbf16>
    tpu.vector_store %arg11[%c0_314, %c2_315, %c0_316, %c0_317], %781 {strides = array<i32>} : memref<1x4x8x8xbf16, #tpu.memory_space<vmem>>, vector<1x1x8x8xbf16>,
    %c3_318 = arith.constant 3 : index
    %782 = memref.load %arg10[%c3_318] : memref<4xf32, #tpu.memory_space<smem>>
    %783 = vector.broadcast %782 : f32 to vector<8x8xf32>
    %784 = arith.addf %752, %783 : vector<8x8xf32>
    %785 = vector.broadcast %754 : vector<1x8xf32> to vector<8x8xf32>
    %786 = arith.addf %784, %785 : vector<8x8xf32>
    %787 = arith.truncf %786 : vector<8x8xf32> to vector<8x8xbf16>
    %c0_319 = arith.constant 0 : index
    %c3_320 = arith.constant 3 : index
    %c0_321 = arith.constant 0 : index
    %c0_322 = arith.constant 0 : index
    %788 = vector.load %arg11[%c0_319, %c3_320, %c0_321, %c0_322] : memref<1x4x8x8xbf16, #tpu.memory_space<vmem>>, vector<1x1x8x8xbf16>
    %789 = vector.shape_cast %788 : vector<1x1x8x8xbf16> to vector<8x8xbf16>
    %790 = vector.shape_cast %787 : vector<8x8xbf16> to vector<1x1x8x8xbf16>
    tpu.vector_store %arg11[%c0_319, %c3_320, %c0_321, %c0_322], %790 {strides = array<i32>} : memref<1x4x8x8xbf16, #tpu.memory_space<vmem>>, vector<1x1x8x8xbf16>,
    return
  }
  func.func @transform_0(%arg0: i32, %arg1: i32, %arg2: i32) -> (i32, i32, i32) {
    %c0_i32 = arith.constant 0 : i32
    %c0_i32_0 = arith.constant 0 : i32
    return %arg0, %arg1, %c0_i32 : i32, i32, i32
  }
  func.func @transform_1(%arg0: i32, %arg1: i32, %arg2: i32) -> (i32, i32, i32, i32) {
    %c0_i32 = arith.constant 0 : i32
    %c0_i32_0 = arith.constant 0 : i32
    %c0_i32_1 = arith.constant 0 : i32
    return %arg0, %arg1, %c0_i32, %c0_i32_0 : i32, i32, i32, i32
  }
  func.func @transform_2(%arg0: i32, %arg1: i32, %arg2: i32) -> (i32, i32, i32) {
    %c0_i32 = arith.constant 0 : i32
    %c0_i32_0 = arith.constant 0 : i32
    return %arg0, %c0_i32, %arg2 : i32, i32, i32
  }
  func.func @transform_3(%arg0: i32, %arg1: i32, %arg2: i32) -> (i32, i32, i32) {
    %c0_i32 = arith.constant 0 : i32
    %c0_i32_0 = arith.constant 0 : i32
    return %arg0, %c0_i32, %arg2 : i32, i32, i32
  }
  func.func @transform_4(%arg0: i32, %arg1: i32, %arg2: i32) -> (i32, i32) {
    %c0_i32 = arith.constant 0 : i32
    %c0_i32_0 = arith.constant 0 : i32
    %c0_i32_1 = arith.constant 0 : i32
    return %c0_i32, %c0_i32_0 : i32, i32
  }
  func.func @transform_5(%arg0: i32, %arg1: i32, %arg2: i32) -> i32 {
    %c0_i32 = arith.constant 0 : i32
    %c0_i32_0 = arith.constant 0 : i32
    return %c0_i32 : i32
  }
  func.func @transform_6(%arg0: i32, %arg1: i32, %arg2: i32) -> (i32, i32) {
    %c0_i32 = arith.constant 0 : i32
    %c0_i32_0 = arith.constant 0 : i32
    %c0_i32_1 = arith.constant 0 : i32
    return %c0_i32, %c0_i32_0 : i32, i32
  }
  func.func @transform_7(%arg0: i32, %arg1: i32, %arg2: i32) -> i32 {
    %c0_i32 = arith.constant 0 : i32
    %c0_i32_0 = arith.constant 0 : i32
    return %c0_i32 : i32
  }
  func.func @transform_8(%arg0: i32, %arg1: i32, %arg2: i32) -> (i32, i32, i32, i32) {
    %c0_i32 = arith.constant 0 : i32
    %c0_i32_0 = arith.constant 0 : i32
    return %arg0, %c0_i32, %arg1, %arg2 : i32, i32, i32, i32
  }
}

</mosaic_0001>

<bundles_post_ra>
// kernel: tpu_custom_call.1
= control target key start
LH: loop header
LB: loop body
LE: loop exit
PB: predicated region body
PF: predicated region fallthrough
CT: control target
= control target key end

     0   :  { %s11277_s0 = inlined_call_operand.vmem [shape: f32[2,8,3], index: 0, kind: input, shape index: {}]   ;;  %s11278_s1 = inlined_call_operand.vmem [shape: f32[2,8,3,3], index: 1, kind: input, shape index: {}]   ;;  %s11279_s2 = inlined_call_operand.vmem [shape: f32[2,3,8], index: 2, kind: input, shape index: {}]   ;;  %s11280_s3 = inlined_call_operand.vmem [shape: f32[2,1,8], index: 3, kind: input, shape index: {}]   ;;  %s11281_s4 = inlined_call_operand.vmem [shape: f32[3,16], index: 4, kind: input, shape index: {}]   ;;  %s11282_s5 = inlined_call_operand.vmem [shape: f32[16], index: 5, kind: input, shape index: {}]   ;;  %s11283_s6 = inlined_call_operand.vmem [shape: f32[16,4], index: 6, kind: input, shape index: {}]   ;;  %s11284_s7 = inlined_call_operand.vmem [shape: f32[4], index: 7, kind: input, shape index: {}]   ;;  %s11285_s8 = inlined_call_operand.hbm [shape: bf16[2,4,8,8], index: 8, kind: output, shape index: {}]  }
   0x1   :  { %11368 = sst [smem:[#allocation57_spill]] %s11281_s4 }
   0x2   :  { %11369 = sst [smem:[#allocation58_spill]] %s11282_s5 }
   0x3   :  { %13 = vsyncpa [#allocation4], 0 }
   0x4   :  { %14 = vsyncpa [#allocation6], 0 }
   0x5   :  { %15 = vsyncpa [#allocation9], 0 }
   0x6   :  { %16 = vsyncpa [#allocation3], 0 }
   0x7   :  { %18 = vsyncpa [#allocation3 + $0x1], 0  ;;  %s5915_s27 = smov 0   ;;  %s5917_s28 = smov 0  }
   0x8   :  { %s5919_s29 = smov 0   ;;  %s5921_s30 = smov 0  }
   0x9   :  { %s5923_s9 = smov 0   ;;  %s5925_s10 = smov 0  }
   0xa LB: > { %11370 = sst [smem:[#allocation15_spill]] %s5853_s9  ;;  %s5173_s11 = sadd.s32 4294967295, %s5857_s10   ;;  %s5857_s10 = sphi %s5925_s10, %s24_s10   ;;  %s5853_s9 = sphi %s5923_s9, %s12229_s9   ;;  %s5849_s30 = sphi %s5921_s30, %s12228_s30   ;;  %s5845_s29 = sphi %s5919_s29, %s12232_s29   ;;  %s5841_s28 = sphi %s5917_s28, %s12231_s28   ;;  %s5837_s27 = sphi %s5915_s27, %s12230_s27  }
   0xb   : > { %s5174_s12 = sadd.s32 4294967294, %s5857_s10   ;;  %s43_s13 = sadd.s32 1, %s5853_s9 }
   0xc   : > { %s250_s14 = sadd.s32 1, %s5845_s29  ;;  %p45_p0 = scmp.ge.s32.totalorder %s43_s13, 2 }
   0xd   : > { %p260_p1 = scmp.ne.s32.totalorder %s5845_s29, %s5841_s28  ;;  %p261_p2 = scmp.eq.s32.totalorder %s5173_s11, 1 }
   0xe   : > { %p266_p3 = scmp.ne.s32.totalorder %s5841_s28, %s5837_s27  ;;  %s12234_s13 = smov (%p45_p0, %s43_s13), 0 }
   0xf   : > { %11371 = sst [smem:[#allocation16_spill]] %s12234_s13  ;;  %p5955_p4 = por %p261_p2, %p260_p1 }
  0x10   : > { %p267_p5 = scmp.eq.s32.totalorder %s5174_s12, 1  ;;  %s243_s16 = ssub.s32 %s5853_s9, %s12234_s13 }
  0x11   : > { %p5175_p6 = scmp.ge.s32.totalorder %s5857_s10, 1  ;;  %p248_p7 = scmp.eq.s32.totalorder %s243_s16, 0 }
  0x12   : > { %p5962_p8 = por %p267_p5, %p266_p3  ;;  %p274_p9 = scmp.lt.s32.totalorder %s5857_s10, 3 }
  0x13   : > { %s5968_s18 = scalar_select %p248_p7, %s5845_s29, %s250_s14  }
  0x14   : > { %p5970_p10 = pnand %p5175_p6, %p274_p9  ;;  %p5974_p11 = scmp.eq.s32.totalorder %s5173_s11, 0 }
  0x15   : > { %11374 = sst [smem:[#allocation17_spill]] %s5968_s18  ;;  %s305_s16 = sshll.u32 %s11283_s6, 4  ;;  %s306_s16 = int_to_ptr.vmem [resolvable:$true] %s305_s16 }
  0x16   : > { %s11377_s5 = sld [smem:[#allocation58_spill]]  ;;  %p5347_p12 = pneg %p5970_p10 }
  0x17   : > { %s11378_s4 = sld [smem:[#allocation57_spill]]  ;;  %s5859_s21 = smov [#allocation5]  }
  0x18   : > { %p5988_p13 = pnand %p5974_p11, %p5347_p12  ;;  %s5860_s22 = smov [#allocation2]  }
  0x19   : > { %s5861_s24 = smov [#allocation7]   ;;  %s5862_s25 = smov 128  }
  0x1a   : > { %s318_s9 = sshll.u32 %s11284_s7, 4  ;;  %s5864_s18 = smov [#allocation8]   ;;  %s319_s9 = int_to_ptr.vmem [resolvable:$true] %s318_s9 }
  0x1b   : > { %5359 = dma.vmem_to_smem (!%p5988_p13), %s319_s9, 16, %s5864_s18, [#allocation9]  }
  0x1c   : > { %s296_s23 = sshll.u32 %s11377_s5, 4  ;;  %373 = sbr.rel (%p5970_p10) target bundleno = 1122 (0x462), region = 52  ;;  %s297_s23 = int_to_ptr.vmem [resolvable:$true] %s296_s23 }
  0x1d   : > { %s286_s26 = sshll.u32 %s11378_s4, 4  ;;  %s5863_s4 = smov 8   ;;  %s287_s26 = int_to_ptr.vmem [resolvable:$true] %s286_s26 }
  0x1e   : > { %5353 = dma.vmem_to_smem (!%p5988_p13), %s297_s23, 16, %s5859_s21, [#allocation6]  }
  0x1f   : > { %5350 = dma.vmem_to_smem (!%p5988_p13), %s287_s26, 64, %s5860_s22, [#allocation4]  }
  0x20   : > { %5356 = dma.vmem_to_smem (!%p5988_p13), %s306_s16, 256, %s5861_s24, [#allocation6], %s5862_s25, %s5862_s25, %s5863_s4  }
  0x21   : > { %5820 = dma.done.wait (%p5974_p11), [#allocation4], 64  }
  0x22   : > { %5822 = vsyncadd (%p5974_p11), [#allocation4], 4294967232 }
  0x23   : > { %5824 = dma.done.wait (%p5974_p11), [#allocation6], 272  }
  0x24   : > { %5826 = vsyncadd (%p5974_p11), [#allocation6], 4294967024 }
  0x25   : > { %5828 = dma.done.wait (%p5974_p11), [#allocation9], 16  }
  0x26   : > { %5830 = vsyncadd (%p5974_p11), [#allocation9], 4294967280 }
  0x27   : > { %395 = sfence }
  0x28   : > { %p448_p0 = scmp.lt.s32.totalorder %s5849_s30, 1  ;;  %v5865_v0 = vmov 2   ;;  %v5866_v1 = vmov 0   ;;  %v5867_v7 = vmov 1   ;;  %s6073_s25 = sld [smem:[#allocation2]]  ;;  %vm4786_vm0 = vcmask 1041409  }
  0x29   : > { %5433 = vset.pattern.permute.xlu1 %v5865_v0  ;;  %5435 = vset.pattern.permute.xlu2 %v5866_v1  ;;  %s5192_s9 = sld [smem:[#allocation2 + $0x100]]  ;;  %vm4789_vm1 = vcmask 1042434   ;;  %vm4792_vm2 = vcmask 1043459   ;;  %vm4795_vm3 = vcmask 1044484   ;;  %vm4798_vm4 = vcmask 1045509  }
  0x2a   : > { %5432 = vset.pattern.permute.xlu0 %v5866_v1  ;;  %s6022_s4 = scalar_select %p448_p0, %s5849_s30, 1  ;;  %vm4801_vm5 = vcmask 1046534   ;;  %vm4804_vm6 = vcmask 1047559   ;;  %vm4808_vm7 = vcmask 60416  }
  0x2b   : > { %s6077_s13 = sld [smem:[#allocation5]] }
  0x2c   : > { %s5327_s5 = sshll.u32 %s6022_s4, 5  ;;  %s477_s18 = scalar_lea.vmem %s11280_s3, %s6022_s4 }
  0x2d   : > { %s6032_s23 = scalar_lea.vmem %s11278_s1, %s5327_s5  ;;  %s5187_s26 = sshll.u32 %s6022_s4, 3 }
  0x2e   : > { %v480_v2 = vld [vmem:[%s6032_s23 + $0x4] sm:$0x7]  ;;  %s454_s14 = scalar_lea.vmem %s11277_s0, %s5187_s26  ;;  %v481_v4 = vld [vmem:[%s6032_s23 + $0x8] sm:$0x7]  ;;  %v482_v5 = vld [vmem:[%s6032_s23 + $0xc] sm:$0x7]  ;;  %v6127_v60 = vstv %s6073_s25 }
  0x2f   : > { %514 = vperm.xlu2 %5435, %v480_v2   ;;  %v478_v3 = vld [vmem:[%s454_s14] sm:$0xff]  ;;  %v483_v8 = vld [vmem:[%s6032_s23 + $0x10] sm:$0x7]  ;;  %v484_v9 = vld [vmem:[%s6032_s23 + $0x14] sm:$0x7]  ;;  %s5190_s16 = sshll.u32 %s6022_s4, 2  ;;  %v6132_v62 = vstv %s5192_s9 }
  0x30   : > { %503 = vperm.xlu1 %5433, %v478_v3   ;;  %491 = vperm.xlu0 %5432, %v478_v3   ;;  %v479_v6 = vld [vmem:[%s6032_s23] sm:$0x7]  ;;  %v486_v10 = vld [vmem:[%s6032_s23 + $0x1c] sm:$0x7]  ;;  %v485_v11 = vld [vmem:[%s6032_s23 + $0x18] sm:$0x7]  ;;  %s471_s24 = scalar_lea.vmem %s11279_s2, %s5190_s16 }
  0x31   : > { %v487_v15 = vld [vmem:[%s471_s24] sm:$0x7]  ;;  %s6075_s5 = sld [smem:[#allocation2 + $0x80]] }
  0x32   : > { %v501_v16 = vperm.slane %v487_v15, 2  ;;  %v488_v17 = vperm.slane %v487_v15, 0  ;;  %s6079_s19 = sld [smem:[#allocation2 + $0x1]]  ;;  %v495_v42 = vperm.slane %v487_v15, 1 }
  0x33   : > { %s6086_s20 = sld [smem:[#allocation2 + $0x81]] }
  0x34   : > { %s6250_s23 = sld [smem:[#allocation7]] }
  0x35   : > { %s6256_s26 = sld [smem:[#allocation7 + $0x1]] }
  0x36   : > { %s6264_s12 = sld [smem:[#allocation7 + $0x2]] }
  0x37   : > { %519 = vperm.xlu2 %5435, %v481_v4   ;;  %v6130_v61 = vstv %s6075_s5  ;;  %s6272_s11 = sld [smem:[#allocation7 + $0x3]] }
  0x38   : > { %5434 = vset.pattern.permute.xlu1 %v5866_v1  ;;  %524 = vperm.xlu0 %5432, %v482_v5   ;;  %s6340_s14 = sld [smem:[#allocation2 + $0x101]] }
  0x39   : > { %509 = vperm.xlu1 %5434, %v479_v6   ;;  %s6551_s16 = sld [smem:[#allocation5 + $0x1]] }
  0x3a   : > { %s6557_s21 = sld [smem:[#allocation2 + $0x2]] }
  0x3b   : > { %s6625_s22 = sld [smem:[#allocation7 + $0x80]] }
  0x3c   : > { %s6649_s24 = sld [smem:[#allocation7 + $0x81]] }
  0x3d   : > { %s6654_s25 = sld [smem:[#allocation7 + $0x82]] }
  0x3e   : > { %s6668_s5 = sld [smem:[#allocation7 + $0x83]] }
  0x3f   : > { %5437 = vset.pattern.permute.xlu2 %v5867_v7  ;;  %s6679_s9 = sld [smem:[#allocation2 + $0x82]] }
  0x40   : > { %5442 = vset.pattern.permute.xlu0 %v5865_v0  ;;  %588 = vperm.xlu2 %5437, %v481_v4   ;;  %s11122_s4 = sld [smem:[#allocation8 + $0x1]] }
  0x41   : > { %5436 = vset.pattern.permute.xlu1 %v5867_v7  ;;  %656 = vperm.xlu0 %5442, %v482_v5  }
  0x42   : > { %584 = vperm.xlu1 %5436, %v480_v2  }
  0x48   : > { %592 = vperm.xlu2 %5437, %v482_v5  }
  0x49   : > { %5443 = vset.pattern.permute.xlu0 %v5867_v7 }
  0x4a   : > { %580 = vperm.xlu1 %5436, %v479_v6   ;;  %497 = vperm.xlu0 %5443, %v478_v3  }
  0x50   : > { %5439 = vset.pattern.permute.xlu2 %v5866_v1 }
  0x51   : > { %529 = vperm.xlu2 %5439, %v483_v8  }
  0x52   : > { %5438 = vset.pattern.permute.xlu1 %v5865_v0  ;;  %596 = vperm.xlu0 %5443, %v483_v8  }
  0x53   : > { %648 = vperm.xlu1 %5438, %v480_v2  }
  0x59   : > { %534 = vperm.xlu2 %5439, %v484_v9  }
  0x5a   : > { %608 = vperm.xlu0 %5443, %v486_v10  }
  0x5b   : > { %652 = vperm.xlu1 %5438, %v481_v4  }
  0x61   : > { %5441 = vset.pattern.permute.xlu2 %v5865_v0 }
  0x62   : > { %644 = vperm.xlu2 %5441, %v479_v6   ;;  %5449 = vset.pattern.permute.xlu0 %v5865_v0 }
  0x63   : > { %5440 = vset.pattern.permute.xlu1 %v5867_v7 }
  0x64   : > { %600 = vperm.xlu1 %5440, %v484_v9  }
  0x6a   : > { %5445 = vset.pattern.permute.xlu2 %v5867_v7 }
  0x6b   : > { %604 = vperm.xlu2 %5445, %v485_v11  }
  0x6c   : > { %5444 = vset.pattern.permute.xlu1 %v5866_v1 }
  0x6d   : > { %539 = vperm.xlu1 %5444, %v485_v11  }
  0x73   : > { %5447 = vset.pattern.permute.xlu2 %v5866_v1 }
  0x74   : > { %544 = vperm.xlu2 %5447, %v486_v10  }
  0x75   : > { %5446 = vset.pattern.permute.xlu1 %v5865_v0 }
  0x76   : > { %660 = vperm.xlu1 %5446, %v483_v8   ;;  %v6145_v8 = vstv %s6077_s13  ;;  %s6863_s13 = sld [smem:[#allocation2 + $0x102]] }
  0x77   : > { %11383 = vst [vmem:[#allocation21_spill] sm:$0xff] %v6145_v8 }
  0x7c   : > { %5448 = vset.pattern.permute.xlu2 %v5865_v0 }
  0x7d   : > { %668 = vperm.xlu2 %5448, %v485_v11  }
  0x7e   : > { %664 = vperm.xlu1 %5446, %v484_v9   ;;  %v6148_v9 = vstv %s6079_s19  ;;  %s6899_s19 = sld [smem:[#allocation5 + $0x2]] }
  0x86   : > { %672 = vperm.xlu1 %5446, %v486_v10  }
  0x89   : > { %v515_v12 = vpop.permute.xlu2 %514 }
  0x91   : > { %v520_v13 = vpop.permute.xlu2 %519 }
  0x9a   : > { %v6050_v14 = vpop.permute.xlu2 %588 }
  0xa2   : > { %v504_v18 = vpop.permute.xlu1 %503  ;;  %v492_v19 = vpop.permute.xlu0 %491 }
  0xa3   : > { %v6052_v20 = vsub.f32 %v501_v16, %v504_v18  ;;  %v494_v21 = vsub.f32 %v488_v17, %v492_v19  ;;  %v6054_v22 = vpop.permute.xlu2 %592 }
  0xa5   : > { %v6056_v23 = vrot.slane %v494_v21, 7  ;;  %v548_v24 = vrot.slane %v494_v21, 1  ;;  %v6058_v25 = vrot.slane %v494_v21, 6  ;;  %v6062_v27 = vmul.f32 %v515_v12, %v494_v21 }
  0xa6   : > { %v549_v37 = vrot.slane %v494_v21, 2  ;;  %v550_v39 = vrot.slane %v494_v21, 3  ;;  %v6081_v40 = vrot.slane %v494_v21, 4  ;;  %v6084_v41 = vrot.slane %v6052_v20, 1 }
  0xa7   : > { %v6060_v26 = vmul.f32 %v548_v24, %v515_v12  ;;  %v6065_v28 = vmul.f32 %v6056_v23, %v515_v12  ;;  %v6089_v43 = vrot.slane %v6052_v20, 2  ;;  %v6092_v44 = vrot.slane %v6052_v20, 3 }
  0xa8   : > { %11380 = vst [vmem:[#allocation18_spill] sm:$0xff] %v6081_v40  ;;  %v6094_v45 = vrot.slane %v494_v21, 5  ;;  %v6097_v46 = vrot.slane %v6052_v20, 6  ;;  %v6100_v47 = vrot.slane %v6052_v20, 7  ;;  %v6102_v48 = vmul.f32 %v549_v37, %v520_v13 }
  0xa9   : > { %11381 = vst [vmem:[#allocation19_spill] sm:$0xff] %v6092_v44  ;;  %v6104_v49 = vmul.f32 %v548_v24, %v520_v13  ;;  %v6106_v50 = vmul.f32 %v520_v13, %v494_v21  ;;  %v6113_v53 = vrot.slane %v6052_v20, 4  ;;  %v6116_v54 = vrot.slane %v6052_v20, 5 }
  0xaa   : > { %v525_v29 = vpop.permute.xlu0 %524  ;;  %v6154_v13 = vstv %s6086_s20  ;;  %s6913_s20 = sld [smem:[#allocation7 + $0x100]] }
  0xab   : > { %v510_v30 = vpop.permute.xlu1 %509  ;;  %v530_v31 = vpop.permute.xlu2 %529  ;;  %v6108_v51 = vmul.f32 %v550_v39, %v525_v29  ;;  %v6110_v52 = vmul.f32 %v549_v37, %v525_v29  ;;  %v758_v55 = vmul.f32 %v548_v24, %v525_v29 }
  0xac   : > { %v563_v32 = vmul.f32 %v510_v30, %v494_v21  ;;  %v6068_v33 = vmul.f32 %v6056_v23, %v510_v30  ;;  %v6071_v34 = vmul.f32 %v6058_v25, %v510_v30  ;;  %v6119_v56 = vmul.f32 %v6081_v40, %v530_v31 }
  0xad   : > { %v6121_v57 = vmul.f32 %v550_v39, %v530_v31  ;;  %v6123_v58 = vmul.f32 %v549_v37, %v530_v31 }
  0xb3   : > { %v657_v35 = vpop.permute.xlu0 %656  ;;  %v535_v36 = vpop.permute.xlu2 %534 }
  0xb4   : > { %v585_v38 = vpop.permute.xlu1 %584  ;;  %v694_v59 = vmul.f32 %v6092_v44, %v657_v35  ;;  %v742_v63 = vmul.f32 %v6089_v43, %v657_v35  ;;  %v790_v0 = vmul.f32 %v6084_v41, %v657_v35  ;;  %v6137_v1 = vmul.f32 %v6094_v45, %v535_v36 }
  0xb5   : > { %v6140_v2 = vmul.f32 %v6081_v40, %v535_v36  ;;  %v6142_v5 = vmul.f32 %v550_v39, %v535_v36 }
  0xb7   : > { %11382 = vst [vmem:[#allocation20_spill] sm:$0xff] %v6142_v5 }
  0xbc   : > { %v581_v3 = vpop.permute.xlu1 %580  ;;  %v498_v4 = vpop.permute.xlu0 %497 }
  0xbd   : > { %v500_v6 = vsub.f32 %v495_v42, %v498_v4  ;;  %v645_v7 = vpop.permute.xlu2 %644 }
  0xbe   : > { %v691_v10 = vmul.f32 %v645_v7, %v6052_v20  ;;  %v739_v11 = vmul.f32 %v6100_v47, %v645_v7  ;;  %v787_v12 = vmul.f32 %v6097_v46, %v645_v7 }
  0xbf   : > { %v617_v15 = vrot.slane %v500_v6, 6  ;;  %v618_v16 = vrot.slane %v500_v6, 7  ;;  %v627_v17 = vmul.f32 %v581_v3, %v500_v6  ;;  %v612_v18 = vrot.slane %v500_v6, 1 }
  0xc0   : > { %v724_v19 = vmul.f32 %v585_v38, %v500_v6  ;;  %v6156_v21 = vrot.slane %v500_v6, 4  ;;  %v6158_v24 = vrot.slane %v500_v6, 5  ;;  %v613_v29 = vrot.slane %v500_v6, 2 }
  0xc1   : > { %v635_v30 = vadd.f32 %v627_v17, %v563_v32  ;;  %v723_v31 = vmul.f32 %v618_v16, %v581_v3  ;;  %v771_v35 = vmul.f32 %v617_v15, %v581_v3  ;;  %v628_v36 = vmul.f32 %v612_v18, %v585_v38 }
  0xc2   : > { %v732_v37 = vadd.f32 %v724_v19, %v6062_v27  ;;  %v772_v39 = vmul.f32 %v618_v16, %v585_v38  ;;  %v774_v42 = vmul.f32 %v612_v18, %v6054_v22  ;;  %v6162_v4 = vrot.slane %v500_v6, 3 }
  0xc3   : > { %v6164_v7 = vadd.f32 %v691_v10, %v635_v30  ;;  %v731_v44 = vadd.f32 %v723_v31, %v6068_v33  ;;  %v779_v40 = vadd.f32 %v771_v35, %v6071_v34  ;;  %v636_v8 = vadd.f32 %v628_v36, %v6060_v26 }
  0xc4   : > { %v780_v32 = vadd.f32 %v772_v39, %v6065_v28  ;;  %v782_v17 = vadd.f32 %v774_v42, %v758_v55  ;;  %v630_v3 = vmul.f32 %v6162_v4, %v6054_v22  ;;  %v726_v27 = vmul.f32 %v613_v29, %v6054_v22  ;;  %v597_v38 = vpop.permute.xlu0 %596 }
  0xc5   : > { %11384 = vst [vmem:[#allocation22_spill] sm:$0xff] %v6164_v7  ;;  %v6173_v19 = vadd.f32 %v739_v11, %v731_v44  ;;  %v6175_v5 = vadd.f32 %v787_v12, %v779_v40  ;;  %v649_v10 = vpop.permute.xlu1 %648  ;;  %v605_v30 = vpop.permute.xlu2 %604  ;;  %v631_v33 = vmul.f32 %v6156_v21, %v597_v38  ;;  %v727_v34 = vmul.f32 %v6162_v4, %v597_v38 }
  0xc6   : > { %v692_v26 = vmul.f32 %v6084_v41, %v649_v10  ;;  %v740_v28 = vmul.f32 %v649_v10, %v6052_v20  ;;  %v788_v55 = vmul.f32 %v6100_v47, %v649_v10  ;;  %v6182_v31 = vadd.f32 %v790_v0, %v782_v17 }
  0xc7   : > { %11385 = vst [vmem:[#allocation23_spill] sm:$0xff] %v6173_v19  ;;  %v6184_v22 = vmul.f32 %v617_v15, %v605_v30  ;;  %v6187_v44 = vmul.f32 %v6158_v24, %v605_v30  ;;  %v6190_v40 = vmul.f32 %v6156_v21, %v605_v30  ;;  %v638_v11 = vadd.f32 %v630_v3, %v6108_v51 }
  0xc8   : > { %11386 = vst [vmem:[#allocation24_spill] sm:$0xff] %v6175_v5  ;;  %v6193_v12 = vadd.f32 %v692_v26, %v636_v8  ;;  %v6195_v35 = vadd.f32 %v740_v28, %v732_v37  ;;  %v6197_v36 = vadd.f32 %v788_v55, %v780_v32  ;;  %v734_v39 = vadd.f32 %v726_v27, %v6110_v52 }
  0xc9   : > { %11387 = vst [vmem:[#allocation25_spill] sm:$0xff] %v6182_v31  ;;  %v6200_v0 = vadd.f32 %v694_v59, %v638_v11  ;;  %v6203_v42 = vadd.f32 %v631_v33, %v6119_v56  ;;  %v6206_v17 = vadd.f32 %v727_v34, %v6121_v57  ;;  %v775_v10 = vmul.f32 %v613_v29, %v597_v38 }
  0xca   : > { %11388 = vst [vmem:[#allocation26_spill] sm:$0xff] %v6193_v12  ;;  %v6208_v30 = vadd.f32 %v742_v63, %v734_v39  ;;  %v629_v51 = vmul.f32 %v613_v29, %v6050_v14  ;;  %v725_v8 = vmul.f32 %v612_v18, %v6050_v14  ;;  %v773_v37 = vmul.f32 %v6050_v14, %v500_v6 }
  0xcb   : > { %11389 = vst [vmem:[#allocation27_spill] sm:$0xff] %v6195_v35  ;;  %v6214_v32 = vadd.f32 %v775_v10, %v6123_v58  ;;  %v805_v52 = vmul.f32 %v6127_v60, %v6164_v7  ;;  %v806_v56 = vmul.f32 %v6127_v60, %v6193_v12  ;;  %v808_v57 = vmul.f32 %v6127_v60, %v6200_v0 }
  0xcc   : > { %11390 = vst [vmem:[#allocation28_spill] sm:$0xff] %v6197_v36  ;;  %v637_v59 = vadd.f32 %v629_v51, %v6102_v48  ;;  %v733_v63 = vadd.f32 %v725_v8, %v6104_v49  ;;  %v781_v18 = vadd.f32 %v773_v37, %v6106_v50  ;;  %v609_v29 = vpop.permute.xlu0 %608  ;;  %v815_v14 = vmul.f32 %v6130_v61, %v6173_v19 }
  0xcd   : > { %11391 = vst [vmem:[#allocation29_spill] sm:$0xff] %v6200_v0  ;;  %v653_v58 = vpop.permute.xlu1 %652  ;;  %v634_v6 = vmul.f32 %v618_v16, %v609_v29  ;;  %v730_v3 = vmul.f32 %v617_v15, %v609_v29  ;;  %v778_v27 = vmul.f32 %v6158_v24, %v609_v29  ;;  %v816_v38 = vmul.f32 %v6130_v61, %v6195_v35 }
  0xce   : > { %11392 = vst [vmem:[#allocation30_spill] sm:$0xff] %v6208_v30  ;;  %v693_v33 = vmul.f32 %v6089_v43, %v653_v58  ;;  %v741_v48 = vmul.f32 %v6084_v41, %v653_v58  ;;  %v789_v49 = vmul.f32 %v653_v58, %v6052_v20  ;;  %v545_v34 = vpop.permute.xlu2 %544  ;;  %v818_v50 = vmul.f32 %v6130_v61, %v6208_v30 }
  0xcf   : > { %v570_v26 = vmul.f32 %v6056_v23, %v545_v34  ;;  %v714_v16 = vmul.f32 %v6058_v25, %v545_v34  ;;  %v762_v15 = vmul.f32 %v6094_v45, %v545_v34  ;;  %v831_v28 = vrot.slane %v815_v14, 1 }
  0xd0   : > { %v6238_v55 = vadd.f32 %v693_v33, %v637_v59  ;;  %v6240_v11 = vadd.f32 %v741_v48, %v733_v63  ;;  %v6242_v39 = vadd.f32 %v789_v49, %v781_v18  ;;  %v832_v41 = vrot.slane %v816_v38, 1 }
  0xd1   : > { %v6244_v10 = vadd.f32 %v634_v6, %v570_v26  ;;  %v6246_v20 = vadd.f32 %v730_v3, %v714_v16  ;;  %v6248_v51 = vadd.f32 %v778_v27, %v762_v15  ;;  %v834_v8 = vrot.slane %v818_v50, 1 }
  0xd2   : > { %11393 = vst [vmem:[#allocation31_spill] sm:$0xff] %v6238_v55  ;;  %v807_v23 = vmul.f32 %v6127_v60, %v6238_v55  ;;  %v817_v37 = vmul.f32 %v6130_v61, %v6240_v11  ;;  %v847_v59 = vadd.f32 %v831_v28, %v805_v52  ;;  %v848_v63 = vadd.f32 %v832_v41, %v806_v56 }
  0xd3   : > { %11394 = vst [vmem:[#allocation32_spill] sm:$0xff] %v6240_v11  ;;  %v850_v18 = vadd.f32 %v834_v8, %v808_v57  ;;  %v857_v29 = vmul.f32 %v6132_v62, %v6175_v5  ;;  %v858_v14 = vmul.f32 %v6132_v62, %v6197_v36  ;;  %v859_v58 = vmul.f32 %v6132_v62, %v6242_v39 }
  0xd4   : > { %11395 = vst [vmem:[#allocation33_spill] sm:$0xff] %v6242_v39  ;;  %v833_v6 = vrot.slane %v817_v37, 1  ;;  %v860_v3 = vmul.f32 %v6132_v62, %v6182_v31  ;;  %v1021_v52 = vmul.f32 %v6148_v9, %v6164_v7  ;;  %v1022_v56 = vmul.f32 %v6148_v9, %v6193_v12  ;;  %v11400_v12 = vld [vmem:[#allocation18_spill] sm:$0xff] }
  0xd5   : > { %v873_v57 = vrot.slane %v857_v29, 2  ;;  %v874_v27 = vrot.slane %v858_v14, 2  ;;  %v875_v38 = vrot.slane %v859_v58, 2  ;;  %v1023_v33 = vmul.f32 %v6148_v9, %v6238_v55 }
  0xd6   : > { %v601_v48 = vpop.permute.xlu1 %600  ;;  %v849_v49 = vadd.f32 %v833_v6, %v807_v23  ;;  %v876_v34 = vrot.slane %v860_v3, 2  ;;  %v6278_v50 = vmul.f32 %v6148_v9, %v6200_v0  ;;  %v1031_v26 = vmul.f32 %v6154_v13, %v6173_v19 }
  0xd7   : > { %v632_v16 = vmul.f32 %v6158_v24, %v601_v48  ;;  %v728_v15 = vmul.f32 %v6156_v21, %v601_v48  ;;  %v776_v28 = vmul.f32 %v6162_v4, %v601_v48  ;;  %v669_v41 = vpop.permute.xlu2 %668  ;;  %v889_v8 = vadd.f32 %v873_v57, %v847_v59  ;;  %v11396_v21 = vld [vmem:[#allocation20_spill] sm:$0xff]  ;;  %v11397_v59 = vld [vmem:[#allocation21_spill] sm:$0xff] }
  0xd8   : > { %v697_v23 = vmul.f32 %v6097_v46, %v669_v41  ;;  %v745_v37 = vmul.f32 %v6116_v54, %v669_v41  ;;  %v793_v29 = vmul.f32 %v6113_v53, %v669_v41  ;;  %v890_v14 = vadd.f32 %v874_v27, %v848_v63 }
  0xd9   : > { %v6289_v58 = vadd.f32 %v632_v16, %v6137_v1  ;;  %v6292_v24 = vadd.f32 %v728_v15, %v6140_v2  ;;  %v6295_v4 = vadd.f32 %v776_v28, %v11396_v21  ;;  %v891_v6 = vadd.f32 %v875_v38, %v849_v49 }
  0xda   : > { %v892_v3 = vadd.f32 %v876_v34, %v850_v18  ;;  %v6298_v57 = vadd.f32 %v11397_v59, %v889_v8  ;;  %v6301_v48 = vadd.f32 %v11397_v59, %v890_v14  ;;  %v6304_v41 = vstv %s6250_s23  ;;  %s6927_s23 = sld [smem:[#allocation7 + $0x101]] }
  0xdb   : > { %v6307_v1 = vadd.f32 %v11397_v59, %v891_v6  ;;  %v6310_v63 = vstv %s6256_s26  ;;  %v6313_v2 = vstv %s6264_s12  ;;  %v1032_v27 = vmul.f32 %v6154_v13, %v6195_v35  ;;  %s6941_s26 = sld [smem:[#allocation7 + $0x102]] }
  0xdc   : > { %11398 = vst [vmem:[#allocation20_spill] sm:$0xff] %v6313_v2  ;;  %v6318_v18 = vadd.f32 %v11397_v59, %v892_v3  ;;  %v907_v38 = vmul.f32 %v6298_v57, %v6298_v57  ;;  %v908_v49 = vmul.f32 %v6301_v48, %v6301_v48  ;;  %v1033_v34 = vmul.f32 %v6154_v13, %v6240_v11  ;;  %s6961_s12 = sld [smem:[#allocation7 + $0x103]] }
  0xdd   : > { %v909_v16 = vmul.f32 %v6307_v1, %v6307_v1  ;;  %v6329_v15 = vstv %s6272_s11  ;;  %v1034_v28 = vmul.f32 %v6154_v13, %v6208_v30  ;;  %v1047_v8 = vrot.slane %v1031_v26, 1  ;;  %s6973_s11 = sld [smem:[#allocation2 + $0x3]] }
  0xde   : > { %11399 = vst [vmem:[#allocation21_spill] sm:$0xff] %v6329_v15  ;;  %v910_v14 = vmul.f32 %v6318_v18, %v6318_v18  ;;  %v915_v21 = vmul.f32 %v907_v38, %v6298_v57  ;;  %v916_v6 = vmul.f32 %v908_v49, %v6301_v48  ;;  %v1048_v3 = vrot.slane %v1032_v27, 1 }
  0xdf   : > { %v540_v35 = vpop.permute.xlu1 %539  ;;  %v917_v11 = vmul.f32 %v909_v16, %v6307_v1  ;;  %v1049_v19 = vrot.slane %v1033_v34, 1  ;;  %v1050_v0 = vrot.slane %v1034_v28, 1  ;;  %v6338_v55 = vadd.f32 %v1047_v8, %v1021_v52 }
  0xe0   : > { %v569_v30 = vmul.f32 %v6058_v25, %v540_v35  ;;  %v713_v26 = vmul.f32 %v6094_v45, %v540_v35  ;;  %v761_v7 = vmul.f32 %v11400_v12, %v540_v35  ;;  %v918_v38 = vmul.f32 %v910_v14, %v6318_v18 }
  0xe1   : > { %v923_v15 = vmul.f32 0.044715, %v915_v21  ;;  %v924_v49 = vmul.f32 0.044715, %v916_v6  ;;  %v925_v27 = vmul.f32 0.044715, %v917_v11  ;;  %v6346_v2 = vadd.f32 %v1048_v3, %v1022_v56 }
  0xe2   : > { %v641_v34 = vadd.f32 %v6184_v22, %v569_v30  ;;  %v737_v52 = vadd.f32 %v6187_v44, %v713_v26  ;;  %v785_v16 = vadd.f32 %v6190_v40, %v761_v7  ;;  %v926_v28 = vmul.f32 0.044715, %v918_v38  ;;  %v11404_v26 = vld [vmem:[#allocation19_spill] sm:$0xff] }
  0xe3   : > { %v931_v25 = vadd.f32 %v923_v15, %v6298_v57  ;;  %v932_v45 = vadd.f32 %v924_v49, %v6301_v48  ;;  %v933_v12 = vadd.f32 %v925_v27, %v6307_v1  ;;  %v6354_v35 = vadd.f32 %v1049_v19, %v1023_v33 }
  0xe4   : > { %v6356_v8 = vadd.f32 %v697_v23, %v641_v34  ;;  %v6358_v11 = vadd.f32 %v745_v37, %v737_v52  ;;  %v6360_v56 = vadd.f32 %v793_v29, %v785_v16  ;;  %v934_v22 = vadd.f32 %v926_v28, %v6318_v18 }
  0xe5   : > { %v939_v44 = vmul.f32 0.7978846, %v931_v25  ;;  %v940_v7 = vmul.f32 0.7978846, %v932_v45  ;;  %v941_v40 = vmul.f32 0.7978846, %v933_v12  ;;  %v6364_v30 = vadd.f32 %v1050_v0, %v6278_v50 }
  0xe6   : > { %11401 = vst [vmem:[#allocation18_spill] sm:$0xff] %v6356_v8  ;;  %v811_v15 = vmul.f32 %v6127_v60, %v6356_v8  ;;  %v821_v19 = vmul.f32 %v6130_v61, %v6358_v11  ;;  %v863_v33 = vmul.f32 %v6132_v62, %v6360_v56  ;;  %v942_v23 = vmul.f32 0.7978846, %v934_v22 }
  0xe7   : > { %11402 = vst [vmem:[#allocation34_spill] sm:$0xff] %v6358_v11  ;;  %5451 = vtanh.f32 %v939_v44  ;;  %v1027_v37 = vmul.f32 %v6148_v9, %v6356_v8  ;;  %v1037_v29 = vmul.f32 %v6154_v13, %v6358_v11  ;;  %v6377_v14 = vstv %s6340_s14  ;;  %s7011_s14 = sld [smem:[#allocation2 + $0x83]] }
  0xe8   : > { %11403 = vst [vmem:[#allocation35_spill] sm:$0xff] %v6360_v56  ;;  %v661_v0 = vpop.permute.xlu1 %660  ;;  %v837_v50 = vrot.slane %v821_v19, 1  ;;  %v879_v21 = vrot.slane %v863_v33, 2  ;;  %5453 = vtanh.f32 %v940_v7  ;;  %v6381_v6 = vmul.f32 %v6377_v14, %v6175_v5 }
  0xe9   : > { %v695_v3 = vmul.f32 %v6113_v53, %v661_v0  ;;  %v743_v38 = vmul.f32 %v11404_v26, %v661_v0  ;;  %v791_v49 = vmul.f32 %v6089_v43, %v661_v0  ;;  %5455 = vtanh.f32 %v941_v40 }
  0xea   : > { %v853_v27 = vadd.f32 %v837_v50, %v811_v15  ;;  %5457 = vtanh.f32 %v942_v23  ;;  %v1053_v34 = vrot.slane %v1037_v29, 1  ;;  %v6388_v52 = vmul.f32 %v6377_v14, %v6197_v36 }
  0xeb   : > { %v6391_v16 = vadd.f32 %v695_v3, %v6203_v42  ;;  %v6394_v28 = vadd.f32 %v743_v38, %v6206_v17  ;;  %v6397_v25 = vadd.f32 %v791_v49, %v6214_v32  ;;  %v6401_v43 = vmul.f32 %v6377_v14, %v6242_v39 }
  0xec   : > { %v895_v45 = vadd.f32 %v879_v21, %v853_v27  ;;  %v6403_v12 = vadd.f32 %v1053_v34, %v1027_v37  ;;  %v6407_v22 = vmul.f32 %v6377_v14, %v6182_v31  ;;  %v6411_v42 = vmul.f32 %v6377_v14, %v6360_v56 }
  0xed   : > { %11405 = vst [vmem:[#allocation19_spill] sm:$0xff] %v6391_v16  ;;  %v5452_v17 = vpop.eup %5451  ;;  %v809_v32 = vmul.f32 %v6127_v60, %v6391_v16  ;;  %v819_v44 = vmul.f32 %v6130_v61, %v6394_v28  ;;  %v861_v7 = vmul.f32 %v6132_v62, %v6397_v25  ;;  %v6421_v40 = vmul.f32 %v6148_v9, %v6391_v16 }
  0xee   : > { %11406 = vst [vmem:[#allocation36_spill] sm:$0xff] %v6394_v28  ;;  %v5454_v15 = vpop.eup %5453  ;;  %v6424_v19 = vadd.f32 %v11397_v59, %v895_v45  ;;  %v955_v33 = vadd.f32 1.0, %v5452_v17  ;;  %v6428_v23 = vmul.f32 %v6154_v13, %v6394_v28 }
  0xef   : > { %11407 = vst [vmem:[#allocation37_spill] sm:$0xff] %v6397_v25  ;;  %v5456_v29 = vpop.eup %5455  ;;  %v835_v0 = vrot.slane %v819_v44, 1  ;;  %v877_v50 = vrot.slane %v861_v7, 2  ;;  %v956_v21 = vadd.f32 1.0, %v5454_v15 }
  0xf0   : > { %v5458_v38 = vpop.eup %5457  ;;  %v665_v49 = vpop.permute.xlu1 %664  ;;  %v913_v27 = vmul.f32 %v6424_v19, %v6424_v19  ;;  %v957_v34 = vadd.f32 1.0, %v5456_v29  ;;  %v963_v45 = vmul.f32 0.5, %v955_v33 }
  0xf1   : > { %v696_v56 = vmul.f32 %v6116_v54, %v665_v49  ;;  %v744_v31 = vmul.f32 %v6113_v53, %v665_v49  ;;  %v792_v37 = vmul.f32 %v11404_v26, %v665_v49  ;;  %v851_v44 = vadd.f32 %v835_v0, %v809_v32 }
  0xf2   : > { %v921_v7 = vmul.f32 %v913_v27, %v6424_v19  ;;  %v958_v15 = vadd.f32 1.0, %v5458_v38  ;;  %v964_v3 = vmul.f32 0.5, %v956_v21  ;;  %v965_v39 = vmul.f32 0.5, %v957_v34 }
  0xf3   : > { %v6440_v36 = vadd.f32 %v696_v56, %v6289_v58  ;;  %v6443_v29 = vadd.f32 %v744_v31, %v6292_v24  ;;  %v6446_v33 = vadd.f32 %v792_v37, %v6295_v4  ;;  %v893_v17 = vadd.f32 %v877_v50, %v851_v44 }
  0xf4   : > { %v929_v5 = vmul.f32 0.044715, %v921_v7  ;;  %v966_v53 = vmul.f32 0.5, %v958_v15  ;;  %v971_v26 = vmul.f32 %v963_v45, %v6298_v57  ;;  %v972_v32 = vmul.f32 %v964_v3, %v6301_v48 }
  0xf5   : > { %11408 = vst [vmem:[#allocation38_spill] sm:$0xff] %v6440_v36  ;;  %v810_v0 = vmul.f32 %v6127_v60, %v6440_v36  ;;  %v820_v58 = vmul.f32 %v6130_v61, %v6443_v29  ;;  %v862_v31 = vmul.f32 %v6132_v62, %v6446_v33  ;;  %v6457_v24 = vadd.f32 %v11397_v59, %v893_v17 }
  0xf6   : > { %11409 = vst [vmem:[#allocation39_spill] sm:$0xff] %v6443_v29  ;;  %v937_v4 = vadd.f32 %v929_v5, %v6424_v19  ;;  %v973_v56 = vmul.f32 %v965_v39, %v6307_v1  ;;  %v974_v57 = vmul.f32 %v966_v53, %v6318_v18  ;;  %v6463_v48 = vmul.f32 %v6304_v41, %v971_v26 }
  0xf7   : > { %11410 = vst [vmem:[#allocation40_spill] sm:$0xff] %v6446_v33  ;;  %v836_v37 = vrot.slane %v820_v58, 1  ;;  %v878_v50 = vrot.slane %v862_v31, 2  ;;  %v911_v21 = vmul.f32 %v6457_v24, %v6457_v24  ;;  %v6468_v3 = vmul.f32 %v6304_v41, %v972_v32  ;;  %v11414_v58 = vld [vmem:[#allocation20_spill] sm:$0xff] }
  0xf8   : > { %v673_v38 = vpop.permute.xlu1 %672  ;;  %v945_v49 = vmul.f32 0.7978846, %v937_v4  ;;  %v6471_v27 = vmul.f32 %v6304_v41, %v973_v56  ;;  %v6474_v5 = vmul.f32 %v6304_v41, %v974_v57  ;;  %v6477_v39 = vmul.f32 %v6310_v63, %v971_v26 }
  0xf9   : > { %v698_v1 = vmul.f32 %v6100_v47, %v673_v38  ;;  %v746_v18 = vmul.f32 %v6097_v46, %v673_v38  ;;  %v794_v34 = vmul.f32 %v6116_v54, %v673_v38  ;;  %v852_v45 = vadd.f32 %v836_v37, %v810_v0 }
  0xfa   : > { %v919_v17 = vmul.f32 %v911_v21, %v6457_v24  ;;  %5459 = vtanh.f32 %v945_v49  ;;  %v6484_v44 = vmul.f32 %v6310_v63, %v972_v32  ;;  %v6487_v7 = vmul.f32 %v6310_v63, %v973_v56  ;;  %v11415_v49 = vld [vmem:[#allocation21_spill] sm:$0xff] }
  0xfb   : > { %v6490_v15 = vadd.f32 %v698_v1, %v6244_v10  ;;  %v6493_v53 = vadd.f32 %v746_v18, %v6246_v20  ;;  %v6496_v46 = vadd.f32 %v794_v34, %v6248_v51  ;;  %v894_v47 = vadd.f32 %v878_v50, %v852_v45 }
  0xfc   : > { %v927_v54 = vmul.f32 0.044715, %v919_v17  ;;  %v6499_v0 = vmul.f32 %v6310_v63, %v974_v57  ;;  %v6502_v31 = vmul.f32 %v11414_v58, %v971_v26  ;;  %v6505_v4 = vmul.f32 %v11414_v58, %v972_v32 }
  0xfd   : > { %11411 = vst [vmem:[#allocation41_spill] sm:$0xff] %v6490_v15  ;;  %v812_v10 = vmul.f32 %v6127_v60, %v6490_v15  ;;  %v822_v20 = vmul.f32 %v6130_v61, %v6493_v53  ;;  %v864_v51 = vmul.f32 %v6132_v62, %v6496_v46  ;;  %v6514_v37 = vadd.f32 %v11397_v59, %v894_v47 }
  0xfe   : > { %11412 = vst [vmem:[#allocation42_spill] sm:$0xff] %v6493_v53  ;;  %v935_v50 = vadd.f32 %v927_v54, %v6457_v24  ;;  %v6518_v21 = vmul.f32 %v11414_v58, %v973_v56  ;;  %v6521_v38 = vmul.f32 %v11414_v58, %v974_v57  ;;  %v6524_v1 = vmul.f32 %v11415_v49, %v971_v26 }
  0xff   : > { %11413 = vst [vmem:[#allocation43_spill] sm:$0xff] %v6496_v46  ;;  %v838_v60 = vrot.slane %v822_v20, 1  ;;  %v880_v18 = vrot.slane %v864_v51, 2  ;;  %v912_v61 = vmul.f32 %v6514_v37, %v6514_v37  ;;  %v6529_v62 = vmul.f32 %v11415_v49, %v972_v32 }
 0x100   : > { %11416 = vst [vmem:[#allocation20_spill] sm:$0xff] %v6524_v1  ;;  %v5460_v34 = vpop.eup %5459  ;;  %v943_v45 = vmul.f32 0.7978846, %v935_v50  ;;  %v6532_v17 = vmul.f32 %v11415_v49, %v973_v56  ;;  %v6535_v47 = vmul.f32 %v11415_v49, %v974_v57  ;;  %v1026_v26 = vmul.f32 %v6148_v9, %v6440_v36 }
 0x101   : > { %11417 = vst [vmem:[#allocation21_spill] sm:$0xff] %v6529_v62  ;;  %v854_v54 = vadd.f32 %v838_v60, %v812_v10  ;;  %v920_v20 = vmul.f32 %v912_v61, %v6514_v37  ;;  %v961_v51 = vadd.f32 1.0, %v5460_v34  ;;  %v1028_v1 = vmul.f32 %v6148_v9, %v6490_v15 }
 0x102   : > { %11418 = vst [vmem:[#allocation44_spill] sm:$0xff] %v6532_v17  ;;  %5461 = vtanh.f32 %v943_v45  ;;  %v1036_v32 = vmul.f32 %v6154_v13, %v6443_v29  ;;  %v1038_v56 = vmul.f32 %v6154_v13, %v6493_v53  ;;  %v11420_v57 = vrot.slane %v6428_v23, 1 }
 0x103   : > { %11419 = vst [vmem:[#allocation45_spill] sm:$0xff] %v6535_v47  ;;  %v896_v47 = vadd.f32 %v880_v18, %v854_v54  ;;  %v928_v17 = vmul.f32 0.044715, %v920_v20  ;;  %v969_v10 = vmul.f32 0.5, %v961_v51  ;;  %v1077_v60 = vmul.f32 %v6377_v14, %v6397_v25 }
 0x104   : > { %v1067_v50 = vadd.f32 %v11420_v57, %v6421_v40  ;;  %v1052_v9 = vrot.slane %v1036_v32, 1  ;;  %v1054_v61 = vrot.slane %v1038_v56, 1  ;;  %v1078_v34 = vmul.f32 %v6377_v14, %v6446_v33 }
 0x105   : > { %v1080_v13 = vmul.f32 %v6377_v14, %v6496_v46  ;;  %v6560_v40 = vadd.f32 %v11397_v59, %v896_v47  ;;  %v936_v23 = vadd.f32 %v928_v17, %v6514_v37  ;;  %v977_v18 = vmul.f32 %v969_v10, %v6424_v19 }
 0x106   : > { %v1091_v45 = vrot.slane %v6401_v43, 2  ;;  %v1068_v54 = vadd.f32 %v1052_v9, %v1026_v26  ;;  %v1070_v20 = vadd.f32 %v1054_v61, %v1028_v1  ;;  %v1092_v51 = vrot.slane %v6407_v22, 2 }
 0x107   : > { %v1093_v32 = vrot.slane %v1077_v60, 2  ;;  %v914_v56 = vmul.f32 %v6560_v40, %v6560_v40  ;;  %v944_v14 = vmul.f32 0.7978846, %v936_v23  ;;  %v6569_v57 = vmul.f32 %v6304_v41, %v977_v18 }
 0x108   : > { %v6572_v59 = vmul.f32 %v6310_v63, %v977_v18  ;;  %v5462_v17 = vpop.eup %5461  ;;  %v6575_v19 = vmul.f32 %v11414_v58, %v977_v18  ;;  %v6578_v43 = vmul.f32 %v11415_v49, %v977_v18  ;;  %v1094_v1 = vrot.slane %v1078_v34, 2 }
 0x109   : > { %v1095_v22 = vrot.slane %v6411_v42, 2  ;;  %v922_v47 = vmul.f32 %v914_v56, %v6560_v40  ;;  %5463 = vtanh.f32 %v944_v14  ;;  %v959_v26 = vadd.f32 1.0, %v5462_v17 }
 0x10a   : > { %11421 = vst [vmem:[#allocation46_spill] sm:$0xff] %v6575_v19  ;;  %v1096_v10 = vrot.slane %v1080_v13, 2  ;;  %v11423_v60 = vrot.slane %v6381_v6, 2  ;;  %v11424_v61 = vrot.slane %v6388_v52, 2  ;;  %v1107_v18 = vadd.f32 %v1091_v45, %v6354_v35 }
 0x10b   : > { %11422 = vst [vmem:[#allocation47_spill] sm:$0xff] %v6578_v43  ;;  %v1108_v34 = vadd.f32 %v1092_v51, %v6364_v30  ;;  %v930_v46 = vmul.f32 0.044715, %v922_v47  ;;  %v967_v42 = vmul.f32 0.5, %v959_v26  ;;  %v1109_v33 = vadd.f32 %v1093_v32, %v1067_v50 }
 0x10c   : > { %v1105_v9 = vadd.f32 %v11423_v60, %v6338_v55  ;;  %v1106_v23 = vadd.f32 %v11424_v61, %v6346_v2  ;;  %v1110_v25 = vadd.f32 %v1094_v1, %v1068_v54  ;;  %v1111_v56 = vadd.f32 %v1095_v22, %v6403_v12 }
 0x10d   : > { %v1112_v14 = vadd.f32 %v1096_v10, %v1070_v20  ;;  %v1114_v13 = vstv %s6551_s16  ;;  %v6593_v17 = vstv %s6557_s21  ;;  %v938_v55 = vadd.f32 %v930_v46, %v6560_v40  ;;  %s7017_s16 = sld [smem:[#allocation2 + $0x103]] }
 0x10e   : > { %v975_v6 = vmul.f32 %v967_v42, %v6457_v24  ;;  %v6597_v52 = vadd.f32 %v1114_v13, %v1105_v9  ;;  %v6599_v2 = vadd.f32 %v1114_v13, %v1106_v23  ;;  %v6601_v35 = vadd.f32 %v1114_v13, %v1107_v18  ;;  %s7199_s21 = sld [smem:[#allocation5 + $0x3]] }
 0x10f   : > { %v6603_v30 = vadd.f32 %v1114_v13, %v1108_v34  ;;  %v6605_v50 = vadd.f32 %v1114_v13, %v1109_v33  ;;  %v6607_v45 = vadd.f32 %v1114_v13, %v1110_v25  ;;  %v5464_v12 = vpop.eup %5463  ;;  %v946_v54 = vmul.f32 0.7978846, %v938_v55 }
 0x110   : > { %v6610_v20 = vmul.f32 %v6304_v41, %v975_v6  ;;  %v6613_v46 = vmul.f32 %v6310_v63, %v975_v6  ;;  %v6616_v24 = vmul.f32 %v11414_v58, %v975_v6  ;;  %v960_v51 = vadd.f32 1.0, %v5464_v12 }
 0x111   : > { %v6619_v32 = vmul.f32 %v11415_v49, %v975_v6  ;;  %v6621_v1 = vadd.f32 %v1114_v13, %v1111_v56  ;;  %v6623_v33 = vadd.f32 %v1114_v13, %v1112_v14  ;;  %5465 = vtanh.f32 %v946_v54 }
 0x112   : > { %v1123_v25 = vmul.f32 %v6597_v52, %v6597_v52  ;;  %v1124_v22 = vmul.f32 %v6599_v2, %v6599_v2  ;;  %v1125_v47 = vmul.f32 %v6601_v35, %v6601_v35  ;;  %v968_v26 = vmul.f32 0.5, %v960_v51 }
 0x113   : > { %11425 = vst [vmem:[#allocation48_spill] sm:$0xff] %v6619_v32  ;;  %v1126_v10 = vmul.f32 %v6603_v30, %v6603_v30  ;;  %v1127_v60 = vmul.f32 %v6605_v50, %v6605_v50  ;;  %v1128_v9 = vmul.f32 %v6607_v45, %v6607_v45  ;;  %v1129_v61 = vmul.f32 %v6621_v1, %v6621_v1 }
 0x114   : > { %v1130_v23 = vmul.f32 %v6623_v33, %v6623_v33  ;;  %v1131_v18 = vmul.f32 %v1123_v25, %v6597_v52  ;;  %v1132_v34 = vmul.f32 %v1124_v22, %v6599_v2  ;;  %v976_v42 = vmul.f32 %v968_v26, %v6514_v37 }
 0x115   : > { %v1133_v56 = vmul.f32 %v1125_v47, %v6601_v35  ;;  %v1134_v14 = vmul.f32 %v1126_v10, %v6603_v30  ;;  %v1135_v13 = vmul.f32 %v1127_v60, %v6605_v50  ;;  %v1136_v55 = vmul.f32 %v1128_v9, %v6607_v45 }
 0x116   : > { %v1137_v6 = vmul.f32 %v1129_v61, %v6621_v1  ;;  %v1138_v12 = vmul.f32 %v1130_v23, %v6623_v33  ;;  %v1139_v54 = vmul.f32 0.044715, %v1131_v18  ;;  %v6657_v37 = vmul.f32 %v6304_v41, %v976_v42 }
 0x117   : > { %v6660_v51 = vmul.f32 %v6310_v63, %v976_v42  ;;  %v6663_v25 = vmul.f32 %v11414_v58, %v976_v42  ;;  %v6666_v22 = vmul.f32 %v11415_v49, %v976_v42  ;;  %v5466_v47 = vpop.eup %5465  ;;  %v1140_v26 = vmul.f32 0.044715, %v1132_v34 }
 0x118   : > { %v1141_v10 = vmul.f32 0.044715, %v1133_v56  ;;  %v1142_v60 = vmul.f32 0.044715, %v1134_v14  ;;  %v1147_v9 = vadd.f32 %v1139_v54, %v6597_v52  ;;  %v962_v61 = vadd.f32 1.0, %v5466_v47 }
 0x119   : > { %11426 = vst [vmem:[#allocation49_spill] sm:$0xff] %v6663_v25  ;;  %v1143_v23 = vmul.f32 0.044715, %v1135_v13  ;;  %v1144_v18 = vmul.f32 0.044715, %v1136_v55  ;;  %v6672_v43 = vstv %s6625_s22  ;;  %v1148_v19 = vadd.f32 %v1140_v26, %v6599_v2  ;;  %s7205_s22 = sld [smem:[#allocation7 + $0x180]] }
 0x11a   : > { %11427 = vst [vmem:[#allocation50_spill] sm:$0xff] %v6666_v22  ;;  %v1145_v32 = vmul.f32 0.044715, %v1137_v6  ;;  %v1146_v62 = vmul.f32 0.044715, %v1138_v12  ;;  %v1149_v42 = vadd.f32 %v1141_v10, %v6601_v35  ;;  %v970_v22 = vmul.f32 0.5, %v962_v61 }
 0x11b   : > { %v1150_v25 = vadd.f32 %v1142_v60, %v6603_v30  ;;  %v1151_v34 = vadd.f32 %v1143_v23, %v6605_v50  ;;  %v1152_v56 = vadd.f32 %v1144_v18, %v6607_v45  ;;  %v1155_v55 = vmul.f32 0.7978846, %v1147_v9  ;;  %v11430_v18 = vld [vmem:[#allocation31_spill] sm:$0xff] }
 0x11c   : > { %v1153_v14 = vadd.f32 %v1145_v32, %v6621_v1  ;;  %v1154_v13 = vadd.f32 %v1146_v62, %v6623_v33  ;;  %v1156_v6 = vmul.f32 0.7978846, %v1148_v19  ;;  %v978_v12 = vmul.f32 %v970_v22, %v6560_v40 }
 0x11d   : > { %v1157_v54 = vmul.f32 0.7978846, %v1149_v42  ;;  %v1158_v47 = vmul.f32 0.7978846, %v1150_v25  ;;  %v1159_v26 = vmul.f32 0.7978846, %v1151_v34  ;;  %5467 = vtanh.f32 %v1155_v55 }
 0x11e   : > { %v1160_v10 = vmul.f32 0.7978846, %v1152_v56  ;;  %v1161_v60 = vmul.f32 0.7978846, %v1153_v14  ;;  %v1162_v61 = vmul.f32 0.7978846, %v1154_v13  ;;  %v6685_v23 = vmul.f32 %v6304_v41, %v978_v12 }
 0x11f   : > { %v6688_v32 = vmul.f32 %v6310_v63, %v978_v12  ;;  %v6691_v62 = vmul.f32 %v11414_v58, %v978_v12  ;;  %v6694_v19 = vmul.f32 %v11415_v49, %v978_v12  ;;  %5469 = vtanh.f32 %v1156_v6  ;;  %v11428_v41 = vld [vmem:[#allocation22_spill] sm:$0xff]  ;;  %v11431_v42 = vld [vmem:[#allocation29_spill] sm:$0xff] }
 0x120   : > { %v6697_v40 = vstv %s6649_s24  ;;  %v6700_v25 = vstv %s6654_s25  ;;  %v6703_v22 = vstv %s6668_s5  ;;  %5471 = vtanh.f32 %v1157_v54  ;;  %v11429_v63 = vld [vmem:[#allocation26_spill] sm:$0xff]  ;;  %v11437_v54 = vld [vmem:[#allocation23_spill] sm:$0xff]  ;;  %s7219_s24 = sld [smem:[#allocation7 + $0x181]] }
 0x121   : > { %v6707_v9 = vmul.f32 %v6593_v17, %v11428_v41  ;;  %v6711_v58 = vmul.f32 %v6593_v17, %v11429_v63  ;;  %v6715_v49 = vmul.f32 %v6593_v17, %v11430_v18  ;;  %5473 = vtanh.f32 %v1158_v47  ;;  %s7233_s25 = sld [smem:[#allocation7 + $0x182]] }
 0x122   : > { %v6719_v34 = vmul.f32 %v6593_v17, %v11431_v42  ;;  %v6723_v56 = vmul.f32 %v6593_v17, %v6391_v16  ;;  %v6727_v14 = vmul.f32 %v6593_v17, %v6440_v36  ;;  %5475 = vtanh.f32 %v1159_v26  ;;  %v11438_v16 = vld [vmem:[#allocation27_spill] sm:$0xff]  ;;  %v11439_v36 = vld [vmem:[#allocation32_spill] sm:$0xff]  ;;  %s7267_s5 = sld [smem:[#allocation7 + $0x183]] }
 0x123   : > { %v6731_v13 = vmul.f32 %v6593_v17, %v6356_v8  ;;  %v6735_v55 = vmul.f32 %v6593_v17, %v6490_v15  ;;  %v1278_v6 = vstv %s6679_s9  ;;  %v5468_v12 = vpop.eup %5467  ;;  %5477 = vtanh.f32 %v1160_v10  ;;  %v11440_v8 = vld [vmem:[#allocation30_spill] sm:$0xff]  ;;  %s7279_s9 = sld [smem:[#allocation2 + $0x4]] }
 0x124   : > { %11432 = vst [vmem:[#allocation51_spill] sm:$0xff] %v6719_v34  ;;  %v6739_v47 = vmul.f32 %v1278_v6, %v11437_v54  ;;  %v6742_v42 = vmul.f32 %v1278_v6, %v11438_v16  ;;  %v6745_v18 = vmul.f32 %v1278_v6, %v11439_v36  ;;  %5479 = vtanh.f32 %v1161_v60 }
 0x125   : > { %11433 = vst [vmem:[#allocation52_spill] sm:$0xff] %v6723_v56  ;;  %v1171_v26 = vadd.f32 1.0, %v5468_v12  ;;  %v6748_v63 = vmul.f32 %v1278_v6, %v11440_v8  ;;  %v6751_v17 = vmul.f32 %v1278_v6, %v6394_v28  ;;  %v5470_v15 = vpop.eup %5469  ;;  %5481 = vtanh.f32 %v1162_v61 }
 0x126   : > { %11434 = vst [vmem:[#allocation53_spill] sm:$0xff] %v6727_v14  ;;  %v6754_v10 = vmul.f32 %v1278_v6, %v6443_v29  ;;  %v6757_v54 = vmul.f32 %v1278_v6, %v6358_v11  ;;  %v6760_v16 = vmul.f32 %v1278_v6, %v6493_v53  ;;  %v5472_v36 = vpop.eup %5471  ;;  %v1172_v60 = vadd.f32 1.0, %v5470_v15 }
 0x127   : > { %11435 = vst [vmem:[#allocation54_spill] sm:$0xff] %v6731_v13  ;;  %v1179_v12 = vmul.f32 0.5, %v1171_v26  ;;  %v5474_v28 = vpop.eup %5473 }
 0x128   : > { %11436 = vst [vmem:[#allocation55_spill] sm:$0xff] %v6735_v55  ;;  %v1173_v55 = vadd.f32 1.0, %v5472_v36  ;;  %v5476_v11 = vpop.eup %5475  ;;  %v1174_v14 = vadd.f32 1.0, %v5474_v28  ;;  %v1180_v56 = vmul.f32 0.5, %v1172_v60 }
 0x129   : > { %v6768_v6 = vmul.f32 %v1179_v12, %v6597_v52  ;;  %v5478_v26 = vpop.eup %5477  ;;  %v1175_v8 = vadd.f32 1.0, %v5476_v11 }
 0x12a   : > { %v1181_v53 = vmul.f32 0.5, %v1173_v55  ;;  %v5480_v61 = vpop.eup %5479  ;;  %v1176_v34 = vadd.f32 1.0, %v5478_v26  ;;  %v1182_v29 = vmul.f32 0.5, %v1174_v14  ;;  %v6774_v13 = vmul.f32 %v1180_v56, %v6599_v2 }
 0x12b   : > { %v1197_v28 = vmul.f32 %v6672_v43, %v6768_v6  ;;  %v5482_v52 = vpop.eup %5481  ;;  %v1177_v60 = vadd.f32 1.0, %v5480_v61  ;;  %v1183_v12 = vmul.f32 0.5, %v1175_v8  ;;  %v1215_v11 = vmul.f32 %v6697_v40, %v6768_v6 }
 0x12c   : > { %v1189_v15 = vmul.f32 %v1181_v53, %v6601_v35  ;;  %v1178_v55 = vadd.f32 1.0, %v5482_v52  ;;  %v1184_v41 = vmul.f32 0.5, %v1176_v34  ;;  %v1190_v36 = vmul.f32 %v1182_v29, %v6603_v30 }
 0x12d   : > { %v1198_v14 = vmul.f32 %v6672_v43, %v6774_v13  ;;  %v1185_v2 = vmul.f32 0.5, %v1177_v60  ;;  %v1191_v56 = vmul.f32 %v1183_v12, %v6605_v50  ;;  %v6787_v61 = vadd.f32 %v1197_v28, %v6463_v48 }
 0x12e   : > { %v1199_v26 = vmul.f32 %v6672_v43, %v1189_v15  ;;  %v1186_v8 = vmul.f32 0.5, %v1178_v55  ;;  %v1192_v53 = vmul.f32 %v1184_v41, %v6607_v45  ;;  %v1200_v35 = vmul.f32 %v6672_v43, %v1190_v36 }
 0x12f   : > { %v6792_v34 = vadd.f32 %v1198_v14, %v6468_v3  ;;  %v1193_v29 = vmul.f32 %v1185_v2, %v6621_v1  ;;  %v1201_v30 = vmul.f32 %v6672_v43, %v1191_v56  ;;  %v1216_v50 = vmul.f32 %v6697_v40, %v6774_v13 }
 0x130   : > { %v6797_v52 = vadd.f32 %v1199_v26, %v6471_v27  ;;  %v1194_v48 = vmul.f32 %v1186_v8, %v6623_v33  ;;  %v1202_v28 = vmul.f32 %v6672_v43, %v1192_v53  ;;  %v6804_v45 = vadd.f32 %v1200_v35, %v6474_v5 }
 0x131   : > { %v1217_v3 = vmul.f32 %v6697_v40, %v1189_v15  ;;  %v1203_v41 = vmul.f32 %v6672_v43, %v1193_v29  ;;  %v6809_v1 = vadd.f32 %v1201_v30, %v6610_v20  ;;  %v1218_v27 = vmul.f32 %v6697_v40, %v1190_v36 }
 0x132   : > { %v1219_v60 = vmul.f32 %v6697_v40, %v1191_v56  ;;  %v1204_v12 = vmul.f32 %v6672_v43, %v1194_v48  ;;  %v6815_v33 = vadd.f32 %v1202_v28, %v6657_v37  ;;  %v1220_v55 = vmul.f32 %v6697_v40, %v1192_v53 }
 0x133   : > { %v1221_v5 = vmul.f32 %v6697_v40, %v1193_v29  ;;  %v6820_v14 = vadd.f32 %v1203_v41, %v6569_v57  ;;  %v1222_v2 = vmul.f32 %v6697_v40, %v1194_v48  ;;  %v6824_v20 = vadd.f32 %v1215_v11, %v6477_v39  ;;  %v11441_v41 = vld [vmem:[#allocation49_spill] sm:$0xff] }
 0x134   : > { %v6827_v26 = vadd.f32 %v1216_v50, %v6484_v44  ;;  %v6830_v43 = vadd.f32 %v1204_v12, %v6685_v23  ;;  %v6833_v37 = vadd.f32 %v1217_v3, %v6487_v7  ;;  %v6836_v8 = vadd.f32 %v1218_v27, %v6499_v0 }
 0x135   : > { %v6839_v57 = vadd.f32 %v1219_v60, %v6613_v46  ;;  %v6842_v40 = vadd.f32 %v1220_v55, %v6660_v51  ;;  %v6845_v39 = vadd.f32 %v1221_v5, %v6572_v59  ;;  %v6848_v44 = vadd.f32 %v1222_v2, %v6688_v32 }
 0x136   : > { %v1233_v23 = vmul.f32 %v6700_v25, %v6768_v6  ;;  %v1234_v7 = vmul.f32 %v6700_v25, %v6774_v13  ;;  %v1235_v0 = vmul.f32 %v6700_v25, %v1189_v15  ;;  %v1236_v46 = vmul.f32 %v6700_v25, %v1190_v36 }
 0x137   : > { %v1237_v11 = vmul.f32 %v6700_v25, %v1191_v56  ;;  %v1238_v51 = vmul.f32 %v6700_v25, %v1192_v53  ;;  %v1239_v59 = vmul.f32 %v6700_v25, %v1193_v29  ;;  %v1240_v35 = vmul.f32 %v6700_v25, %v1194_v48  ;;  %v11442_v25 = vld [vmem:[#allocation46_spill] sm:$0xff] }
 0x138   : > { %v6861_v32 = vadd.f32 %v1233_v23, %v6502_v31  ;;  %v6866_v30 = vadd.f32 %v1234_v7, %v6505_v4  ;;  %v6869_v50 = vadd.f32 %v1235_v0, %v6518_v21  ;;  %v6872_v28 = vadd.f32 %v1236_v46, %v6521_v38 }
 0x139   : > { %v6875_v3 = vadd.f32 %v1237_v11, %v6616_v24  ;;  %v6878_v27 = vadd.f32 %v1238_v51, %v11441_v41  ;;  %v6881_v31 = vadd.f32 %v1239_v59, %v11442_v25  ;;  %v6884_v60 = vadd.f32 %v1240_v35, %v6691_v62  ;;  %v11444_v62 = vld [vmem:[#allocation20_spill] sm:$0xff] }
 0x13a   : > { %v1251_v4 = vmul.f32 %v6703_v22, %v6768_v6  ;;  %v1252_v21 = vmul.f32 %v6703_v22, %v6774_v13  ;;  %v1253_v38 = vmul.f32 %v6703_v22, %v1189_v15  ;;  %v1254_v24 = vmul.f32 %v6703_v22, %v1190_v36  ;;  %v11446_v6 = vld [vmem:[#allocation21_spill] sm:$0xff]  ;;  %v11448_v13 = vld [vmem:[#allocation44_spill] sm:$0xff] }
 0x13b   : > { %11443 = vst [vmem:[#allocation49_spill] sm:$0xff] %v6884_v60  ;;  %v1255_v12 = vmul.f32 %v6703_v22, %v1191_v56  ;;  %v1256_v55 = vmul.f32 %v6703_v22, %v1192_v53  ;;  %v1257_v5 = vmul.f32 %v6703_v22, %v1193_v29  ;;  %v1258_v2 = vmul.f32 %v6703_v22, %v1194_v48  ;;  %v11450_v36 = vld [vmem:[#allocation45_spill] sm:$0xff]  ;;  %v11452_v56 = vld [vmem:[#allocation48_spill] sm:$0xff]  ;;  %v11454_v22 = vld [vmem:[#allocation50_spill] sm:$0xff] }
 0x13c   : > { %v6897_v23 = vadd.f32 %v1251_v4, %v11444_v62  ;;  %v6902_v7 = vadd.f32 %v1252_v21, %v11446_v6  ;;  %v6905_v15 = vadd.f32 %v1253_v38, %v11448_v13  ;;  %v6908_v0 = vadd.f32 %v1254_v24, %v11450_v36  ;;  %v11456_v48 = vld [vmem:[#allocation47_spill] sm:$0xff]  ;;  %v11472_v6 = vld [vmem:[#allocation24_spill] sm:$0xff] }
 0x13d   : > { %v6911_v53 = vadd.f32 %v1255_v12, %v11452_v56  ;;  %v6916_v29 = vadd.f32 %v1256_v55, %v11454_v22  ;;  %v6919_v46 = vadd.f32 %v1257_v5, %v11456_v48  ;;  %v6922_v11 = vadd.f32 %v1258_v2, %v6694_v19  ;;  %v11462_v21 = vld [vmem:[#allocation51_spill] sm:$0xff]  ;;  %v11464_v19 = vld [vmem:[#allocation52_spill] sm:$0xff]  ;;  %v11474_v56 = vld [vmem:[#allocation33_spill] sm:$0xff] }
 0x13e   : > { %11445 = vst [vmem:[#allocation46_spill] sm:$0xff] %v6897_v23  ;;  %v11459_v51 = vrot.slane %v6739_v47, 1  ;;  %v11460_v35 = vrot.slane %v6742_v42, 1  ;;  %v11461_v25 = vrot.slane %v6745_v18, 1  ;;  %v11463_v38 = vrot.slane %v6748_v63, 1  ;;  %v11468_v42 = vld [vmem:[#allocation54_spill] sm:$0xff] }
 0x13f   : > { %11447 = vst [vmem:[#allocation20_spill] sm:$0xff] %v6902_v7  ;;  %v11465_v12 = vrot.slane %v6751_v17, 1  ;;  %v11467_v47 = vrot.slane %v6754_v10, 1  ;;  %v11470_v18 = vld [vmem:[#allocation55_spill] sm:$0xff]  ;;  %v1320_v63 = vstv %s6863_s13  ;;  %v11473_v36 = vld [vmem:[#allocation28_spill] sm:$0xff]  ;;  %v11475_v48 = vld [vmem:[#allocation25_spill] sm:$0xff] }
 0x140   : > { %11449 = vst [vmem:[#allocation21_spill] sm:$0xff] %v6905_v15  ;;  %v1311_v59 = vadd.f32 %v11459_v51, %v6707_v9  ;;  %v1312_v41 = vadd.f32 %v11460_v35, %v6711_v58  ;;  %v1313_v4 = vadd.f32 %v11461_v25, %v6715_v49  ;;  %v1314_v24 = vadd.f32 %v11463_v38, %v11462_v21  ;;  %v11466_v9 = vld [vmem:[#allocation53_spill] sm:$0xff]  ;;  %v11477_v25 = vld [vmem:[#allocation40_spill] sm:$0xff]  ;;  %v11478_v38 = vld [vmem:[#allocation35_spill] sm:$0xff]  ;;  %s7317_s13 = sld [smem:[#allocation2 + $0x84]] }
 0x141   : > { %11451 = vst [vmem:[#allocation44_spill] sm:$0xff] %v6908_v0  ;;  %v1315_v55 = vadd.f32 %v11465_v12, %v11464_v19  ;;  %v1316_v5 = vadd.f32 %v11467_v47, %v11466_v9  ;;  %v11469_v58 = vrot.slane %v6757_v54, 1  ;;  %v11471_v49 = vrot.slane %v6760_v16, 1  ;;  %v11476_v35 = vld [vmem:[#allocation37_spill] sm:$0xff]  ;;  %v11479_v19 = vld [vmem:[#allocation43_spill] sm:$0xff] }
 0x142   : > { %11453 = vst [vmem:[#allocation45_spill] sm:$0xff] %v6911_v53  ;;  %v1321_v13 = vmul.f32 %v1320_v63, %v11472_v6  ;;  %v1322_v17 = vmul.f32 %v1320_v63, %v11473_v36  ;;  %v1323_v22 = vmul.f32 %v1320_v63, %v11474_v56  ;;  %v1324_v51 = vmul.f32 %v1320_v63, %v11475_v48  ;;  %v11483_v53 = vld [vmem:[#allocation31_spill] sm:$0xff]  ;;  %v11484_v0 = vld [vmem:[#allocation29_spill] sm:$0xff] }
 0x143   : > { %11455 = vst [vmem:[#allocation48_spill] sm:$0xff] %v6916_v29  ;;  %v1317_v2 = vadd.f32 %v11469_v58, %v11468_v42  ;;  %v1318_v62 = vadd.f32 %v11471_v49, %v11470_v18  ;;  %v1325_v10 = vmul.f32 %v1320_v63, %v11476_v35  ;;  %v1326_v21 = vmul.f32 %v1320_v63, %v11477_v25 }
 0x144   : > { %11457 = vst [vmem:[#allocation50_spill] sm:$0xff] %v6919_v46  ;;  %v1327_v54 = vmul.f32 %v1320_v63, %v11478_v38  ;;  %v1328_v12 = vmul.f32 %v1320_v63, %v11479_v19  ;;  %v1337_v9 = vrot.slane %v1321_v13, 2  ;;  %v1338_v16 = vrot.slane %v1322_v17, 2 }
 0x145   : > { %11458 = vst [vmem:[#allocation47_spill] sm:$0xff] %v6922_v11  ;;  %v1339_v47 = vrot.slane %v1323_v22, 2  ;;  %v1340_v42 = vrot.slane %v1324_v51, 2  ;;  %v1341_v58 = vrot.slane %v1325_v10, 2  ;;  %v1342_v18 = vrot.slane %v1326_v21, 2 }
 0x146   : > { %v1343_v49 = vrot.slane %v1327_v54, 2  ;;  %v1344_v48 = vrot.slane %v1328_v12, 2  ;;  %v1353_v56 = vadd.f32 %v1337_v9, %v1311_v59  ;;  %v1354_v35 = vadd.f32 %v1338_v16, %v1312_v41 }
 0x147   : > { %v1355_v36 = vadd.f32 %v1339_v47, %v1313_v4  ;;  %v1356_v25 = vadd.f32 %v1340_v42, %v1314_v24  ;;  %v1357_v6 = vadd.f32 %v1341_v58, %v1315_v55  ;;  %v1358_v38 = vadd.f32 %v1342_v18, %v1316_v5 }
 0x148   : > { %v1359_v11 = vadd.f32 %v1343_v49, %v1317_v2  ;;  %v1360_v63 = vadd.f32 %v1344_v48, %v1318_v62  ;;  %v1362_v13 = vstv %s6899_s19  ;;  %v6965_v17 = vstv %s6913_s20  ;;  %s7323_s19 = sld [smem:[#allocation2 + $0x104]] }
 0x149   : > { %v6968_v22 = vstv %s6927_s23  ;;  %v6971_v51 = vstv %s6941_s26  ;;  %v6975_v10 = vadd.f32 %v1362_v13, %v1353_v56  ;;  %v6977_v59 = vadd.f32 %v1362_v13, %v1354_v35  ;;  %s7505_s20 = sld [smem:[#allocation5 + $0x4]] }
 0x14a   : > { %v6979_v41 = vadd.f32 %v1362_v13, %v1355_v36  ;;  %v6981_v4 = vadd.f32 %v1362_v13, %v1356_v25  ;;  %v6983_v24 = vadd.f32 %v1362_v13, %v1357_v6  ;;  %v6985_v55 = vadd.f32 %v1362_v13, %v1358_v38  ;;  %s7511_s23 = sld [smem:[#allocation7 + $0x200]] }
 0x14b   : > { %v6987_v5 = vadd.f32 %v1362_v13, %v1359_v11  ;;  %v6989_v2 = vadd.f32 %v1362_v13, %v1360_v63  ;;  %v1371_v62 = vmul.f32 %v6975_v10, %v6975_v10  ;;  %v1372_v56 = vmul.f32 %v6977_v59, %v6977_v59  ;;  %s7525_s26 = sld [smem:[#allocation7 + $0x201]] }
 0x14c   : > { %v1373_v36 = vmul.f32 %v6979_v41, %v6979_v41  ;;  %v1374_v48 = vmul.f32 %v6981_v4, %v6981_v4  ;;  %v1375_v6 = vmul.f32 %v6983_v24, %v6983_v24  ;;  %v1376_v11 = vmul.f32 %v6985_v55, %v6985_v55 }
 0x14d   : > { %v1377_v35 = vmul.f32 %v6987_v5, %v6987_v5  ;;  %v1378_v25 = vmul.f32 %v6989_v2, %v6989_v2  ;;  %v1379_v21 = vmul.f32 %v1371_v62, %v6975_v10  ;;  %v1380_v38 = vmul.f32 %v1372_v56, %v6977_v59 }
 0x14e   : > { %v1381_v54 = vmul.f32 %v1373_v36, %v6979_v41  ;;  %v1382_v12 = vmul.f32 %v1374_v48, %v6981_v4  ;;  %v1383_v9 = vmul.f32 %v1375_v6, %v6983_v24  ;;  %v1384_v16 = vmul.f32 %v1376_v11, %v6985_v55 }
 0x14f   : > { %v1385_v47 = vmul.f32 %v1377_v35, %v6987_v5  ;;  %v1386_v42 = vmul.f32 %v1378_v25, %v6989_v2  ;;  %v1387_v58 = vmul.f32 0.044715, %v1379_v21  ;;  %v1388_v18 = vmul.f32 0.044715, %v1380_v38 }
 0x150   : > { %v1389_v49 = vmul.f32 0.044715, %v1381_v54  ;;  %v7020_v63 = vstv %s6961_s12  ;;  %v1390_v13 = vmul.f32 0.044715, %v1382_v12  ;;  %v1391_v62 = vmul.f32 0.044715, %v1383_v9 }
 0x151   : > { %11480 = vst [vmem:[#allocation51_spill] sm:$0xff] %v7020_v63  ;;  %v1392_v56 = vmul.f32 0.044715, %v1384_v16  ;;  %v1516_v36 = vstv %s6973_s11  ;;  %v1393_v48 = vmul.f32 0.044715, %v1385_v47  ;;  %v1395_v6 = vadd.f32 %v1387_v58, %v6975_v10  ;;  %v11481_v58 = vld [vmem:[#allocation22_spill] sm:$0xff] }
 0x152   : > { %v1394_v19 = vmul.f32 0.044715, %v1386_v42  ;;  %v1396_v11 = vadd.f32 %v1388_v18, %v6977_v59  ;;  %v1397_v35 = vadd.f32 %v1389_v49, %v6979_v41  ;;  %v1398_v25 = vadd.f32 %v1390_v13, %v6981_v4  ;;  %s7539_s12 = sld [smem:[#allocation7 + $0x202]] }
 0x153   : > { %v1399_v21 = vadd.f32 %v1391_v62, %v6983_v24  ;;  %v1400_v38 = vadd.f32 %v1392_v56, %v6985_v55  ;;  %v1401_v54 = vadd.f32 %v1393_v48, %v6987_v5  ;;  %v1403_v9 = vmul.f32 0.7978846, %v1395_v6  ;;  %v11482_v62 = vld [vmem:[#allocation26_spill] sm:$0xff]  ;;  %v11485_v6 = vld [vmem:[#allocation19_spill] sm:$0xff]  ;;  %s7573_s11 = sld [smem:[#allocation7 + $0x203]] }
 0x154   : > { %v1402_v12 = vadd.f32 %v1394_v19, %v6989_v2  ;;  %v1404_v16 = vmul.f32 0.7978846, %v1396_v11  ;;  %v1405_v47 = vmul.f32 0.7978846, %v1397_v35  ;;  %v1406_v42 = vmul.f32 0.7978846, %v1398_v25 }
 0x155   : > { %v1407_v46 = vmul.f32 0.7978846, %v1399_v21  ;;  %v1517_v18 = vmul.f32 %v1516_v36, %v11481_v58  ;;  %v1408_v49 = vmul.f32 0.7978846, %v1400_v38  ;;  %v1409_v29 = vmul.f32 0.7978846, %v1401_v54 }
 0x156   : > { %v1410_v13 = vmul.f32 0.7978846, %v1402_v12  ;;  %5483 = vtanh.f32 %v1403_v9  ;;  %v1518_v56 = vmul.f32 %v1516_v36, %v11482_v62  ;;  %v1519_v48 = vmul.f32 %v1516_v36, %v11483_v53  ;;  %v11487_v35 = vld [vmem:[#allocation38_spill] sm:$0xff]  ;;  %v11491_v38 = vld [vmem:[#allocation41_spill] sm:$0xff] }
 0x157   : > { %5485 = vtanh.f32 %v1404_v16  ;;  %v1520_v19 = vmul.f32 %v1516_v36, %v11484_v0  ;;  %v7036_v11 = vmul.f32 %v1516_v36, %v11485_v6  ;;  %v7039_v25 = vmul.f32 %v1516_v36, %v11487_v35  ;;  %v11489_v21 = vld [vmem:[#allocation18_spill] sm:$0xff]  ;;  %v11494_v16 = vld [vmem:[#allocation23_spill] sm:$0xff]  ;;  %v11496_v6 = vld [vmem:[#allocation32_spill] sm:$0xff] }
 0x158   : > { %5487 = vtanh.f32 %v1405_v47  ;;  %v7042_v58 = vmul.f32 %v1516_v36, %v11489_v21  ;;  %v7045_v54 = vmul.f32 %v1516_v36, %v11491_v38  ;;  %v1526_v12 = vstv %s7011_s14  ;;  %v11495_v47 = vld [vmem:[#allocation27_spill] sm:$0xff]  ;;  %v11497_v35 = vld [vmem:[#allocation30_spill] sm:$0xff]  ;;  %s7585_s14 = sld [smem:[#allocation2 + $0x5]] }
 0x159   : > { %11486 = vst [vmem:[#allocation52_spill] sm:$0xff] %v7036_v11  ;;  %5489 = vtanh.f32 %v1406_v42  ;;  %v7049_v9 = vstv %s7017_s16  ;;  %v1527_v0 = vmul.f32 %v1526_v12, %v11494_v16  ;;  %v1528_v53 = vmul.f32 %v1526_v12, %v11495_v47  ;;  %v11498_v11 = vld [vmem:[#allocation36_spill] sm:$0xff]  ;;  %v11499_v42 = vld [vmem:[#allocation39_spill] sm:$0xff]  ;;  %v11500_v38 = vld [vmem:[#allocation34_spill] sm:$0xff]  ;;  %s7623_s16 = sld [smem:[#allocation2 + $0x85]] }
 0x15a   : > { %11488 = vst [vmem:[#allocation53_spill] sm:$0xff] %v7039_v25  ;;  %5491 = vtanh.f32 %v1407_v46  ;;  %v1529_v62 = vmul.f32 %v1526_v12, %v11496_v6  ;;  %v1530_v25 = vmul.f32 %v1526_v12, %v11497_v35  ;;  %v7056_v21 = vmul.f32 %v1526_v12, %v11498_v11  ;;  %v11501_v46 = vld [vmem:[#allocation42_spill] sm:$0xff] }
 0x15b   : > { %11490 = vst [vmem:[#allocation54_spill] sm:$0xff] %v7042_v58  ;;  %5493 = vtanh.f32 %v1408_v49  ;;  %v7059_v58 = vmul.f32 %v1526_v12, %v11499_v42  ;;  %v7065_v16 = vmul.f32 %v1526_v12, %v11501_v46  ;;  %v1543_v47 = vrot.slane %v1527_v0, 1 }
 0x15c   : > { %11492 = vst [vmem:[#allocation55_spill] sm:$0xff] %v7045_v54  ;;  %v5484_v36 = vpop.eup %5483  ;;  %5495 = vtanh.f32 %v1409_v29  ;;  %v1544_v6 = vrot.slane %v1528_v53, 1  ;;  %v1545_v35 = vrot.slane %v1529_v62, 1  ;;  %v1546_v7 = vrot.slane %v1530_v25, 1 }
 0x15d   : > { %11493 = vst [vmem:[#allocation56_spill] sm:$0xff] %v7049_v9  ;;  %v7062_v9 = vmul.f32 %v1526_v12, %v11500_v38  ;;  %v5486_v54 = vpop.eup %5485  ;;  %5497 = vtanh.f32 %v1410_v13  ;;  %v1419_v49 = vadd.f32 1.0, %v5484_v36  ;;  %v7071_v36 = vadd.f32 %v1543_v47, %v1517_v18 }
 0x15e   : > { %v5488_v15 = vpop.eup %5487  ;;  %v1420_v11 = vadd.f32 1.0, %v5486_v54  ;;  %v7073_v53 = vadd.f32 %v1544_v6, %v1518_v56  ;;  %v7078_v23 = vadd.f32 %v1545_v35, %v1519_v48 }
 0x15f   : > { %v5490_v29 = vpop.eup %5489  ;;  %v1421_v63 = vadd.f32 1.0, %v5488_v15  ;;  %v1427_v38 = vmul.f32 0.5, %v1419_v49 }
 0x160   : > { %v5492_v0 = vpop.eup %5491  ;;  %v1422_v46 = vadd.f32 1.0, %v5490_v29  ;;  %v1428_v13 = vmul.f32 0.5, %v1420_v11  ;;  %v7083_v29 = vadd.f32 %v1546_v7, %v1520_v19 }
 0x161   : > { %v5494_v62 = vpop.eup %5493  ;;  %v1423_v25 = vadd.f32 1.0, %v5492_v0  ;;  %v1429_v54 = vmul.f32 0.5, %v1421_v63  ;;  %v7076_v42 = vmul.f32 %v1427_v38, %v6975_v10 }
 0x162   : > { %v5496_v15 = vpop.eup %5495  ;;  %v1424_v49 = vadd.f32 1.0, %v5494_v62  ;;  %v1430_v60 = vmul.f32 0.5, %v1422_v46  ;;  %v7081_v12 = vmul.f32 %v1428_v13, %v6977_v59 }
 0x163   : > { %v5498_v18 = vpop.eup %5497  ;;  %v1425_v11 = vadd.f32 1.0, %v5496_v15  ;;  %v1431_v56 = vmul.f32 0.5, %v1423_v25  ;;  %v1437_v6 = vmul.f32 %v1429_v54, %v6979_v41  ;;  %v1445_v63 = vmul.f32 %v6965_v17, %v7076_v42 }
 0x164   : > { %v1426_v10 = vadd.f32 1.0, %v5498_v18  ;;  %v1432_v38 = vmul.f32 0.5, %v1424_v49  ;;  %v1438_v48 = vmul.f32 %v1430_v60, %v6981_v4  ;;  %v1446_v35 = vmul.f32 %v6965_v17, %v7081_v12 }
 0x165   : > { %v1433_v47 = vmul.f32 0.5, %v1425_v11  ;;  %v1439_v59 = vmul.f32 %v1431_v56, %v6983_v24  ;;  %v1447_v7 = vmul.f32 %v6965_v17, %v1437_v6  ;;  %v7094_v19 = vadd.f32 %v1445_v63, %v6787_v61 }
 0x166   : > { %v1434_v46 = vmul.f32 0.5, %v1426_v10  ;;  %v1440_v41 = vmul.f32 %v1432_v38, %v6985_v55  ;;  %v1448_v0 = vmul.f32 %v6965_v17, %v1438_v48  ;;  %v7099_v13 = vadd.f32 %v1446_v35, %v6792_v34 }
 0x167   : > { %v1441_v60 = vmul.f32 %v1433_v47, %v6987_v5  ;;  %v1449_v4 = vmul.f32 %v6965_v17, %v1439_v59  ;;  %v7104_v62 = vadd.f32 %v1447_v7, %v6797_v52  ;;  %v1463_v24 = vmul.f32 %v6968_v22, %v7076_v42 }
 0x168   : > { %v1442_v61 = vmul.f32 %v1434_v46, %v6989_v2  ;;  %v1450_v25 = vmul.f32 %v6965_v17, %v1440_v41  ;;  %v7111_v55 = vadd.f32 %v1448_v0, %v6804_v45  ;;  %v1464_v34 = vmul.f32 %v6968_v22, %v7081_v12 }
 0x169   : > { %v1451_v5 = vmul.f32 %v6965_v17, %v1441_v60  ;;  %v7117_v54 = vadd.f32 %v1449_v4, %v6809_v1  ;;  %v1465_v52 = vmul.f32 %v6968_v22, %v1437_v6  ;;  %v1466_v15 = vmul.f32 %v6968_v22, %v1438_v48 }
 0x16a   : > { %v1452_v49 = vmul.f32 %v6965_v17, %v1442_v61  ;;  %v7123_v2 = vadd.f32 %v1450_v25, %v6815_v33  ;;  %v1467_v45 = vmul.f32 %v6968_v22, %v1439_v59  ;;  %v1468_v18 = vmul.f32 %v6968_v22, %v1440_v41 }
 0x16b   : > { %v7128_v11 = vadd.f32 %v1451_v5, %v6820_v14  ;;  %v1469_v56 = vmul.f32 %v6968_v22, %v1441_v60  ;;  %v1470_v1 = vmul.f32 %v6968_v22, %v1442_v61  ;;  %v7133_v63 = vadd.f32 %v1463_v24, %v6824_v20 }
 0x16c   : > { %v7136_v10 = vadd.f32 %v1452_v49, %v6830_v43  ;;  %v7139_v33 = vadd.f32 %v1464_v34, %v6827_v26  ;;  %v7142_v17 = vadd.f32 %v1465_v52, %v6833_v37  ;;  %v7145_v38 = vadd.f32 %v1466_v15, %v6836_v8 }
 0x16d   : > { %v7148_v14 = vadd.f32 %v1467_v45, %v6839_v57  ;;  %v7151_v22 = vadd.f32 %v1468_v18, %v6842_v40  ;;  %v7154_v20 = vadd.f32 %v1469_v56, %v6845_v39  ;;  %v7157_v43 = vadd.f32 %v1470_v1, %v6848_v44  ;;  %v11511_v45 = vld [vmem:[#allocation44_spill] sm:$0xff]  ;;  %v11517_v56 = vld [vmem:[#allocation50_spill] sm:$0xff] }
 0x16e   : > { %v1481_v26 = vmul.f32 %v6971_v51, %v7076_v42  ;;  %v1482_v37 = vmul.f32 %v6971_v51, %v7081_v12  ;;  %v1483_v8 = vmul.f32 %v6971_v51, %v1437_v6  ;;  %v1484_v57 = vmul.f32 %v6971_v51, %v1438_v48 }
 0x16f   : > { %v1485_v35 = vmul.f32 %v6971_v51, %v1439_v59  ;;  %v1486_v40 = vmul.f32 %v6971_v51, %v1440_v41  ;;  %v1487_v39 = vmul.f32 %v6971_v51, %v1441_v60  ;;  %v1488_v47 = vmul.f32 %v6971_v51, %v1442_v61 }
 0x170   : > { %v7170_v44 = vadd.f32 %v1481_v26, %v6861_v32  ;;  %v7173_v7 = vadd.f32 %v1482_v37, %v6866_v30  ;;  %v7176_v46 = vadd.f32 %v1483_v8, %v6869_v50  ;;  %v7179_v0 = vadd.f32 %v1484_v57, %v6872_v28  ;;  %v11502_v32 = vld [vmem:[#allocation49_spill] sm:$0xff]  ;;  %v11504_v30 = vld [vmem:[#allocation51_spill] sm:$0xff]  ;;  %v11521_v8 = vld [vmem:[#allocation52_spill] sm:$0xff] }
 0x171   : > { %v7182_v4 = vadd.f32 %v1485_v35, %v6875_v3  ;;  %v7185_v24 = vadd.f32 %v1486_v40, %v6878_v27  ;;  %v7188_v51 = vadd.f32 %v1487_v39, %v6881_v31  ;;  %v7191_v25 = vadd.f32 %v1488_v47, %v11502_v32  ;;  %v11519_v26 = vld [vmem:[#allocation47_spill] sm:$0xff]  ;;  %v11523_v40 = vld [vmem:[#allocation53_spill] sm:$0xff]  ;;  %v11525_v32 = vld [vmem:[#allocation54_spill] sm:$0xff] }
 0x172   : > { %v1499_v34 = vmul.f32 %v11504_v30, %v7076_v42  ;;  %v1500_v50 = vmul.f32 %v11504_v30, %v7081_v12  ;;  %v1501_v28 = vmul.f32 %v11504_v30, %v1437_v6  ;;  %v1502_v3 = vmul.f32 %v11504_v30, %v1438_v48  ;;  %v11505_v42 = vld [vmem:[#allocation46_spill] sm:$0xff]  ;;  %v11507_v12 = vld [vmem:[#allocation20_spill] sm:$0xff]  ;;  %v11509_v6 = vld [vmem:[#allocation21_spill] sm:$0xff] }
 0x173   : > { %11503 = vst [vmem:[#allocation49_spill] sm:$0xff] %v7191_v25  ;;  %v1503_v27 = vmul.f32 %v11504_v30, %v1439_v59  ;;  %v1504_v31 = vmul.f32 %v11504_v30, %v1440_v41  ;;  %v1505_v5 = vmul.f32 %v11504_v30, %v1441_v60  ;;  %v1506_v52 = vmul.f32 %v11504_v30, %v1442_v61  ;;  %v11513_v59 = vld [vmem:[#allocation45_spill] sm:$0xff]  ;;  %v11515_v60 = vld [vmem:[#allocation48_spill] sm:$0xff] }
 0x174   : > { %v7208_v15 = vadd.f32 %v1499_v34, %v11505_v42  ;;  %v7211_v49 = vadd.f32 %v1500_v50, %v11507_v12  ;;  %v7214_v48 = vadd.f32 %v1501_v28, %v11509_v6  ;;  %v7217_v18 = vadd.f32 %v1502_v3, %v11511_v45  ;;  %v11527_v50 = vld [vmem:[#allocation55_spill] sm:$0xff]  ;;  %v11533_v6 = vld [vmem:[#allocation25_spill] sm:$0xff] }
 0x175   : > { %v7222_v41 = vadd.f32 %v1503_v27, %v11513_v59  ;;  %v7225_v61 = vadd.f32 %v1504_v31, %v11515_v60  ;;  %v7228_v1 = vadd.f32 %v1505_v5, %v11517_v56  ;;  %v7231_v37 = vadd.f32 %v1506_v52, %v11519_v26  ;;  %v11529_v27 = vld [vmem:[#allocation24_spill] sm:$0xff]  ;;  %v11534_v45 = vld [vmem:[#allocation37_spill] sm:$0xff]  ;;  %v11537_v26 = vld [vmem:[#allocation43_spill] sm:$0xff] }
 0x176   : > { %11506 = vst [vmem:[#allocation51_spill] sm:$0xff] %v7208_v15  ;;  %v11522_v57 = vrot.slane %v7056_v21, 1  ;;  %v11524_v39 = vrot.slane %v7059_v58, 1  ;;  %v11526_v30 = vrot.slane %v7062_v9, 1  ;;  %v11528_v28 = vrot.slane %v7065_v16, 1  ;;  %v11530_v31 = vld [vmem:[#allocation56_spill] sm:$0xff] }
 0x177   : > { %11508 = vst [vmem:[#allocation46_spill] sm:$0xff] %v7211_v49  ;;  %v1569_v5 = vmul.f32 %v11530_v31, %v11529_v27  ;;  %v11531_v52 = vld [vmem:[#allocation28_spill] sm:$0xff]  ;;  %v11532_v21 = vld [vmem:[#allocation33_spill] sm:$0xff]  ;;  %v1572_v58 = vmul.f32 %v11530_v31, %v11533_v6  ;;  %v1573_v9 = vmul.f32 %v11530_v31, %v11534_v45  ;;  %v11536_v16 = vld [vmem:[#allocation35_spill] sm:$0xff] }
 0x178   : > { %11510 = vst [vmem:[#allocation20_spill] sm:$0xff] %v7214_v48  ;;  %v1563_v35 = vadd.f32 %v11522_v57, %v11521_v8  ;;  %v1564_v47 = vadd.f32 %v11524_v39, %v11523_v40  ;;  %v1565_v34 = vadd.f32 %v11526_v30, %v11525_v32  ;;  %v1566_v3 = vadd.f32 %v11528_v28, %v11527_v50  ;;  %v11535_v59 = vld [vmem:[#allocation40_spill] sm:$0xff] }
 0x179   : > { %11512 = vst [vmem:[#allocation21_spill] sm:$0xff] %v7217_v18  ;;  %v1570_v42 = vmul.f32 %v11530_v31, %v11531_v52  ;;  %v1571_v12 = vmul.f32 %v11530_v31, %v11532_v21  ;;  %v1574_v60 = vmul.f32 %v11530_v31, %v11535_v59  ;;  %v1575_v56 = vmul.f32 %v11530_v31, %v11536_v16  ;;  %v11542_v18 = vld [vmem:[#allocation29_spill] sm:$0xff] }
 0x17a   : > { %11514 = vst [vmem:[#allocation44_spill] sm:$0xff] %v7222_v41  ;;  %v1576_v8 = vmul.f32 %v11530_v31, %v11537_v26  ;;  %v1585_v57 = vrot.slane %v1569_v5, 2  ;;  %v1588_v32 = vrot.slane %v1572_v58, 2  ;;  %v1589_v30 = vrot.slane %v1573_v9, 2  ;;  %v11541_v41 = vld [vmem:[#allocation31_spill] sm:$0xff] }
 0x17b   : > { %11516 = vst [vmem:[#allocation45_spill] sm:$0xff] %v7225_v61  ;;  %v1586_v40 = vrot.slane %v1570_v42, 2  ;;  %v1587_v39 = vrot.slane %v1571_v12, 2  ;;  %v1590_v50 = vrot.slane %v1574_v60, 2  ;;  %v1591_v28 = vrot.slane %v1575_v56, 2 }
 0x17c   : > { %11518 = vst [vmem:[#allocation48_spill] sm:$0xff] %v7228_v1  ;;  %v1592_v45 = vrot.slane %v1576_v8, 2  ;;  %v1601_v59 = vadd.f32 %v1585_v57, %v7071_v36  ;;  %v1604_v31 = vadd.f32 %v1588_v32, %v7083_v29  ;;  %v1605_v5 = vadd.f32 %v1589_v30, %v1563_v35 }
 0x17d   : > { %11520 = vst [vmem:[#allocation50_spill] sm:$0xff] %v7231_v37  ;;  %v1602_v6 = vadd.f32 %v1586_v40, %v7073_v53  ;;  %v1603_v16 = vadd.f32 %v1587_v39, %v7078_v23  ;;  %v1606_v42 = vadd.f32 %v1590_v50, %v1564_v47  ;;  %v1607_v26 = vadd.f32 %v1591_v28, %v1565_v34 }
 0x17e   : > { %v1608_v12 = vadd.f32 %v1592_v45, %v1566_v3  ;;  %v1610_v58 = vstv %s7199_s21  ;;  %v7271_v9 = vstv %s7205_s22  ;;  %v7274_v60 = vstv %s7219_s24  ;;  %s7629_s21 = sld [smem:[#allocation2 + $0x105]] }
 0x17f   : > { %v7277_v56 = vstv %s7233_s25  ;;  %v7281_v36 = vadd.f32 %v1610_v58, %v1601_v59  ;;  %v7283_v23 = vadd.f32 %v1610_v58, %v1602_v6  ;;  %v7285_v53 = vadd.f32 %v1610_v58, %v1603_v16  ;;  %s7811_s22 = sld [smem:[#allocation5 + $0x5]] }
 0x180   : > { %v7287_v29 = vadd.f32 %v1610_v58, %v1604_v31  ;;  %v7289_v35 = vadd.f32 %v1610_v58, %v1605_v5  ;;  %v7291_v47 = vadd.f32 %v1610_v58, %v1606_v42  ;;  %v7293_v34 = vadd.f32 %v1610_v58, %v1607_v26  ;;  %s7817_s24 = sld [smem:[#allocation7 + $0x280]] }
 0x181   : > { %v7295_v3 = vadd.f32 %v1610_v58, %v1608_v12  ;;  %v1619_v45 = vmul.f32 %v7281_v36, %v7281_v36  ;;  %v1620_v59 = vmul.f32 %v7283_v23, %v7283_v23  ;;  %v1621_v6 = vmul.f32 %v7285_v53, %v7285_v53  ;;  %s7831_s25 = sld [smem:[#allocation7 + $0x281]] }
 0x182   : > { %v1622_v16 = vmul.f32 %v7287_v29, %v7287_v29  ;;  %v1623_v8 = vmul.f32 %v7289_v35, %v7289_v35  ;;  %v1624_v26 = vmul.f32 %v7291_v47, %v7291_v47  ;;  %v1625_v57 = vmul.f32 %v7293_v34, %v7293_v34 }
 0x183   : > { %v1626_v40 = vmul.f32 %v7295_v3, %v7295_v3  ;;  %v1627_v39 = vmul.f32 %v1619_v45, %v7281_v36  ;;  %v1628_v32 = vmul.f32 %v1620_v59, %v7283_v23  ;;  %v1629_v30 = vmul.f32 %v1621_v6, %v7285_v53 }
 0x184   : > { %v1630_v50 = vmul.f32 %v1622_v16, %v7287_v29  ;;  %v1631_v28 = vmul.f32 %v1623_v8, %v7289_v35  ;;  %v1632_v31 = vmul.f32 %v1624_v26, %v7291_v47  ;;  %v1633_v5 = vmul.f32 %v1625_v57, %v7293_v34 }
 0x185   : > { %v1634_v42 = vmul.f32 %v1626_v40, %v7295_v3  ;;  %v1635_v12 = vmul.f32 0.044715, %v1627_v39  ;;  %v1636_v58 = vmul.f32 0.044715, %v1628_v32  ;;  %v1637_v45 = vmul.f32 0.044715, %v1629_v30 }
 0x186   : > { %v7326_v59 = vstv %s7267_s5  ;;  %v1638_v6 = vmul.f32 0.044715, %v1630_v50  ;;  %v1639_v21 = vmul.f32 0.044715, %v1631_v28  ;;  %v1640_v16 = vmul.f32 0.044715, %v1632_v31 }
 0x187   : > { %11538 = vst [vmem:[#allocation47_spill] sm:$0xff] %v7326_v59  ;;  %v1764_v52 = vstv %s7279_s9  ;;  %v1641_v27 = vmul.f32 0.044715, %v1633_v5  ;;  %v1642_v37 = vmul.f32 0.044715, %v1634_v42  ;;  %v1643_v8 = vadd.f32 %v1635_v12, %v7281_v36  ;;  %v11539_v12 = vld [vmem:[#allocation22_spill] sm:$0xff] }
 0x188   : > { %v1644_v26 = vadd.f32 %v1636_v58, %v7283_v23  ;;  %v1645_v57 = vadd.f32 %v1637_v45, %v7285_v53  ;;  %v1646_v40 = vadd.f32 %v1638_v6, %v7287_v29  ;;  %v1647_v39 = vadd.f32 %v1639_v21, %v7289_v35  ;;  %v11540_v21 = vld [vmem:[#allocation26_spill] sm:$0xff]  ;;  %s7845_s5 = sld [smem:[#allocation7 + $0x282]] }
 0x189   : > { %v1648_v32 = vadd.f32 %v1640_v16, %v7291_v47  ;;  %v1649_v30 = vadd.f32 %v1641_v27, %v7293_v34  ;;  %v1650_v50 = vadd.f32 %v1642_v37, %v7295_v3  ;;  %v1651_v28 = vmul.f32 0.7978846, %v1643_v8  ;;  %v11543_v8 = vld [vmem:[#allocation19_spill] sm:$0xff]  ;;  %s7879_s9 = sld [smem:[#allocation7 + $0x283]] }
 0x18a   : > { %v1652_v31 = vmul.f32 0.7978846, %v1644_v26  ;;  %v1653_v5 = vmul.f32 0.7978846, %v1645_v57  ;;  %v1654_v42 = vmul.f32 0.7978846, %v1646_v40  ;;  %v1765_v58 = vmul.f32 %v1764_v52, %v11539_v12 }
 0x18b   : > { %v1655_v1 = vmul.f32 0.7978846, %v1647_v39  ;;  %v1656_v45 = vmul.f32 0.7978846, %v1648_v32  ;;  %v1657_v61 = vmul.f32 0.7978846, %v1649_v30  ;;  %5499 = vtanh.f32 %v1651_v28 }
 0x18c   : > { %v1658_v6 = vmul.f32 0.7978846, %v1650_v50  ;;  %5501 = vtanh.f32 %v1652_v31  ;;  %v1766_v16 = vmul.f32 %v1764_v52, %v11540_v21  ;;  %v1767_v27 = vmul.f32 %v1764_v52, %v11541_v41  ;;  %v11545_v57 = vld [vmem:[#allocation38_spill] sm:$0xff]  ;;  %v11549_v32 = vld [vmem:[#allocation41_spill] sm:$0xff]  ;;  %v11552_v31 = vld [vmem:[#allocation23_spill] sm:$0xff] }
 0x18d   : > { %v1768_v37 = vmul.f32 %v1764_v52, %v11542_v18  ;;  %5503 = vtanh.f32 %v1653_v5  ;;  %v7342_v26 = vmul.f32 %v1764_v52, %v11543_v8  ;;  %v7345_v40 = vmul.f32 %v1764_v52, %v11545_v57  ;;  %v11547_v39 = vld [vmem:[#allocation18_spill] sm:$0xff]  ;;  %v11553_v5 = vld [vmem:[#allocation27_spill] sm:$0xff]  ;;  %v11554_v8 = vld [vmem:[#allocation32_spill] sm:$0xff] }
 0x18e   : > { %v7348_v12 = vmul.f32 %v1764_v52, %v11547_v39  ;;  %5505 = vtanh.f32 %v1654_v42  ;;  %v7351_v30 = vmul.f32 %v1764_v52, %v11549_v32  ;;  %v1774_v50 = vstv %s7317_s13  ;;  %v11555_v57 = vld [vmem:[#allocation30_spill] sm:$0xff]  ;;  %v11557_v42 = vld [vmem:[#allocation39_spill] sm:$0xff]  ;;  %s7891_s13 = sld [smem:[#allocation2 + $0x6]] }
 0x18f   : > { %11544 = vst [vmem:[#allocation52_spill] sm:$0xff] %v7342_v26  ;;  %v7355_v28 = vstv %s7323_s19  ;;  %5507 = vtanh.f32 %v1655_v1  ;;  %v1775_v18 = vmul.f32 %v1774_v50, %v11552_v31  ;;  %v1776_v41 = vmul.f32 %v1774_v50, %v11553_v5  ;;  %v11556_v26 = vld [vmem:[#allocation36_spill] sm:$0xff]  ;;  %v11558_v32 = vld [vmem:[#allocation34_spill] sm:$0xff]  ;;  %s7929_s19 = sld [smem:[#allocation2 + $0x86]] }
 0x190   : > { %11546 = vst [vmem:[#allocation53_spill] sm:$0xff] %v7345_v40  ;;  %v1777_v21 = vmul.f32 %v1774_v50, %v11554_v8  ;;  %5509 = vtanh.f32 %v1656_v45  ;;  %v1778_v40 = vmul.f32 %v1774_v50, %v11555_v57  ;;  %v7362_v39 = vmul.f32 %v1774_v50, %v11556_v26  ;;  %v11559_v1 = vld [vmem:[#allocation42_spill] sm:$0xff] }
 0x191   : > { %11548 = vst [vmem:[#allocation54_spill] sm:$0xff] %v7348_v12  ;;  %v7365_v12 = vmul.f32 %v1774_v50, %v11557_v42  ;;  %v5500_v52 = vpop.eup %5499  ;;  %5511 = vtanh.f32 %v1657_v61  ;;  %v7371_v31 = vmul.f32 %v1774_v50, %v11559_v1  ;;  %v1791_v5 = vrot.slane %v1775_v18, 1 }
 0x192   : > { %11550 = vst [vmem:[#allocation55_spill] sm:$0xff] %v7351_v30  ;;  %v5502_v30 = vpop.eup %5501  ;;  %5513 = vtanh.f32 %v1658_v6  ;;  %v1667_v45 = vadd.f32 1.0, %v5500_v52  ;;  %v1792_v8 = vrot.slane %v1776_v41, 1  ;;  %v1793_v57 = vrot.slane %v1777_v21, 1 }
 0x193   : > { %11551 = vst [vmem:[#allocation56_spill] sm:$0xff] %v7355_v28  ;;  %v7368_v28 = vmul.f32 %v1774_v50, %v11558_v32  ;;  %v5504_v48 = vpop.eup %5503  ;;  %v1668_v26 = vadd.f32 1.0, %v5502_v30  ;;  %v1794_v49 = vrot.slane %v1778_v40, 1  ;;  %v7377_v52 = vadd.f32 %v1791_v5, %v1765_v58 }
 0x194   : > { %v5506_v61 = vpop.eup %5505  ;;  %v1669_v59 = vadd.f32 1.0, %v5504_v48  ;;  %v1675_v32 = vmul.f32 0.5, %v1667_v45  ;;  %v7379_v41 = vadd.f32 %v1792_v8, %v1766_v16  ;;  %v7384_v15 = vadd.f32 %v1793_v57, %v1767_v27 }
 0x195   : > { %v5508_v18 = vpop.eup %5507  ;;  %v1670_v1 = vadd.f32 1.0, %v5506_v61  ;;  %v1676_v6 = vmul.f32 0.5, %v1668_v26  ;;  %v7389_v61 = vadd.f32 %v1794_v49, %v1768_v37 }
 0x196   : > { %v5510_v21 = vpop.eup %5509  ;;  %v1671_v40 = vadd.f32 1.0, %v5508_v18  ;;  %v1677_v30 = vmul.f32 0.5, %v1669_v59  ;;  %v7382_v42 = vmul.f32 %v1675_v32, %v7281_v36 }
 0x197   : > { %v5512_v48 = vpop.eup %5511  ;;  %v1672_v45 = vadd.f32 1.0, %v5510_v21  ;;  %v1678_v25 = vmul.f32 0.5, %v1670_v1  ;;  %v7387_v50 = vmul.f32 %v1676_v6, %v7283_v23 }
 0x198   : > { %v5514_v58 = vpop.eup %5513  ;;  %v1673_v26 = vadd.f32 1.0, %v5512_v48  ;;  %v1679_v16 = vmul.f32 0.5, %v1671_v40  ;;  %v1685_v8 = vmul.f32 %v1677_v30, %v7285_v53  ;;  %v1693_v59 = vmul.f32 %v7271_v9, %v7382_v42 }
 0x199   : > { %v1674_v36 = vadd.f32 1.0, %v5514_v58  ;;  %v1680_v32 = vmul.f32 0.5, %v1672_v45  ;;  %v1686_v27 = vmul.f32 %v1678_v25, %v7287_v29  ;;  %v1694_v57 = vmul.f32 %v7271_v9, %v7387_v50 }
 0x19a   : > { %v1681_v5 = vmul.f32 0.5, %v1673_v26  ;;  %v1687_v23 = vmul.f32 %v1679_v16, %v7289_v35  ;;  %v1695_v49 = vmul.f32 %v7271_v9, %v1685_v8  ;;  %v7400_v37 = vadd.f32 %v1693_v59, %v7094_v19 }
 0x19b   : > { %v1682_v1 = vmul.f32 0.5, %v1674_v36  ;;  %v1688_v53 = vmul.f32 %v1680_v32, %v7291_v47  ;;  %v1696_v18 = vmul.f32 %v7271_v9, %v1686_v27  ;;  %v7405_v6 = vadd.f32 %v1694_v57, %v7099_v13 }
 0x19c   : > { %v1689_v25 = vmul.f32 %v1681_v5, %v7293_v34  ;;  %v1697_v29 = vmul.f32 %v7271_v9, %v1687_v23  ;;  %v7410_v21 = vadd.f32 %v1695_v49, %v7104_v62  ;;  %v1711_v35 = vmul.f32 %v7274_v60, %v7382_v42 }
 0x19d   : > { %v1690_v19 = vmul.f32 %v1682_v1, %v7295_v3  ;;  %v1698_v40 = vmul.f32 %v7271_v9, %v1688_v53  ;;  %v7417_v47 = vadd.f32 %v1696_v18, %v7111_v55  ;;  %v1712_v13 = vmul.f32 %v7274_v60, %v7387_v50 }
 0x19e   : > { %v1699_v34 = vmul.f32 %v7271_v9, %v1689_v25  ;;  %v7423_v30 = vadd.f32 %v1697_v29, %v7117_v54  ;;  %v1713_v62 = vmul.f32 %v7274_v60, %v1685_v8  ;;  %v1714_v48 = vmul.f32 %v7274_v60, %v1686_v27 }
 0x19f   : > { %v1700_v45 = vmul.f32 %v7271_v9, %v1690_v19  ;;  %v7429_v3 = vadd.f32 %v1698_v40, %v7123_v2  ;;  %v1715_v55 = vmul.f32 %v7274_v60, %v1687_v23  ;;  %v1716_v58 = vmul.f32 %v7274_v60, %v1688_v53 }
 0x1a0   : > { %v7434_v26 = vadd.f32 %v1699_v34, %v7128_v11  ;;  %v1717_v16 = vmul.f32 %v7274_v60, %v1689_v25  ;;  %v1718_v54 = vmul.f32 %v7274_v60, %v1690_v19  ;;  %v7439_v59 = vadd.f32 %v1711_v35, %v7133_v63 }
 0x1a1   : > { %v7442_v36 = vadd.f32 %v1700_v45, %v7136_v10  ;;  %v7445_v2 = vadd.f32 %v1712_v13, %v7139_v33  ;;  %v7448_v9 = vadd.f32 %v1713_v62, %v7142_v17  ;;  %v7451_v32 = vadd.f32 %v1714_v48, %v7145_v38 }
 0x1a2   : > { %v7454_v11 = vadd.f32 %v1715_v55, %v7148_v14  ;;  %v7457_v60 = vadd.f32 %v1716_v58, %v7151_v22  ;;  %v7460_v63 = vadd.f32 %v1717_v16, %v7154_v20  ;;  %v7463_v10 = vadd.f32 %v1718_v54, %v7157_v43  ;;  %v11569_v55 = vld [vmem:[#allocation21_spill] sm:$0xff]  ;;  %v11575_v16 = vld [vmem:[#allocation48_spill] sm:$0xff] }
 0x1a3   : > { %v1729_v33 = vmul.f32 %v7277_v56, %v7382_v42  ;;  %v1730_v17 = vmul.f32 %v7277_v56, %v7387_v50  ;;  %v1731_v38 = vmul.f32 %v7277_v56, %v1685_v8  ;;  %v1732_v14 = vmul.f32 %v7277_v56, %v1686_v27 }
 0x1a4   : > { %v1733_v57 = vmul.f32 %v7277_v56, %v1687_v23  ;;  %v1734_v22 = vmul.f32 %v7277_v56, %v1688_v53  ;;  %v1735_v20 = vmul.f32 %v7277_v56, %v1689_v25  ;;  %v1736_v5 = vmul.f32 %v7277_v56, %v1690_v19 }
 0x1a5   : > { %v7476_v43 = vadd.f32 %v1729_v33, %v7170_v44  ;;  %v7479_v49 = vadd.f32 %v1730_v17, %v7173_v7  ;;  %v7482_v1 = vadd.f32 %v1731_v38, %v7176_v46  ;;  %v7485_v18 = vadd.f32 %v1732_v14, %v7179_v0  ;;  %v11560_v44 = vld [vmem:[#allocation49_spill] sm:$0xff]  ;;  %v11562_v7 = vld [vmem:[#allocation47_spill] sm:$0xff]  ;;  %v11577_v33 = vld [vmem:[#allocation50_spill] sm:$0xff] }
 0x1a6   : > { %v7488_v29 = vadd.f32 %v1733_v57, %v7182_v4  ;;  %v7491_v35 = vadd.f32 %v1734_v22, %v7185_v24  ;;  %v7494_v56 = vadd.f32 %v1735_v20, %v7188_v51  ;;  %v7497_v40 = vadd.f32 %v1736_v5, %v11560_v44  ;;  %v11579_v38 = vld [vmem:[#allocation52_spill] sm:$0xff]  ;;  %v11581_v22 = vld [vmem:[#allocation53_spill] sm:$0xff]  ;;  %v11583_v44 = vld [vmem:[#allocation54_spill] sm:$0xff] }
 0x1a7   : > { %v1747_v13 = vmul.f32 %v11562_v7, %v7382_v42  ;;  %v1748_v46 = vmul.f32 %v11562_v7, %v7387_v50  ;;  %v1749_v0 = vmul.f32 %v11562_v7, %v1685_v8  ;;  %v1750_v4 = vmul.f32 %v11562_v7, %v1686_v27  ;;  %v11563_v42 = vld [vmem:[#allocation51_spill] sm:$0xff]  ;;  %v11565_v50 = vld [vmem:[#allocation46_spill] sm:$0xff]  ;;  %v11567_v8 = vld [vmem:[#allocation20_spill] sm:$0xff] }
 0x1a8   : > { %11561 = vst [vmem:[#allocation49_spill] sm:$0xff] %v7497_v40  ;;  %v1751_v24 = vmul.f32 %v11562_v7, %v1687_v23  ;;  %v1752_v51 = vmul.f32 %v11562_v7, %v1688_v53  ;;  %v1753_v34 = vmul.f32 %v11562_v7, %v1689_v25  ;;  %v1754_v62 = vmul.f32 %v11562_v7, %v1690_v19  ;;  %v11571_v23 = vld [vmem:[#allocation44_spill] sm:$0xff]  ;;  %v11573_v25 = vld [vmem:[#allocation45_spill] sm:$0xff] }
 0x1a9   : > { %v7514_v48 = vadd.f32 %v1747_v13, %v11563_v42  ;;  %v7517_v45 = vadd.f32 %v1748_v46, %v11565_v50  ;;  %v7520_v27 = vadd.f32 %v1749_v0, %v11567_v8  ;;  %v7523_v58 = vadd.f32 %v1750_v4, %v11569_v55  ;;  %v11585_v46 = vld [vmem:[#allocation55_spill] sm:$0xff]  ;;  %v11591_v8 = vld [vmem:[#allocation25_spill] sm:$0xff] }
 0x1aa   : > { %v7528_v53 = vadd.f32 %v1751_v24, %v11571_v23  ;;  %v7531_v19 = vadd.f32 %v1752_v51, %v11573_v25  ;;  %v7534_v54 = vadd.f32 %v1753_v34, %v11575_v16  ;;  %v7537_v17 = vadd.f32 %v1754_v62, %v11577_v33  ;;  %v11587_v24 = vld [vmem:[#allocation24_spill] sm:$0xff]  ;;  %v11592_v55 = vld [vmem:[#allocation37_spill] sm:$0xff]  ;;  %v11595_v33 = vld [vmem:[#allocation43_spill] sm:$0xff] }
 0x1ab   : > { %11564 = vst [vmem:[#allocation47_spill] sm:$0xff] %v7514_v48  ;;  %v11580_v14 = vrot.slane %v7362_v39, 1  ;;  %v11582_v20 = vrot.slane %v7365_v12, 1  ;;  %v11584_v7 = vrot.slane %v7368_v28, 1  ;;  %v11586_v0 = vrot.slane %v7371_v31, 1  ;;  %v11588_v51 = vld [vmem:[#allocation56_spill] sm:$0xff] }
 0x1ac   : > { %11566 = vst [vmem:[#allocation51_spill] sm:$0xff] %v7517_v45  ;;  %v1817_v34 = vmul.f32 %v11588_v51, %v11587_v24  ;;  %v11589_v62 = vld [vmem:[#allocation28_spill] sm:$0xff]  ;;  %v11590_v39 = vld [vmem:[#allocation33_spill] sm:$0xff]  ;;  %v1820_v12 = vmul.f32 %v11588_v51, %v11591_v8  ;;  %v1821_v28 = vmul.f32 %v11588_v51, %v11592_v55  ;;  %v11594_v31 = vld [vmem:[#allocation35_spill] sm:$0xff] }
 0x1ad   : > { %11568 = vst [vmem:[#allocation46_spill] sm:$0xff] %v7520_v27  ;;  %v1811_v57 = vadd.f32 %v11580_v14, %v11579_v38  ;;  %v1812_v5 = vadd.f32 %v11582_v20, %v11581_v22  ;;  %v1813_v13 = vadd.f32 %v11584_v7, %v11583_v44  ;;  %v1814_v4 = vadd.f32 %v11586_v0, %v11585_v46  ;;  %v11593_v23 = vld [vmem:[#allocation40_spill] sm:$0xff] }
 0x1ae   : > { %11570 = vst [vmem:[#allocation20_spill] sm:$0xff] %v7523_v58  ;;  %v1818_v42 = vmul.f32 %v11588_v51, %v11589_v62  ;;  %v1819_v50 = vmul.f32 %v11588_v51, %v11590_v39  ;;  %v1822_v25 = vmul.f32 %v11588_v51, %v11593_v23  ;;  %v1823_v16 = vmul.f32 %v11588_v51, %v11594_v31  ;;  %v11600_v58 = vld [vmem:[#allocation29_spill] sm:$0xff] }
 0x1af   : > { %11572 = vst [vmem:[#allocation21_spill] sm:$0xff] %v7528_v53  ;;  %v1824_v38 = vmul.f32 %v11588_v51, %v11595_v33  ;;  %v1833_v14 = vrot.slane %v1817_v34, 2  ;;  %v1836_v44 = vrot.slane %v1820_v12, 2  ;;  %v1837_v7 = vrot.slane %v1821_v28, 2  ;;  %v11599_v53 = vld [vmem:[#allocation31_spill] sm:$0xff] }
 0x1b0   : > { %11574 = vst [vmem:[#allocation44_spill] sm:$0xff] %v7531_v19  ;;  %v1834_v22 = vrot.slane %v1818_v42, 2  ;;  %v1835_v20 = vrot.slane %v1819_v50, 2  ;;  %v1838_v46 = vrot.slane %v1822_v25, 2  ;;  %v1839_v0 = vrot.slane %v1823_v16, 2 }
 0x1b1   : > { %11576 = vst [vmem:[#allocation45_spill] sm:$0xff] %v7534_v54  ;;  %v1840_v55 = vrot.slane %v1824_v38, 2  ;;  %v1849_v23 = vadd.f32 %v1833_v14, %v7377_v52  ;;  %v1852_v51 = vadd.f32 %v1836_v44, %v7389_v61  ;;  %v1853_v34 = vadd.f32 %v1837_v7, %v1811_v57 }
 0x1b2   : > { %11578 = vst [vmem:[#allocation48_spill] sm:$0xff] %v7537_v17  ;;  %v1850_v8 = vadd.f32 %v1834_v22, %v7379_v41  ;;  %v1851_v31 = vadd.f32 %v1835_v20, %v7384_v15  ;;  %v1854_v42 = vadd.f32 %v1838_v46, %v1812_v5  ;;  %v1855_v33 = vadd.f32 %v1839_v0, %v1813_v13 }
 0x1b3   : > { %v1856_v50 = vadd.f32 %v1840_v55, %v1814_v4  ;;  %v1858_v12 = vstv %s7505_s20  ;;  %v7577_v28 = vstv %s7511_s23  ;;  %v7580_v25 = vstv %s7525_s26  ;;  %s7935_s20 = sld [smem:[#allocation2 + $0x106]] }
 0x1b4   : > { %v7583_v16 = vstv %s7539_s12  ;;  %v7587_v52 = vadd.f32 %v1858_v12, %v1849_v23  ;;  %v7589_v15 = vadd.f32 %v1858_v12, %v1850_v8  ;;  %v7591_v41 = vadd.f32 %v1858_v12, %v1851_v31  ;;  %s8117_s23 = sld [smem:[#allocation5 + $0x6]] }
 0x1b5   : > { %v7593_v61 = vadd.f32 %v1858_v12, %v1852_v51  ;;  %v7595_v57 = vadd.f32 %v1858_v12, %v1853_v34  ;;  %v7597_v5 = vadd.f32 %v1858_v12, %v1854_v42  ;;  %v7599_v13 = vadd.f32 %v1858_v12, %v1855_v33  ;;  %s8123_s26 = sld [smem:[#allocation7 + $0x300]] }
 0x1b6   : > { %v7601_v4 = vadd.f32 %v1858_v12, %v1856_v50  ;;  %v1867_v55 = vmul.f32 %v7587_v52, %v7587_v52  ;;  %v1868_v23 = vmul.f32 %v7589_v15, %v7589_v15  ;;  %v1869_v8 = vmul.f32 %v7591_v41, %v7591_v41  ;;  %s8137_s12 = sld [smem:[#allocation7 + $0x301]] }
 0x1b7   : > { %v1870_v31 = vmul.f32 %v7593_v61, %v7593_v61  ;;  %v1871_v38 = vmul.f32 %v7595_v57, %v7595_v57  ;;  %v1872_v33 = vmul.f32 %v7597_v5, %v7597_v5  ;;  %v1873_v14 = vmul.f32 %v7599_v13, %v7599_v13 }
 0x1b8   : > { %v1874_v22 = vmul.f32 %v7601_v4, %v7601_v4  ;;  %v1875_v20 = vmul.f32 %v1867_v55, %v7587_v52  ;;  %v1876_v44 = vmul.f32 %v1868_v23, %v7589_v15  ;;  %v1877_v7 = vmul.f32 %v1869_v8, %v7591_v41 }
 0x1b9   : > { %v1878_v46 = vmul.f32 %v1870_v31, %v7593_v61  ;;  %v1879_v0 = vmul.f32 %v1871_v38, %v7595_v57  ;;  %v1880_v51 = vmul.f32 %v1872_v33, %v7597_v5  ;;  %v1881_v34 = vmul.f32 %v1873_v14, %v7599_v13 }
 0x1ba   : > { %v1882_v42 = vmul.f32 %v1874_v22, %v7601_v4  ;;  %v1883_v50 = vmul.f32 0.044715, %v1875_v20  ;;  %v1884_v12 = vmul.f32 0.044715, %v1876_v44  ;;  %v1885_v55 = vmul.f32 0.044715, %v1877_v7 }
 0x1bb   : > { %v7632_v23 = vstv %s7573_s11  ;;  %v1886_v8 = vmul.f32 0.044715, %v1878_v46  ;;  %v1887_v39 = vmul.f32 0.044715, %v1879_v0  ;;  %v1888_v31 = vmul.f32 0.044715, %v1880_v51 }
 0x1bc   : > { %11596 = vst [vmem:[#allocation50_spill] sm:$0xff] %v7632_v23  ;;  %v2012_v62 = vstv %s7585_s14  ;;  %v1889_v24 = vmul.f32 0.044715, %v1881_v34  ;;  %v1890_v17 = vmul.f32 0.044715, %v1882_v42  ;;  %v1891_v38 = vadd.f32 %v1883_v50, %v7587_v52  ;;  %v11597_v50 = vld [vmem:[#allocation22_spill] sm:$0xff] }
 0x1bd   : > { %v1892_v33 = vadd.f32 %v1884_v12, %v7589_v15  ;;  %v1893_v14 = vadd.f32 %v1885_v55, %v7591_v41  ;;  %v1894_v22 = vadd.f32 %v1886_v8, %v7593_v61  ;;  %v1895_v20 = vadd.f32 %v1887_v39, %v7595_v57  ;;  %v11598_v39 = vld [vmem:[#allocation26_spill] sm:$0xff]  ;;  %s8151_s11 = sld [smem:[#allocation7 + $0x302]] }
 0x1be   : > { %v1896_v44 = vadd.f32 %v1888_v31, %v7597_v5  ;;  %v1897_v7 = vadd.f32 %v1889_v24, %v7599_v13  ;;  %v1898_v46 = vadd.f32 %v1890_v17, %v7601_v4  ;;  %v1899_v0 = vmul.f32 0.7978846, %v1891_v38  ;;  %v11601_v38 = vld [vmem:[#allocation19_spill] sm:$0xff]  ;;  %s8185_s14 = sld [smem:[#allocation7 + $0x303]] }
 0x1bf   : > { %v1900_v51 = vmul.f32 0.7978846, %v1892_v33  ;;  %v1901_v34 = vmul.f32 0.7978846, %v1893_v14  ;;  %v1902_v42 = vmul.f32 0.7978846, %v1894_v22  ;;  %v2013_v12 = vmul.f32 %v2012_v62, %v11597_v50 }
 0x1c0   : > { %v1903_v54 = vmul.f32 0.7978846, %v1895_v20  ;;  %v1904_v55 = vmul.f32 0.7978846, %v1896_v44  ;;  %v1905_v19 = vmul.f32 0.7978846, %v1897_v7  ;;  %5515 = vtanh.f32 %v1899_v0 }
 0x1c1   : > { %v1906_v8 = vmul.f32 0.7978846, %v1898_v46  ;;  %5517 = vtanh.f32 %v1900_v51  ;;  %v2014_v31 = vmul.f32 %v2012_v62, %v11598_v39  ;;  %v2015_v24 = vmul.f32 %v2012_v62, %v11599_v53  ;;  %v11603_v14 = vld [vmem:[#allocation38_spill] sm:$0xff]  ;;  %v11607_v44 = vld [vmem:[#allocation41_spill] sm:$0xff]  ;;  %v11610_v51 = vld [vmem:[#allocation23_spill] sm:$0xff] }
 0x1c2   : > { %v2016_v17 = vmul.f32 %v2012_v62, %v11600_v58  ;;  %5519 = vtanh.f32 %v1901_v34  ;;  %v7648_v33 = vmul.f32 %v2012_v62, %v11601_v38  ;;  %v7651_v22 = vmul.f32 %v2012_v62, %v11603_v14  ;;  %v11605_v20 = vld [vmem:[#allocation18_spill] sm:$0xff]  ;;  %v11611_v34 = vld [vmem:[#allocation27_spill] sm:$0xff]  ;;  %v11612_v38 = vld [vmem:[#allocation32_spill] sm:$0xff] }
 0x1c3   : > { %v7654_v50 = vmul.f32 %v2012_v62, %v11605_v20  ;;  %5521 = vtanh.f32 %v1902_v42  ;;  %v7657_v7 = vmul.f32 %v2012_v62, %v11607_v44  ;;  %v2022_v46 = vstv %s7623_s16  ;;  %v11613_v14 = vld [vmem:[#allocation30_spill] sm:$0xff]  ;;  %v11615_v42 = vld [vmem:[#allocation39_spill] sm:$0xff]  ;;  %s8197_s16 = sld [smem:[#allocation2 + $0x7]] }
 0x1c4   : > { %11602 = vst [vmem:[#allocation52_spill] sm:$0xff] %v7648_v33  ;;  %v7661_v0 = vstv %s7629_s21  ;;  %5523 = vtanh.f32 %v1903_v54  ;;  %v2023_v58 = vmul.f32 %v2022_v46, %v11610_v51  ;;  %v2024_v53 = vmul.f32 %v2022_v46, %v11611_v34  ;;  %v11614_v33 = vld [vmem:[#allocation36_spill] sm:$0xff]  ;;  %v11616_v44 = vld [vmem:[#allocation34_spill] sm:$0xff]  ;;  %s8235_s21 = sld [smem:[#allocation2 + $0x87]] }
 0x1c5   : > { %11604 = vst [vmem:[#allocation53_spill] sm:$0xff] %v7651_v22  ;;  %v2025_v39 = vmul.f32 %v2022_v46, %v11612_v38  ;;  %5525 = vtanh.f32 %v1904_v55  ;;  %v2026_v22 = vmul.f32 %v2022_v46, %v11613_v14  ;;  %v7668_v20 = vmul.f32 %v2022_v46, %v11614_v33  ;;  %v11617_v54 = vld [vmem:[#allocation42_spill] sm:$0xff] }
 0x1c6   : > { %11606 = vst [vmem:[#allocation54_spill] sm:$0xff] %v7654_v50  ;;  %v7671_v50 = vmul.f32 %v2022_v46, %v11615_v42  ;;  %v5516_v62 = vpop.eup %5515  ;;  %5527 = vtanh.f32 %v1905_v19  ;;  %v7677_v51 = vmul.f32 %v2022_v46, %v11617_v54  ;;  %v2039_v34 = vrot.slane %v2023_v58, 1 }
 0x1c7   : > { %11608 = vst [vmem:[#allocation55_spill] sm:$0xff] %v7657_v7  ;;  %v5518_v7 = vpop.eup %5517  ;;  %5529 = vtanh.f32 %v1906_v8  ;;  %v1915_v55 = vadd.f32 1.0, %v5516_v62  ;;  %v2040_v38 = vrot.slane %v2024_v53, 1  ;;  %v2041_v14 = vrot.slane %v2025_v39, 1 }
 0x1c8   : > { %11609 = vst [vmem:[#allocation56_spill] sm:$0xff] %v7661_v0  ;;  %v7674_v0 = vmul.f32 %v2022_v46, %v11616_v44  ;;  %v5520_v27 = vpop.eup %5519  ;;  %v1916_v33 = vadd.f32 1.0, %v5518_v7  ;;  %v2042_v45 = vrot.slane %v2026_v22, 1  ;;  %v7683_v62 = vadd.f32 %v2039_v34, %v2013_v12 }
 0x1c9   : > { %v5522_v19 = vpop.eup %5521  ;;  %v1917_v23 = vadd.f32 1.0, %v5520_v27  ;;  %v1923_v44 = vmul.f32 0.5, %v1915_v55  ;;  %v7685_v53 = vadd.f32 %v2040_v38, %v2014_v31  ;;  %v7690_v48 = vadd.f32 %v2041_v14, %v2015_v24 }
 0x1ca   : > { %v5524_v58 = vpop.eup %5523  ;;  %v1918_v54 = vadd.f32 1.0, %v5522_v19  ;;  %v1924_v8 = vmul.f32 0.5, %v1916_v33  ;;  %v7695_v19 = vadd.f32 %v2042_v45, %v2016_v17 }
 0x1cb   : > { %v5526_v39 = vpop.eup %5525  ;;  %v1919_v22 = vadd.f32 1.0, %v5524_v58  ;;  %v1925_v7 = vmul.f32 0.5, %v1917_v23  ;;  %v7688_v42 = vmul.f32 %v1923_v44, %v7587_v52 }
 0x1cc   : > { %v5528_v27 = vpop.eup %5527  ;;  %v1920_v55 = vadd.f32 1.0, %v5526_v39  ;;  %v1926_v40 = vmul.f32 0.5, %v1918_v54  ;;  %v7693_v46 = vmul.f32 %v1924_v8, %v7589_v15 }
 0x1cd   : > { %v5530_v12 = vpop.eup %5529  ;;  %v1921_v33 = vadd.f32 1.0, %v5528_v27  ;;  %v1927_v31 = vmul.f32 0.5, %v1919_v22  ;;  %v1933_v38 = vmul.f32 %v1925_v7, %v7591_v41  ;;  %v1941_v23 = vmul.f32 %v7577_v28, %v7688_v42 }
 0x1ce   : > { %v1922_v52 = vadd.f32 1.0, %v5530_v12  ;;  %v1928_v44 = vmul.f32 0.5, %v1920_v55  ;;  %v1934_v24 = vmul.f32 %v1926_v40, %v7593_v61  ;;  %v1942_v14 = vmul.f32 %v7577_v28, %v7693_v46 }
 0x1cf   : > { %v1929_v34 = vmul.f32 0.5, %v1921_v33  ;;  %v1935_v15 = vmul.f32 %v1927_v31, %v7595_v57  ;;  %v1943_v45 = vmul.f32 %v7577_v28, %v1933_v38  ;;  %v7706_v17 = vadd.f32 %v1941_v23, %v7400_v37 }
 0x1d0   : > { %v1930_v54 = vmul.f32 0.5, %v1922_v52  ;;  %v1936_v41 = vmul.f32 %v1928_v44, %v7597_v5  ;;  %v1944_v58 = vmul.f32 %v7577_v28, %v1934_v24  ;;  %v7711_v8 = vadd.f32 %v1942_v14, %v7405_v6 }
 0x1d1   : > { %v1937_v40 = vmul.f32 %v1929_v34, %v7599_v13  ;;  %v1945_v61 = vmul.f32 %v7577_v28, %v1935_v15  ;;  %v7716_v39 = vadd.f32 %v1943_v45, %v7410_v21  ;;  %v1959_v57 = vmul.f32 %v7580_v25, %v7688_v42 }
 0x1d2   : > { %v1938_v37 = vmul.f32 %v1930_v54, %v7601_v4  ;;  %v1946_v22 = vmul.f32 %v7577_v28, %v1936_v41  ;;  %v7723_v5 = vadd.f32 %v1944_v58, %v7417_v47  ;;  %v1960_v6 = vmul.f32 %v7580_v25, %v7693_v46 }
 0x1d3   : > { %v1947_v13 = vmul.f32 %v7577_v28, %v1937_v40  ;;  %v7729_v7 = vadd.f32 %v1945_v61, %v7423_v30  ;;  %v1961_v21 = vmul.f32 %v7580_v25, %v1933_v38  ;;  %v1962_v27 = vmul.f32 %v7580_v25, %v1934_v24 }
 0x1d4   : > { %v1948_v55 = vmul.f32 %v7577_v28, %v1938_v37  ;;  %v7735_v4 = vadd.f32 %v1946_v22, %v7429_v3  ;;  %v1963_v47 = vmul.f32 %v7580_v25, %v1935_v15  ;;  %v1964_v12 = vmul.f32 %v7580_v25, %v1936_v41 }
 0x1d5   : > { %v7740_v33 = vadd.f32 %v1947_v13, %v7434_v26  ;;  %v1965_v31 = vmul.f32 %v7580_v25, %v1937_v40  ;;  %v1966_v30 = vmul.f32 %v7580_v25, %v1938_v37  ;;  %v7745_v23 = vadd.f32 %v1959_v57, %v7439_v59 }
 0x1d6   : > { %v7748_v52 = vadd.f32 %v1948_v55, %v7442_v36  ;;  %v7751_v3 = vadd.f32 %v1960_v6, %v7445_v2  ;;  %v7754_v28 = vadd.f32 %v1961_v21, %v7448_v9  ;;  %v7757_v44 = vadd.f32 %v1962_v27, %v7451_v32 }
 0x1d7   : > { %v7760_v26 = vadd.f32 %v1963_v47, %v7454_v11  ;;  %v7763_v25 = vadd.f32 %v1964_v12, %v7457_v60  ;;  %v7766_v59 = vadd.f32 %v1965_v31, %v7460_v63  ;;  %v7769_v36 = vadd.f32 %v1966_v30, %v7463_v10  ;;  %v11627_v47 = vld [vmem:[#allocation20_spill] sm:$0xff]  ;;  %v11633_v31 = vld [vmem:[#allocation45_spill] sm:$0xff] }
 0x1d8   : > { %v1977_v2 = vmul.f32 %v7583_v16, %v7688_v42  ;;  %v1978_v9 = vmul.f32 %v7583_v16, %v7693_v46  ;;  %v1979_v32 = vmul.f32 %v7583_v16, %v1933_v38  ;;  %v1980_v11 = vmul.f32 %v7583_v16, %v1934_v24 }
 0x1d9   : > { %v1981_v14 = vmul.f32 %v7583_v16, %v1935_v15  ;;  %v1982_v60 = vmul.f32 %v7583_v16, %v1936_v41  ;;  %v1983_v63 = vmul.f32 %v7583_v16, %v1937_v40  ;;  %v1984_v34 = vmul.f32 %v7583_v16, %v1938_v37 }
 0x1da   : > { %v7782_v10 = vadd.f32 %v1977_v2, %v7476_v43  ;;  %v7785_v45 = vadd.f32 %v1978_v9, %v7479_v49  ;;  %v7788_v54 = vadd.f32 %v1979_v32, %v7482_v1  ;;  %v7791_v58 = vadd.f32 %v1980_v11, %v7485_v18  ;;  %v11618_v43 = vld [vmem:[#allocation49_spill] sm:$0xff]  ;;  %v11620_v49 = vld [vmem:[#allocation50_spill] sm:$0xff]  ;;  %v11635_v2 = vld [vmem:[#allocation48_spill] sm:$0xff] }
 0x1db   : > { %v7794_v61 = vadd.f32 %v1981_v14, %v7488_v29  ;;  %v7797_v57 = vadd.f32 %v1982_v60, %v7491_v35  ;;  %v7800_v16 = vadd.f32 %v1983_v63, %v7494_v56  ;;  %v7803_v22 = vadd.f32 %v1984_v34, %v11618_v43  ;;  %v11637_v32 = vld [vmem:[#allocation52_spill] sm:$0xff]  ;;  %v11639_v60 = vld [vmem:[#allocation53_spill] sm:$0xff]  ;;  %v11641_v43 = vld [vmem:[#allocation54_spill] sm:$0xff] }
 0x1dc   : > { %v1995_v6 = vmul.f32 %v11620_v49, %v7688_v42  ;;  %v1996_v1 = vmul.f32 %v11620_v49, %v7693_v46  ;;  %v1997_v18 = vmul.f32 %v11620_v49, %v1933_v38  ;;  %v1998_v29 = vmul.f32 %v11620_v49, %v1934_v24  ;;  %v11621_v42 = vld [vmem:[#allocation47_spill] sm:$0xff]  ;;  %v11625_v38 = vld [vmem:[#allocation46_spill] sm:$0xff] }
 0x1dd   : > { %11619 = vst [vmem:[#allocation49_spill] sm:$0xff] %v7803_v22  ;;  %v1999_v35 = vmul.f32 %v11620_v49, %v1935_v15  ;;  %v2000_v56 = vmul.f32 %v11620_v49, %v1936_v41  ;;  %v2001_v13 = vmul.f32 %v11620_v49, %v1937_v40  ;;  %v2002_v21 = vmul.f32 %v11620_v49, %v1938_v37  ;;  %v11623_v46 = vld [vmem:[#allocation51_spill] sm:$0xff]  ;;  %v11629_v15 = vld [vmem:[#allocation21_spill] sm:$0xff]  ;;  %v11631_v40 = vld [vmem:[#allocation44_spill] sm:$0xff] }
 0x1de   : > { %v7820_v27 = vadd.f32 %v1995_v6, %v11621_v42  ;;  %v7823_v55 = vadd.f32 %v1996_v1, %v11623_v46  ;;  %v7826_v24 = vadd.f32 %v1997_v18, %v11625_v38  ;;  %v7829_v12 = vadd.f32 %v1998_v29, %v11627_v47  ;;  %v11643_v1 = vld [vmem:[#allocation55_spill] sm:$0xff]  ;;  %v11649_v38 = vld [vmem:[#allocation25_spill] sm:$0xff] }
 0x1df   : > { %v7834_v41 = vadd.f32 %v1999_v35, %v11629_v15  ;;  %v7837_v37 = vadd.f32 %v2000_v56, %v11631_v40  ;;  %v7840_v30 = vadd.f32 %v2001_v13, %v11633_v31  ;;  %v7843_v9 = vadd.f32 %v2002_v21, %v11635_v2  ;;  %v11645_v35 = vld [vmem:[#allocation24_spill] sm:$0xff]  ;;  %v11650_v47 = vld [vmem:[#allocation37_spill] sm:$0xff]  ;;  %v11653_v2 = vld [vmem:[#allocation43_spill] sm:$0xff] }
 0x1e0   : > { %11622 = vst [vmem:[#allocation50_spill] sm:$0xff] %v7820_v27  ;;  %v11638_v11 = vrot.slane %v7668_v20, 1  ;;  %v11640_v63 = vrot.slane %v7671_v50, 1  ;;  %v11642_v49 = vrot.slane %v7674_v0, 1  ;;  %v11644_v18 = vrot.slane %v7677_v51, 1  ;;  %v11646_v56 = vld [vmem:[#allocation56_spill] sm:$0xff] }
 0x1e1   : > { %11624 = vst [vmem:[#allocation47_spill] sm:$0xff] %v7823_v55  ;;  %v2065_v13 = vmul.f32 %v11646_v56, %v11645_v35  ;;  %v11647_v21 = vld [vmem:[#allocation28_spill] sm:$0xff]  ;;  %v11648_v20 = vld [vmem:[#allocation33_spill] sm:$0xff]  ;;  %v2068_v50 = vmul.f32 %v11646_v56, %v11649_v38  ;;  %v2069_v0 = vmul.f32 %v11646_v56, %v11650_v47  ;;  %v11652_v51 = vld [vmem:[#allocation35_spill] sm:$0xff] }
 0x1e2   : > { %11626 = vst [vmem:[#allocation51_spill] sm:$0xff] %v7826_v24  ;;  %v2059_v14 = vadd.f32 %v11638_v11, %v11637_v32  ;;  %v2060_v34 = vadd.f32 %v11640_v63, %v11639_v60  ;;  %v2061_v6 = vadd.f32 %v11642_v49, %v11641_v43  ;;  %v2062_v29 = vadd.f32 %v11644_v18, %v11643_v1  ;;  %v11651_v15 = vld [vmem:[#allocation40_spill] sm:$0xff] }
 0x1e3   : > { %11628 = vst [vmem:[#allocation46_spill] sm:$0xff] %v7829_v12  ;;  %v2066_v42 = vmul.f32 %v11646_v56, %v11647_v21  ;;  %v2067_v46 = vmul.f32 %v11646_v56, %v11648_v20  ;;  %v2070_v40 = vmul.f32 %v11646_v56, %v11651_v15  ;;  %v2071_v31 = vmul.f32 %v11646_v56, %v11652_v51  ;;  %v11658_v12 = vld [vmem:[#allocation29_spill] sm:$0xff] }
 0x1e4   : > { %11630 = vst [vmem:[#allocation20_spill] sm:$0xff] %v7834_v41  ;;  %v2072_v32 = vmul.f32 %v11646_v56, %v11653_v2  ;;  %v2081_v11 = vrot.slane %v2065_v13, 2  ;;  %v2084_v43 = vrot.slane %v2068_v50, 2  ;;  %v2085_v49 = vrot.slane %v2069_v0, 2  ;;  %v11657_v41 = vld [vmem:[#allocation31_spill] sm:$0xff] }
 0x1e5   : > { %11632 = vst [vmem:[#allocation21_spill] sm:$0xff] %v7837_v37  ;;  %v2082_v60 = vrot.slane %v2066_v42, 2  ;;  %v2083_v63 = vrot.slane %v2067_v46, 2  ;;  %v2086_v1 = vrot.slane %v2070_v40, 2  ;;  %v2087_v18 = vrot.slane %v2071_v31, 2 }
 0x1e6   : > { %11634 = vst [vmem:[#allocation44_spill] sm:$0xff] %v7840_v30  ;;  %v2088_v47 = vrot.slane %v2072_v32, 2  ;;  %v2097_v15 = vadd.f32 %v2081_v11, %v7683_v62  ;;  %v2100_v56 = vadd.f32 %v2084_v43, %v7695_v19  ;;  %v2101_v13 = vadd.f32 %v2085_v49, %v2059_v14 }
 0x1e7   : > { %11636 = vst [vmem:[#allocation45_spill] sm:$0xff] %v7843_v9  ;;  %v2098_v38 = vadd.f32 %v2082_v60, %v7685_v53  ;;  %v2099_v51 = vadd.f32 %v2083_v63, %v7690_v48  ;;  %v2102_v42 = vadd.f32 %v2086_v1, %v2060_v34  ;;  %v2103_v2 = vadd.f32 %v2087_v18, %v2061_v6 }
 0x1e8   : > { %v2104_v46 = vadd.f32 %v2088_v47, %v2062_v29  ;;  %v2106_v50 = vstv %s7811_s22  ;;  %v7883_v0 = vstv %s7817_s24  ;;  %v7886_v40 = vstv %s7831_s25  ;;  %s8241_s22 = sld [smem:[#allocation2 + $0x107]] }
 0x1e9   : > { %v7889_v31 = vstv %s7845_s5  ;;  %v7893_v62 = vadd.f32 %v2106_v50, %v2097_v15  ;;  %v7895_v48 = vadd.f32 %v2106_v50, %v2098_v38  ;;  %v7897_v53 = vadd.f32 %v2106_v50, %v2099_v51  ;;  %s8423_s24 = sld [smem:[#allocation5 + $0x7]] }
 0x1ea   : > { %v7899_v19 = vadd.f32 %v2106_v50, %v2100_v56  ;;  %v7901_v14 = vadd.f32 %v2106_v50, %v2101_v13  ;;  %v7903_v34 = vadd.f32 %v2106_v50, %v2102_v42  ;;  %v7905_v6 = vadd.f32 %v2106_v50, %v2103_v2  ;;  %s8429_s25 = sld [smem:[#allocation7 + $0x380]] }
 0x1eb   : > { %v7907_v29 = vadd.f32 %v2106_v50, %v2104_v46  ;;  %v2115_v47 = vmul.f32 %v7893_v62, %v7893_v62  ;;  %v2116_v15 = vmul.f32 %v7895_v48, %v7895_v48  ;;  %v2117_v38 = vmul.f32 %v7897_v53, %v7897_v53  ;;  %s8443_s5 = sld [smem:[#allocation7 + $0x381]] }
 0x1ec   : > { %v2118_v51 = vmul.f32 %v7899_v19, %v7899_v19  ;;  %v2119_v32 = vmul.f32 %v7901_v14, %v7901_v14  ;;  %v2120_v2 = vmul.f32 %v7903_v34, %v7903_v34  ;;  %v2121_v11 = vmul.f32 %v7905_v6, %v7905_v6 }
 0x1ed   : > { %v2122_v60 = vmul.f32 %v7907_v29, %v7907_v29  ;;  %v2123_v63 = vmul.f32 %v2115_v47, %v7893_v62  ;;  %v2124_v43 = vmul.f32 %v2116_v15, %v7895_v48  ;;  %v2125_v49 = vmul.f32 %v2117_v38, %v7897_v53 }
 0x1ee   : > { %v2126_v1 = vmul.f32 %v2118_v51, %v7899_v19  ;;  %v2127_v18 = vmul.f32 %v2119_v32, %v7901_v14  ;;  %v2128_v56 = vmul.f32 %v2120_v2, %v7903_v34  ;;  %v2129_v13 = vmul.f32 %v2121_v11, %v7905_v6 }
 0x1ef   : > { %v2130_v42 = vmul.f32 %v2122_v60, %v7907_v29  ;;  %v2131_v46 = vmul.f32 0.044715, %v2123_v63  ;;  %v2132_v50 = vmul.f32 0.044715, %v2124_v43  ;;  %v2133_v47 = vmul.f32 0.044715, %v2125_v49 }
 0x1f0   : > { %v7938_v15 = vstv %s7879_s9  ;;  %v2134_v38 = vmul.f32 0.044715, %v2126_v1  ;;  %v2135_v20 = vmul.f32 0.044715, %v2127_v18  ;;  %v2136_v51 = vmul.f32 0.044715, %v2128_v56 }
 0x1f1   : > { %11654 = vst [vmem:[#allocation48_spill] sm:$0xff] %v7938_v15  ;;  %v2260_v21 = vstv %s7891_s13  ;;  %v2137_v35 = vmul.f32 0.044715, %v2129_v13  ;;  %v2138_v9 = vmul.f32 0.044715, %v2130_v42  ;;  %v2139_v32 = vadd.f32 %v2131_v46, %v7893_v62  ;;  %v11655_v46 = vld [vmem:[#allocation22_spill] sm:$0xff] }
 0x1f2   : > { %v2140_v2 = vadd.f32 %v2132_v50, %v7895_v48  ;;  %v2141_v11 = vadd.f32 %v2133_v47, %v7897_v53  ;;  %v2142_v60 = vadd.f32 %v2134_v38, %v7899_v19  ;;  %v2143_v63 = vadd.f32 %v2135_v20, %v7901_v14  ;;  %v11656_v20 = vld [vmem:[#allocation26_spill] sm:$0xff]  ;;  %s8457_s9 = sld [smem:[#allocation7 + $0x382]] }
 0x1f3   : > { %v2144_v43 = vadd.f32 %v2136_v51, %v7903_v34  ;;  %v2145_v49 = vadd.f32 %v2137_v35, %v7905_v6  ;;  %v2146_v1 = vadd.f32 %v2138_v9, %v7907_v29  ;;  %v2147_v18 = vmul.f32 0.7978846, %v2139_v32  ;;  %v11659_v32 = vld [vmem:[#allocation19_spill] sm:$0xff]  ;;  %s8491_s13 = sld [smem:[#allocation7 + $0x383]] }
 0x1f4   : > { %v2148_v56 = vmul.f32 0.7978846, %v2140_v2  ;;  %v2149_v13 = vmul.f32 0.7978846, %v2141_v11  ;;  %v2150_v42 = vmul.f32 0.7978846, %v2142_v60  ;;  %v2261_v50 = vmul.f32 %v2260_v21, %v11655_v46 }
 0x1f5   : > { %v2151_v30 = vmul.f32 0.7978846, %v2143_v63  ;;  %v2152_v47 = vmul.f32 0.7978846, %v2144_v43  ;;  %v2153_v37 = vmul.f32 0.7978846, %v2145_v49  ;;  %5531 = vtanh.f32 %v2147_v18 }
 0x1f6   : > { %v2154_v38 = vmul.f32 0.7978846, %v2146_v1  ;;  %5533 = vtanh.f32 %v2148_v56  ;;  %v2262_v51 = vmul.f32 %v2260_v21, %v11656_v20  ;;  %v2263_v35 = vmul.f32 %v2260_v21, %v11657_v41  ;;  %v11661_v11 = vld [vmem:[#allocation38_spill] sm:$0xff]  ;;  %v11665_v43 = vld [vmem:[#allocation41_spill] sm:$0xff]  ;;  %v11668_v56 = vld [vmem:[#allocation23_spill] sm:$0xff] }
 0x1f7   : > { %v2264_v9 = vmul.f32 %v2260_v21, %v11658_v12  ;;  %5535 = vtanh.f32 %v2149_v13  ;;  %v7954_v2 = vmul.f32 %v2260_v21, %v11659_v32  ;;  %v7957_v60 = vmul.f32 %v2260_v21, %v11661_v11  ;;  %v11663_v63 = vld [vmem:[#allocation18_spill] sm:$0xff]  ;;  %v11669_v13 = vld [vmem:[#allocation27_spill] sm:$0xff]  ;;  %v11670_v32 = vld [vmem:[#allocation32_spill] sm:$0xff] }
 0x1f8   : > { %v7960_v46 = vmul.f32 %v2260_v21, %v11663_v63  ;;  %5537 = vtanh.f32 %v2150_v42  ;;  %v7963_v49 = vmul.f32 %v2260_v21, %v11665_v43  ;;  %v2270_v1 = vstv %s7929_s19  ;;  %v11671_v11 = vld [vmem:[#allocation30_spill] sm:$0xff]  ;;  %v11673_v42 = vld [vmem:[#allocation39_spill] sm:$0xff]  ;;  %s8503_s19 = sld [smem:[#allocation2 + $0x8]] }
 0x1f9   : > { %11660 = vst [vmem:[#allocation52_spill] sm:$0xff] %v7954_v2  ;;  %v7967_v18 = vstv %s7935_s20  ;;  %5539 = vtanh.f32 %v2151_v30  ;;  %v2271_v12 = vmul.f32 %v2270_v1, %v11668_v56  ;;  %v2272_v41 = vmul.f32 %v2270_v1, %v11669_v13  ;;  %v11672_v2 = vld [vmem:[#allocation36_spill] sm:$0xff]  ;;  %v11674_v43 = vld [vmem:[#allocation34_spill] sm:$0xff]  ;;  %s8541_s20 = sld [smem:[#allocation2 + $0x88]] }
 0x1fa   : > { %11662 = vst [vmem:[#allocation53_spill] sm:$0xff] %v7957_v60  ;;  %v2273_v20 = vmul.f32 %v2270_v1, %v11670_v32  ;;  %5541 = vtanh.f32 %v2152_v47  ;;  %v2274_v60 = vmul.f32 %v2270_v1, %v11671_v11  ;;  %v7974_v63 = vmul.f32 %v2270_v1, %v11672_v2  ;;  %v11675_v30 = vld [vmem:[#allocation42_spill] sm:$0xff] }
 0x1fb   : > { %11664 = vst [vmem:[#allocation54_spill] sm:$0xff] %v7960_v46  ;;  %v7977_v46 = vmul.f32 %v2270_v1, %v11673_v42  ;;  %v5532_v21 = vpop.eup %5531  ;;  %5543 = vtanh.f32 %v2153_v37  ;;  %v7983_v56 = vmul.f32 %v2270_v1, %v11675_v30  ;;  %v2287_v13 = vrot.slane %v2271_v12, 1 }
 0x1fc   : > { %11666 = vst [vmem:[#allocation55_spill] sm:$0xff] %v7963_v49  ;;  %v5534_v49 = vpop.eup %5533  ;;  %5545 = vtanh.f32 %v2154_v38  ;;  %v2163_v47 = vadd.f32 1.0, %v5532_v21  ;;  %v2288_v32 = vrot.slane %v2272_v41, 1  ;;  %v2289_v11 = vrot.slane %v2273_v20, 1 }
 0x1fd   : > { %11667 = vst [vmem:[#allocation56_spill] sm:$0xff] %v7967_v18  ;;  %v7980_v18 = vmul.f32 %v2270_v1, %v11674_v43  ;;  %v5536_v24 = vpop.eup %5535  ;;  %v2164_v2 = vadd.f32 1.0, %v5534_v49  ;;  %v2290_v55 = vrot.slane %v2274_v60, 1  ;;  %v7989_v21 = vadd.f32 %v2287_v13, %v2261_v50 }
 0x1fe   : > { %v5538_v37 = vpop.eup %5537  ;;  %v2165_v15 = vadd.f32 1.0, %v5536_v24  ;;  %v2171_v43 = vmul.f32 0.5, %v2163_v47  ;;  %v7991_v41 = vadd.f32 %v2288_v32, %v2262_v51  ;;  %v7996_v27 = vadd.f32 %v2289_v11, %v2263_v35 }
 0x1ff   : > { %v5540_v12 = vpop.eup %5539  ;;  %v2166_v30 = vadd.f32 1.0, %v5538_v37  ;;  %v2172_v38 = vmul.f32 0.5, %v2164_v2  ;;  %v8001_v37 = vadd.f32 %v2290_v55, %v2264_v9 }
 0x200   : > { %v5542_v20 = vpop.eup %5541  ;;  %v2167_v60 = vadd.f32 1.0, %v5540_v12  ;;  %v2173_v49 = vmul.f32 0.5, %v2165_v15  ;;  %v7994_v42 = vmul.f32 %v2171_v43, %v7893_v62 }
 0x201   : > { %v5544_v24 = vpop.eup %5543  ;;  %v2168_v47 = vadd.f32 1.0, %v5542_v20  ;;  %v2174_v22 = vmul.f32 0.5, %v2166_v30  ;;  %v7999_v1 = vmul.f32 %v2172_v38, %v7895_v48 }
 0x202   : > { %v5546_v50 = vpop.eup %5545  ;;  %v2169_v2 = vadd.f32 1.0, %v5544_v24  ;;  %v2175_v51 = vmul.f32 0.5, %v2167_v60  ;;  %v2181_v32 = vmul.f32 %v2173_v49, %v7897_v53  ;;  %v2189_v15 = vmul.f32 %v7883_v0, %v7994_v42 }
 0x203   : > { %v2170_v62 = vadd.f32 1.0, %v5546_v50  ;;  %v2176_v43 = vmul.f32 0.5, %v2168_v47  ;;  %v2182_v35 = vmul.f32 %v2174_v22, %v7899_v19  ;;  %v2190_v11 = vmul.f32 %v7883_v0, %v7999_v1 }
 0x204   : > { %v2177_v13 = vmul.f32 0.5, %v2169_v2  ;;  %v2183_v48 = vmul.f32 %v2175_v51, %v7901_v14  ;;  %v2191_v55 = vmul.f32 %v7883_v0, %v2181_v32  ;;  %v8012_v9 = vadd.f32 %v2189_v15, %v7706_v17 }
 0x205   : > { %v2178_v30 = vmul.f32 0.5, %v2170_v62  ;;  %v2184_v53 = vmul.f32 %v2176_v43, %v7903_v34  ;;  %v2192_v12 = vmul.f32 %v7883_v0, %v2182_v35  ;;  %v8017_v38 = vadd.f32 %v2190_v11, %v7711_v8 }
 0x206   : > { %v2185_v22 = vmul.f32 %v2177_v13, %v7905_v6  ;;  %v2193_v19 = vmul.f32 %v7883_v0, %v2183_v48  ;;  %v8022_v20 = vadd.f32 %v2191_v55, %v7716_v39  ;;  %v2207_v14 = vmul.f32 %v7886_v40, %v7994_v42 }
 0x207   : > { %v2186_v17 = vmul.f32 %v2178_v30, %v7907_v29  ;;  %v2194_v60 = vmul.f32 %v7883_v0, %v2184_v53  ;;  %v8029_v34 = vadd.f32 %v2192_v12, %v7723_v5  ;;  %v2208_v8 = vmul.f32 %v7886_v40, %v7999_v1 }
 0x208   : > { %v2195_v6 = vmul.f32 %v7883_v0, %v2185_v22  ;;  %v8035_v49 = vadd.f32 %v2193_v19, %v7729_v7  ;;  %v2209_v39 = vmul.f32 %v7886_v40, %v2181_v32  ;;  %v2210_v24 = vmul.f32 %v7886_v40, %v2182_v35 }
 0x209   : > { %v2196_v47 = vmul.f32 %v7883_v0, %v2186_v17  ;;  %v8041_v29 = vadd.f32 %v2194_v60, %v7735_v4  ;;  %v2211_v5 = vmul.f32 %v7886_v40, %v2183_v48  ;;  %v2212_v50 = vmul.f32 %v7886_v40, %v2184_v53 }
 0x20a   : > { %v8046_v2 = vadd.f32 %v2195_v6, %v7740_v33  ;;  %v2213_v51 = vmul.f32 %v7886_v40, %v2185_v22  ;;  %v2214_v7 = vmul.f32 %v7886_v40, %v2186_v17  ;;  %v8051_v15 = vadd.f32 %v2207_v14, %v7745_v23 }
 0x20b   : > { %v8054_v62 = vadd.f32 %v2196_v47, %v7748_v52  ;;  %v8057_v4 = vadd.f32 %v2208_v8, %v7751_v3  ;;  %v8060_v0 = vadd.f32 %v2209_v39, %v7754_v28  ;;  %v8063_v43 = vadd.f32 %v2210_v24, %v7757_v44 }
 0x20c   : > { %v8066_v33 = vadd.f32 %v2211_v5, %v7760_v26  ;;  %v8069_v40 = vadd.f32 %v2212_v50, %v7763_v25  ;;  %v8072_v23 = vadd.f32 %v2213_v51, %v7766_v59  ;;  %v8075_v52 = vadd.f32 %v2214_v7, %v7769_v36  ;;  %v11685_v5 = vld [vmem:[#allocation46_spill] sm:$0xff]  ;;  %v11691_v51 = vld [vmem:[#allocation44_spill] sm:$0xff] }
 0x20d   : > { %v2225_v3 = vmul.f32 %v7889_v31, %v7994_v42  ;;  %v2226_v28 = vmul.f32 %v7889_v31, %v7999_v1  ;;  %v2227_v44 = vmul.f32 %v7889_v31, %v2181_v32  ;;  %v2228_v26 = vmul.f32 %v7889_v31, %v2182_v35 }
 0x20e   : > { %v2229_v11 = vmul.f32 %v7889_v31, %v2183_v48  ;;  %v2230_v25 = vmul.f32 %v7889_v31, %v2184_v53  ;;  %v2231_v59 = vmul.f32 %v7889_v31, %v2185_v22  ;;  %v2232_v13 = vmul.f32 %v7889_v31, %v2186_v17 }
 0x20f   : > { %v8088_v36 = vadd.f32 %v2225_v3, %v7782_v10  ;;  %v8091_v55 = vadd.f32 %v2226_v28, %v7785_v45  ;;  %v8094_v30 = vadd.f32 %v2227_v44, %v7788_v54  ;;  %v8097_v12 = vadd.f32 %v2228_v26, %v7791_v58  ;;  %v11676_v10 = vld [vmem:[#allocation49_spill] sm:$0xff]  ;;  %v11678_v45 = vld [vmem:[#allocation48_spill] sm:$0xff] }
 0x210   : > { %v8100_v19 = vadd.f32 %v2229_v11, %v7794_v61  ;;  %v8103_v14 = vadd.f32 %v2230_v25, %v7797_v57  ;;  %v8106_v31 = vadd.f32 %v2231_v59, %v7800_v16  ;;  %v8109_v60 = vadd.f32 %v2232_v13, %v11676_v10  ;;  %v11693_v3 = vld [vmem:[#allocation45_spill] sm:$0xff]  ;;  %v11695_v44 = vld [vmem:[#allocation52_spill] sm:$0xff]  ;;  %v11699_v10 = vld [vmem:[#allocation54_spill] sm:$0xff] }
 0x211   : > { %v2243_v8 = vmul.f32 %v11678_v45, %v7994_v42  ;;  %v2244_v54 = vmul.f32 %v11678_v45, %v7999_v1  ;;  %v2245_v58 = vmul.f32 %v11678_v45, %v2181_v32  ;;  %v2246_v61 = vmul.f32 %v11678_v45, %v2182_v35  ;;  %v11679_v42 = vld [vmem:[#allocation50_spill] sm:$0xff]  ;;  %v11681_v1 = vld [vmem:[#allocation47_spill] sm:$0xff]  ;;  %v11697_v25 = vld [vmem:[#allocation53_spill] sm:$0xff] }
 0x212   : > { %11677 = vst [vmem:[#allocation49_spill] sm:$0xff] %v8109_v60  ;;  %v2247_v57 = vmul.f32 %v11678_v45, %v2183_v48  ;;  %v2248_v16 = vmul.f32 %v11678_v45, %v2184_v53  ;;  %v2249_v6 = vmul.f32 %v11678_v45, %v2185_v22  ;;  %v2250_v39 = vmul.f32 %v11678_v45, %v2186_v17  ;;  %v11683_v32 = vld [vmem:[#allocation51_spill] sm:$0xff]  ;;  %v11687_v48 = vld [vmem:[#allocation20_spill] sm:$0xff]  ;;  %v11689_v22 = vld [vmem:[#allocation21_spill] sm:$0xff] }
 0x213   : > { %v8126_v24 = vadd.f32 %v2243_v8, %v11679_v42  ;;  %v8129_v47 = vadd.f32 %v2244_v54, %v11681_v1  ;;  %v8132_v35 = vadd.f32 %v2245_v58, %v11683_v32  ;;  %v8135_v50 = vadd.f32 %v2246_v61, %v11685_v5  ;;  %v11701_v54 = vld [vmem:[#allocation55_spill] sm:$0xff]  ;;  %v11707_v32 = vld [vmem:[#allocation25_spill] sm:$0xff] }
 0x214   : > { %v8140_v53 = vadd.f32 %v2247_v57, %v11687_v48  ;;  %v8143_v17 = vadd.f32 %v2248_v16, %v11689_v22  ;;  %v8146_v7 = vadd.f32 %v2249_v6, %v11691_v51  ;;  %v8149_v28 = vadd.f32 %v2250_v39, %v11693_v3  ;;  %v11703_v57 = vld [vmem:[#allocation24_spill] sm:$0xff]  ;;  %v11708_v5 = vld [vmem:[#allocation37_spill] sm:$0xff]  ;;  %v11711_v3 = vld [vmem:[#allocation43_spill] sm:$0xff] }
 0x215   : > { %11680 = vst [vmem:[#allocation48_spill] sm:$0xff] %v8126_v24  ;;  %v11696_v26 = vrot.slane %v7974_v63, 1  ;;  %v11698_v59 = vrot.slane %v7977_v46, 1  ;;  %v11700_v45 = vrot.slane %v7980_v18, 1  ;;  %v11702_v58 = vrot.slane %v7983_v56, 1  ;;  %v11704_v16 = vld [vmem:[#allocation56_spill] sm:$0xff] }
 0x216   : > { %11682 = vst [vmem:[#allocation50_spill] sm:$0xff] %v8129_v47  ;;  %v2313_v6 = vmul.f32 %v11704_v16, %v11703_v57  ;;  %v11705_v39 = vld [vmem:[#allocation28_spill] sm:$0xff]  ;;  %v11706_v63 = vld [vmem:[#allocation33_spill] sm:$0xff]  ;;  %v2316_v46 = vmul.f32 %v11704_v16, %v11707_v32  ;;  %v2317_v18 = vmul.f32 %v11704_v16, %v11708_v5  ;;  %v11710_v56 = vld [vmem:[#allocation35_spill] sm:$0xff] }
 0x217   : > { %11684 = vst [vmem:[#allocation47_spill] sm:$0xff] %v8132_v35  ;;  %v2307_v11 = vadd.f32 %v11696_v26, %v11695_v44  ;;  %v2308_v13 = vadd.f32 %v11698_v59, %v11697_v25  ;;  %v2309_v8 = vadd.f32 %v11700_v45, %v11699_v10  ;;  %v2310_v61 = vadd.f32 %v11702_v58, %v11701_v54  ;;  %v11709_v48 = vld [vmem:[#allocation40_spill] sm:$0xff] }
 0x218   : > { %11686 = vst [vmem:[#allocation51_spill] sm:$0xff] %v8135_v50  ;;  %v2314_v42 = vmul.f32 %v11704_v16, %v11705_v39  ;;  %v2315_v1 = vmul.f32 %v11704_v16, %v11706_v63  ;;  %v2318_v22 = vmul.f32 %v11704_v16, %v11709_v48  ;;  %v2319_v51 = vmul.f32 %v11704_v16, %v11710_v56  ;;  %v11716_v50 = vld [vmem:[#allocation29_spill] sm:$0xff] }
 0x219   : > { %11688 = vst [vmem:[#allocation46_spill] sm:$0xff] %v8140_v53  ;;  %v2320_v44 = vmul.f32 %v11704_v16, %v11711_v3  ;;  %v2329_v26 = vrot.slane %v2313_v6, 2  ;;  %v2332_v10 = vrot.slane %v2316_v46, 2  ;;  %v2333_v45 = vrot.slane %v2317_v18, 2  ;;  %v11715_v53 = vld [vmem:[#allocation31_spill] sm:$0xff] }
 0x21a   : > { %11690 = vst [vmem:[#allocation20_spill] sm:$0xff] %v8143_v17  ;;  %v2330_v25 = vrot.slane %v2314_v42, 2  ;;  %v2331_v59 = vrot.slane %v2315_v1, 2  ;;  %v2334_v54 = vrot.slane %v2318_v22, 2  ;;  %v2335_v58 = vrot.slane %v2319_v51, 2 }
 0x21b   : > { %11692 = vst [vmem:[#allocation21_spill] sm:$0xff] %v8146_v7  ;;  %v2336_v5 = vrot.slane %v2320_v44, 2  ;;  %v2345_v48 = vadd.f32 %v2329_v26, %v7989_v21  ;;  %v2348_v16 = vadd.f32 %v2332_v10, %v8001_v37  ;;  %v2349_v6 = vadd.f32 %v2333_v45, %v2307_v11 }
 0x21c   : > { %11694 = vst [vmem:[#allocation44_spill] sm:$0xff] %v8149_v28  ;;  %v2346_v32 = vadd.f32 %v2330_v25, %v7991_v41  ;;  %v2347_v56 = vadd.f32 %v2331_v59, %v7996_v27  ;;  %v2350_v42 = vadd.f32 %v2334_v54, %v2308_v13  ;;  %v2351_v3 = vadd.f32 %v2335_v58, %v2309_v8 }
 0x21d   : > { %v2352_v1 = vadd.f32 %v2336_v5, %v2310_v61  ;;  %v2354_v46 = vstv %s8117_s23  ;;  %v8189_v18 = vstv %s8123_s26  ;;  %v8192_v22 = vstv %s8137_s12  ;;  %s8547_s23 = sld [smem:[#allocation2 + $0x108]] }
 0x21e   : > { %v8195_v51 = vstv %s8151_s11  ;;  %v8199_v21 = vadd.f32 %v2354_v46, %v2345_v48  ;;  %v8201_v27 = vadd.f32 %v2354_v46, %v2346_v32  ;;  %v8203_v41 = vadd.f32 %v2354_v46, %v2347_v56  ;;  %s8729_s26 = sld [smem:[#allocation5 + $0x8]] }
 0x21f   : > { %v8205_v37 = vadd.f32 %v2354_v46, %v2348_v16  ;;  %v8207_v11 = vadd.f32 %v2354_v46, %v2349_v6  ;;  %v8209_v13 = vadd.f32 %v2354_v46, %v2350_v42  ;;  %v8211_v8 = vadd.f32 %v2354_v46, %v2351_v3  ;;  %s8735_s12 = sld [smem:[#allocation7 + $0x400]] }
 0x220   : > { %v8213_v61 = vadd.f32 %v2354_v46, %v2352_v1  ;;  %v2363_v5 = vmul.f32 %v8199_v21, %v8199_v21  ;;  %v2364_v48 = vmul.f32 %v8201_v27, %v8201_v27  ;;  %v2365_v32 = vmul.f32 %v8203_v41, %v8203_v41  ;;  %s8749_s11 = sld [smem:[#allocation7 + $0x401]] }
 0x221   : > { %v2366_v56 = vmul.f32 %v8205_v37, %v8205_v37  ;;  %v2367_v44 = vmul.f32 %v8207_v11, %v8207_v11  ;;  %v2368_v3 = vmul.f32 %v8209_v13, %v8209_v13  ;;  %v2369_v26 = vmul.f32 %v8211_v8, %v8211_v8 }
 0x222   : > { %v2370_v25 = vmul.f32 %v8213_v61, %v8213_v61  ;;  %v2371_v59 = vmul.f32 %v2363_v5, %v8199_v21  ;;  %v2372_v10 = vmul.f32 %v2364_v48, %v8201_v27  ;;  %v2373_v45 = vmul.f32 %v2365_v32, %v8203_v41 }
 0x223   : > { %v2374_v54 = vmul.f32 %v2366_v56, %v8205_v37  ;;  %v2375_v58 = vmul.f32 %v2367_v44, %v8207_v11  ;;  %v2376_v16 = vmul.f32 %v2368_v3, %v8209_v13  ;;  %v2377_v6 = vmul.f32 %v2369_v26, %v8211_v8 }
 0x224   : > { %v2378_v42 = vmul.f32 %v2370_v25, %v8213_v61  ;;  %v2379_v1 = vmul.f32 0.044715, %v2371_v59  ;;  %v2380_v46 = vmul.f32 0.044715, %v2372_v10  ;;  %v2381_v5 = vmul.f32 0.044715, %v2373_v45 }
 0x225   : > { %v8244_v48 = vstv %s8185_s14  ;;  %v2382_v32 = vmul.f32 0.044715, %v2374_v54  ;;  %v2383_v63 = vmul.f32 0.044715, %v2375_v58  ;;  %v2384_v56 = vmul.f32 0.044715, %v2376_v16 }
 0x226   : > { %11712 = vst [vmem:[#allocation45_spill] sm:$0xff] %v8244_v48  ;;  %v2508_v39 = vstv %s8197_s16  ;;  %v2385_v57 = vmul.f32 0.044715, %v2377_v6  ;;  %v2386_v28 = vmul.f32 0.044715, %v2378_v42  ;;  %v2387_v44 = vadd.f32 %v2379_v1, %v8199_v21  ;;  %v11713_v1 = vld [vmem:[#allocation22_spill] sm:$0xff] }
 0x227   : > { %v2388_v3 = vadd.f32 %v2380_v46, %v8201_v27  ;;  %v2389_v26 = vadd.f32 %v2381_v5, %v8203_v41  ;;  %v2390_v25 = vadd.f32 %v2382_v32, %v8205_v37  ;;  %v2391_v59 = vadd.f32 %v2383_v63, %v8207_v11  ;;  %v11714_v63 = vld [vmem:[#allocation26_spill] sm:$0xff]  ;;  %s8763_s14 = sld [smem:[#allocation7 + $0x402]] }
 0x228   : > { %v2392_v10 = vadd.f32 %v2384_v56, %v8209_v13  ;;  %v2393_v45 = vadd.f32 %v2385_v57, %v8211_v8  ;;  %v2394_v54 = vadd.f32 %v2386_v28, %v8213_v61  ;;  %v2395_v58 = vmul.f32 0.7978846, %v2387_v44  ;;  %v11717_v44 = vld [vmem:[#allocation19_spill] sm:$0xff]  ;;  %s8797_s16 = sld [smem:[#allocation7 + $0x403]] }
 0x229   : > { %v2396_v16 = vmul.f32 0.7978846, %v2388_v3  ;;  %v2397_v6 = vmul.f32 0.7978846, %v2389_v26  ;;  %v2398_v42 = vmul.f32 0.7978846, %v2390_v25  ;;  %v2509_v46 = vmul.f32 %v2508_v39, %v11713_v1 }
 0x22a   : > { %v2399_v7 = vmul.f32 0.7978846, %v2391_v59  ;;  %v2400_v5 = vmul.f32 0.7978846, %v2392_v10  ;;  %v2401_v17 = vmul.f32 0.7978846, %v2393_v45  ;;  %5547 = vtanh.f32 %v2395_v58 }
 0x22b   : > { %v2402_v32 = vmul.f32 0.7978846, %v2394_v54  ;;  %5549 = vtanh.f32 %v2396_v16  ;;  %v2510_v56 = vmul.f32 %v2508_v39, %v11714_v63  ;;  %v2511_v57 = vmul.f32 %v2508_v39, %v11715_v53  ;;  %v11719_v26 = vld [vmem:[#allocation38_spill] sm:$0xff]  ;;  %v11723_v10 = vld [vmem:[#allocation41_spill] sm:$0xff]  ;;  %v11726_v16 = vld [vmem:[#allocation23_spill] sm:$0xff] }
 0x22c   : > { %v2512_v28 = vmul.f32 %v2508_v39, %v11716_v50  ;;  %5551 = vtanh.f32 %v2397_v6  ;;  %v8260_v3 = vmul.f32 %v2508_v39, %v11717_v44  ;;  %v8263_v25 = vmul.f32 %v2508_v39, %v11719_v26  ;;  %v11721_v59 = vld [vmem:[#allocation18_spill] sm:$0xff]  ;;  %v11727_v6 = vld [vmem:[#allocation27_spill] sm:$0xff]  ;;  %v11728_v44 = vld [vmem:[#allocation32_spill] sm:$0xff] }
 0x22d   : > { %v8266_v1 = vmul.f32 %v2508_v39, %v11721_v59  ;;  %5553 = vtanh.f32 %v2398_v42  ;;  %v8269_v45 = vmul.f32 %v2508_v39, %v11723_v10  ;;  %v2518_v54 = vstv %s8235_s21  ;;  %v11729_v26 = vld [vmem:[#allocation30_spill] sm:$0xff]  ;;  %v11731_v42 = vld [vmem:[#allocation39_spill] sm:$0xff]  ;;  %s8809_s21 = sld [smem:[#allocation2 + $0x9]] }
 0x22e   : > { %11718 = vst [vmem:[#allocation52_spill] sm:$0xff] %v8260_v3  ;;  %v8273_v58 = vstv %s8241_s22  ;;  %5555 = vtanh.f32 %v2399_v7  ;;  %v2519_v50 = vmul.f32 %v2518_v54, %v11726_v16  ;;  %v2520_v53 = vmul.f32 %v2518_v54, %v11727_v6  ;;  %v11730_v3 = vld [vmem:[#allocation36_spill] sm:$0xff]  ;;  %v11732_v10 = vld [vmem:[#allocation34_spill] sm:$0xff]  ;;  %s8847_s22 = sld [smem:[#allocation2 + $0x89]] }
 0x22f   : > { %11720 = vst [vmem:[#allocation53_spill] sm:$0xff] %v8263_v25  ;;  %v2521_v63 = vmul.f32 %v2518_v54, %v11728_v44  ;;  %5557 = vtanh.f32 %v2400_v5  ;;  %v2522_v25 = vmul.f32 %v2518_v54, %v11729_v26  ;;  %v8280_v59 = vmul.f32 %v2518_v54, %v11730_v3  ;;  %v11733_v7 = vld [vmem:[#allocation42_spill] sm:$0xff] }
 0x230   : > { %11722 = vst [vmem:[#allocation54_spill] sm:$0xff] %v8266_v1  ;;  %v8283_v1 = vmul.f32 %v2518_v54, %v11731_v42  ;;  %v5548_v39 = vpop.eup %5547  ;;  %5559 = vtanh.f32 %v2401_v17  ;;  %v8289_v16 = vmul.f32 %v2518_v54, %v11733_v7  ;;  %v2535_v6 = vrot.slane %v2519_v50, 1 }
 0x231   : > { %11724 = vst [vmem:[#allocation55_spill] sm:$0xff] %v8269_v45  ;;  %v5550_v45 = vpop.eup %5549  ;;  %5561 = vtanh.f32 %v2402_v32  ;;  %v2411_v5 = vadd.f32 1.0, %v5548_v39  ;;  %v2536_v44 = vrot.slane %v2520_v53, 1  ;;  %v2537_v26 = vrot.slane %v2521_v63, 1 }
 0x232   : > { %11725 = vst [vmem:[#allocation56_spill] sm:$0xff] %v8273_v58  ;;  %v8286_v58 = vmul.f32 %v2518_v54, %v11732_v10  ;;  %v5552_v35 = vpop.eup %5551  ;;  %v2412_v3 = vadd.f32 1.0, %v5550_v45  ;;  %v2538_v47 = vrot.slane %v2522_v25, 1  ;;  %v8295_v39 = vadd.f32 %v2535_v6, %v2509_v46 }
 0x233   : > { %v5554_v17 = vpop.eup %5553  ;;  %v2413_v48 = vadd.f32 1.0, %v5552_v35  ;;  %v2419_v10 = vmul.f32 0.5, %v2411_v5  ;;  %v8297_v53 = vadd.f32 %v2536_v44, %v2510_v56  ;;  %v8302_v24 = vadd.f32 %v2537_v26, %v2511_v57 }
 0x234   : > { %v5556_v50 = vpop.eup %5555  ;;  %v2414_v7 = vadd.f32 1.0, %v5554_v17  ;;  %v2420_v32 = vmul.f32 0.5, %v2412_v3  ;;  %v8307_v17 = vadd.f32 %v2538_v47, %v2512_v28 }
 0x235   : > { %v5558_v63 = vpop.eup %5557  ;;  %v2415_v25 = vadd.f32 1.0, %v5556_v50  ;;  %v2421_v45 = vmul.f32 0.5, %v2413_v48  ;;  %v8300_v42 = vmul.f32 %v2419_v10, %v8199_v21 }
 0x236   : > { %v5560_v35 = vpop.eup %5559  ;;  %v2416_v5 = vadd.f32 1.0, %v5558_v63  ;;  %v2422_v60 = vmul.f32 0.5, %v2414_v7  ;;  %v8305_v54 = vmul.f32 %v2420_v32, %v8201_v27 }
 0x237   : > { %v5562_v46 = vpop.eup %5561  ;;  %v2417_v3 = vadd.f32 1.0, %v5560_v35  ;;  %v2423_v56 = vmul.f32 0.5, %v2415_v25  ;;  %v2429_v44 = vmul.f32 %v2421_v45, %v8203_v41  ;;  %v2437_v48 = vmul.f32 %v8189_v18, %v8300_v42 }
 0x238   : > { %v2418_v21 = vadd.f32 1.0, %v5562_v46  ;;  %v2424_v10 = vmul.f32 0.5, %v2416_v5  ;;  %v2430_v57 = vmul.f32 %v2422_v60, %v8205_v37  ;;  %v2438_v26 = vmul.f32 %v8189_v18, %v8305_v54 }
 0x239   : > { %v2425_v6 = vmul.f32 0.5, %v2417_v3  ;;  %v2431_v27 = vmul.f32 %v2423_v56, %v8207_v11  ;;  %v2439_v47 = vmul.f32 %v8189_v18, %v2429_v44  ;;  %v8318_v28 = vadd.f32 %v2437_v48, %v8012_v9 }
 0x23a   : > { %v2426_v7 = vmul.f32 0.5, %v2418_v21  ;;  %v2432_v41 = vmul.f32 %v2424_v10, %v8209_v13  ;;  %v2440_v50 = vmul.f32 %v8189_v18, %v2430_v57  ;;  %v8323_v32 = vadd.f32 %v2438_v26, %v8017_v38 }
 0x23b   : > { %v2433_v60 = vmul.f32 %v2425_v6, %v8211_v8  ;;  %v2441_v37 = vmul.f32 %v8189_v18, %v2431_v27  ;;  %v8328_v63 = vadd.f32 %v2439_v47, %v8022_v20  ;;  %v2455_v11 = vmul.f32 %v8192_v22, %v8300_v42 }
 0x23c   : > { %v2434_v9 = vmul.f32 %v2426_v7, %v8213_v61  ;;  %v2442_v25 = vmul.f32 %v8189_v18, %v2432_v41  ;;  %v8335_v13 = vadd.f32 %v2440_v50, %v8029_v34  ;;  %v2456_v38 = vmul.f32 %v8192_v22, %v8305_v54 }
 0x23d   : > { %v2443_v8 = vmul.f32 %v8189_v18, %v2433_v60  ;;  %v8341_v45 = vadd.f32 %v2441_v37, %v8035_v49  ;;  %v2457_v20 = vmul.f32 %v8192_v22, %v2429_v44  ;;  %v2458_v35 = vmul.f32 %v8192_v22, %v2430_v57 }
 0x23e   : > { %v2444_v5 = vmul.f32 %v8189_v18, %v2434_v9  ;;  %v8347_v61 = vadd.f32 %v2442_v25, %v8041_v29  ;;  %v2459_v34 = vmul.f32 %v8192_v22, %v2431_v27  ;;  %v2460_v46 = vmul.f32 %v8192_v22, %v2432_v41 }
 0x23f   : > { %v8352_v3 = vadd.f32 %v2443_v8, %v8046_v2  ;;  %v2461_v56 = vmul.f32 %v8192_v22, %v2433_v60  ;;  %v2462_v49 = vmul.f32 %v8192_v22, %v2434_v9  ;;  %v8357_v48 = vadd.f32 %v2455_v11, %v8051_v15 }
 0x240   : > { %v8360_v21 = vadd.f32 %v2444_v5, %v8054_v62  ;;  %v8363_v29 = vadd.f32 %v2456_v38, %v8057_v4  ;;  %v8366_v18 = vadd.f32 %v2457_v20, %v8060_v0  ;;  %v8369_v10 = vadd.f32 %v2458_v35, %v8063_v43 }
 0x241   : > { %v8372_v2 = vadd.f32 %v2459_v34, %v8066_v33  ;;  %v8375_v22 = vadd.f32 %v2460_v46, %v8069_v40  ;;  %v8378_v15 = vadd.f32 %v2461_v56, %v8072_v23  ;;  %v8381_v62 = vadd.f32 %v2462_v49, %v8075_v52  ;;  %v11743_v34 = vld [vmem:[#allocation51_spill] sm:$0xff]  ;;  %v11749_v56 = vld [vmem:[#allocation21_spill] sm:$0xff] }
 0x242   : > { %v2473_v4 = vmul.f32 %v8195_v51, %v8300_v42  ;;  %v2474_v0 = vmul.f32 %v8195_v51, %v8305_v54  ;;  %v2475_v43 = vmul.f32 %v8195_v51, %v2429_v44  ;;  %v2476_v33 = vmul.f32 %v8195_v51, %v2430_v57 }
 0x243   : > { %v2477_v26 = vmul.f32 %v8195_v51, %v2431_v27  ;;  %v2478_v40 = vmul.f32 %v8195_v51, %v2432_v41  ;;  %v2479_v23 = vmul.f32 %v8195_v51, %v2433_v60  ;;  %v2480_v6 = vmul.f32 %v8195_v51, %v2434_v9 }
 0x244   : > { %v8394_v52 = vadd.f32 %v2473_v4, %v8088_v36  ;;  %v8397_v47 = vadd.f32 %v2474_v0, %v8091_v55  ;;  %v8400_v7 = vadd.f32 %v2475_v43, %v8094_v30  ;;  %v8403_v50 = vadd.f32 %v2476_v33, %v8097_v12  ;;  %v11734_v36 = vld [vmem:[#allocation49_spill] sm:$0xff]  ;;  %v11751_v4 = vld [vmem:[#allocation44_spill] sm:$0xff] }
 0x245   : > { %v8406_v37 = vadd.f32 %v2477_v26, %v8100_v19  ;;  %v8409_v11 = vadd.f32 %v2478_v40, %v8103_v14  ;;  %v8412_v51 = vadd.f32 %v2479_v23, %v8106_v31  ;;  %v8415_v25 = vadd.f32 %v2480_v6, %v11734_v36  ;;  %v11736_v55 = vld [vmem:[#allocation45_spill] sm:$0xff]  ;;  %v11753_v43 = vld [vmem:[#allocation52_spill] sm:$0xff]  ;;  %v11757_v36 = vld [vmem:[#allocation54_spill] sm:$0xff] }
 0x246   : > { %v2491_v38 = vmul.f32 %v11736_v55, %v8300_v42  ;;  %v2492_v30 = vmul.f32 %v11736_v55, %v8305_v54  ;;  %v2493_v12 = vmul.f32 %v11736_v55, %v2429_v44  ;;  %v2494_v19 = vmul.f32 %v11736_v55, %v2430_v57  ;;  %v11737_v42 = vld [vmem:[#allocation48_spill] sm:$0xff]  ;;  %v11739_v54 = vld [vmem:[#allocation50_spill] sm:$0xff]  ;;  %v11741_v44 = vld [vmem:[#allocation47_spill] sm:$0xff] }
 0x247   : > { %11735 = vst [vmem:[#allocation49_spill] sm:$0xff] %v8415_v25  ;;  %v2495_v14 = vmul.f32 %v11736_v55, %v2431_v27  ;;  %v2496_v31 = vmul.f32 %v11736_v55, %v2432_v41  ;;  %v2497_v8 = vmul.f32 %v11736_v55, %v2433_v60  ;;  %v2498_v20 = vmul.f32 %v11736_v55, %v2434_v9  ;;  %v11745_v27 = vld [vmem:[#allocation46_spill] sm:$0xff]  ;;  %v11747_v60 = vld [vmem:[#allocation20_spill] sm:$0xff]  ;;  %v11755_v40 = vld [vmem:[#allocation53_spill] sm:$0xff] }
 0x248   : > { %v8432_v35 = vadd.f32 %v2491_v38, %v11737_v42  ;;  %v8435_v5 = vadd.f32 %v2492_v30, %v11739_v54  ;;  %v8438_v57 = vadd.f32 %v2493_v12, %v11741_v44  ;;  %v8441_v46 = vadd.f32 %v2494_v19, %v11743_v34  ;;  %v11759_v30 = vld [vmem:[#allocation55_spill] sm:$0xff]  ;;  %v11765_v44 = vld [vmem:[#allocation25_spill] sm:$0xff] }
 0x249   : > { %v8446_v41 = vadd.f32 %v2495_v14, %v11745_v27  ;;  %v8449_v9 = vadd.f32 %v2496_v31, %v11747_v60  ;;  %v8452_v49 = vadd.f32 %v2497_v8, %v11749_v56  ;;  %v8455_v0 = vadd.f32 %v2498_v20, %v11751_v4  ;;  %v11761_v14 = vld [vmem:[#allocation24_spill] sm:$0xff]  ;;  %v11766_v34 = vld [vmem:[#allocation37_spill] sm:$0xff]  ;;  %v11769_v4 = vld [vmem:[#allocation43_spill] sm:$0xff] }
 0x24a   : > { %11738 = vst [vmem:[#allocation45_spill] sm:$0xff] %v8432_v35  ;;  %v11754_v33 = vrot.slane %v8280_v59, 1  ;;  %v11756_v23 = vrot.slane %v8283_v1, 1  ;;  %v11758_v55 = vrot.slane %v8286_v58, 1  ;;  %v11760_v12 = vrot.slane %v8289_v16, 1  ;;  %v11762_v31 = vld [vmem:[#allocation56_spill] sm:$0xff] }
 0x24b   : > { %11740 = vst [vmem:[#allocation48_spill] sm:$0xff] %v8435_v5  ;;  %v2561_v8 = vmul.f32 %v11762_v31, %v11761_v14  ;;  %v11763_v20 = vld [vmem:[#allocation28_spill] sm:$0xff]  ;;  %v11764_v59 = vld [vmem:[#allocation33_spill] sm:$0xff]  ;;  %v2564_v1 = vmul.f32 %v11762_v31, %v11765_v44  ;;  %v2565_v58 = vmul.f32 %v11762_v31, %v11766_v34  ;;  %v11768_v16 = vld [vmem:[#allocation35_spill] sm:$0xff] }
 0x24c   : > { %11742 = vst [vmem:[#allocation50_spill] sm:$0xff] %v8438_v57  ;;  %v2555_v26 = vadd.f32 %v11754_v33, %v11753_v43  ;;  %v2556_v6 = vadd.f32 %v11756_v23, %v11755_v40  ;;  %v2557_v38 = vadd.f32 %v11758_v55, %v11757_v36  ;;  %v2558_v19 = vadd.f32 %v11760_v12, %v11759_v30  ;;  %v11767_v27 = vld [vmem:[#allocation40_spill] sm:$0xff] }
 0x24d   : > { %11744 = vst [vmem:[#allocation47_spill] sm:$0xff] %v8441_v46  ;;  %v2562_v42 = vmul.f32 %v11762_v31, %v11763_v20  ;;  %v2563_v54 = vmul.f32 %v11762_v31, %v11764_v59  ;;  %v2566_v60 = vmul.f32 %v11762_v31, %v11767_v27  ;;  %v2567_v56 = vmul.f32 %v11762_v31, %v11768_v16  ;;  %v11774_v46 = vld [vmem:[#allocation29_spill] sm:$0xff] }
 0x24e   : > { %11746 = vst [vmem:[#allocation51_spill] sm:$0xff] %v8446_v41  ;;  %v2568_v43 = vmul.f32 %v11762_v31, %v11769_v4  ;;  %v2577_v33 = vrot.slane %v2561_v8, 2  ;;  %v2580_v36 = vrot.slane %v2564_v1, 2  ;;  %v2581_v55 = vrot.slane %v2565_v58, 2  ;;  %v11773_v41 = vld [vmem:[#allocation31_spill] sm:$0xff] }
 0x24f   : > { %11748 = vst [vmem:[#allocation46_spill] sm:$0xff] %v8449_v9  ;;  %v2578_v40 = vrot.slane %v2562_v42, 2  ;;  %v2579_v23 = vrot.slane %v2563_v54, 2  ;;  %v2582_v30 = vrot.slane %v2566_v60, 2  ;;  %v2583_v12 = vrot.slane %v2567_v56, 2 }
 0x250   : > { %11750 = vst [vmem:[#allocation20_spill] sm:$0xff] %v8452_v49  ;;  %v2584_v34 = vrot.slane %v2568_v43, 2  ;;  %v2593_v27 = vadd.f32 %v2577_v33, %v8295_v39  ;;  %v2596_v31 = vadd.f32 %v2580_v36, %v8307_v17  ;;  %v2597_v8 = vadd.f32 %v2581_v55, %v2555_v26 }
 0x251   : > { %11752 = vst [vmem:[#allocation21_spill] sm:$0xff] %v8455_v0  ;;  %v2594_v44 = vadd.f32 %v2578_v40, %v8297_v53  ;;  %v2595_v16 = vadd.f32 %v2579_v23, %v8302_v24  ;;  %v2598_v42 = vadd.f32 %v2582_v30, %v2556_v6  ;;  %v2599_v4 = vadd.f32 %v2583_v12, %v2557_v38 }
 0x252   : > { %v2600_v54 = vadd.f32 %v2584_v34, %v2558_v19  ;;  %v2602_v1 = vstv %s8423_s24  ;;  %v8495_v58 = vstv %s8429_s25  ;;  %v8498_v60 = vstv %s8443_s5  ;;  %s8853_s24 = sld [smem:[#allocation2 + $0x109]] }
 0x253   : > { %v8501_v56 = vstv %s8457_s9  ;;  %v8505_v39 = vadd.f32 %v2602_v1, %v2593_v27  ;;  %v8507_v24 = vadd.f32 %v2602_v1, %v2594_v44  ;;  %v8509_v53 = vadd.f32 %v2602_v1, %v2595_v16  ;;  %s9035_s25 = sld [smem:[#allocation5 + $0x9]] }
 0x254   : > { %v8511_v17 = vadd.f32 %v2602_v1, %v2596_v31  ;;  %v8513_v26 = vadd.f32 %v2602_v1, %v2597_v8  ;;  %v8515_v6 = vadd.f32 %v2602_v1, %v2598_v42  ;;  %v8517_v38 = vadd.f32 %v2602_v1, %v2599_v4  ;;  %s9041_s5 = sld [smem:[#allocation7 + $0x480]] }
 0x255   : > { %v8519_v19 = vadd.f32 %v2602_v1, %v2600_v54  ;;  %v2611_v34 = vmul.f32 %v8505_v39, %v8505_v39  ;;  %v2612_v27 = vmul.f32 %v8507_v24, %v8507_v24  ;;  %v2613_v44 = vmul.f32 %v8509_v53, %v8509_v53  ;;  %s9055_s9 = sld [smem:[#allocation7 + $0x481]] }
 0x256   : > { %v2614_v16 = vmul.f32 %v8511_v17, %v8511_v17  ;;  %v2615_v43 = vmul.f32 %v8513_v26, %v8513_v26  ;;  %v2616_v4 = vmul.f32 %v8515_v6, %v8515_v6  ;;  %v2617_v33 = vmul.f32 %v8517_v38, %v8517_v38 }
 0x257   : > { %v2618_v40 = vmul.f32 %v8519_v19, %v8519_v19  ;;  %v2619_v23 = vmul.f32 %v2611_v34, %v8505_v39  ;;  %v2620_v36 = vmul.f32 %v2612_v27, %v8507_v24  ;;  %v2621_v55 = vmul.f32 %v2613_v44, %v8509_v53 }
 0x258   : > { %v2622_v30 = vmul.f32 %v2614_v16, %v8511_v17  ;;  %v2623_v12 = vmul.f32 %v2615_v43, %v8513_v26  ;;  %v2624_v31 = vmul.f32 %v2616_v4, %v8515_v6  ;;  %v2625_v8 = vmul.f32 %v2617_v33, %v8517_v38 }
 0x259   : > { %v2626_v42 = vmul.f32 %v2618_v40, %v8519_v19  ;;  %v2627_v54 = vmul.f32 0.044715, %v2619_v23  ;;  %v2628_v1 = vmul.f32 0.044715, %v2620_v36  ;;  %v2629_v34 = vmul.f32 0.044715, %v2621_v55 }
 0x25a   : > { %v8550_v27 = vstv %s8491_s13  ;;  %v2630_v44 = vmul.f32 0.044715, %v2622_v30  ;;  %v2631_v59 = vmul.f32 0.044715, %v2623_v12  ;;  %v2632_v16 = vmul.f32 0.044715, %v2624_v31 }
 0x25b   : > { %11770 = vst [vmem:[#allocation44_spill] sm:$0xff] %v8550_v27  ;;  %v2756_v20 = vstv %s8503_s19  ;;  %v2633_v14 = vmul.f32 0.044715, %v2625_v8  ;;  %v2634_v0 = vmul.f32 0.044715, %v2626_v42  ;;  %v2635_v43 = vadd.f32 %v2627_v54, %v8505_v39  ;;  %v11771_v54 = vld [vmem:[#allocation22_spill] sm:$0xff] }
 0x25c   : > { %v2636_v4 = vadd.f32 %v2628_v1, %v8507_v24  ;;  %v2637_v33 = vadd.f32 %v2629_v34, %v8509_v53  ;;  %v2638_v40 = vadd.f32 %v2630_v44, %v8511_v17  ;;  %v2639_v23 = vadd.f32 %v2631_v59, %v8513_v26  ;;  %v11772_v59 = vld [vmem:[#allocation26_spill] sm:$0xff]  ;;  %s9069_s13 = sld [smem:[#allocation7 + $0x482]] }
 0x25d   : > { %v2640_v36 = vadd.f32 %v2632_v16, %v8515_v6  ;;  %v2641_v55 = vadd.f32 %v2633_v14, %v8517_v38  ;;  %v2642_v30 = vadd.f32 %v2634_v0, %v8519_v19  ;;  %v2643_v12 = vmul.f32 0.7978846, %v2635_v43  ;;  %v11775_v43 = vld [vmem:[#allocation19_spill] sm:$0xff]  ;;  %s9103_s19 = sld [smem:[#allocation7 + $0x483]] }
 0x25e   : > { %v2644_v31 = vmul.f32 0.7978846, %v2636_v4  ;;  %v2645_v8 = vmul.f32 0.7978846, %v2637_v33  ;;  %v2646_v42 = vmul.f32 0.7978846, %v2638_v40  ;;  %v2757_v1 = vmul.f32 %v2756_v20, %v11771_v54 }
 0x25f   : > { %v2647_v49 = vmul.f32 0.7978846, %v2639_v23  ;;  %v2648_v34 = vmul.f32 0.7978846, %v2640_v36  ;;  %v2649_v9 = vmul.f32 0.7978846, %v2641_v55  ;;  %5563 = vtanh.f32 %v2643_v12 }
 0x260   : > { %v2650_v44 = vmul.f32 0.7978846, %v2642_v30  ;;  %5565 = vtanh.f32 %v2644_v31  ;;  %v2758_v16 = vmul.f32 %v2756_v20, %v11772_v59  ;;  %v2759_v14 = vmul.f32 %v2756_v20, %v11773_v41  ;;  %v11777_v33 = vld [vmem:[#allocation38_spill] sm:$0xff]  ;;  %v11781_v36 = vld [vmem:[#allocation41_spill] sm:$0xff]  ;;  %v11784_v31 = vld [vmem:[#allocation23_spill] sm:$0xff] }
 0x261   : > { %v2760_v0 = vmul.f32 %v2756_v20, %v11774_v46  ;;  %5567 = vtanh.f32 %v2645_v8  ;;  %v8566_v4 = vmul.f32 %v2756_v20, %v11775_v43  ;;  %v8569_v40 = vmul.f32 %v2756_v20, %v11777_v33  ;;  %v11779_v23 = vld [vmem:[#allocation18_spill] sm:$0xff]  ;;  %v11785_v8 = vld [vmem:[#allocation27_spill] sm:$0xff]  ;;  %v11786_v43 = vld [vmem:[#allocation32_spill] sm:$0xff] }
 0x262   : > { %v8572_v54 = vmul.f32 %v2756_v20, %v11779_v23  ;;  %5569 = vtanh.f32 %v2646_v42  ;;  %v8575_v55 = vmul.f32 %v2756_v20, %v11781_v36  ;;  %v2766_v30 = vstv %s8541_s20  ;;  %v11787_v33 = vld [vmem:[#allocation30_spill] sm:$0xff]  ;;  %v11789_v42 = vld [vmem:[#allocation39_spill] sm:$0xff]  ;;  %s9115_s20 = sld [smem:[#allocation2 + $0xa]] }
 0x263   : > { %11776 = vst [vmem:[#allocation52_spill] sm:$0xff] %v8566_v4  ;;  %v8579_v12 = vstv %s8547_s23  ;;  %5571 = vtanh.f32 %v2647_v49  ;;  %v2767_v46 = vmul.f32 %v2766_v30, %v11784_v31  ;;  %v2768_v41 = vmul.f32 %v2766_v30, %v11785_v8  ;;  %v11788_v4 = vld [vmem:[#allocation36_spill] sm:$0xff]  ;;  %v11790_v36 = vld [vmem:[#allocation34_spill] sm:$0xff]  ;;  %s9153_s23 = sld [smem:[#allocation2 + $0x8a]] }
 0x264   : > { %11778 = vst [vmem:[#allocation53_spill] sm:$0xff] %v8569_v40  ;;  %v2769_v59 = vmul.f32 %v2766_v30, %v11786_v43  ;;  %5573 = vtanh.f32 %v2648_v34  ;;  %v2770_v40 = vmul.f32 %v2766_v30, %v11787_v33  ;;  %v8586_v23 = vmul.f32 %v2766_v30, %v11788_v4  ;;  %v11791_v49 = vld [vmem:[#allocation42_spill] sm:$0xff] }
 0x265   : > { %11780 = vst [vmem:[#allocation54_spill] sm:$0xff] %v8572_v54  ;;  %v8589_v54 = vmul.f32 %v2766_v30, %v11789_v42  ;;  %v5564_v20 = vpop.eup %5563  ;;  %5575 = vtanh.f32 %v2649_v9  ;;  %v8595_v31 = vmul.f32 %v2766_v30, %v11791_v49  ;;  %v2783_v8 = vrot.slane %v2767_v46, 1 }
 0x266   : > { %11782 = vst [vmem:[#allocation55_spill] sm:$0xff] %v8575_v55  ;;  %v5566_v55 = vpop.eup %5565  ;;  %5577 = vtanh.f32 %v2650_v44  ;;  %v2659_v34 = vadd.f32 1.0, %v5564_v20  ;;  %v2784_v43 = vrot.slane %v2768_v41, 1  ;;  %v2785_v33 = vrot.slane %v2769_v59, 1 }
 0x267   : > { %11783 = vst [vmem:[#allocation56_spill] sm:$0xff] %v8579_v12  ;;  %v8592_v12 = vmul.f32 %v2766_v30, %v11790_v36  ;;  %v5568_v57 = vpop.eup %5567  ;;  %v2660_v4 = vadd.f32 1.0, %v5566_v55  ;;  %v2786_v5 = vrot.slane %v2770_v40, 1  ;;  %v8601_v20 = vadd.f32 %v2783_v8, %v2757_v1 }
 0x268   : > { %v5570_v9 = vpop.eup %5569  ;;  %v2661_v27 = vadd.f32 1.0, %v5568_v57  ;;  %v2667_v36 = vmul.f32 0.5, %v2659_v34  ;;  %v8603_v41 = vadd.f32 %v2784_v43, %v2758_v16  ;;  %v8608_v35 = vadd.f32 %v2785_v33, %v2759_v14 }
 0x269   : > { %v5572_v46 = vpop.eup %5571  ;;  %v2662_v49 = vadd.f32 1.0, %v5570_v9  ;;  %v2668_v44 = vmul.f32 0.5, %v2660_v4  ;;  %v8613_v9 = vadd.f32 %v2786_v5, %v2760_v0 }
 0x26a   : > { %v5574_v59 = vpop.eup %5573  ;;  %v2663_v40 = vadd.f32 1.0, %v5572_v46  ;;  %v2669_v55 = vmul.f32 0.5, %v2661_v27  ;;  %v8606_v42 = vmul.f32 %v2667_v36, %v8505_v39 }
 0x26b   : > { %v5576_v57 = vpop.eup %5575  ;;  %v2664_v34 = vadd.f32 1.0, %v5574_v59  ;;  %v2670_v25 = vmul.f32 0.5, %v2662_v49  ;;  %v8611_v30 = vmul.f32 %v2668_v44, %v8507_v24 }
 0x26c   : > { %v5578_v1 = vpop.eup %5577  ;;  %v2665_v4 = vadd.f32 1.0, %v5576_v57  ;;  %v2671_v16 = vmul.f32 0.5, %v2663_v40  ;;  %v2677_v43 = vmul.f32 %v2669_v55, %v8509_v53  ;;  %v2685_v27 = vmul.f32 %v8495_v58, %v8606_v42 }
 0x26d   : > { %v2666_v39 = vadd.f32 1.0, %v5578_v1  ;;  %v2672_v36 = vmul.f32 0.5, %v2664_v34  ;;  %v2678_v14 = vmul.f32 %v2670_v25, %v8511_v17  ;;  %v2686_v33 = vmul.f32 %v8495_v58, %v8611_v30 }
 0x26e   : > { %v2673_v8 = vmul.f32 0.5, %v2665_v4  ;;  %v2679_v24 = vmul.f32 %v2671_v16, %v8513_v26  ;;  %v2687_v5 = vmul.f32 %v8495_v58, %v2677_v43  ;;  %v8624_v0 = vadd.f32 %v2685_v27, %v8318_v28 }
 0x26f   : > { %v2674_v49 = vmul.f32 0.5, %v2666_v39  ;;  %v2680_v53 = vmul.f32 %v2672_v36, %v8515_v6  ;;  %v2688_v46 = vmul.f32 %v8495_v58, %v2678_v14  ;;  %v8629_v44 = vadd.f32 %v2686_v33, %v8323_v32 }
 0x270   : > { %v2681_v25 = vmul.f32 %v2673_v8, %v8517_v38  ;;  %v2689_v17 = vmul.f32 %v8495_v58, %v2679_v24  ;;  %v8634_v59 = vadd.f32 %v2687_v5, %v8328_v63  ;;  %v2703_v26 = vmul.f32 %v8498_v60, %v8606_v42 }
 0x271   : > { %v2682_v28 = vmul.f32 %v2674_v49, %v8519_v19  ;;  %v2690_v40 = vmul.f32 %v8495_v58, %v2680_v53  ;;  %v8641_v6 = vadd.f32 %v2688_v46, %v8335_v13  ;;  %v2704_v32 = vmul.f32 %v8498_v60, %v8611_v30 }
 0x272   : > { %v2691_v38 = vmul.f32 %v8495_v58, %v2681_v25  ;;  %v8647_v55 = vadd.f32 %v2689_v17, %v8341_v45  ;;  %v2705_v63 = vmul.f32 %v8498_v60, %v2677_v43  ;;  %v2706_v57 = vmul.f32 %v8498_v60, %v2678_v14 }
 0x273   : > { %v2692_v34 = vmul.f32 %v8495_v58, %v2682_v28  ;;  %v8653_v19 = vadd.f32 %v2690_v40, %v8347_v61  ;;  %v2707_v13 = vmul.f32 %v8498_v60, %v2679_v24  ;;  %v2708_v1 = vmul.f32 %v8498_v60, %v2680_v53 }
 0x274   : > { %v8658_v4 = vadd.f32 %v2691_v38, %v8352_v3  ;;  %v2709_v16 = vmul.f32 %v8498_v60, %v2681_v25  ;;  %v2710_v45 = vmul.f32 %v8498_v60, %v2682_v28  ;;  %v8663_v27 = vadd.f32 %v2703_v26, %v8357_v48 }
 0x275   : > { %v8666_v39 = vadd.f32 %v2692_v34, %v8360_v21  ;;  %v8669_v61 = vadd.f32 %v2704_v32, %v8363_v29  ;;  %v8672_v58 = vadd.f32 %v2705_v63, %v8366_v18  ;;  %v8675_v36 = vadd.f32 %v2706_v57, %v8369_v10 }
 0x276   : > { %v8678_v3 = vadd.f32 %v2707_v13, %v8372_v2  ;;  %v8681_v60 = vadd.f32 %v2708_v1, %v8375_v22  ;;  %v8684_v48 = vadd.f32 %v2709_v16, %v8378_v15  ;;  %v8687_v21 = vadd.f32 %v2710_v45, %v8381_v62  ;;  %v11801_v13 = vld [vmem:[#allocation47_spill] sm:$0xff]  ;;  %v11807_v16 = vld [vmem:[#allocation20_spill] sm:$0xff] }
 0x277   : > { %v2721_v29 = vmul.f32 %v8501_v56, %v8606_v42  ;;  %v2722_v18 = vmul.f32 %v8501_v56, %v8611_v30  ;;  %v2723_v10 = vmul.f32 %v8501_v56, %v2677_v43  ;;  %v2724_v2 = vmul.f32 %v8501_v56, %v2678_v14 }
 0x278   : > { %v2725_v33 = vmul.f32 %v8501_v56, %v2679_v24  ;;  %v2726_v22 = vmul.f32 %v8501_v56, %v2680_v53  ;;  %v2727_v15 = vmul.f32 %v8501_v56, %v2681_v25  ;;  %v2728_v8 = vmul.f32 %v8501_v56, %v2682_v28 }
 0x279   : > { %v8700_v62 = vadd.f32 %v2721_v29, %v8394_v52  ;;  %v8703_v5 = vadd.f32 %v2722_v18, %v8397_v47  ;;  %v8706_v49 = vadd.f32 %v2723_v10, %v8400_v7  ;;  %v8709_v46 = vadd.f32 %v2724_v2, %v8403_v50  ;;  %v11792_v52 = vld [vmem:[#allocation49_spill] sm:$0xff]  ;;  %v11794_v47 = vld [vmem:[#allocation44_spill] sm:$0xff] }
 0x27a   : > { %v8712_v17 = vadd.f32 %v2725_v33, %v8406_v37  ;;  %v8715_v26 = vadd.f32 %v2726_v22, %v8409_v11  ;;  %v8718_v56 = vadd.f32 %v2727_v15, %v8412_v51  ;;  %v8721_v40 = vadd.f32 %v2728_v8, %v11792_v52  ;;  %v11809_v29 = vld [vmem:[#allocation21_spill] sm:$0xff]  ;;  %v11811_v10 = vld [vmem:[#allocation52_spill] sm:$0xff]  ;;  %v11815_v52 = vld [vmem:[#allocation54_spill] sm:$0xff] }
 0x27b   : > { %v2739_v32 = vmul.f32 %v11794_v47, %v8606_v42  ;;  %v2740_v7 = vmul.f32 %v11794_v47, %v8611_v30  ;;  %v2741_v50 = vmul.f32 %v11794_v47, %v2677_v43  ;;  %v2742_v37 = vmul.f32 %v11794_v47, %v2678_v14  ;;  %v11795_v42 = vld [vmem:[#allocation45_spill] sm:$0xff]  ;;  %v11797_v30 = vld [vmem:[#allocation48_spill] sm:$0xff]  ;;  %v11799_v43 = vld [vmem:[#allocation50_spill] sm:$0xff] }
 0x27c   : > { %11793 = vst [vmem:[#allocation49_spill] sm:$0xff] %v8721_v40  ;;  %v2743_v11 = vmul.f32 %v11794_v47, %v2679_v24  ;;  %v2744_v51 = vmul.f32 %v11794_v47, %v2680_v53  ;;  %v2745_v38 = vmul.f32 %v11794_v47, %v2681_v25  ;;  %v2746_v63 = vmul.f32 %v11794_v47, %v2682_v28  ;;  %v11803_v24 = vld [vmem:[#allocation51_spill] sm:$0xff]  ;;  %v11805_v25 = vld [vmem:[#allocation46_spill] sm:$0xff]  ;;  %v11813_v22 = vld [vmem:[#allocation53_spill] sm:$0xff] }
 0x27d   : > { %v8738_v57 = vadd.f32 %v2739_v32, %v11795_v42  ;;  %v8741_v34 = vadd.f32 %v2740_v7, %v11797_v30  ;;  %v8744_v14 = vadd.f32 %v2741_v50, %v11799_v43  ;;  %v8747_v1 = vadd.f32 %v2742_v37, %v11801_v13  ;;  %v11817_v7 = vld [vmem:[#allocation55_spill] sm:$0xff]  ;;  %v11823_v43 = vld [vmem:[#allocation25_spill] sm:$0xff] }
 0x27e   : > { %v8752_v53 = vadd.f32 %v2743_v11, %v11803_v24  ;;  %v8755_v28 = vadd.f32 %v2744_v51, %v11805_v25  ;;  %v8758_v45 = vadd.f32 %v2745_v38, %v11807_v16  ;;  %v8761_v18 = vadd.f32 %v2746_v63, %v11809_v29  ;;  %v11819_v11 = vld [vmem:[#allocation24_spill] sm:$0xff]  ;;  %v11824_v13 = vld [vmem:[#allocation37_spill] sm:$0xff]  ;;  %v11827_v29 = vld [vmem:[#allocation43_spill] sm:$0xff] }
 0x27f   : > { %11796 = vst [vmem:[#allocation44_spill] sm:$0xff] %v8738_v57  ;;  %v11812_v2 = vrot.slane %v8586_v23, 1  ;;  %v11814_v15 = vrot.slane %v8589_v54, 1  ;;  %v11816_v47 = vrot.slane %v8592_v12, 1  ;;  %v11818_v50 = vrot.slane %v8595_v31, 1  ;;  %v11820_v51 = vld [vmem:[#allocation56_spill] sm:$0xff] }
 0x280   : > { %11798 = vst [vmem:[#allocation45_spill] sm:$0xff] %v8741_v34  ;;  %v2809_v38 = vmul.f32 %v11820_v51, %v11819_v11  ;;  %v11821_v63 = vld [vmem:[#allocation28_spill] sm:$0xff]  ;;  %v11822_v23 = vld [vmem:[#allocation33_spill] sm:$0xff]  ;;  %v2812_v54 = vmul.f32 %v11820_v51, %v11823_v43  ;;  %v2813_v12 = vmul.f32 %v11820_v51, %v11824_v13  ;;  %v11826_v31 = vld [vmem:[#allocation35_spill] sm:$0xff] }
 0x281   : > { %11800 = vst [vmem:[#allocation48_spill] sm:$0xff] %v8744_v14  ;;  %v2803_v33 = vadd.f32 %v11812_v2, %v11811_v10  ;;  %v2804_v8 = vadd.f32 %v11814_v15, %v11813_v22  ;;  %v2805_v32 = vadd.f32 %v11816_v47, %v11815_v52  ;;  %v2806_v37 = vadd.f32 %v11818_v50, %v11817_v7  ;;  %v11825_v24 = vld [vmem:[#allocation40_spill] sm:$0xff] }
 0x282   : > { %11802 = vst [vmem:[#allocation50_spill] sm:$0xff] %v8747_v1  ;;  %v2810_v42 = vmul.f32 %v11820_v51, %v11821_v63  ;;  %v2811_v30 = vmul.f32 %v11820_v51, %v11822_v23  ;;  %v2814_v25 = vmul.f32 %v11820_v51, %v11825_v24  ;;  %v2815_v16 = vmul.f32 %v11820_v51, %v11826_v31  ;;  %v11832_v1 = vld [vmem:[#allocation29_spill] sm:$0xff] }
 0x283   : > { %11804 = vst [vmem:[#allocation47_spill] sm:$0xff] %v8752_v53  ;;  %v2816_v10 = vmul.f32 %v11820_v51, %v11827_v29  ;;  %v2825_v2 = vrot.slane %v2809_v38, 2  ;;  %v2828_v52 = vrot.slane %v2812_v54, 2  ;;  %v2829_v47 = vrot.slane %v2813_v12, 2  ;;  %v11831_v53 = vld [vmem:[#allocation31_spill] sm:$0xff] }
 0x284   : > { %11806 = vst [vmem:[#allocation51_spill] sm:$0xff] %v8755_v28  ;;  %v2826_v22 = vrot.slane %v2810_v42, 2  ;;  %v2827_v15 = vrot.slane %v2811_v30, 2  ;;  %v2830_v7 = vrot.slane %v2814_v25, 2  ;;  %v2831_v50 = vrot.slane %v2815_v16, 2 }
 0x285   : > { %11808 = vst [vmem:[#allocation46_spill] sm:$0xff] %v8758_v45  ;;  %v2832_v13 = vrot.slane %v2816_v10, 2  ;;  %v2841_v24 = vadd.f32 %v2825_v2, %v8601_v20  ;;  %v2844_v51 = vadd.f32 %v2828_v52, %v8613_v9  ;;  %v2845_v38 = vadd.f32 %v2829_v47, %v2803_v33 }
 0x286   : > { %11810 = vst [vmem:[#allocation20_spill] sm:$0xff] %v8761_v18  ;;  %v2842_v43 = vadd.f32 %v2826_v22, %v8603_v41  ;;  %v2843_v31 = vadd.f32 %v2827_v15, %v8608_v35  ;;  %v2846_v42 = vadd.f32 %v2830_v7, %v2804_v8  ;;  %v2847_v29 = vadd.f32 %v2831_v50, %v2805_v32 }
 0x287   : > { %v2848_v30 = vadd.f32 %v2832_v13, %v2806_v37  ;;  %v2850_v54 = vstv %s8729_s26  ;;  %v8801_v12 = vstv %s8735_s12  ;;  %v8804_v25 = vstv %s8749_s11  ;;  %s9159_s26 = sld [smem:[#allocation2 + $0x10a]] }
 0x288   : > { %v8807_v16 = vstv %s8763_s14  ;;  %v8811_v20 = vadd.f32 %v2850_v54, %v2841_v24  ;;  %v8813_v35 = vadd.f32 %v2850_v54, %v2842_v43  ;;  %v8815_v41 = vadd.f32 %v2850_v54, %v2843_v31  ;;  %s9341_s12 = sld [smem:[#allocation5 + $0xa]] }
 0x289   : > { %v8817_v9 = vadd.f32 %v2850_v54, %v2844_v51  ;;  %v8819_v33 = vadd.f32 %v2850_v54, %v2845_v38  ;;  %v8821_v8 = vadd.f32 %v2850_v54, %v2846_v42  ;;  %v8823_v32 = vadd.f32 %v2850_v54, %v2847_v29  ;;  %s9347_s11 = sld [smem:[#allocation7 + $0x500]] }
 0x28a   : > { %v8825_v37 = vadd.f32 %v2850_v54, %v2848_v30  ;;  %v2859_v13 = vmul.f32 %v8811_v20, %v8811_v20  ;;  %v2860_v24 = vmul.f32 %v8813_v35, %v8813_v35  ;;  %v2861_v43 = vmul.f32 %v8815_v41, %v8815_v41  ;;  %s9361_s14 = sld [smem:[#allocation7 + $0x501]] }
 0x28b   : > { %v2862_v31 = vmul.f32 %v8817_v9, %v8817_v9  ;;  %v2863_v10 = vmul.f32 %v8819_v33, %v8819_v33  ;;  %v2864_v29 = vmul.f32 %v8821_v8, %v8821_v8  ;;  %v2865_v2 = vmul.f32 %v8823_v32, %v8823_v32 }
 0x28c   : > { %v2866_v22 = vmul.f32 %v8825_v37, %v8825_v37  ;;  %v2867_v15 = vmul.f32 %v2859_v13, %v8811_v20  ;;  %v2868_v52 = vmul.f32 %v2860_v24, %v8813_v35  ;;  %v2869_v47 = vmul.f32 %v2861_v43, %v8815_v41 }
 0x28d   : > { %v2870_v7 = vmul.f32 %v2862_v31, %v8817_v9  ;;  %v2871_v50 = vmul.f32 %v2863_v10, %v8819_v33  ;;  %v2872_v51 = vmul.f32 %v2864_v29, %v8821_v8  ;;  %v2873_v38 = vmul.f32 %v2865_v2, %v8823_v32 }
 0x28e   : > { %v2874_v42 = vmul.f32 %v2866_v22, %v8825_v37  ;;  %v2875_v30 = vmul.f32 0.044715, %v2867_v15  ;;  %v2876_v54 = vmul.f32 0.044715, %v2868_v52  ;;  %v2877_v13 = vmul.f32 0.044715, %v2869_v47 }
 0x28f   : > { %v8856_v24 = vstv %s8797_s16  ;;  %v2878_v43 = vmul.f32 0.044715, %v2870_v7  ;;  %v2879_v23 = vmul.f32 0.044715, %v2871_v50  ;;  %v2880_v31 = vmul.f32 0.044715, %v2872_v51 }
 0x290   : > { %11828 = vst [vmem:[#allocation21_spill] sm:$0xff] %v8856_v24  ;;  %v3004_v63 = vstv %s8809_s21  ;;  %v2881_v11 = vmul.f32 0.044715, %v2873_v38  ;;  %v2882_v18 = vmul.f32 0.044715, %v2874_v42  ;;  %v2883_v10 = vadd.f32 %v2875_v30, %v8811_v20  ;;  %v11829_v30 = vld [vmem:[#allocation22_spill] sm:$0xff] }
 0x291   : > { %v2884_v29 = vadd.f32 %v2876_v54, %v8813_v35  ;;  %v2885_v2 = vadd.f32 %v2877_v13, %v8815_v41  ;;  %v2886_v22 = vadd.f32 %v2878_v43, %v8817_v9  ;;  %v2887_v15 = vadd.f32 %v2879_v23, %v8819_v33  ;;  %v11830_v23 = vld [vmem:[#allocation26_spill] sm:$0xff]  ;;  %s9375_s16 = sld [smem:[#allocation7 + $0x502]] }
 0x292   : > { %v2888_v52 = vadd.f32 %v2880_v31, %v8821_v8  ;;  %v2889_v47 = vadd.f32 %v2881_v11, %v8823_v32  ;;  %v2890_v7 = vadd.f32 %v2882_v18, %v8825_v37  ;;  %v2891_v50 = vmul.f32 0.7978846, %v2883_v10  ;;  %v11833_v10 = vld [vmem:[#allocation19_spill] sm:$0xff]  ;;  %s9409_s21 = sld [smem:[#allocation7 + $0x503]] }
 0x293   : > { %v2892_v51 = vmul.f32 0.7978846, %v2884_v29  ;;  %v2893_v38 = vmul.f32 0.7978846, %v2885_v2  ;;  %v2894_v42 = vmul.f32 0.7978846, %v2886_v22  ;;  %v3005_v54 = vmul.f32 %v3004_v63, %v11829_v30 }
 0x294   : > { %v2895_v45 = vmul.f32 0.7978846, %v2887_v15  ;;  %v2896_v13 = vmul.f32 0.7978846, %v2888_v52  ;;  %v2897_v28 = vmul.f32 0.7978846, %v2889_v47  ;;  %5579 = vtanh.f32 %v2891_v50 }
 0x295   : > { %v2898_v43 = vmul.f32 0.7978846, %v2890_v7  ;;  %5581 = vtanh.f32 %v2892_v51  ;;  %v3006_v31 = vmul.f32 %v3004_v63, %v11830_v23  ;;  %v3007_v11 = vmul.f32 %v3004_v63, %v11831_v53  ;;  %v11835_v2 = vld [vmem:[#allocation38_spill] sm:$0xff]  ;;  %v11839_v52 = vld [vmem:[#allocation41_spill] sm:$0xff]  ;;  %v11842_v51 = vld [vmem:[#allocation23_spill] sm:$0xff] }
 0x296   : > { %v3008_v18 = vmul.f32 %v3004_v63, %v11832_v1  ;;  %5583 = vtanh.f32 %v2893_v38  ;;  %v8872_v29 = vmul.f32 %v3004_v63, %v11833_v10  ;;  %v8875_v22 = vmul.f32 %v3004_v63, %v11835_v2  ;;  %v11837_v15 = vld [vmem:[#allocation18_spill] sm:$0xff]  ;;  %v11843_v38 = vld [vmem:[#allocation27_spill] sm:$0xff]  ;;  %v11844_v10 = vld [vmem:[#allocation32_spill] sm:$0xff] }
 0x297   : > { %v8878_v30 = vmul.f32 %v3004_v63, %v11837_v15  ;;  %5585 = vtanh.f32 %v2894_v42  ;;  %v8881_v47 = vmul.f32 %v3004_v63, %v11839_v52  ;;  %v3014_v7 = vstv %s8847_s22  ;;  %v11845_v2 = vld [vmem:[#allocation30_spill] sm:$0xff]  ;;  %v11847_v42 = vld [vmem:[#allocation39_spill] sm:$0xff]  ;;  %s9421_s22 = sld [smem:[#allocation2 + $0xb]] }
 0x298   : > { %11834 = vst [vmem:[#allocation52_spill] sm:$0xff] %v8872_v29  ;;  %v8885_v50 = vstv %s8853_s24  ;;  %5587 = vtanh.f32 %v2895_v45  ;;  %v3015_v1 = vmul.f32 %v3014_v7, %v11842_v51  ;;  %v3016_v53 = vmul.f32 %v3014_v7, %v11843_v38  ;;  %v11846_v29 = vld [vmem:[#allocation36_spill] sm:$0xff]  ;;  %v11848_v52 = vld [vmem:[#allocation34_spill] sm:$0xff]  ;;  %s9459_s24 = sld [smem:[#allocation2 + $0x8b]] }
 0x299   : > { %11836 = vst [vmem:[#allocation53_spill] sm:$0xff] %v8875_v22  ;;  %v3017_v23 = vmul.f32 %v3014_v7, %v11844_v10  ;;  %5589 = vtanh.f32 %v2896_v13  ;;  %v3018_v22 = vmul.f32 %v3014_v7, %v11845_v2  ;;  %v8892_v15 = vmul.f32 %v3014_v7, %v11846_v29  ;;  %v11849_v45 = vld [vmem:[#allocation42_spill] sm:$0xff] }
 0x29a   : > { %11838 = vst [vmem:[#allocation54_spill] sm:$0xff] %v8878_v30  ;;  %v8895_v30 = vmul.f32 %v3014_v7, %v11847_v42  ;;  %v5580_v63 = vpop.eup %5579  ;;  %5591 = vtanh.f32 %v2897_v28  ;;  %v8901_v51 = vmul.f32 %v3014_v7, %v11849_v45  ;;  %v3031_v38 = vrot.slane %v3015_v1, 1 }
 0x29b   : > { %11840 = vst [vmem:[#allocation55_spill] sm:$0xff] %v8881_v47  ;;  %v5582_v47 = vpop.eup %5581  ;;  %5593 = vtanh.f32 %v2898_v43  ;;  %v2907_v13 = vadd.f32 1.0, %v5580_v63  ;;  %v3032_v10 = vrot.slane %v3016_v53, 1  ;;  %v3033_v2 = vrot.slane %v3017_v23, 1 }
 0x29c   : > { %11841 = vst [vmem:[#allocation56_spill] sm:$0xff] %v8885_v50  ;;  %v8898_v50 = vmul.f32 %v3014_v7, %v11848_v52  ;;  %v5584_v14 = vpop.eup %5583  ;;  %v2908_v29 = vadd.f32 1.0, %v5582_v47  ;;  %v3034_v34 = vrot.slane %v3018_v22, 1  ;;  %v8907_v63 = vadd.f32 %v3031_v38, %v3005_v54 }
 0x29d   : > { %v5586_v28 = vpop.eup %5585  ;;  %v2909_v24 = vadd.f32 1.0, %v5584_v14  ;;  %v2915_v52 = vmul.f32 0.5, %v2907_v13  ;;  %v8909_v53 = vadd.f32 %v3032_v10, %v3006_v31  ;;  %v8914_v57 = vadd.f32 %v3033_v2, %v3007_v11 }
 0x29e   : > { %v5588_v1 = vpop.eup %5587  ;;  %v2910_v45 = vadd.f32 1.0, %v5586_v28  ;;  %v2916_v43 = vmul.f32 0.5, %v2908_v29  ;;  %v8919_v28 = vadd.f32 %v3034_v34, %v3008_v18 }
 0x29f   : > { %v5590_v23 = vpop.eup %5589  ;;  %v2911_v22 = vadd.f32 1.0, %v5588_v1  ;;  %v2917_v47 = vmul.f32 0.5, %v2909_v24  ;;  %v8912_v42 = vmul.f32 %v2915_v52, %v8811_v20 }
 0x2a0   : > { %v5592_v14 = vpop.eup %5591  ;;  %v2912_v13 = vadd.f32 1.0, %v5590_v23  ;;  %v2918_v40 = vmul.f32 0.5, %v2910_v45  ;;  %v8917_v7 = vmul.f32 %v2916_v43, %v8813_v35 }
 0x2a1   : > { %v5594_v54 = vpop.eup %5593  ;;  %v2913_v29 = vadd.f32 1.0, %v5592_v14  ;;  %v2919_v31 = vmul.f32 0.5, %v2911_v22  ;;  %v2925_v10 = vmul.f32 %v2917_v47, %v8815_v41  ;;  %v2933_v24 = vmul.f32 %v8801_v12, %v8912_v42 }
 0x2a2   : > { %v2914_v20 = vadd.f32 1.0, %v5594_v54  ;;  %v2920_v52 = vmul.f32 0.5, %v2912_v13  ;;  %v2926_v11 = vmul.f32 %v2918_v40, %v8817_v9  ;;  %v2934_v2 = vmul.f32 %v8801_v12, %v8917_v7 }
 0x2a3   : > { %v2921_v38 = vmul.f32 0.5, %v2913_v29  ;;  %v2927_v35 = vmul.f32 %v2919_v31, %v8819_v33  ;;  %v2935_v34 = vmul.f32 %v8801_v12, %v2925_v10  ;;  %v8930_v18 = vadd.f32 %v2933_v24, %v8624_v0 }
 0x2a4   : > { %v2922_v45 = vmul.f32 0.5, %v2914_v20  ;;  %v2928_v41 = vmul.f32 %v2920_v52, %v8821_v8  ;;  %v2936_v1 = vmul.f32 %v8801_v12, %v2926_v11  ;;  %v8935_v43 = vadd.f32 %v2934_v2, %v8629_v44 }
 0x2a5   : > { %v2929_v40 = vmul.f32 %v2921_v38, %v8823_v32  ;;  %v2937_v9 = vmul.f32 %v8801_v12, %v2927_v35  ;;  %v8940_v23 = vadd.f32 %v2935_v34, %v8634_v59  ;;  %v2951_v33 = vmul.f32 %v8804_v25, %v8912_v42 }
 0x2a6   : > { %v2930_v0 = vmul.f32 %v2922_v45, %v8825_v37  ;;  %v2938_v22 = vmul.f32 %v8801_v12, %v2928_v41  ;;  %v8947_v8 = vadd.f32 %v2936_v1, %v8641_v6  ;;  %v2952_v44 = vmul.f32 %v8804_v25, %v8917_v7 }
 0x2a7   : > { %v2939_v32 = vmul.f32 %v8801_v12, %v2929_v40  ;;  %v8953_v47 = vadd.f32 %v2937_v9, %v8647_v55  ;;  %v2953_v59 = vmul.f32 %v8804_v25, %v2925_v10  ;;  %v2954_v14 = vmul.f32 %v8804_v25, %v2926_v11 }
 0x2a8   : > { %v2940_v13 = vmul.f32 %v8801_v12, %v2930_v0  ;;  %v8959_v37 = vadd.f32 %v2938_v22, %v8653_v19  ;;  %v2955_v6 = vmul.f32 %v8804_v25, %v2927_v35  ;;  %v2956_v54 = vmul.f32 %v8804_v25, %v2928_v41 }
 0x2a9   : > { %v8964_v29 = vadd.f32 %v2939_v32, %v8658_v4  ;;  %v2957_v31 = vmul.f32 %v8804_v25, %v2929_v40  ;;  %v2958_v55 = vmul.f32 %v8804_v25, %v2930_v0  ;;  %v8969_v24 = vadd.f32 %v2951_v33, %v8663_v27 }
 0x2aa   : > { %v8972_v20 = vadd.f32 %v2940_v13, %v8666_v39  ;;  %v8975_v19 = vadd.f32 %v2952_v44, %v8669_v61  ;;  %v8978_v12 = vadd.f32 %v2953_v59, %v8672_v58  ;;  %v8981_v52 = vadd.f32 %v2954_v14, %v8675_v36 }
 0x2ab   : > { %v8984_v4 = vadd.f32 %v2955_v6, %v8678_v3  ;;  %v8987_v25 = vadd.f32 %v2956_v54, %v8681_v60  ;;  %v8990_v27 = vadd.f32 %v2957_v31, %v8684_v48  ;;  %v8993_v39 = vadd.f32 %v2958_v55, %v8687_v21  ;;  %v11859_v6 = vld [vmem:[#allocation50_spill] sm:$0xff] }
 0x2ac   : > { %v2969_v61 = vmul.f32 %v8807_v16, %v8912_v42  ;;  %v2970_v58 = vmul.f32 %v8807_v16, %v8917_v7  ;;  %v2971_v36 = vmul.f32 %v8807_v16, %v2925_v10  ;;  %v2972_v3 = vmul.f32 %v8807_v16, %v2926_v11  ;;  %v11865_v31 = vld [vmem:[#allocation46_spill] sm:$0xff] }
 0x2ad   : > { %v2973_v2 = vmul.f32 %v8807_v16, %v2927_v35  ;;  %v2974_v60 = vmul.f32 %v8807_v16, %v2928_v41  ;;  %v2975_v48 = vmul.f32 %v8807_v16, %v2929_v40  ;;  %v2976_v38 = vmul.f32 %v8807_v16, %v2930_v0 }
 0x2ae   : > { %v9006_v21 = vadd.f32 %v2969_v61, %v8700_v62  ;;  %v9009_v34 = vadd.f32 %v2970_v58, %v8703_v5  ;;  %v9012_v45 = vadd.f32 %v2971_v36, %v8706_v49  ;;  %v9015_v1 = vadd.f32 %v2972_v3, %v8709_v46  ;;  %v11850_v62 = vld [vmem:[#allocation49_spill] sm:$0xff]  ;;  %v11867_v61 = vld [vmem:[#allocation20_spill] sm:$0xff] }
 0x2af   : > { %v9018_v9 = vadd.f32 %v2973_v2, %v8712_v17  ;;  %v9021_v33 = vadd.f32 %v2974_v60, %v8715_v26  ;;  %v9024_v16 = vadd.f32 %v2975_v48, %v8718_v56  ;;  %v9027_v22 = vadd.f32 %v2976_v38, %v11850_v62  ;;  %v11852_v5 = vld [vmem:[#allocation21_spill] sm:$0xff]  ;;  %v11869_v36 = vld [vmem:[#allocation52_spill] sm:$0xff]  ;;  %v11873_v62 = vld [vmem:[#allocation54_spill] sm:$0xff] }
 0x2b0   : > { %v2987_v44 = vmul.f32 %v11852_v5, %v8912_v42  ;;  %v2988_v49 = vmul.f32 %v11852_v5, %v8917_v7  ;;  %v2989_v46 = vmul.f32 %v11852_v5, %v2925_v10  ;;  %v2990_v17 = vmul.f32 %v11852_v5, %v2926_v11  ;;  %v11853_v42 = vld [vmem:[#allocation44_spill] sm:$0xff]  ;;  %v11855_v7 = vld [vmem:[#allocation45_spill] sm:$0xff] }
 0x2b1   : > { %11851 = vst [vmem:[#allocation49_spill] sm:$0xff] %v9027_v22  ;;  %v2991_v26 = vmul.f32 %v11852_v5, %v2927_v35  ;;  %v2992_v56 = vmul.f32 %v11852_v5, %v2928_v41  ;;  %v2993_v32 = vmul.f32 %v11852_v5, %v2929_v40  ;;  %v2994_v59 = vmul.f32 %v11852_v5, %v2930_v0  ;;  %v11857_v10 = vld [vmem:[#allocation48_spill] sm:$0xff]  ;;  %v11861_v35 = vld [vmem:[#allocation47_spill] sm:$0xff]  ;;  %v11871_v60 = vld [vmem:[#allocation53_spill] sm:$0xff] }
 0x2b2   : > { %v9044_v14 = vadd.f32 %v2987_v44, %v11853_v42  ;;  %v9047_v13 = vadd.f32 %v2988_v49, %v11855_v7  ;;  %v9050_v11 = vadd.f32 %v2989_v46, %v11857_v10  ;;  %v9053_v54 = vadd.f32 %v2990_v17, %v11859_v6  ;;  %v11863_v40 = vld [vmem:[#allocation51_spill] sm:$0xff]  ;;  %v11881_v10 = vld [vmem:[#allocation25_spill] sm:$0xff] }
 0x2b3   : > { %v9058_v41 = vadd.f32 %v2991_v26, %v11861_v35  ;;  %v9061_v0 = vadd.f32 %v2992_v56, %v11863_v40  ;;  %v9064_v55 = vadd.f32 %v2993_v32, %v11865_v31  ;;  %v9067_v58 = vadd.f32 %v2994_v59, %v11867_v61  ;;  %v11875_v49 = vld [vmem:[#allocation55_spill] sm:$0xff]  ;;  %v11877_v26 = vld [vmem:[#allocation24_spill] sm:$0xff]  ;;  %v11882_v6 = vld [vmem:[#allocation37_spill] sm:$0xff] }
 0x2b4   : > { %11854 = vst [vmem:[#allocation21_spill] sm:$0xff] %v9044_v14  ;;  %v11870_v3 = vrot.slane %v8892_v15, 1  ;;  %v11872_v48 = vrot.slane %v8895_v30, 1  ;;  %v11874_v5 = vrot.slane %v8898_v50, 1  ;;  %v11876_v46 = vrot.slane %v8901_v51, 1  ;;  %v11878_v56 = vld [vmem:[#allocation56_spill] sm:$0xff] }
 0x2b5   : > { %11856 = vst [vmem:[#allocation44_spill] sm:$0xff] %v9047_v13  ;;  %v3057_v32 = vmul.f32 %v11878_v56, %v11877_v26  ;;  %v11879_v59 = vld [vmem:[#allocation28_spill] sm:$0xff]  ;;  %v11880_v15 = vld [vmem:[#allocation33_spill] sm:$0xff]  ;;  %v3060_v30 = vmul.f32 %v11878_v56, %v11881_v10  ;;  %v3061_v50 = vmul.f32 %v11878_v56, %v11882_v6  ;;  %v11884_v51 = vld [vmem:[#allocation35_spill] sm:$0xff] }
 0x2b6   : > { %11858 = vst [vmem:[#allocation45_spill] sm:$0xff] %v9050_v11  ;;  %v3051_v2 = vadd.f32 %v11870_v3, %v11869_v36  ;;  %v3052_v38 = vadd.f32 %v11872_v48, %v11871_v60  ;;  %v3053_v44 = vadd.f32 %v11874_v5, %v11873_v62  ;;  %v3054_v17 = vadd.f32 %v11876_v46, %v11875_v49  ;;  %v11883_v35 = vld [vmem:[#allocation40_spill] sm:$0xff]  ;;  %v11885_v61 = vld [vmem:[#allocation43_spill] sm:$0xff] }
 0x2b7   : > { %11860 = vst [vmem:[#allocation48_spill] sm:$0xff] %v9053_v54  ;;  %v3058_v42 = vmul.f32 %v11878_v56, %v11879_v59  ;;  %v3059_v7 = vmul.f32 %v11878_v56, %v11880_v15  ;;  %v3062_v40 = vmul.f32 %v11878_v56, %v11883_v35  ;;  %v3063_v31 = vmul.f32 %v11878_v56, %v11884_v51  ;;  %v11890_v54 = vld [vmem:[#allocation29_spill] sm:$0xff] }
 0x2b8   : > { %11862 = vst [vmem:[#allocation50_spill] sm:$0xff] %v9058_v41  ;;  %v3064_v36 = vmul.f32 %v11878_v56, %v11885_v61  ;;  %v3073_v3 = vrot.slane %v3057_v32, 2  ;;  %v3076_v62 = vrot.slane %v3060_v30, 2  ;;  %v3077_v5 = vrot.slane %v3061_v50, 2  ;;  %v11889_v41 = vld [vmem:[#allocation31_spill] sm:$0xff] }
 0x2b9   : > { %11864 = vst [vmem:[#allocation47_spill] sm:$0xff] %v9061_v0  ;;  %v3074_v60 = vrot.slane %v3058_v42, 2  ;;  %v3075_v48 = vrot.slane %v3059_v7, 2  ;;  %v3078_v49 = vrot.slane %v3062_v40, 2  ;;  %v3079_v46 = vrot.slane %v3063_v31, 2 }
 0x2ba   : > { %11866 = vst [vmem:[#allocation51_spill] sm:$0xff] %v9064_v55  ;;  %v3080_v6 = vrot.slane %v3064_v36, 2  ;;  %v3089_v35 = vadd.f32 %v3073_v3, %v8907_v63  ;;  %v3092_v56 = vadd.f32 %v3076_v62, %v8919_v28  ;;  %v3093_v32 = vadd.f32 %v3077_v5, %v3051_v2 }
 0x2bb   : > { %11868 = vst [vmem:[#allocation46_spill] sm:$0xff] %v9067_v58  ;;  %v3090_v10 = vadd.f32 %v3074_v60, %v8909_v53  ;;  %v3091_v51 = vadd.f32 %v3075_v48, %v8914_v57  ;;  %v3094_v42 = vadd.f32 %v3078_v49, %v3052_v38  ;;  %v3095_v61 = vadd.f32 %v3079_v46, %v3053_v44 }
 0x2bc   : > { %v3096_v7 = vadd.f32 %v3080_v6, %v3054_v17  ;;  %v3098_v30 = vstv %s9035_s25  ;;  %v9107_v50 = vstv %s9041_s5  ;;  %v9110_v40 = vstv %s9055_s9  ;;  %s9465_s25 = sld [smem:[#allocation2 + $0x10b]] }
 0x2bd   : > { %v9113_v31 = vstv %s9069_s13  ;;  %v9117_v63 = vadd.f32 %v3098_v30, %v3089_v35  ;;  %v9119_v57 = vadd.f32 %v3098_v30, %v3090_v10  ;;  %v9121_v53 = vadd.f32 %v3098_v30, %v3091_v51  ;;  %s9647_s5 = sld [smem:[#allocation5 + $0xb]] }
 0x2be   : > { %v9123_v28 = vadd.f32 %v3098_v30, %v3092_v56  ;;  %v9125_v2 = vadd.f32 %v3098_v30, %v3093_v32  ;;  %v9127_v38 = vadd.f32 %v3098_v30, %v3094_v42  ;;  %v9129_v44 = vadd.f32 %v3098_v30, %v3095_v61  ;;  %s9653_s9 = sld [smem:[#allocation7 + $0x580]] }
 0x2bf   : > { %v9131_v17 = vadd.f32 %v3098_v30, %v3096_v7  ;;  %v3107_v6 = vmul.f32 %v9117_v63, %v9117_v63  ;;  %v3108_v35 = vmul.f32 %v9119_v57, %v9119_v57  ;;  %v3109_v10 = vmul.f32 %v9121_v53, %v9121_v53  ;;  %s9667_s13 = sld [smem:[#allocation7 + $0x581]] }
 0x2c0   : > { %v3110_v51 = vmul.f32 %v9123_v28, %v9123_v28  ;;  %v3111_v36 = vmul.f32 %v9125_v2, %v9125_v2  ;;  %v3112_v61 = vmul.f32 %v9127_v38, %v9127_v38  ;;  %v3113_v3 = vmul.f32 %v9129_v44, %v9129_v44 }
 0x2c1   : > { %v3114_v60 = vmul.f32 %v9131_v17, %v9131_v17  ;;  %v3115_v48 = vmul.f32 %v3107_v6, %v9117_v63  ;;  %v3116_v62 = vmul.f32 %v3108_v35, %v9119_v57  ;;  %v3117_v5 = vmul.f32 %v3109_v10, %v9121_v53 }
 0x2c2   : > { %v3118_v49 = vmul.f32 %v3110_v51, %v9123_v28  ;;  %v3119_v46 = vmul.f32 %v3111_v36, %v9125_v2  ;;  %v3120_v56 = vmul.f32 %v3112_v61, %v9127_v38  ;;  %v3121_v32 = vmul.f32 %v3113_v3, %v9129_v44 }
 0x2c3   : > { %v3122_v42 = vmul.f32 %v3114_v60, %v9131_v17  ;;  %v3123_v7 = vmul.f32 0.044715, %v3115_v48  ;;  %v3124_v30 = vmul.f32 0.044715, %v3116_v62  ;;  %v3125_v6 = vmul.f32 0.044715, %v3117_v5 }
 0x2c4   : > { %v9162_v35 = vstv %s9103_s19  ;;  %v3126_v10 = vmul.f32 0.044715, %v3118_v49  ;;  %v3127_v15 = vmul.f32 0.044715, %v3119_v46  ;;  %v3128_v51 = vmul.f32 0.044715, %v3120_v56 }
 0x2c5   : > { %11886 = vst [vmem:[#allocation20_spill] sm:$0xff] %v9162_v35  ;;  %v3252_v59 = vstv %s9115_s20  ;;  %v3129_v26 = vmul.f32 0.044715, %v3121_v32  ;;  %v3130_v58 = vmul.f32 0.044715, %v3122_v42  ;;  %v3131_v36 = vadd.f32 %v3123_v7, %v9117_v63  ;;  %v11887_v7 = vld [vmem:[#allocation22_spill] sm:$0xff] }
 0x2c6   : > { %v3132_v61 = vadd.f32 %v3124_v30, %v9119_v57  ;;  %v3133_v3 = vadd.f32 %v3125_v6, %v9121_v53  ;;  %v3134_v60 = vadd.f32 %v3126_v10, %v9123_v28  ;;  %v3135_v48 = vadd.f32 %v3127_v15, %v9125_v2  ;;  %v11888_v15 = vld [vmem:[#allocation26_spill] sm:$0xff]  ;;  %s9681_s19 = sld [smem:[#allocation7 + $0x582]] }
 0x2c7   : > { %v3136_v62 = vadd.f32 %v3128_v51, %v9127_v38  ;;  %v3137_v5 = vadd.f32 %v3129_v26, %v9129_v44  ;;  %v3138_v49 = vadd.f32 %v3130_v58, %v9131_v17  ;;  %v3139_v46 = vmul.f32 0.7978846, %v3131_v36  ;;  %v11891_v36 = vld [vmem:[#allocation19_spill] sm:$0xff]  ;;  %s9715_s20 = sld [smem:[#allocation7 + $0x583]] }
 0x2c8   : > { %v3140_v56 = vmul.f32 0.7978846, %v3132_v61  ;;  %v3141_v32 = vmul.f32 0.7978846, %v3133_v3  ;;  %v3142_v42 = vmul.f32 0.7978846, %v3134_v60  ;;  %v3253_v30 = vmul.f32 %v3252_v59, %v11887_v7 }
 0x2c9   : > { %v3143_v55 = vmul.f32 0.7978846, %v3135_v48  ;;  %v3144_v6 = vmul.f32 0.7978846, %v3136_v62  ;;  %v3145_v0 = vmul.f32 0.7978846, %v3137_v5  ;;  %5595 = vtanh.f32 %v3139_v46 }
 0x2ca   : > { %v3146_v10 = vmul.f32 0.7978846, %v3138_v49  ;;  %5597 = vtanh.f32 %v3140_v56  ;;  %v3254_v51 = vmul.f32 %v3252_v59, %v11888_v15  ;;  %v3255_v26 = vmul.f32 %v3252_v59, %v11889_v41  ;;  %v11893_v3 = vld [vmem:[#allocation38_spill] sm:$0xff]  ;;  %v11897_v62 = vld [vmem:[#allocation41_spill] sm:$0xff]  ;;  %v11900_v56 = vld [vmem:[#allocation23_spill] sm:$0xff] }
 0x2cb   : > { %v3256_v58 = vmul.f32 %v3252_v59, %v11890_v54  ;;  %5599 = vtanh.f32 %v3141_v32  ;;  %v9178_v61 = vmul.f32 %v3252_v59, %v11891_v36  ;;  %v9181_v60 = vmul.f32 %v3252_v59, %v11893_v3  ;;  %v11895_v48 = vld [vmem:[#allocation18_spill] sm:$0xff]  ;;  %v11901_v32 = vld [vmem:[#allocation27_spill] sm:$0xff]  ;;  %v11902_v36 = vld [vmem:[#allocation32_spill] sm:$0xff] }
 0x2cc   : > { %v9184_v7 = vmul.f32 %v3252_v59, %v11895_v48  ;;  %5601 = vtanh.f32 %v3142_v42  ;;  %v9187_v5 = vmul.f32 %v3252_v59, %v11897_v62  ;;  %v3262_v49 = vstv %s9153_s23  ;;  %v11903_v3 = vld [vmem:[#allocation30_spill] sm:$0xff]  ;;  %v11905_v42 = vld [vmem:[#allocation39_spill] sm:$0xff]  ;;  %s9727_s23 = sld [smem:[#allocation2 + $0xc]] }
 0x2cd   : > { %11892 = vst [vmem:[#allocation52_spill] sm:$0xff] %v9178_v61  ;;  %v9191_v46 = vstv %s9159_s26  ;;  %5603 = vtanh.f32 %v3143_v55  ;;  %v3263_v54 = vmul.f32 %v3262_v49, %v11900_v56  ;;  %v3264_v41 = vmul.f32 %v3262_v49, %v11901_v32  ;;  %v11904_v61 = vld [vmem:[#allocation36_spill] sm:$0xff]  ;;  %v11906_v62 = vld [vmem:[#allocation34_spill] sm:$0xff]  ;;  %s9765_s26 = sld [smem:[#allocation2 + $0x8c]] }
 0x2ce   : > { %11894 = vst [vmem:[#allocation53_spill] sm:$0xff] %v9181_v60  ;;  %v3265_v15 = vmul.f32 %v3262_v49, %v11902_v36  ;;  %5605 = vtanh.f32 %v3144_v6  ;;  %v3266_v60 = vmul.f32 %v3262_v49, %v11903_v3  ;;  %v9198_v48 = vmul.f32 %v3262_v49, %v11904_v61  ;;  %v11907_v55 = vld [vmem:[#allocation42_spill] sm:$0xff] }
 0x2cf   : > { %11896 = vst [vmem:[#allocation54_spill] sm:$0xff] %v9184_v7  ;;  %v9201_v7 = vmul.f32 %v3262_v49, %v11905_v42  ;;  %v5596_v59 = vpop.eup %5595  ;;  %5607 = vtanh.f32 %v3145_v0  ;;  %v9207_v56 = vmul.f32 %v3262_v49, %v11907_v55  ;;  %v3279_v32 = vrot.slane %v3263_v54, 1 }
 0x2d0   : > { %11898 = vst [vmem:[#allocation55_spill] sm:$0xff] %v9187_v5  ;;  %v5598_v5 = vpop.eup %5597  ;;  %5609 = vtanh.f32 %v3146_v10  ;;  %v3155_v6 = vadd.f32 1.0, %v5596_v59  ;;  %v3280_v36 = vrot.slane %v3264_v41, 1  ;;  %v3281_v3 = vrot.slane %v3265_v15, 1 }
 0x2d1   : > { %11899 = vst [vmem:[#allocation56_spill] sm:$0xff] %v9191_v46  ;;  %v9204_v46 = vmul.f32 %v3262_v49, %v11906_v62  ;;  %v5600_v11 = vpop.eup %5599  ;;  %v3156_v61 = vadd.f32 1.0, %v5598_v5  ;;  %v3282_v13 = vrot.slane %v3266_v60, 1  ;;  %v9213_v59 = vadd.f32 %v3279_v32, %v3253_v30 }
 0x2d2   : > { %v5602_v0 = vpop.eup %5601  ;;  %v3157_v35 = vadd.f32 1.0, %v5600_v11  ;;  %v3163_v62 = vmul.f32 0.5, %v3155_v6  ;;  %v9215_v41 = vadd.f32 %v3280_v36, %v3254_v51  ;;  %v9220_v14 = vadd.f32 %v3281_v3, %v3255_v26 }
 0x2d3   : > { %v5604_v54 = vpop.eup %5603  ;;  %v3158_v55 = vadd.f32 1.0, %v5602_v0  ;;  %v3164_v10 = vmul.f32 0.5, %v3156_v61  ;;  %v9225_v0 = vadd.f32 %v3282_v13, %v3256_v58 }
 0x2d4   : > { %v5606_v15 = vpop.eup %5605  ;;  %v3159_v60 = vadd.f32 1.0, %v5604_v54  ;;  %v3165_v5 = vmul.f32 0.5, %v3157_v35  ;;  %v9218_v42 = vmul.f32 %v3163_v62, %v9117_v63 }
 0x2d5   : > { %v5608_v11 = vpop.eup %5607  ;;  %v3160_v6 = vadd.f32 1.0, %v5606_v15  ;;  %v3166_v22 = vmul.f32 0.5, %v3158_v55  ;;  %v9223_v49 = vmul.f32 %v3164_v10, %v9119_v57 }
 0x2d6   : > { %v5610_v30 = vpop.eup %5609  ;;  %v3161_v61 = vadd.f32 1.0, %v5608_v11  ;;  %v3167_v51 = vmul.f32 0.5, %v3159_v60  ;;  %v3173_v36 = vmul.f32 %v3165_v5, %v9121_v53  ;;  %v3181_v35 = vmul.f32 %v9107_v50, %v9218_v42 }
 0x2d7   : > { %v3162_v63 = vadd.f32 1.0, %v5610_v30  ;;  %v3168_v62 = vmul.f32 0.5, %v3160_v6  ;;  %v3174_v26 = vmul.f32 %v3166_v22, %v9123_v28  ;;  %v3182_v3 = vmul.f32 %v9107_v50, %v9223_v49 }
 0x2d8   : > { %v3169_v32 = vmul.f32 0.5, %v3161_v61  ;;  %v3175_v57 = vmul.f32 %v3167_v51, %v9125_v2  ;;  %v3183_v13 = vmul.f32 %v9107_v50, %v3173_v36  ;;  %v9236_v58 = vadd.f32 %v3181_v35, %v8930_v18 }
 0x2d9   : > { %v3170_v55 = vmul.f32 0.5, %v3162_v63  ;;  %v3176_v53 = vmul.f32 %v3168_v62, %v9127_v38  ;;  %v3184_v54 = vmul.f32 %v9107_v50, %v3174_v26  ;;  %v9241_v10 = vadd.f32 %v3182_v3, %v8935_v43 }
 0x2da   : > { %v3177_v22 = vmul.f32 %v3169_v32, %v9129_v44  ;;  %v3185_v28 = vmul.f32 %v9107_v50, %v3175_v57  ;;  %v9246_v15 = vadd.f32 %v3183_v13, %v8940_v23  ;;  %v3199_v2 = vmul.f32 %v9110_v40, %v9218_v42 }
 0x2db   : > { %v3178_v18 = vmul.f32 %v3170_v55, %v9131_v17  ;;  %v3186_v60 = vmul.f32 %v9107_v50, %v3176_v53  ;;  %v9253_v38 = vadd.f32 %v3184_v54, %v8947_v8  ;;  %v3200_v43 = vmul.f32 %v9110_v40, %v9223_v49 }
 0x2dc   : > { %v3187_v44 = vmul.f32 %v9107_v50, %v3177_v22  ;;  %v9259_v5 = vadd.f32 %v3185_v28, %v8953_v47  ;;  %v3201_v23 = vmul.f32 %v9110_v40, %v3173_v36  ;;  %v3202_v11 = vmul.f32 %v9110_v40, %v3174_v26 }
 0x2dd   : > { %v3188_v6 = vmul.f32 %v9107_v50, %v3178_v18  ;;  %v9265_v17 = vadd.f32 %v3186_v60, %v8959_v37  ;;  %v3203_v8 = vmul.f32 %v9110_v40, %v3175_v57  ;;  %v3204_v30 = vmul.f32 %v9110_v40, %v3176_v53 }
 0x2de   : > { %v9270_v61 = vadd.f32 %v3187_v44, %v8964_v29  ;;  %v3205_v51 = vmul.f32 %v9110_v40, %v3177_v22  ;;  %v3206_v47 = vmul.f32 %v9110_v40, %v3178_v18  ;;  %v9275_v35 = vadd.f32 %v3199_v2, %v8969_v24 }
 0x2df   : > { %v9278_v63 = vadd.f32 %v3188_v6, %v8972_v20  ;;  %v9281_v37 = vadd.f32 %v3200_v43, %v8975_v19  ;;  %v9284_v50 = vadd.f32 %v3201_v23, %v8978_v12  ;;  %v9287_v62 = vadd.f32 %v3202_v11, %v8981_v52 }
 0x2e0   : > { %v9290_v29 = vadd.f32 %v3203_v8, %v8984_v4  ;;  %v9293_v40 = vadd.f32 %v3204_v30, %v8987_v25  ;;  %v9296_v24 = vadd.f32 %v3205_v51, %v8990_v27  ;;  %v9299_v20 = vadd.f32 %v3206_v47, %v8993_v39  ;;  %v11917_v8 = vld [vmem:[#allocation48_spill] sm:$0xff]  ;;  %v11923_v51 = vld [vmem:[#allocation51_spill] sm:$0xff] }
 0x2e1   : > { %v3217_v19 = vmul.f32 %v9113_v31, %v9218_v42  ;;  %v3218_v12 = vmul.f32 %v9113_v31, %v9223_v49  ;;  %v3219_v52 = vmul.f32 %v9113_v31, %v3173_v36  ;;  %v3220_v4 = vmul.f32 %v9113_v31, %v3174_v26 }
 0x2e2   : > { %v3221_v3 = vmul.f32 %v9113_v31, %v3175_v57  ;;  %v3222_v25 = vmul.f32 %v9113_v31, %v3176_v53  ;;  %v3223_v27 = vmul.f32 %v9113_v31, %v3177_v22  ;;  %v3224_v32 = vmul.f32 %v9113_v31, %v3178_v18 }
 0x2e3   : > { %v9312_v39 = vadd.f32 %v3217_v19, %v9006_v21  ;;  %v9315_v13 = vadd.f32 %v3218_v12, %v9009_v34  ;;  %v9318_v55 = vadd.f32 %v3219_v52, %v9012_v45  ;;  %v9321_v54 = vadd.f32 %v3220_v4, %v9015_v1  ;;  %v11908_v21 = vld [vmem:[#allocation49_spill] sm:$0xff]  ;;  %v11910_v34 = vld [vmem:[#allocation20_spill] sm:$0xff]  ;;  %v11925_v19 = vld [vmem:[#allocation46_spill] sm:$0xff] }
 0x2e4   : > { %v9324_v28 = vadd.f32 %v3221_v3, %v9018_v9  ;;  %v9327_v2 = vadd.f32 %v3222_v25, %v9021_v33  ;;  %v9330_v31 = vadd.f32 %v3223_v27, %v9024_v16  ;;  %v9333_v60 = vadd.f32 %v3224_v32, %v11908_v21  ;;  %v11927_v52 = vld [vmem:[#allocation52_spill] sm:$0xff]  ;;  %v11929_v25 = vld [vmem:[#allocation53_spill] sm:$0xff]  ;;  %v11931_v21 = vld [vmem:[#allocation54_spill] sm:$0xff] }
 0x2e5   : > { %v3235_v43 = vmul.f32 %v11910_v34, %v9218_v42  ;;  %v3236_v45 = vmul.f32 %v11910_v34, %v9223_v49  ;;  %v3237_v1 = vmul.f32 %v11910_v34, %v3173_v36  ;;  %v3238_v9 = vmul.f32 %v11910_v34, %v3174_v26  ;;  %v11911_v42 = vld [vmem:[#allocation21_spill] sm:$0xff]  ;;  %v11913_v49 = vld [vmem:[#allocation44_spill] sm:$0xff] }
 0x2e6   : > { %11909 = vst [vmem:[#allocation49_spill] sm:$0xff] %v9333_v60  ;;  %v3239_v33 = vmul.f32 %v11910_v34, %v3175_v57  ;;  %v3240_v16 = vmul.f32 %v11910_v34, %v3176_v53  ;;  %v3241_v44 = vmul.f32 %v11910_v34, %v3177_v22  ;;  %v3242_v23 = vmul.f32 %v11910_v34, %v3178_v18  ;;  %v11915_v36 = vld [vmem:[#allocation45_spill] sm:$0xff]  ;;  %v11919_v57 = vld [vmem:[#allocation50_spill] sm:$0xff]  ;;  %v11921_v22 = vld [vmem:[#allocation47_spill] sm:$0xff] }
 0x2e7   : > { %v9350_v11 = vadd.f32 %v3235_v43, %v11911_v42  ;;  %v9353_v6 = vadd.f32 %v3236_v45, %v11913_v49  ;;  %v9356_v26 = vadd.f32 %v3237_v1, %v11915_v36  ;;  %v9359_v30 = vadd.f32 %v3238_v9, %v11917_v8  ;;  %v11933_v45 = vld [vmem:[#allocation55_spill] sm:$0xff]  ;;  %v11939_v36 = vld [vmem:[#allocation25_spill] sm:$0xff] }
 0x2e8   : > { %v9364_v53 = vadd.f32 %v3239_v33, %v11919_v57  ;;  %v9367_v18 = vadd.f32 %v3240_v16, %v11921_v22  ;;  %v9370_v47 = vadd.f32 %v3241_v44, %v11923_v51  ;;  %v9373_v12 = vadd.f32 %v3242_v23, %v11925_v19  ;;  %v11935_v33 = vld [vmem:[#allocation24_spill] sm:$0xff]  ;;  %v11940_v8 = vld [vmem:[#allocation37_spill] sm:$0xff]  ;;  %v11943_v19 = vld [vmem:[#allocation43_spill] sm:$0xff] }
 0x2e9   : > { %11912 = vst [vmem:[#allocation20_spill] sm:$0xff] %v9350_v11  ;;  %v11928_v4 = vrot.slane %v9198_v48, 1  ;;  %v11930_v27 = vrot.slane %v9201_v7, 1  ;;  %v11932_v34 = vrot.slane %v9204_v46, 1  ;;  %v11934_v1 = vrot.slane %v9207_v56, 1  ;;  %v11936_v16 = vld [vmem:[#allocation56_spill] sm:$0xff] }
 0x2ea   : > { %11914 = vst [vmem:[#allocation21_spill] sm:$0xff] %v9353_v6  ;;  %v3305_v44 = vmul.f32 %v11936_v16, %v11935_v33  ;;  %v11937_v23 = vld [vmem:[#allocation28_spill] sm:$0xff]  ;;  %v11938_v48 = vld [vmem:[#allocation33_spill] sm:$0xff]  ;;  %v3308_v7 = vmul.f32 %v11936_v16, %v11939_v36  ;;  %v3309_v46 = vmul.f32 %v11936_v16, %v11940_v8  ;;  %v11942_v56 = vld [vmem:[#allocation35_spill] sm:$0xff] }
 0x2eb   : > { %11916 = vst [vmem:[#allocation44_spill] sm:$0xff] %v9356_v26  ;;  %v3299_v3 = vadd.f32 %v11928_v4, %v11927_v52  ;;  %v3300_v32 = vadd.f32 %v11930_v27, %v11929_v25  ;;  %v3301_v43 = vadd.f32 %v11932_v34, %v11931_v21  ;;  %v3302_v9 = vadd.f32 %v11934_v1, %v11933_v45  ;;  %v11941_v57 = vld [vmem:[#allocation40_spill] sm:$0xff] }
 0x2ec   : > { %11918 = vst [vmem:[#allocation45_spill] sm:$0xff] %v9359_v30  ;;  %v3306_v42 = vmul.f32 %v11936_v16, %v11937_v23  ;;  %v3307_v49 = vmul.f32 %v11936_v16, %v11938_v48  ;;  %v3310_v22 = vmul.f32 %v11936_v16, %v11941_v57  ;;  %v3311_v51 = vmul.f32 %v11936_v16, %v11942_v56  ;;  %v11948_v30 = vld [vmem:[#allocation29_spill] sm:$0xff] }
 0x2ed   : > { %11920 = vst [vmem:[#allocation48_spill] sm:$0xff] %v9364_v53  ;;  %v3312_v52 = vmul.f32 %v11936_v16, %v11943_v19  ;;  %v3321_v4 = vrot.slane %v3305_v44, 2  ;;  %v3324_v21 = vrot.slane %v3308_v7, 2  ;;  %v3325_v34 = vrot.slane %v3309_v46, 2  ;;  %v11947_v53 = vld [vmem:[#allocation31_spill] sm:$0xff] }
 0x2ee   : > { %11922 = vst [vmem:[#allocation50_spill] sm:$0xff] %v9367_v18  ;;  %v3322_v25 = vrot.slane %v3306_v42, 2  ;;  %v3323_v27 = vrot.slane %v3307_v49, 2  ;;  %v3326_v45 = vrot.slane %v3310_v22, 2  ;;  %v3327_v1 = vrot.slane %v3311_v51, 2 }
 0x2ef   : > { %11924 = vst [vmem:[#allocation47_spill] sm:$0xff] %v9370_v47  ;;  %v3328_v8 = vrot.slane %v3312_v52, 2  ;;  %v3337_v57 = vadd.f32 %v3321_v4, %v9213_v59  ;;  %v3340_v16 = vadd.f32 %v3324_v21, %v9225_v0  ;;  %v3341_v44 = vadd.f32 %v3325_v34, %v3299_v3 }
 0x2f0   : > { %11926 = vst [vmem:[#allocation51_spill] sm:$0xff] %v9373_v12  ;;  %v3338_v36 = vadd.f32 %v3322_v25, %v9215_v41  ;;  %v3339_v56 = vadd.f32 %v3323_v27, %v9220_v14  ;;  %v3342_v42 = vadd.f32 %v3326_v45, %v3300_v32  ;;  %v3343_v19 = vadd.f32 %v3327_v1, %v3301_v43 }
 0x2f1   : > { %v3344_v49 = vadd.f32 %v3328_v8, %v3302_v9  ;;  %v3346_v7 = vstv %s9341_s12  ;;  %v9413_v46 = vstv %s9347_s11  ;;  %v9416_v22 = vstv %s9361_s14  ;;  %s9771_s12 = sld [smem:[#allocation2 + $0x10c]] }
 0x2f2   : > { %v9419_v51 = vstv %s9375_s16  ;;  %v9423_v59 = vadd.f32 %v3346_v7, %v3337_v57  ;;  %v9425_v14 = vadd.f32 %v3346_v7, %v3338_v36  ;;  %v9427_v41 = vadd.f32 %v3346_v7, %v3339_v56  ;;  %s9953_s11 = sld [smem:[#allocation5 + $0xc]] }
 0x2f3   : > { %v9429_v0 = vadd.f32 %v3346_v7, %v3340_v16  ;;  %v9431_v3 = vadd.f32 %v3346_v7, %v3341_v44  ;;  %v9433_v32 = vadd.f32 %v3346_v7, %v3342_v42  ;;  %v9435_v43 = vadd.f32 %v3346_v7, %v3343_v19  ;;  %s9959_s14 = sld [smem:[#allocation7 + $0x600]] }
 0x2f4   : > { %v9437_v9 = vadd.f32 %v3346_v7, %v3344_v49  ;;  %v3355_v8 = vmul.f32 %v9423_v59, %v9423_v59  ;;  %v3356_v57 = vmul.f32 %v9425_v14, %v9425_v14  ;;  %v3357_v36 = vmul.f32 %v9427_v41, %v9427_v41  ;;  %s9973_s16 = sld [smem:[#allocation7 + $0x601]] }
 0x2f5   : > { %v3358_v56 = vmul.f32 %v9429_v0, %v9429_v0  ;;  %v3359_v52 = vmul.f32 %v9431_v3, %v9431_v3  ;;  %v3360_v19 = vmul.f32 %v9433_v32, %v9433_v32  ;;  %v3361_v4 = vmul.f32 %v9435_v43, %v9435_v43 }
 0x2f6   : > { %v3362_v25 = vmul.f32 %v9437_v9, %v9437_v9  ;;  %v3363_v27 = vmul.f32 %v3355_v8, %v9423_v59  ;;  %v3364_v21 = vmul.f32 %v3356_v57, %v9425_v14  ;;  %v3365_v34 = vmul.f32 %v3357_v36, %v9427_v41 }
 0x2f7   : > { %v3366_v45 = vmul.f32 %v3358_v56, %v9429_v0  ;;  %v3367_v1 = vmul.f32 %v3359_v52, %v9431_v3  ;;  %v3368_v16 = vmul.f32 %v3360_v19, %v9433_v32  ;;  %v3369_v44 = vmul.f32 %v3361_v4, %v9435_v43 }
 0x2f8   : > { %v3370_v42 = vmul.f32 %v3362_v25, %v9437_v9  ;;  %v3371_v49 = vmul.f32 0.044715, %v3363_v27  ;;  %v3372_v7 = vmul.f32 0.044715, %v3364_v21  ;;  %v3373_v8 = vmul.f32 0.044715, %v3365_v34 }
 0x2f9   : > { %v9468_v57 = vstv %s9409_s21  ;;  %v3374_v36 = vmul.f32 0.044715, %v3366_v45  ;;  %v3375_v48 = vmul.f32 0.044715, %v3367_v1  ;;  %v3376_v56 = vmul.f32 0.044715, %v3368_v16 }
 0x2fa   : > { %11944 = vst [vmem:[#allocation46_spill] sm:$0xff] %v9468_v57  ;;  %v3500_v23 = vstv %s9421_s22  ;;  %v3377_v33 = vmul.f32 0.044715, %v3369_v44  ;;  %v3378_v12 = vmul.f32 0.044715, %v3370_v42  ;;  %v3379_v52 = vadd.f32 %v3371_v49, %v9423_v59  ;;  %v11945_v49 = vld [vmem:[#allocation22_spill] sm:$0xff] }
 0x2fb   : > { %v3380_v19 = vadd.f32 %v3372_v7, %v9425_v14  ;;  %v3381_v4 = vadd.f32 %v3373_v8, %v9427_v41  ;;  %v3382_v25 = vadd.f32 %v3374_v36, %v9429_v0  ;;  %v3383_v27 = vadd.f32 %v3375_v48, %v9431_v3  ;;  %v11946_v48 = vld [vmem:[#allocation26_spill] sm:$0xff]  ;;  %s9987_s21 = sld [smem:[#allocation7 + $0x602]] }
 0x2fc   : > { %v3384_v21 = vadd.f32 %v3376_v56, %v9433_v32  ;;  %v3385_v34 = vadd.f32 %v3377_v33, %v9435_v43  ;;  %v3386_v45 = vadd.f32 %v3378_v12, %v9437_v9  ;;  %v3387_v1 = vmul.f32 0.7978846, %v3379_v52  ;;  %v11949_v52 = vld [vmem:[#allocation19_spill] sm:$0xff]  ;;  %s10021_s22 = sld [smem:[#allocation7 + $0x603]] }
 0x2fd   : > { %v3388_v16 = vmul.f32 0.7978846, %v3380_v19  ;;  %v3389_v44 = vmul.f32 0.7978846, %v3381_v4  ;;  %v3390_v42 = vmul.f32 0.7978846, %v3382_v25  ;;  %v3501_v7 = vmul.f32 %v3500_v23, %v11945_v49 }
 0x2fe   : > { %v3391_v47 = vmul.f32 0.7978846, %v3383_v27  ;;  %v3392_v8 = vmul.f32 0.7978846, %v3384_v21  ;;  %v3393_v18 = vmul.f32 0.7978846, %v3385_v34  ;;  %5611 = vtanh.f32 %v3387_v1 }
 0x2ff   : > { %v3394_v36 = vmul.f32 0.7978846, %v3386_v45  ;;  %5613 = vtanh.f32 %v3388_v16  ;;  %v3502_v56 = vmul.f32 %v3500_v23, %v11946_v48  ;;  %v3503_v33 = vmul.f32 %v3500_v23, %v11947_v53  ;;  %v11951_v4 = vld [vmem:[#allocation38_spill] sm:$0xff]  ;;  %v11955_v21 = vld [vmem:[#allocation41_spill] sm:$0xff]  ;;  %v11958_v16 = vld [vmem:[#allocation23_spill] sm:$0xff] }
 0x300   : > { %v3504_v12 = vmul.f32 %v3500_v23, %v11948_v30  ;;  %5615 = vtanh.f32 %v3389_v44  ;;  %v9484_v19 = vmul.f32 %v3500_v23, %v11949_v52  ;;  %v9487_v25 = vmul.f32 %v3500_v23, %v11951_v4  ;;  %v11953_v27 = vld [vmem:[#allocation18_spill] sm:$0xff]  ;;  %v11959_v44 = vld [vmem:[#allocation27_spill] sm:$0xff]  ;;  %v11960_v52 = vld [vmem:[#allocation32_spill] sm:$0xff] }
 0x301   : > { %v9490_v49 = vmul.f32 %v3500_v23, %v11953_v27  ;;  %5617 = vtanh.f32 %v3390_v42  ;;  %v9493_v34 = vmul.f32 %v3500_v23, %v11955_v21  ;;  %v3510_v45 = vstv %s9459_s24  ;;  %v11961_v4 = vld [vmem:[#allocation30_spill] sm:$0xff]  ;;  %v11963_v42 = vld [vmem:[#allocation39_spill] sm:$0xff]  ;;  %s10033_s24 = sld [smem:[#allocation2 + $0xd]] }
 0x302   : > { %11950 = vst [vmem:[#allocation52_spill] sm:$0xff] %v9484_v19  ;;  %v9497_v1 = vstv %s9465_s25  ;;  %5619 = vtanh.f32 %v3391_v47  ;;  %v3511_v30 = vmul.f32 %v3510_v45, %v11958_v16  ;;  %v3512_v53 = vmul.f32 %v3510_v45, %v11959_v44  ;;  %v11962_v19 = vld [vmem:[#allocation36_spill] sm:$0xff]  ;;  %v11964_v21 = vld [vmem:[#allocation34_spill] sm:$0xff]  ;;  %s10071_s25 = sld [smem:[#allocation2 + $0x8d]] }
 0x303   : > { %11952 = vst [vmem:[#allocation53_spill] sm:$0xff] %v9487_v25  ;;  %v3513_v48 = vmul.f32 %v3510_v45, %v11960_v52  ;;  %5621 = vtanh.f32 %v3392_v8  ;;  %v3514_v25 = vmul.f32 %v3510_v45, %v11961_v4  ;;  %v9504_v27 = vmul.f32 %v3510_v45, %v11962_v19  ;;  %v11965_v47 = vld [vmem:[#allocation42_spill] sm:$0xff] }
 0x304   : > { %11954 = vst [vmem:[#allocation54_spill] sm:$0xff] %v9490_v49  ;;  %v9507_v49 = vmul.f32 %v3510_v45, %v11963_v42  ;;  %v5612_v23 = vpop.eup %5611  ;;  %5623 = vtanh.f32 %v3393_v18  ;;  %v9513_v16 = vmul.f32 %v3510_v45, %v11965_v47  ;;  %v3527_v44 = vrot.slane %v3511_v30, 1 }
 0x305   : > { %11956 = vst [vmem:[#allocation55_spill] sm:$0xff] %v9493_v34  ;;  %v5614_v34 = vpop.eup %5613  ;;  %5625 = vtanh.f32 %v3394_v36  ;;  %v3403_v8 = vadd.f32 1.0, %v5612_v23  ;;  %v3528_v52 = vrot.slane %v3512_v53, 1  ;;  %v3529_v4 = vrot.slane %v3513_v48, 1 }
 0x306   : > { %11957 = vst [vmem:[#allocation56_spill] sm:$0xff] %v9497_v1  ;;  %v9510_v1 = vmul.f32 %v3510_v45, %v11964_v21  ;;  %v5616_v26 = vpop.eup %5615  ;;  %v3404_v19 = vadd.f32 1.0, %v5614_v34  ;;  %v3530_v6 = vrot.slane %v3514_v25, 1  ;;  %v9519_v23 = vadd.f32 %v3527_v44, %v3501_v7 }
 0x307   : > { %v5618_v18 = vpop.eup %5617  ;;  %v3405_v57 = vadd.f32 1.0, %v5616_v26  ;;  %v3411_v21 = vmul.f32 0.5, %v3403_v8  ;;  %v9521_v53 = vadd.f32 %v3528_v52, %v3502_v56  ;;  %v9526_v11 = vadd.f32 %v3529_v4, %v3503_v33 }
 0x308   : > { %v5620_v30 = vpop.eup %5619  ;;  %v3406_v47 = vadd.f32 1.0, %v5618_v18  ;;  %v3412_v36 = vmul.f32 0.5, %v3404_v19  ;;  %v9531_v18 = vadd.f32 %v3530_v6, %v3504_v12 }
 0x309   : > { %v5622_v48 = vpop.eup %5621  ;;  %v3407_v25 = vadd.f32 1.0, %v5620_v30  ;;  %v3413_v34 = vmul.f32 0.5, %v3405_v57  ;;  %v9524_v42 = vmul.f32 %v3411_v21, %v9423_v59 }
 0x30a   : > { %v5624_v26 = vpop.eup %5623  ;;  %v3408_v8 = vadd.f32 1.0, %v5622_v48  ;;  %v3414_v60 = vmul.f32 0.5, %v3406_v47  ;;  %v9529_v45 = vmul.f32 %v3412_v36, %v9425_v14 }
 0x30b   : > { %v5626_v7 = vpop.eup %5625  ;;  %v3409_v19 = vadd.f32 1.0, %v5624_v26  ;;  %v3415_v56 = vmul.f32 0.5, %v3407_v25  ;;  %v3421_v52 = vmul.f32 %v3413_v34, %v9427_v41  ;;  %v3429_v57 = vmul.f32 %v9413_v46, %v9524_v42 }
 0x30c   : > { %v3410_v59 = vadd.f32 1.0, %v5626_v7  ;;  %v3416_v21 = vmul.f32 0.5, %v3408_v8  ;;  %v3422_v33 = vmul.f32 %v3414_v60, %v9429_v0  ;;  %v3430_v4 = vmul.f32 %v9413_v46, %v9529_v45 }
 0x30d   : > { %v3417_v44 = vmul.f32 0.5, %v3409_v19  ;;  %v3423_v14 = vmul.f32 %v3415_v56, %v9431_v3  ;;  %v3431_v6 = vmul.f32 %v9413_v46, %v3421_v52  ;;  %v9542_v12 = vadd.f32 %v3429_v57, %v9236_v58 }
 0x30e   : > { %v3418_v47 = vmul.f32 0.5, %v3410_v59  ;;  %v3424_v41 = vmul.f32 %v3416_v21, %v9433_v32  ;;  %v3432_v30 = vmul.f32 %v9413_v46, %v3422_v33  ;;  %v9547_v36 = vadd.f32 %v3430_v4, %v9241_v10 }
 0x30f   : > { %v3425_v60 = vmul.f32 %v3417_v44, %v9435_v43  ;;  %v3433_v0 = vmul.f32 %v9413_v46, %v3423_v14  ;;  %v9552_v48 = vadd.f32 %v3431_v6, %v9246_v15  ;;  %v3447_v3 = vmul.f32 %v9416_v22, %v9524_v42 }
 0x310   : > { %v3426_v58 = vmul.f32 %v3418_v47, %v9437_v9  ;;  %v3434_v25 = vmul.f32 %v9413_v46, %v3424_v41  ;;  %v9559_v32 = vadd.f32 %v3432_v30, %v9253_v38  ;;  %v3448_v10 = vmul.f32 %v9416_v22, %v9529_v45 }
 0x311   : > { %v3435_v43 = vmul.f32 %v9413_v46, %v3425_v60  ;;  %v9565_v34 = vadd.f32 %v3433_v0, %v9259_v5  ;;  %v3449_v15 = vmul.f32 %v9416_v22, %v3421_v52  ;;  %v3450_v26 = vmul.f32 %v9416_v22, %v3422_v33 }
 0x312   : > { %v3436_v8 = vmul.f32 %v9413_v46, %v3426_v58  ;;  %v9571_v9 = vadd.f32 %v3434_v25, %v9265_v17  ;;  %v3451_v38 = vmul.f32 %v9416_v22, %v3423_v14  ;;  %v3452_v7 = vmul.f32 %v9416_v22, %v3424_v41 }
 0x313   : > { %v9576_v19 = vadd.f32 %v3435_v43, %v9270_v61  ;;  %v3453_v56 = vmul.f32 %v9416_v22, %v3425_v60  ;;  %v3454_v5 = vmul.f32 %v9416_v22, %v3426_v58  ;;  %v9581_v57 = vadd.f32 %v3447_v3, %v9275_v35 }
 0x314   : > { %v9584_v59 = vadd.f32 %v3436_v8, %v9278_v63  ;;  %v9587_v17 = vadd.f32 %v3448_v10, %v9281_v37  ;;  %v9590_v46 = vadd.f32 %v3449_v15, %v9284_v50  ;;  %v9593_v21 = vadd.f32 %v3450_v26, %v9287_v62 }
 0x315   : > { %v9596_v61 = vadd.f32 %v3451_v38, %v9290_v29  ;;  %v9599_v22 = vadd.f32 %v3452_v7, %v9293_v40  ;;  %v9602_v35 = vadd.f32 %v3453_v56, %v9296_v24  ;;  %v9605_v63 = vadd.f32 %v3454_v5, %v9299_v20  ;;  %v11975_v38 = vld [vmem:[#allocation45_spill] sm:$0xff]  ;;  %v11981_v56 = vld [vmem:[#allocation47_spill] sm:$0xff] }
 0x316   : > { %v3465_v37 = vmul.f32 %v9419_v51, %v9524_v42  ;;  %v3466_v50 = vmul.f32 %v9419_v51, %v9529_v45  ;;  %v3467_v62 = vmul.f32 %v9419_v51, %v3421_v52  ;;  %v3468_v29 = vmul.f32 %v9419_v51, %v3422_v33 }
 0x317   : > { %v3469_v4 = vmul.f32 %v9419_v51, %v3423_v14  ;;  %v3470_v40 = vmul.f32 %v9419_v51, %v3424_v41  ;;  %v3471_v24 = vmul.f32 %v9419_v51, %v3425_v60  ;;  %v3472_v44 = vmul.f32 %v9419_v51, %v3426_v58 }
 0x318   : > { %v9618_v20 = vadd.f32 %v3465_v37, %v9312_v39  ;;  %v9621_v6 = vadd.f32 %v3466_v50, %v9315_v13  ;;  %v9624_v47 = vadd.f32 %v3467_v62, %v9318_v55  ;;  %v9627_v30 = vadd.f32 %v3468_v29, %v9321_v54  ;;  %v11966_v39 = vld [vmem:[#allocation49_spill] sm:$0xff]  ;;  %v11968_v13 = vld [vmem:[#allocation46_spill] sm:$0xff]  ;;  %v11983_v37 = vld [vmem:[#allocation51_spill] sm:$0xff] }
 0x319   : > { %v9630_v0 = vadd.f32 %v3469_v4, %v9324_v28  ;;  %v9633_v3 = vadd.f32 %v3470_v40, %v9327_v2  ;;  %v9636_v51 = vadd.f32 %v3471_v24, %v9330_v31  ;;  %v9639_v25 = vadd.f32 %v3472_v44, %v11966_v39  ;;  %v11985_v62 = vld [vmem:[#allocation52_spill] sm:$0xff]  ;;  %v11987_v40 = vld [vmem:[#allocation53_spill] sm:$0xff]  ;;  %v11989_v39 = vld [vmem:[#allocation54_spill] sm:$0xff] }
 0x31a   : > { %v3483_v10 = vmul.f32 %v11968_v13, %v9524_v42  ;;  %v3484_v55 = vmul.f32 %v11968_v13, %v9529_v45  ;;  %v3485_v54 = vmul.f32 %v11968_v13, %v3421_v52  ;;  %v3486_v28 = vmul.f32 %v11968_v13, %v3422_v33  ;;  %v11969_v42 = vld [vmem:[#allocation20_spill] sm:$0xff]  ;;  %v11971_v45 = vld [vmem:[#allocation21_spill] sm:$0xff] }
 0x31b   : > { %11967 = vst [vmem:[#allocation49_spill] sm:$0xff] %v9639_v25  ;;  %v3487_v2 = vmul.f32 %v11968_v13, %v3423_v14  ;;  %v3488_v31 = vmul.f32 %v11968_v13, %v3424_v41  ;;  %v3489_v43 = vmul.f32 %v11968_v13, %v3425_v60  ;;  %v3490_v15 = vmul.f32 %v11968_v13, %v3426_v58  ;;  %v11973_v52 = vld [vmem:[#allocation44_spill] sm:$0xff]  ;;  %v11979_v60 = vld [vmem:[#allocation50_spill] sm:$0xff] }
 0x31c   : > { %v9656_v26 = vadd.f32 %v3483_v10, %v11969_v42  ;;  %v9659_v8 = vadd.f32 %v3484_v55, %v11971_v45  ;;  %v9662_v33 = vadd.f32 %v3485_v54, %v11973_v52  ;;  %v9665_v7 = vadd.f32 %v3486_v28, %v11975_v38  ;;  %v11977_v14 = vld [vmem:[#allocation48_spill] sm:$0xff]  ;;  %v11991_v55 = vld [vmem:[#allocation55_spill] sm:$0xff]  ;;  %v11997_v52 = vld [vmem:[#allocation25_spill] sm:$0xff] }
 0x31d   : > { %v9670_v41 = vadd.f32 %v3487_v2, %v11977_v14  ;;  %v9673_v58 = vadd.f32 %v3488_v31, %v11979_v60  ;;  %v9676_v5 = vadd.f32 %v3489_v43, %v11981_v56  ;;  %v9679_v50 = vadd.f32 %v3490_v15, %v11983_v37  ;;  %v11993_v2 = vld [vmem:[#allocation24_spill] sm:$0xff]  ;;  %v11998_v38 = vld [vmem:[#allocation37_spill] sm:$0xff]  ;;  %v12001_v37 = vld [vmem:[#allocation43_spill] sm:$0xff] }
 0x31e   : > { %11970 = vst [vmem:[#allocation46_spill] sm:$0xff] %v9656_v26  ;;  %v11986_v29 = vrot.slane %v9504_v27, 1  ;;  %v11988_v24 = vrot.slane %v9507_v49, 1  ;;  %v11990_v13 = vrot.slane %v9510_v1, 1  ;;  %v11992_v54 = vrot.slane %v9513_v16, 1  ;;  %v11994_v31 = vld [vmem:[#allocation56_spill] sm:$0xff] }
 0x31f   : > { %11972 = vst [vmem:[#allocation20_spill] sm:$0xff] %v9659_v8  ;;  %v3553_v43 = vmul.f32 %v11994_v31, %v11993_v2  ;;  %v11995_v15 = vld [vmem:[#allocation28_spill] sm:$0xff]  ;;  %v11996_v27 = vld [vmem:[#allocation33_spill] sm:$0xff]  ;;  %v3556_v49 = vmul.f32 %v11994_v31, %v11997_v52  ;;  %v3557_v1 = vmul.f32 %v11994_v31, %v11998_v38  ;;  %v12000_v16 = vld [vmem:[#allocation35_spill] sm:$0xff] }
 0x320   : > { %11974 = vst [vmem:[#allocation21_spill] sm:$0xff] %v9662_v33  ;;  %v3547_v4 = vadd.f32 %v11986_v29, %v11985_v62  ;;  %v3548_v44 = vadd.f32 %v11988_v24, %v11987_v40  ;;  %v3549_v10 = vadd.f32 %v11990_v13, %v11989_v39  ;;  %v3550_v28 = vadd.f32 %v11992_v54, %v11991_v55  ;;  %v11999_v14 = vld [vmem:[#allocation40_spill] sm:$0xff] }
 0x321   : > { %11976 = vst [vmem:[#allocation44_spill] sm:$0xff] %v9665_v7  ;;  %v3554_v42 = vmul.f32 %v11994_v31, %v11995_v15  ;;  %v3555_v45 = vmul.f32 %v11994_v31, %v11996_v27  ;;  %v3558_v60 = vmul.f32 %v11994_v31, %v11999_v14  ;;  %v3559_v56 = vmul.f32 %v11994_v31, %v12000_v16  ;;  %v12006_v7 = vld [vmem:[#allocation29_spill] sm:$0xff] }
 0x322   : > { %11978 = vst [vmem:[#allocation45_spill] sm:$0xff] %v9670_v41  ;;  %v3560_v62 = vmul.f32 %v11994_v31, %v12001_v37  ;;  %v3569_v29 = vrot.slane %v3553_v43, 2  ;;  %v3572_v39 = vrot.slane %v3556_v49, 2  ;;  %v3573_v13 = vrot.slane %v3557_v1, 2  ;;  %v12005_v41 = vld [vmem:[#allocation31_spill] sm:$0xff] }
 0x323   : > { %11980 = vst [vmem:[#allocation48_spill] sm:$0xff] %v9673_v58  ;;  %v3570_v40 = vrot.slane %v3554_v42, 2  ;;  %v3571_v24 = vrot.slane %v3555_v45, 2  ;;  %v3574_v55 = vrot.slane %v3558_v60, 2  ;;  %v3575_v54 = vrot.slane %v3559_v56, 2 }
 0x324   : > { %11982 = vst [vmem:[#allocation50_spill] sm:$0xff] %v9676_v5  ;;  %v3576_v38 = vrot.slane %v3560_v62, 2  ;;  %v3585_v14 = vadd.f32 %v3569_v29, %v9519_v23  ;;  %v3588_v31 = vadd.f32 %v3572_v39, %v9531_v18  ;;  %v3589_v43 = vadd.f32 %v3573_v13, %v3547_v4 }
 0x325   : > { %11984 = vst [vmem:[#allocation47_spill] sm:$0xff] %v9679_v50  ;;  %v3586_v52 = vadd.f32 %v3570_v40, %v9521_v53  ;;  %v3587_v16 = vadd.f32 %v3571_v24, %v9526_v11  ;;  %v3590_v42 = vadd.f32 %v3574_v55, %v3548_v44  ;;  %v3591_v37 = vadd.f32 %v3575_v54, %v3549_v10 }
 0x326   : > { %v3592_v45 = vadd.f32 %v3576_v38, %v3550_v28  ;;  %v3594_v49 = vstv %s9647_s5  ;;  %v9719_v1 = vstv %s9653_s9  ;;  %v9722_v60 = vstv %s9667_s13  ;;  %s10077_s5 = sld [smem:[#allocation2 + $0x10d]] }
 0x327   : > { %v9725_v56 = vstv %s9681_s19  ;;  %v9729_v23 = vadd.f32 %v3594_v49, %v3585_v14  ;;  %v9731_v11 = vadd.f32 %v3594_v49, %v3586_v52  ;;  %v9733_v53 = vadd.f32 %v3594_v49, %v3587_v16  ;;  %s10259_s9 = sld [smem:[#allocation5 + $0xd]] }
 0x328   : > { %v9735_v18 = vadd.f32 %v3594_v49, %v3588_v31  ;;  %v9737_v4 = vadd.f32 %v3594_v49, %v3589_v43  ;;  %v9739_v44 = vadd.f32 %v3594_v49, %v3590_v42  ;;  %v9741_v10 = vadd.f32 %v3594_v49, %v3591_v37  ;;  %s10265_s13 = sld [smem:[#allocation7 + $0x680]] }
 0x329   : > { %v9743_v28 = vadd.f32 %v3594_v49, %v3592_v45  ;;  %v3603_v38 = vmul.f32 %v9729_v23, %v9729_v23  ;;  %v3604_v14 = vmul.f32 %v9731_v11, %v9731_v11  ;;  %v3605_v52 = vmul.f32 %v9733_v53, %v9733_v53  ;;  %s10279_s19 = sld [smem:[#allocation7 + $0x681]] }
 0x32a   : > { %v3606_v16 = vmul.f32 %v9735_v18, %v9735_v18  ;;  %v3607_v62 = vmul.f32 %v9737_v4, %v9737_v4  ;;  %v3608_v37 = vmul.f32 %v9739_v44, %v9739_v44  ;;  %v3609_v29 = vmul.f32 %v9741_v10, %v9741_v10 }
 0x32b   : > { %v3610_v40 = vmul.f32 %v9743_v28, %v9743_v28  ;;  %v3611_v24 = vmul.f32 %v3603_v38, %v9729_v23  ;;  %v3612_v39 = vmul.f32 %v3604_v14, %v9731_v11  ;;  %v3613_v13 = vmul.f32 %v3605_v52, %v9733_v53 }
 0x32c   : > { %v3614_v55 = vmul.f32 %v3606_v16, %v9735_v18  ;;  %v3615_v54 = vmul.f32 %v3607_v62, %v9737_v4  ;;  %v3616_v31 = vmul.f32 %v3608_v37, %v9739_v44  ;;  %v3617_v43 = vmul.f32 %v3609_v29, %v9741_v10 }
 0x32d   : > { %v3618_v42 = vmul.f32 %v3610_v40, %v9743_v28  ;;  %v3619_v45 = vmul.f32 0.044715, %v3611_v24  ;;  %v3620_v49 = vmul.f32 0.044715, %v3612_v39  ;;  %v3621_v38 = vmul.f32 0.044715, %v3613_v13 }
 0x32e   : > { %v9774_v14 = vstv %s9715_s20  ;;  %v3622_v52 = vmul.f32 0.044715, %v3614_v55  ;;  %v3623_v27 = vmul.f32 0.044715, %v3615_v54  ;;  %v3624_v16 = vmul.f32 0.044715, %v3616_v31 }
 0x32f   : > { %12002 = vst [vmem:[#allocation51_spill] sm:$0xff] %v9774_v14  ;;  %v3748_v15 = vstv %s9727_s23  ;;  %v3625_v2 = vmul.f32 0.044715, %v3617_v43  ;;  %v3626_v50 = vmul.f32 0.044715, %v3618_v42  ;;  %v3627_v62 = vadd.f32 %v3619_v45, %v9729_v23  ;;  %v12003_v45 = vld [vmem:[#allocation22_spill] sm:$0xff] }
 0x330   : > { %v3628_v37 = vadd.f32 %v3620_v49, %v9731_v11  ;;  %v3629_v29 = vadd.f32 %v3621_v38, %v9733_v53  ;;  %v3630_v40 = vadd.f32 %v3622_v52, %v9735_v18  ;;  %v3631_v24 = vadd.f32 %v3623_v27, %v9737_v4  ;;  %v12004_v27 = vld [vmem:[#allocation26_spill] sm:$0xff]  ;;  %s10293_s20 = sld [smem:[#allocation7 + $0x682]] }
 0x331   : > { %v3632_v39 = vadd.f32 %v3624_v16, %v9739_v44  ;;  %v3633_v13 = vadd.f32 %v3625_v2, %v9741_v10  ;;  %v3634_v55 = vadd.f32 %v3626_v50, %v9743_v28  ;;  %v3635_v54 = vmul.f32 0.7978846, %v3627_v62  ;;  %v12007_v62 = vld [vmem:[#allocation19_spill] sm:$0xff]  ;;  %s10327_s23 = sld [smem:[#allocation7 + $0x683]] }
 0x332   : > { %v3636_v31 = vmul.f32 0.7978846, %v3628_v37  ;;  %v3637_v43 = vmul.f32 0.7978846, %v3629_v29  ;;  %v3638_v42 = vmul.f32 0.7978846, %v3630_v40  ;;  %v3749_v49 = vmul.f32 %v3748_v15, %v12003_v45 }
 0x333   : > { %v3639_v5 = vmul.f32 0.7978846, %v3631_v24  ;;  %v3640_v38 = vmul.f32 0.7978846, %v3632_v39  ;;  %v3641_v58 = vmul.f32 0.7978846, %v3633_v13  ;;  %5627 = vtanh.f32 %v3635_v54 }
 0x334   : > { %v3642_v52 = vmul.f32 0.7978846, %v3634_v55  ;;  %5629 = vtanh.f32 %v3636_v31  ;;  %v3750_v16 = vmul.f32 %v3748_v15, %v12004_v27  ;;  %v3751_v2 = vmul.f32 %v3748_v15, %v12005_v41  ;;  %v12009_v29 = vld [vmem:[#allocation38_spill] sm:$0xff]  ;;  %v12013_v39 = vld [vmem:[#allocation41_spill] sm:$0xff]  ;;  %v12016_v31 = vld [vmem:[#allocation23_spill] sm:$0xff] }
 0x335   : > { %v3752_v50 = vmul.f32 %v3748_v15, %v12006_v7  ;;  %5631 = vtanh.f32 %v3637_v43  ;;  %v9790_v37 = vmul.f32 %v3748_v15, %v12007_v62  ;;  %v9793_v40 = vmul.f32 %v3748_v15, %v12009_v29  ;;  %v12011_v24 = vld [vmem:[#allocation18_spill] sm:$0xff]  ;;  %v12017_v43 = vld [vmem:[#allocation27_spill] sm:$0xff]  ;;  %v12018_v62 = vld [vmem:[#allocation32_spill] sm:$0xff] }
 0x336   : > { %v9796_v45 = vmul.f32 %v3748_v15, %v12011_v24  ;;  %5633 = vtanh.f32 %v3638_v42  ;;  %v9799_v13 = vmul.f32 %v3748_v15, %v12013_v39  ;;  %v3758_v55 = vstv %s9765_s26  ;;  %v12019_v29 = vld [vmem:[#allocation30_spill] sm:$0xff]  ;;  %v12021_v42 = vld [vmem:[#allocation39_spill] sm:$0xff]  ;;  %s10339_s26 = sld [smem:[#allocation2 + $0xe]] }
 0x337   : > { %12008 = vst [vmem:[#allocation52_spill] sm:$0xff] %v9790_v37  ;;  %v9803_v54 = vstv %s9771_s12  ;;  %5635 = vtanh.f32 %v3639_v5  ;;  %v3759_v7 = vmul.f32 %v3758_v55, %v12016_v31  ;;  %v3760_v41 = vmul.f32 %v3758_v55, %v12017_v43  ;;  %v12020_v37 = vld [vmem:[#allocation36_spill] sm:$0xff]  ;;  %v12022_v39 = vld [vmem:[#allocation34_spill] sm:$0xff]  ;;  %s10377_s12 = sld [smem:[#allocation2 + $0x8e]] }
 0x338   : > { %12010 = vst [vmem:[#allocation53_spill] sm:$0xff] %v9793_v40  ;;  %v3761_v27 = vmul.f32 %v3758_v55, %v12018_v62  ;;  %5637 = vtanh.f32 %v3640_v38  ;;  %v3762_v40 = vmul.f32 %v3758_v55, %v12019_v29  ;;  %v9810_v24 = vmul.f32 %v3758_v55, %v12020_v37  ;;  %v12023_v5 = vld [vmem:[#allocation42_spill] sm:$0xff] }
 0x339   : > { %12012 = vst [vmem:[#allocation54_spill] sm:$0xff] %v9796_v45  ;;  %v9813_v45 = vmul.f32 %v3758_v55, %v12021_v42  ;;  %v5628_v15 = vpop.eup %5627  ;;  %5639 = vtanh.f32 %v3641_v58  ;;  %v9819_v31 = vmul.f32 %v3758_v55, %v12023_v5  ;;  %v3775_v43 = vrot.slane %v3759_v7, 1 }
 0x33a   : > { %12014 = vst [vmem:[#allocation55_spill] sm:$0xff] %v9799_v13  ;;  %v5630_v13 = vpop.eup %5629  ;;  %5641 = vtanh.f32 %v3642_v52  ;;  %v3651_v38 = vadd.f32 1.0, %v5628_v15  ;;  %v3776_v62 = vrot.slane %v3760_v41, 1  ;;  %v3777_v29 = vrot.slane %v3761_v27, 1 }
 0x33b   : > { %12015 = vst [vmem:[#allocation56_spill] sm:$0xff] %v9803_v54  ;;  %v9816_v54 = vmul.f32 %v3758_v55, %v12022_v39  ;;  %v5632_v33 = vpop.eup %5631  ;;  %v3652_v37 = vadd.f32 1.0, %v5630_v13  ;;  %v3778_v8 = vrot.slane %v3762_v40, 1  ;;  %v9825_v15 = vadd.f32 %v3775_v43, %v3749_v49 }
 0x33c   : > { %v5634_v58 = vpop.eup %5633  ;;  %v3653_v14 = vadd.f32 1.0, %v5632_v33  ;;  %v3659_v39 = vmul.f32 0.5, %v3651_v38  ;;  %v9827_v41 = vadd.f32 %v3776_v62, %v3750_v16  ;;  %v9832_v26 = vadd.f32 %v3777_v29, %v3751_v2 }
 0x33d   : > { %v5636_v7 = vpop.eup %5635  ;;  %v3654_v5 = vadd.f32 1.0, %v5634_v58  ;;  %v3660_v52 = vmul.f32 0.5, %v3652_v37  ;;  %v9837_v58 = vadd.f32 %v3778_v8, %v3752_v50 }
 0x33e   : > { %v5638_v27 = vpop.eup %5637  ;;  %v3655_v40 = vadd.f32 1.0, %v5636_v7  ;;  %v3661_v13 = vmul.f32 0.5, %v3653_v14  ;;  %v9830_v42 = vmul.f32 %v3659_v39, %v9729_v23 }
 0x33f   : > { %v5640_v33 = vpop.eup %5639  ;;  %v3656_v38 = vadd.f32 1.0, %v5638_v27  ;;  %v3662_v25 = vmul.f32 0.5, %v3654_v5  ;;  %v9835_v55 = vmul.f32 %v3660_v52, %v9731_v11 }
 0x340   : > { %v5642_v49 = vpop.eup %5641  ;;  %v3657_v37 = vadd.f32 1.0, %v5640_v33  ;;  %v3663_v16 = vmul.f32 0.5, %v3655_v40  ;;  %v3669_v62 = vmul.f32 %v3661_v13, %v9733_v53  ;;  %v3677_v14 = vmul.f32 %v9719_v1, %v9830_v42 }
 0x341   : > { %v3658_v23 = vadd.f32 1.0, %v5642_v49  ;;  %v3664_v39 = vmul.f32 0.5, %v3656_v38  ;;  %v3670_v2 = vmul.f32 %v3662_v25, %v9735_v18  ;;  %v3678_v29 = vmul.f32 %v9719_v1, %v9835_v55 }
 0x342   : > { %v3665_v43 = vmul.f32 0.5, %v3657_v37  ;;  %v3671_v11 = vmul.f32 %v3663_v16, %v9737_v4  ;;  %v3679_v8 = vmul.f32 %v9719_v1, %v3669_v62  ;;  %v9848_v50 = vadd.f32 %v3677_v14, %v9542_v12 }
 0x343   : > { %v3666_v5 = vmul.f32 0.5, %v3658_v23  ;;  %v3672_v53 = vmul.f32 %v3664_v39, %v9739_v44  ;;  %v3680_v7 = vmul.f32 %v9719_v1, %v3670_v2  ;;  %v9853_v52 = vadd.f32 %v3678_v29, %v9547_v36 }
 0x344   : > { %v3673_v25 = vmul.f32 %v3665_v43, %v9741_v10  ;;  %v3681_v18 = vmul.f32 %v9719_v1, %v3671_v11  ;;  %v9858_v27 = vadd.f32 %v3679_v8, %v9552_v48  ;;  %v3695_v4 = vmul.f32 %v9722_v60, %v9830_v42 }
 0x345   : > { %v3674_v12 = vmul.f32 %v3666_v5, %v9743_v28  ;;  %v3682_v40 = vmul.f32 %v9719_v1, %v3672_v53  ;;  %v9865_v44 = vadd.f32 %v3680_v7, %v9559_v32  ;;  %v3696_v36 = vmul.f32 %v9722_v60, %v9835_v55 }
 0x346   : > { %v3683_v10 = vmul.f32 %v9719_v1, %v3673_v25  ;;  %v9871_v13 = vadd.f32 %v3681_v18, %v9565_v34  ;;  %v3697_v48 = vmul.f32 %v9722_v60, %v3669_v62  ;;  %v3698_v33 = vmul.f32 %v9722_v60, %v3670_v2 }
 0x347   : > { %v3684_v38 = vmul.f32 %v9719_v1, %v3674_v12  ;;  %v9877_v28 = vadd.f32 %v3682_v40, %v9571_v9  ;;  %v3699_v32 = vmul.f32 %v9722_v60, %v3671_v11  ;;  %v3700_v49 = vmul.f32 %v9722_v60, %v3672_v53 }
 0x348   : > { %v9882_v37 = vadd.f32 %v3683_v10, %v9576_v19  ;;  %v3701_v16 = vmul.f32 %v9722_v60, %v3673_v25  ;;  %v3702_v34 = vmul.f32 %v9722_v60, %v3674_v12  ;;  %v9887_v14 = vadd.f32 %v3695_v4, %v9581_v57 }
 0x349   : > { %v9890_v23 = vadd.f32 %v3684_v38, %v9584_v59  ;;  %v9893_v9 = vadd.f32 %v3696_v36, %v9587_v17  ;;  %v9896_v1 = vadd.f32 %v3697_v48, %v9590_v46  ;;  %v9899_v39 = vadd.f32 %v3698_v33, %v9593_v21 }
 0x34a   : > { %v9902_v19 = vadd.f32 %v3699_v32, %v9596_v61  ;;  %v9905_v60 = vadd.f32 %v3700_v49, %v9599_v22  ;;  %v9908_v57 = vadd.f32 %v3701_v16, %v9602_v35  ;;  %v9911_v59 = vadd.f32 %v3702_v34, %v9605_v63  ;;  %v12033_v32 = vld [vmem:[#allocation44_spill] sm:$0xff]  ;;  %v12039_v16 = vld [vmem:[#allocation50_spill] sm:$0xff] }
 0x34b   : > { %v3713_v17 = vmul.f32 %v9725_v56, %v9830_v42  ;;  %v3714_v46 = vmul.f32 %v9725_v56, %v9835_v55  ;;  %v3715_v21 = vmul.f32 %v9725_v56, %v3669_v62  ;;  %v3716_v61 = vmul.f32 %v9725_v56, %v3670_v2 }
 0x34c   : > { %v3717_v29 = vmul.f32 %v9725_v56, %v3671_v11  ;;  %v3718_v22 = vmul.f32 %v9725_v56, %v3672_v53  ;;  %v3719_v35 = vmul.f32 %v9725_v56, %v3673_v25  ;;  %v3720_v43 = vmul.f32 %v9725_v56, %v3674_v12 }
 0x34d   : > { %v9924_v63 = vadd.f32 %v3713_v17, %v9618_v20  ;;  %v9927_v8 = vadd.f32 %v3714_v46, %v9621_v6  ;;  %v9930_v5 = vadd.f32 %v3715_v21, %v9624_v47  ;;  %v9933_v7 = vadd.f32 %v3716_v61, %v9627_v30  ;;  %v12024_v20 = vld [vmem:[#allocation49_spill] sm:$0xff]  ;;  %v12026_v6 = vld [vmem:[#allocation51_spill] sm:$0xff]  ;;  %v12043_v21 = vld [vmem:[#allocation52_spill] sm:$0xff] }
 0x34e   : > { %v9936_v18 = vadd.f32 %v3717_v29, %v9630_v0  ;;  %v9939_v4 = vadd.f32 %v3718_v22, %v9633_v3  ;;  %v9942_v56 = vadd.f32 %v3719_v35, %v9636_v51  ;;  %v9945_v40 = vadd.f32 %v3720_v43, %v12024_v20  ;;  %v12041_v17 = vld [vmem:[#allocation47_spill] sm:$0xff]  ;;  %v12045_v22 = vld [vmem:[#allocation53_spill] sm:$0xff]  ;;  %v12047_v20 = vld [vmem:[#allocation54_spill] sm:$0xff] }
 0x34f   : > { %v3731_v36 = vmul.f32 %v12026_v6, %v9830_v42  ;;  %v3732_v47 = vmul.f32 %v12026_v6, %v9835_v55  ;;  %v3733_v30 = vmul.f32 %v12026_v6, %v3669_v62  ;;  %v3734_v0 = vmul.f32 %v12026_v6, %v3670_v2  ;;  %v12027_v42 = vld [vmem:[#allocation46_spill] sm:$0xff]  ;;  %v12029_v55 = vld [vmem:[#allocation20_spill] sm:$0xff]  ;;  %v12031_v62 = vld [vmem:[#allocation21_spill] sm:$0xff] }
 0x350   : > { %12025 = vst [vmem:[#allocation49_spill] sm:$0xff] %v9945_v40  ;;  %v3735_v3 = vmul.f32 %v12026_v6, %v3671_v11  ;;  %v3736_v51 = vmul.f32 %v12026_v6, %v3672_v53  ;;  %v3737_v10 = vmul.f32 %v12026_v6, %v3673_v25  ;;  %v3738_v48 = vmul.f32 %v12026_v6, %v3674_v12  ;;  %v12035_v11 = vld [vmem:[#allocation45_spill] sm:$0xff]  ;;  %v12037_v25 = vld [vmem:[#allocation48_spill] sm:$0xff] }
 0x351   : > { %v9962_v33 = vadd.f32 %v3731_v36, %v12027_v42  ;;  %v9965_v38 = vadd.f32 %v3732_v47, %v12029_v55  ;;  %v9968_v2 = vadd.f32 %v3733_v30, %v12031_v62  ;;  %v9971_v49 = vadd.f32 %v3734_v0, %v12033_v32  ;;  %v12049_v47 = vld [vmem:[#allocation55_spill] sm:$0xff]  ;;  %v12055_v62 = vld [vmem:[#allocation25_spill] sm:$0xff] }
 0x352   : > { %v9976_v53 = vadd.f32 %v3735_v3, %v12035_v11  ;;  %v9979_v12 = vadd.f32 %v3736_v51, %v12037_v25  ;;  %v9982_v34 = vadd.f32 %v3737_v10, %v12039_v16  ;;  %v9985_v46 = vadd.f32 %v3738_v48, %v12041_v17  ;;  %v12051_v3 = vld [vmem:[#allocation24_spill] sm:$0xff]  ;;  %v12056_v32 = vld [vmem:[#allocation37_spill] sm:$0xff]  ;;  %v12059_v17 = vld [vmem:[#allocation43_spill] sm:$0xff] }
 0x353   : > { %12028 = vst [vmem:[#allocation51_spill] sm:$0xff] %v9962_v33  ;;  %v12044_v61 = vrot.slane %v9810_v24, 1  ;;  %v12046_v35 = vrot.slane %v9813_v45, 1  ;;  %v12048_v6 = vrot.slane %v9816_v54, 1  ;;  %v12050_v30 = vrot.slane %v9819_v31, 1  ;;  %v12052_v51 = vld [vmem:[#allocation56_spill] sm:$0xff] }
 0x354   : > { %12030 = vst [vmem:[#allocation46_spill] sm:$0xff] %v9965_v38  ;;  %v3801_v10 = vmul.f32 %v12052_v51, %v12051_v3  ;;  %v12053_v48 = vld [vmem:[#allocation28_spill] sm:$0xff]  ;;  %v12054_v24 = vld [vmem:[#allocation33_spill] sm:$0xff]  ;;  %v3804_v45 = vmul.f32 %v12052_v51, %v12055_v62  ;;  %v3805_v54 = vmul.f32 %v12052_v51, %v12056_v32  ;;  %v12058_v31 = vld [vmem:[#allocation35_spill] sm:$0xff] }
 0x355   : > { %12032 = vst [vmem:[#allocation20_spill] sm:$0xff] %v9968_v2  ;;  %v3795_v29 = vadd.f32 %v12044_v61, %v12043_v21  ;;  %v3796_v43 = vadd.f32 %v12046_v35, %v12045_v22  ;;  %v3797_v36 = vadd.f32 %v12048_v6, %v12047_v20  ;;  %v3798_v0 = vadd.f32 %v12050_v30, %v12049_v47  ;;  %v12057_v11 = vld [vmem:[#allocation40_spill] sm:$0xff] }
 0x356   : > { %12034 = vst [vmem:[#allocation21_spill] sm:$0xff] %v9971_v49  ;;  %v3802_v42 = vmul.f32 %v12052_v51, %v12053_v48  ;;  %v3803_v55 = vmul.f32 %v12052_v51, %v12054_v24  ;;  %v3806_v25 = vmul.f32 %v12052_v51, %v12057_v11  ;;  %v3807_v16 = vmul.f32 %v12052_v51, %v12058_v31  ;;  %v12064_v49 = vld [vmem:[#allocation29_spill] sm:$0xff] }
 0x357   : > { %12036 = vst [vmem:[#allocation44_spill] sm:$0xff] %v9976_v53  ;;  %v3808_v21 = vmul.f32 %v12052_v51, %v12059_v17  ;;  %v3817_v61 = vrot.slane %v3801_v10, 2  ;;  %v3820_v20 = vrot.slane %v3804_v45, 2  ;;  %v3821_v6 = vrot.slane %v3805_v54, 2  ;;  %v12063_v53 = vld [vmem:[#allocation31_spill] sm:$0xff] }
 0x358   : > { %12038 = vst [vmem:[#allocation45_spill] sm:$0xff] %v9979_v12  ;;  %v3818_v22 = vrot.slane %v3802_v42, 2  ;;  %v3819_v35 = vrot.slane %v3803_v55, 2  ;;  %v3822_v47 = vrot.slane %v3806_v25, 2  ;;  %v3823_v30 = vrot.slane %v3807_v16, 2 }
 0x359   : > { %12040 = vst [vmem:[#allocation48_spill] sm:$0xff] %v9982_v34  ;;  %v3824_v32 = vrot.slane %v3808_v21, 2  ;;  %v3833_v11 = vadd.f32 %v3817_v61, %v9825_v15  ;;  %v3836_v51 = vadd.f32 %v3820_v20, %v9837_v58  ;;  %v3837_v10 = vadd.f32 %v3821_v6, %v3795_v29 }
 0x35a   : > { %12042 = vst [vmem:[#allocation50_spill] sm:$0xff] %v9985_v46  ;;  %v3834_v62 = vadd.f32 %v3818_v22, %v9827_v41  ;;  %v3835_v31 = vadd.f32 %v3819_v35, %v9832_v26  ;;  %v3838_v42 = vadd.f32 %v3822_v47, %v3796_v43  ;;  %v3839_v17 = vadd.f32 %v3823_v30, %v3797_v36 }
 0x35b   : > { %v3840_v55 = vadd.f32 %v3824_v32, %v3798_v0  ;;  %v3842_v45 = vstv %s9953_s11  ;;  %v10025_v54 = vstv %s9959_s14  ;;  %v10028_v25 = vstv %s9973_s16  ;;  %s10383_s11 = sld [smem:[#allocation2 + $0x10e]] }
 0x35c   : > { %v10031_v16 = vstv %s9987_s21  ;;  %v10035_v15 = vadd.f32 %v3842_v45, %v3833_v11  ;;  %v10037_v26 = vadd.f32 %v3842_v45, %v3834_v62  ;;  %v10039_v41 = vadd.f32 %v3842_v45, %v3835_v31  ;;  %s10565_s14 = sld [smem:[#allocation5 + $0xe]] }
 0x35d   : > { %v10041_v58 = vadd.f32 %v3842_v45, %v3836_v51  ;;  %v10043_v29 = vadd.f32 %v3842_v45, %v3837_v10  ;;  %v10045_v43 = vadd.f32 %v3842_v45, %v3838_v42  ;;  %v10047_v36 = vadd.f32 %v3842_v45, %v3839_v17  ;;  %s10571_s16 = sld [smem:[#allocation7 + $0x700]] }
 0x35e   : > { %v10049_v0 = vadd.f32 %v3842_v45, %v3840_v55  ;;  %v3851_v32 = vmul.f32 %v10035_v15, %v10035_v15  ;;  %v3852_v11 = vmul.f32 %v10037_v26, %v10037_v26  ;;  %v3853_v62 = vmul.f32 %v10039_v41, %v10039_v41  ;;  %s10585_s21 = sld [smem:[#allocation7 + $0x701]] }
 0x35f   : > { %v3854_v31 = vmul.f32 %v10041_v58, %v10041_v58  ;;  %v3855_v21 = vmul.f32 %v10043_v29, %v10043_v29  ;;  %v3856_v17 = vmul.f32 %v10045_v43, %v10045_v43  ;;  %v3857_v61 = vmul.f32 %v10047_v36, %v10047_v36 }
 0x360   : > { %v3858_v22 = vmul.f32 %v10049_v0, %v10049_v0  ;;  %v3859_v35 = vmul.f32 %v3851_v32, %v10035_v15  ;;  %v3860_v20 = vmul.f32 %v3852_v11, %v10037_v26  ;;  %v3861_v6 = vmul.f32 %v3853_v62, %v10039_v41 }
 0x361   : > { %v3862_v47 = vmul.f32 %v3854_v31, %v10041_v58  ;;  %v3863_v30 = vmul.f32 %v3855_v21, %v10043_v29  ;;  %v3864_v51 = vmul.f32 %v3856_v17, %v10045_v43  ;;  %v3865_v10 = vmul.f32 %v3857_v61, %v10047_v36 }
 0x362   : > { %v3866_v42 = vmul.f32 %v3858_v22, %v10049_v0  ;;  %v3867_v55 = vmul.f32 0.044715, %v3859_v35  ;;  %v3868_v45 = vmul.f32 0.044715, %v3860_v20  ;;  %v3869_v32 = vmul.f32 0.044715, %v3861_v6 }
 0x363   : > { %v10080_v11 = vstv %s10021_s22  ;;  %v3870_v62 = vmul.f32 0.044715, %v3862_v47  ;;  %v3871_v24 = vmul.f32 0.044715, %v3863_v30  ;;  %v3872_v31 = vmul.f32 0.044715, %v3864_v51 }
 0x364   : > { %12060 = vst [vmem:[#allocation47_spill] sm:$0xff] %v10080_v11  ;;  %v3996_v48 = vstv %s10033_s24  ;;  %v3873_v3 = vmul.f32 0.044715, %v3865_v10  ;;  %v3874_v46 = vmul.f32 0.044715, %v3866_v42  ;;  %v3875_v21 = vadd.f32 %v3867_v55, %v10035_v15  ;;  %v12061_v55 = vld [vmem:[#allocation22_spill] sm:$0xff] }
 0x365   : > { %v3876_v17 = vadd.f32 %v3868_v45, %v10037_v26  ;;  %v3877_v61 = vadd.f32 %v3869_v32, %v10039_v41  ;;  %v3878_v22 = vadd.f32 %v3870_v62, %v10041_v58  ;;  %v3879_v35 = vadd.f32 %v3871_v24, %v10043_v29  ;;  %v12062_v24 = vld [vmem:[#allocation26_spill] sm:$0xff]  ;;  %s10599_s22 = sld [smem:[#allocation7 + $0x702]] }
 0x366   : > { %v3880_v20 = vadd.f32 %v3872_v31, %v10045_v43  ;;  %v3881_v6 = vadd.f32 %v3873_v3, %v10047_v36  ;;  %v3882_v47 = vadd.f32 %v3874_v46, %v10049_v0  ;;  %v3883_v30 = vmul.f32 0.7978846, %v3875_v21  ;;  %v12065_v21 = vld [vmem:[#allocation19_spill] sm:$0xff]  ;;  %s10633_s24 = sld [smem:[#allocation7 + $0x703]] }
 0x367   : > { %v3884_v51 = vmul.f32 0.7978846, %v3876_v17  ;;  %v3885_v10 = vmul.f32 0.7978846, %v3877_v61  ;;  %v3886_v42 = vmul.f32 0.7978846, %v3878_v22  ;;  %v3997_v45 = vmul.f32 %v3996_v48, %v12061_v55 }
 0x368   : > { %v3887_v34 = vmul.f32 0.7978846, %v3879_v35  ;;  %v3888_v32 = vmul.f32 0.7978846, %v3880_v20  ;;  %v3889_v12 = vmul.f32 0.7978846, %v3881_v6  ;;  %5643 = vtanh.f32 %v3883_v30 }
 0x369   : > { %v3890_v62 = vmul.f32 0.7978846, %v3882_v47  ;;  %5645 = vtanh.f32 %v3884_v51  ;;  %v3998_v31 = vmul.f32 %v3996_v48, %v12062_v24  ;;  %v3999_v3 = vmul.f32 %v3996_v48, %v12063_v53  ;;  %v12067_v61 = vld [vmem:[#allocation38_spill] sm:$0xff]  ;;  %v12071_v20 = vld [vmem:[#allocation41_spill] sm:$0xff]  ;;  %v12074_v51 = vld [vmem:[#allocation23_spill] sm:$0xff] }
 0x36a   : > { %v4000_v46 = vmul.f32 %v3996_v48, %v12064_v49  ;;  %5647 = vtanh.f32 %v3885_v10  ;;  %v10096_v17 = vmul.f32 %v3996_v48, %v12065_v21  ;;  %v10099_v22 = vmul.f32 %v3996_v48, %v12067_v61  ;;  %v12069_v35 = vld [vmem:[#allocation18_spill] sm:$0xff]  ;;  %v12075_v10 = vld [vmem:[#allocation27_spill] sm:$0xff]  ;;  %v12076_v21 = vld [vmem:[#allocation32_spill] sm:$0xff] }
 0x36b   : > { %v10102_v55 = vmul.f32 %v3996_v48, %v12069_v35  ;;  %5649 = vtanh.f32 %v3886_v42  ;;  %v10105_v6 = vmul.f32 %v3996_v48, %v12071_v20  ;;  %v4006_v47 = vstv %s10071_s25  ;;  %v12077_v61 = vld [vmem:[#allocation30_spill] sm:$0xff]  ;;  %v12079_v42 = vld [vmem:[#allocation39_spill] sm:$0xff]  ;;  %s10645_s25 = sld [smem:[#allocation2 + $0xf]] }
 0x36c   : > { %12066 = vst [vmem:[#allocation52_spill] sm:$0xff] %v10096_v17  ;;  %v10109_v30 = vstv %s10077_s5  ;;  %5651 = vtanh.f32 %v3887_v34  ;;  %v4007_v49 = vmul.f32 %v4006_v47, %v12074_v51  ;;  %v4008_v53 = vmul.f32 %v4006_v47, %v12075_v10  ;;  %v12078_v17 = vld [vmem:[#allocation36_spill] sm:$0xff]  ;;  %v12080_v20 = vld [vmem:[#allocation34_spill] sm:$0xff]  ;;  %s10683_s5 = sld [smem:[#allocation2 + $0x8f]] }
 0x36d   : > { %12068 = vst [vmem:[#allocation53_spill] sm:$0xff] %v10099_v22  ;;  %v4009_v24 = vmul.f32 %v4006_v47, %v12076_v21  ;;  %5653 = vtanh.f32 %v3888_v32  ;;  %v4010_v22 = vmul.f32 %v4006_v47, %v12077_v61  ;;  %v10116_v35 = vmul.f32 %v4006_v47, %v12078_v17  ;;  %v12081_v34 = vld [vmem:[#allocation42_spill] sm:$0xff] }
 0x36e   : > { %12070 = vst [vmem:[#allocation54_spill] sm:$0xff] %v10102_v55  ;;  %v10119_v55 = vmul.f32 %v4006_v47, %v12079_v42  ;;  %v5644_v48 = vpop.eup %5643  ;;  %5655 = vtanh.f32 %v3889_v12  ;;  %v10125_v51 = vmul.f32 %v4006_v47, %v12081_v34  ;;  %v4023_v10 = vrot.slane %v4007_v49, 1 }
 0x36f   : > { %12072 = vst [vmem:[#allocation55_spill] sm:$0xff] %v10105_v6  ;;  %v5646_v6 = vpop.eup %5645  ;;  %5657 = vtanh.f32 %v3890_v62  ;;  %v3899_v32 = vadd.f32 1.0, %v5644_v48  ;;  %v4024_v21 = vrot.slane %v4008_v53, 1  ;;  %v4025_v61 = vrot.slane %v4009_v24, 1 }
 0x370   : > { %12073 = vst [vmem:[#allocation56_spill] sm:$0xff] %v10109_v30  ;;  %v10122_v30 = vmul.f32 %v4006_v47, %v12080_v20  ;;  %v5648_v2 = vpop.eup %5647  ;;  %v3900_v17 = vadd.f32 1.0, %v5646_v6  ;;  %v4026_v38 = vrot.slane %v4010_v22, 1  ;;  %v10131_v48 = vadd.f32 %v4023_v10, %v3997_v45 }
 0x371   : > { %v5650_v12 = vpop.eup %5649  ;;  %v3901_v11 = vadd.f32 1.0, %v5648_v2  ;;  %v3907_v20 = vmul.f32 0.5, %v3899_v32  ;;  %v10133_v53 = vadd.f32 %v4024_v21, %v3998_v31  ;;  %v10138_v33 = vadd.f32 %v4025_v61, %v3999_v3 }
 0x372   : > { %v5652_v49 = vpop.eup %5651  ;;  %v3902_v34 = vadd.f32 1.0, %v5650_v12  ;;  %v3908_v62 = vmul.f32 0.5, %v3900_v17  ;;  %v10143_v12 = vadd.f32 %v4026_v38, %v4000_v46 }
 0x373   : > { %v5654_v24 = vpop.eup %5653  ;;  %v3903_v22 = vadd.f32 1.0, %v5652_v49  ;;  %v3909_v6 = vmul.f32 0.5, %v3901_v11  ;;  %v10136_v42 = vmul.f32 %v3907_v20, %v10035_v15 }
 0x374   : > { %v5656_v2 = vpop.eup %5655  ;;  %v3904_v32 = vadd.f32 1.0, %v5654_v24  ;;  %v3910_v40 = vmul.f32 0.5, %v3902_v34  ;;  %v10141_v47 = vmul.f32 %v3908_v62, %v10037_v26 }
 0x375   : > { %v5658_v45 = vpop.eup %5657  ;;  %v3905_v17 = vadd.f32 1.0, %v5656_v2  ;;  %v3911_v31 = vmul.f32 0.5, %v3903_v22  ;;  %v3917_v21 = vmul.f32 %v3909_v6, %v10039_v41  ;;  %v3925_v11 = vmul.f32 %v10025_v54, %v10136_v42 }
 0x376   : > { %v3906_v15 = vadd.f32 1.0, %v5658_v45  ;;  %v3912_v20 = vmul.f32 0.5, %v3904_v32  ;;  %v3918_v3 = vmul.f32 %v3910_v40, %v10041_v58  ;;  %v3926_v61 = vmul.f32 %v10025_v54, %v10141_v47 }
 0x377   : > { %v3913_v10 = vmul.f32 0.5, %v3905_v17  ;;  %v3919_v26 = vmul.f32 %v3911_v31, %v10043_v29  ;;  %v3927_v38 = vmul.f32 %v10025_v54, %v3917_v21  ;;  %v10154_v46 = vadd.f32 %v3925_v11, %v9848_v50 }
 0x378   : > { %v3914_v34 = vmul.f32 0.5, %v3906_v15  ;;  %v3920_v41 = vmul.f32 %v3912_v20, %v10045_v43  ;;  %v3928_v49 = vmul.f32 %v10025_v54, %v3918_v3  ;;  %v10159_v62 = vadd.f32 %v3926_v61, %v9853_v52 }
 0x379   : > { %v3921_v40 = vmul.f32 %v3913_v10, %v10047_v36  ;;  %v3929_v58 = vmul.f32 %v10025_v54, %v3919_v26  ;;  %v10164_v24 = vadd.f32 %v3927_v38, %v9858_v27  ;;  %v3943_v29 = vmul.f32 %v10028_v25, %v10136_v42 }
 0x37a   : > { %v3922_v50 = vmul.f32 %v3914_v34, %v10049_v0  ;;  %v3930_v22 = vmul.f32 %v10025_v54, %v3920_v41  ;;  %v10171_v43 = vadd.f32 %v3928_v49, %v9865_v44  ;;  %v3944_v52 = vmul.f32 %v10028_v25, %v10141_v47 }
 0x37b   : > { %v3931_v36 = vmul.f32 %v10025_v54, %v3921_v40  ;;  %v10177_v6 = vadd.f32 %v3929_v58, %v9871_v13  ;;  %v3945_v27 = vmul.f32 %v10028_v25, %v3917_v21  ;;  %v3946_v2 = vmul.f32 %v10028_v25, %v3918_v3 }
 0x37c   : > { %v3932_v32 = vmul.f32 %v10025_v54, %v3922_v50  ;;  %v10183_v0 = vadd.f32 %v3930_v22, %v9877_v28  ;;  %v3947_v44 = vmul.f32 %v10028_v25, %v3919_v26  ;;  %v3948_v45 = vmul.f32 %v10028_v25, %v3920_v41 }
 0x37d   : > { %v10188_v17 = vadd.f32 %v3931_v36, %v9882_v37  ;;  %v3949_v31 = vmul.f32 %v10028_v25, %v3921_v40  ;;  %v3950_v13 = vmul.f32 %v10028_v25, %v3922_v50  ;;  %v10193_v11 = vadd.f32 %v3943_v29, %v9887_v14 }
 0x37e   : > { %v10196_v15 = vadd.f32 %v3932_v32, %v9890_v23  ;;  %v10199_v28 = vadd.f32 %v3944_v52, %v9893_v9  ;;  %v10202_v54 = vadd.f32 %v3945_v27, %v9896_v1  ;;  %v10205_v20 = vadd.f32 %v3946_v2, %v9899_v39 }
 0x37f   : > { %v10208_v37 = vadd.f32 %v3947_v44, %v9902_v19  ;;  %v10211_v25 = vadd.f32 %v3948_v45, %v9905_v60  ;;  %v10214_v14 = vadd.f32 %v3949_v31, %v9908_v57  ;;  %v10217_v23 = vadd.f32 %v3950_v13, %v9911_v59  ;;  %v12091_v44 = vld [vmem:[#allocation21_spill] sm:$0xff]  ;;  %v12097_v31 = vld [vmem:[#allocation48_spill] sm:$0xff] }
 0x380   : > { %v3961_v9 = vmul.f32 %v10031_v16, %v10136_v42  ;;  %v3962_v1 = vmul.f32 %v10031_v16, %v10141_v47  ;;  %v3963_v39 = vmul.f32 %v10031_v16, %v3917_v21  ;;  %v3964_v19 = vmul.f32 %v10031_v16, %v3918_v3 }
 0x381   : > { %v3965_v61 = vmul.f32 %v10031_v16, %v3919_v26  ;;  %v3966_v60 = vmul.f32 %v10031_v16, %v3920_v41  ;;  %v3967_v57 = vmul.f32 %v10031_v16, %v3921_v40  ;;  %v3968_v10 = vmul.f32 %v10031_v16, %v3922_v50 }
 0x382   : > { %v10230_v59 = vadd.f32 %v3961_v9, %v9924_v63  ;;  %v10233_v38 = vadd.f32 %v3962_v1, %v9927_v8  ;;  %v10236_v34 = vadd.f32 %v3963_v39, %v9930_v5  ;;  %v10239_v49 = vadd.f32 %v3964_v19, %v9933_v7  ;;  %v12082_v63 = vld [vmem:[#allocation49_spill] sm:$0xff]  ;;  %v12084_v8 = vld [vmem:[#allocation47_spill] sm:$0xff]  ;;  %v12099_v9 = vld [vmem:[#allocation50_spill] sm:$0xff] }
 0x383   : > { %v10242_v58 = vadd.f32 %v3965_v61, %v9936_v18  ;;  %v10245_v29 = vadd.f32 %v3966_v60, %v9939_v4  ;;  %v10248_v16 = vadd.f32 %v3967_v57, %v9942_v56  ;;  %v10251_v22 = vadd.f32 %v3968_v10, %v12082_v63  ;;  %v12101_v39 = vld [vmem:[#allocation52_spill] sm:$0xff]  ;;  %v12103_v60 = vld [vmem:[#allocation53_spill] sm:$0xff]  ;;  %v12105_v63 = vld [vmem:[#allocation54_spill] sm:$0xff] }
 0x384   : > { %v3979_v52 = vmul.f32 %v12084_v8, %v10136_v42  ;;  %v3980_v5 = vmul.f32 %v12084_v8, %v10141_v47  ;;  %v3981_v7 = vmul.f32 %v12084_v8, %v3917_v21  ;;  %v3982_v18 = vmul.f32 %v12084_v8, %v3918_v3  ;;  %v12085_v42 = vld [vmem:[#allocation51_spill] sm:$0xff]  ;;  %v12087_v47 = vld [vmem:[#allocation46_spill] sm:$0xff]  ;;  %v12089_v21 = vld [vmem:[#allocation20_spill] sm:$0xff] }
 0x385   : > { %12083 = vst [vmem:[#allocation49_spill] sm:$0xff] %v10251_v22  ;;  %v3983_v4 = vmul.f32 %v12084_v8, %v3919_v26  ;;  %v3984_v56 = vmul.f32 %v12084_v8, %v3920_v41  ;;  %v3985_v36 = vmul.f32 %v12084_v8, %v3921_v40  ;;  %v3986_v27 = vmul.f32 %v12084_v8, %v3922_v50  ;;  %v12093_v26 = vld [vmem:[#allocation44_spill] sm:$0xff]  ;;  %v12095_v40 = vld [vmem:[#allocation45_spill] sm:$0xff] }
 0x386   : > { %v10268_v2 = vadd.f32 %v3979_v52, %v12085_v42  ;;  %v10271_v32 = vadd.f32 %v3980_v5, %v12087_v47  ;;  %v10274_v3 = vadd.f32 %v3981_v7, %v12089_v21  ;;  %v10277_v45 = vadd.f32 %v3982_v18, %v12091_v44  ;;  %v12107_v5 = vld [vmem:[#allocation55_spill] sm:$0xff]  ;;  %v12113_v21 = vld [vmem:[#allocation25_spill] sm:$0xff] }
 0x387   : > { %v10282_v41 = vadd.f32 %v3983_v4, %v12093_v26  ;;  %v10285_v50 = vadd.f32 %v3984_v56, %v12095_v40  ;;  %v10288_v13 = vadd.f32 %v3985_v36, %v12097_v31  ;;  %v10291_v1 = vadd.f32 %v3986_v27, %v12099_v9  ;;  %v12109_v4 = vld [vmem:[#allocation24_spill] sm:$0xff]  ;;  %v12114_v44 = vld [vmem:[#allocation37_spill] sm:$0xff]  ;;  %v12117_v9 = vld [vmem:[#allocation43_spill] sm:$0xff] }
 0x388   : > { %12086 = vst [vmem:[#allocation47_spill] sm:$0xff] %v10268_v2  ;;  %v12102_v19 = vrot.slane %v10116_v35, 1  ;;  %v12104_v57 = vrot.slane %v10119_v55, 1  ;;  %v12106_v8 = vrot.slane %v10122_v30, 1  ;;  %v12108_v7 = vrot.slane %v10125_v51, 1  ;;  %v12110_v56 = vld [vmem:[#allocation56_spill] sm:$0xff] }
 0x389   : > { %12088 = vst [vmem:[#allocation51_spill] sm:$0xff] %v10271_v32  ;;  %v4049_v36 = vmul.f32 %v12110_v56, %v12109_v4  ;;  %v12111_v27 = vld [vmem:[#allocation28_spill] sm:$0xff]  ;;  %v12112_v35 = vld [vmem:[#allocation33_spill] sm:$0xff]  ;;  %v4052_v55 = vmul.f32 %v12110_v56, %v12113_v21  ;;  %v4053_v30 = vmul.f32 %v12110_v56, %v12114_v44  ;;  %v12116_v51 = vld [vmem:[#allocation35_spill] sm:$0xff] }
 0x38a   : > { %12090 = vst [vmem:[#allocation46_spill] sm:$0xff] %v10274_v3  ;;  %v4043_v61 = vadd.f32 %v12102_v19, %v12101_v39  ;;  %v4044_v10 = vadd.f32 %v12104_v57, %v12103_v60  ;;  %v4045_v52 = vadd.f32 %v12106_v8, %v12105_v63  ;;  %v4046_v18 = vadd.f32 %v12108_v7, %v12107_v5  ;;  %v12115_v26 = vld [vmem:[#allocation40_spill] sm:$0xff] }
 0x38b   : > { %12092 = vst [vmem:[#allocation20_spill] sm:$0xff] %v10277_v45  ;;  %v4050_v42 = vmul.f32 %v12110_v56, %v12111_v27  ;;  %v4051_v47 = vmul.f32 %v12110_v56, %v12112_v35  ;;  %v4054_v40 = vmul.f32 %v12110_v56, %v12115_v26  ;;  %v4055_v31 = vmul.f32 %v12110_v56, %v12116_v51  ;;  %v12122_v45 = vld [vmem:[#allocation29_spill] sm:$0xff] }
 0x38c   : > { %12094 = vst [vmem:[#allocation21_spill] sm:$0xff] %v10282_v41  ;;  %v4056_v39 = vmul.f32 %v12110_v56, %v12117_v9  ;;  %v4065_v19 = vrot.slane %v4049_v36, 2  ;;  %v4068_v63 = vrot.slane %v4052_v55, 2  ;;  %v4069_v8 = vrot.slane %v4053_v30, 2  ;;  %v12121_v41 = vld [vmem:[#allocation31_spill] sm:$0xff] }
 0x38d   : > { %12096 = vst [vmem:[#allocation44_spill] sm:$0xff] %v10285_v50  ;;  %v4066_v60 = vrot.slane %v4050_v42, 2  ;;  %v4067_v57 = vrot.slane %v4051_v47, 2  ;;  %v4070_v5 = vrot.slane %v4054_v40, 2  ;;  %v4071_v7 = vrot.slane %v4055_v31, 2 }
 0x38e   : > { %12098 = vst [vmem:[#allocation45_spill] sm:$0xff] %v10288_v13  ;;  %v4072_v44 = vrot.slane %v4056_v39, 2  ;;  %v4081_v26 = vadd.f32 %v4065_v19, %v10131_v48  ;;  %v4084_v56 = vadd.f32 %v4068_v63, %v10143_v12  ;;  %v4085_v36 = vadd.f32 %v4069_v8, %v4043_v61 }
 0x38f   : > { %12100 = vst [vmem:[#allocation48_spill] sm:$0xff] %v10291_v1  ;;  %v4082_v21 = vadd.f32 %v4066_v60, %v10133_v53  ;;  %v4083_v51 = vadd.f32 %v4067_v57, %v10138_v33  ;;  %v4086_v42 = vadd.f32 %v4070_v5, %v4044_v10  ;;  %v4087_v9 = vadd.f32 %v4071_v7, %v4045_v52 }
 0x390   : > { %v4088_v47 = vadd.f32 %v4072_v44, %v4046_v18  ;;  %v4090_v55 = vstv %s10259_s9  ;;  %v10331_v30 = vstv %s10265_s13  ;;  %v10334_v40 = vstv %s10279_s19  ;;  %s10689_s9 = sld [smem:[#allocation2 + $0x10f]] }
 0x391   : > { %v10337_v31 = vstv %s10293_s20  ;;  %v10341_v48 = vadd.f32 %v4090_v55, %v4081_v26  ;;  %v10343_v33 = vadd.f32 %v4090_v55, %v4082_v21  ;;  %v10345_v53 = vadd.f32 %v4090_v55, %v4083_v51  ;;  %s5311_s13 = sld [smem:[#allocation5 + $0xf]] }
 0x392   : > { %v10347_v12 = vadd.f32 %v4090_v55, %v4084_v56  ;;  %v10349_v61 = vadd.f32 %v4090_v55, %v4085_v36  ;;  %v10351_v10 = vadd.f32 %v4090_v55, %v4086_v42  ;;  %v10353_v52 = vadd.f32 %v4090_v55, %v4087_v9  ;;  %s5312_s19 = sld [smem:[#allocation7 + $0x780]] }
 0x393   : > { %v10355_v18 = vadd.f32 %v4090_v55, %v4088_v47  ;;  %v4099_v44 = vmul.f32 %v10341_v48, %v10341_v48  ;;  %v4100_v26 = vmul.f32 %v10343_v33, %v10343_v33  ;;  %v4101_v21 = vmul.f32 %v10345_v53, %v10345_v53  ;;  %s5313_s20 = sld [smem:[#allocation7 + $0x781]] }
 0x394   : > { %v4102_v51 = vmul.f32 %v10347_v12, %v10347_v12  ;;  %v4103_v39 = vmul.f32 %v10349_v61, %v10349_v61  ;;  %v4104_v9 = vmul.f32 %v10351_v10, %v10351_v10  ;;  %v4105_v19 = vmul.f32 %v10353_v52, %v10353_v52 }
 0x395   : > { %v4106_v60 = vmul.f32 %v10355_v18, %v10355_v18  ;;  %v4107_v57 = vmul.f32 %v4099_v44, %v10341_v48  ;;  %v4108_v63 = vmul.f32 %v4100_v26, %v10343_v33  ;;  %v4109_v8 = vmul.f32 %v4101_v21, %v10345_v53 }
 0x396   : > { %v4110_v5 = vmul.f32 %v4102_v51, %v10347_v12  ;;  %v4111_v7 = vmul.f32 %v4103_v39, %v10349_v61  ;;  %v4112_v56 = vmul.f32 %v4104_v9, %v10351_v10  ;;  %v4113_v36 = vmul.f32 %v4105_v19, %v10353_v52 }
 0x397   : > { %v4114_v42 = vmul.f32 %v4106_v60, %v10355_v18  ;;  %v4115_v47 = vmul.f32 0.044715, %v4107_v57  ;;  %v4116_v55 = vmul.f32 0.044715, %v4108_v63  ;;  %v4117_v44 = vmul.f32 0.044715, %v4109_v8 }
 0x398   : > { %v10386_v26 = vstv %s10327_s23  ;;  %v4118_v21 = vmul.f32 0.044715, %v4110_v5  ;;  %v4119_v35 = vmul.f32 0.044715, %v4111_v7  ;;  %v4120_v51 = vmul.f32 0.044715, %v4112_v56 }
 0x399   : > { %12118 = vst [vmem:[#allocation50_spill] sm:$0xff] %v10386_v26  ;;  %v4244_v27 = vstv %s10339_s26  ;;  %v4121_v4 = vmul.f32 0.044715, %v4113_v36  ;;  %v4122_v1 = vmul.f32 0.044715, %v4114_v42  ;;  %v4123_v39 = vadd.f32 %v4115_v47, %v10341_v48  ;;  %v12119_v47 = vld [vmem:[#allocation22_spill] sm:$0xff] }
 0x39a   : > { %v4124_v9 = vadd.f32 %v4116_v55, %v10343_v33  ;;  %v4125_v19 = vadd.f32 %v4117_v44, %v10345_v53  ;;  %v4126_v60 = vadd.f32 %v4118_v21, %v10347_v12  ;;  %v4127_v57 = vadd.f32 %v4119_v35, %v10349_v61  ;;  %v12120_v35 = vld [vmem:[#allocation26_spill] sm:$0xff]  ;;  %s5314_s23 = sld [smem:[#allocation7 + $0x782]] }
 0x39b   : > { %v4128_v63 = vadd.f32 %v4120_v51, %v10351_v10  ;;  %v4129_v8 = vadd.f32 %v4121_v4, %v10353_v52  ;;  %v4130_v5 = vadd.f32 %v4122_v1, %v10355_v18  ;;  %v4131_v7 = vmul.f32 0.7978846, %v4123_v39  ;;  %v12123_v39 = vld [vmem:[#allocation19_spill] sm:$0xff]  ;;  %s5315_s26 = sld [smem:[#allocation7 + $0x783]] }
 0x39c   : > { %v4132_v56 = vmul.f32 0.7978846, %v4124_v9  ;;  %v4133_v36 = vmul.f32 0.7978846, %v4125_v19  ;;  %v4134_v42 = vmul.f32 0.7978846, %v4126_v60  ;;  %v4245_v55 = vmul.f32 %v4244_v27, %v12119_v47 }
 0x39d   : > { %v4135_v13 = vmul.f32 0.7978846, %v4127_v57  ;;  %v4136_v44 = vmul.f32 0.7978846, %v4128_v63  ;;  %v4137_v50 = vmul.f32 0.7978846, %v4129_v8  ;;  %5659 = vtanh.f32 %v4131_v7 }
 0x39e   : > { %v4138_v21 = vmul.f32 0.7978846, %v4130_v5  ;;  %5661 = vtanh.f32 %v4132_v56  ;;  %v4246_v51 = vmul.f32 %v4244_v27, %v12120_v35  ;;  %v4247_v4 = vmul.f32 %v4244_v27, %v12121_v41  ;;  %v12125_v19 = vld [vmem:[#allocation38_spill] sm:$0xff]  ;;  %v12129_v63 = vld [vmem:[#allocation41_spill] sm:$0xff]  ;;  %v12132_v56 = vld [vmem:[#allocation23_spill] sm:$0xff] }
 0x39f   : > { %v4248_v1 = vmul.f32 %v4244_v27, %v12122_v45  ;;  %5663 = vtanh.f32 %v4133_v36  ;;  %v10402_v9 = vmul.f32 %v4244_v27, %v12123_v39  ;;  %v10405_v60 = vmul.f32 %v4244_v27, %v12125_v19  ;;  %v12127_v57 = vld [vmem:[#allocation18_spill] sm:$0xff]  ;;  %v12133_v36 = vld [vmem:[#allocation27_spill] sm:$0xff]  ;;  %v12134_v39 = vld [vmem:[#allocation32_spill] sm:$0xff] }
 0x3a0   : > { %v10408_v47 = vmul.f32 %v4244_v27, %v12127_v57  ;;  %5665 = vtanh.f32 %v4134_v42  ;;  %v10411_v8 = vmul.f32 %v4244_v27, %v12129_v63  ;;  %v4254_v5 = vstv %s10377_s12  ;;  %v12135_v19 = vld [vmem:[#allocation30_spill] sm:$0xff]  ;;  %v12137_v42 = vld [vmem:[#allocation39_spill] sm:$0xff]  ;;  %s4740_s12 = sld [smem:[#allocation8]] }
 0x3a1   : > { %12124 = vst [vmem:[#allocation52_spill] sm:$0xff] %v10402_v9  ;;  %v10415_v7 = vstv %s10383_s11  ;;  %5667 = vtanh.f32 %v4135_v13  ;;  %v4255_v45 = vmul.f32 %v4254_v5, %v12132_v56  ;;  %v4256_v41 = vmul.f32 %v4254_v5, %v12133_v36  ;;  %v12136_v9 = vld [vmem:[#allocation36_spill] sm:$0xff]  ;;  %v12138_v63 = vld [vmem:[#allocation34_spill] sm:$0xff] }
 0x3a2   : > { %12126 = vst [vmem:[#allocation53_spill] sm:$0xff] %v10405_v60  ;;  %v4257_v35 = vmul.f32 %v4254_v5, %v12134_v39  ;;  %5669 = vtanh.f32 %v4136_v44  ;;  %v4258_v60 = vmul.f32 %v4254_v5, %v12135_v19  ;;  %v10422_v57 = vmul.f32 %v4254_v5, %v12136_v9  ;;  %v12139_v13 = vld [vmem:[#allocation42_spill] sm:$0xff] }
 0x3a3   : > { %12128 = vst [vmem:[#allocation54_spill] sm:$0xff] %v10408_v47  ;;  %v10425_v47 = vmul.f32 %v4254_v5, %v12137_v42  ;;  %v5660_v27 = vpop.eup %5659  ;;  %5671 = vtanh.f32 %v4137_v50  ;;  %v10431_v56 = vmul.f32 %v4254_v5, %v12139_v13  ;;  %v4271_v36 = vrot.slane %v4255_v45, 1 }
 0x3a4   : > { %12130 = vst [vmem:[#allocation55_spill] sm:$0xff] %v10411_v8  ;;  %v5662_v8 = vpop.eup %5661  ;;  %5673 = vtanh.f32 %v4138_v21  ;;  %v4147_v44 = vadd.f32 1.0, %v5660_v27  ;;  %v4272_v39 = vrot.slane %v4256_v41, 1  ;;  %v4273_v19 = vrot.slane %v4257_v35, 1 }
 0x3a5   : > { %12131 = vst [vmem:[#allocation56_spill] sm:$0xff] %v10415_v7  ;;  %v10428_v7 = vmul.f32 %v4254_v5, %v12138_v63  ;;  %v5664_v3 = vpop.eup %5663  ;;  %v4148_v9 = vadd.f32 1.0, %v5662_v8  ;;  %v4274_v32 = vrot.slane %v4258_v60, 1  ;;  %v10437_v27 = vadd.f32 %v4271_v36, %v4245_v55 }
 0x3a6   : > { %v5666_v50 = vpop.eup %5665  ;;  %v4149_v26 = vadd.f32 1.0, %v5664_v3  ;;  %v4155_v63 = vmul.f32 0.5, %v4147_v44  ;;  %v10439_v41 = vadd.f32 %v4272_v39, %v4246_v51  ;;  %v10444_v2 = vadd.f32 %v4273_v19, %v4247_v4 }
 0x3a7   : > { %v5668_v45 = vpop.eup %5667  ;;  %v4150_v13 = vadd.f32 1.0, %v5666_v50  ;;  %v4156_v21 = vmul.f32 0.5, %v4148_v9  ;;  %v10449_v50 = vadd.f32 %v4274_v32, %v4248_v1 }
 0x3a8   : > { %v5670_v35 = vpop.eup %5669  ;;  %v4151_v60 = vadd.f32 1.0, %v5668_v45  ;;  %v4157_v8 = vmul.f32 0.5, %v4149_v26  ;;  %v10442_v42 = vmul.f32 %v4155_v63, %v10341_v48 }
 0x3a9   : > { %v5672_v3 = vpop.eup %5671  ;;  %v4152_v44 = vadd.f32 1.0, %v5670_v35  ;;  %v4158_v22 = vmul.f32 0.5, %v4150_v13  ;;  %v10447_v5 = vmul.f32 %v4156_v21, %v10343_v33 }
 0x3aa   : > { %v5674_v55 = vpop.eup %5673  ;;  %v4153_v9 = vadd.f32 1.0, %v5672_v3  ;;  %v4159_v51 = vmul.f32 0.5, %v4151_v60  ;;  %v4165_v39 = vmul.f32 %v4157_v8, %v10345_v53  ;;  %v4173_v26 = vmul.f32 %v10331_v30, %v10442_v42 }
 0x3ab   : > { %v4154_v48 = vadd.f32 1.0, %v5674_v55  ;;  %v4160_v63 = vmul.f32 0.5, %v4152_v44  ;;  %v4166_v4 = vmul.f32 %v4158_v22, %v10347_v12  ;;  %v4174_v19 = vmul.f32 %v10331_v30, %v10447_v5 }
 0x3ac   : > { %v4161_v36 = vmul.f32 0.5, %v4153_v9  ;;  %v4167_v33 = vmul.f32 %v4159_v51, %v10349_v61  ;;  %v4175_v32 = vmul.f32 %v10331_v30, %v4165_v39  ;;  %v10460_v1 = vadd.f32 %v4173_v26, %v10154_v46 }
 0x3ad   : > { %v4162_v13 = vmul.f32 0.5, %v4154_v48  ;;  %v4168_v53 = vmul.f32 %v4160_v63, %v10351_v10  ;;  %v4176_v45 = vmul.f32 %v10331_v30, %v4166_v4  ;;  %v10465_v21 = vadd.f32 %v4174_v19, %v10159_v62 }
 0x3ae   : > { %v4169_v22 = vmul.f32 %v4161_v36, %v10353_v52  ;;  %v4177_v12 = vmul.f32 %v10331_v30, %v4167_v33  ;;  %v10470_v35 = vadd.f32 %v4175_v32, %v10164_v24  ;;  %v4191_v61 = vmul.f32 %v10334_v40, %v10442_v42 }
 0x3af   : > { %v4170_v46 = vmul.f32 %v4162_v13, %v10355_v18  ;;  %v4178_v60 = vmul.f32 %v10331_v30, %v4168_v53  ;;  %v10477_v10 = vadd.f32 %v4176_v45, %v10171_v43  ;;  %v4192_v62 = vmul.f32 %v10334_v40, %v10447_v5 }
 0x3b0   : > { %v4179_v52 = vmul.f32 %v10331_v30, %v4169_v22  ;;  %v10483_v8 = vadd.f32 %v4177_v12, %v10177_v6  ;;  %v4193_v24 = vmul.f32 %v10334_v40, %v4165_v39  ;;  %v4194_v3 = vmul.f32 %v10334_v40, %v4166_v4 }
 0x3b1   : > { %v4180_v44 = vmul.f32 %v10331_v30, %v4170_v46  ;;  %v10489_v18 = vadd.f32 %v4178_v60, %v10183_v0  ;;  %v4195_v43 = vmul.f32 %v10334_v40, %v4167_v33  ;;  %v4196_v55 = vmul.f32 %v10334_v40, %v4168_v53 }
 0x3b2   : > { %v10494_v9 = vadd.f32 %v4179_v52, %v10188_v17  ;;  %v4197_v51 = vmul.f32 %v10334_v40, %v4169_v22  ;;  %v4198_v6 = vmul.f32 %v10334_v40, %v4170_v46  ;;  %v10499_v26 = vadd.f32 %v4191_v61, %v10193_v11 }
 0x3b3   : > { %v10502_v48 = vadd.f32 %v4180_v44, %v10196_v15  ;;  %v10505_v0 = vadd.f32 %v4192_v62, %v10199_v28  ;;  %v10508_v30 = vadd.f32 %v4193_v24, %v10202_v54  ;;  %v10511_v63 = vadd.f32 %v4194_v3, %v10205_v20 }
 0x3b4   : > { %v10514_v17 = vadd.f32 %v4195_v43, %v10208_v37  ;;  %v10517_v40 = vadd.f32 %v4196_v55, %v10211_v25  ;;  %v10520_v11 = vadd.f32 %v4197_v51, %v10214_v14  ;;  %v10523_v15 = vadd.f32 %v4198_v6, %v10217_v23  ;;  %v12149_v43 = vld [vmem:[#allocation20_spill] sm:$0xff]  ;;  %v12155_v51 = vld [vmem:[#allocation45_spill] sm:$0xff] }
 0x3b5   : > { %v4209_v28 = vmul.f32 %v10337_v31, %v10442_v42  ;;  %v4210_v54 = vmul.f32 %v10337_v31, %v10447_v5  ;;  %v4211_v20 = vmul.f32 %v10337_v31, %v4165_v39  ;;  %v4212_v37 = vmul.f32 %v10337_v31, %v4166_v4 }
 0x3b6   : > { %v4213_v19 = vmul.f32 %v10337_v31, %v4167_v33  ;;  %v4214_v25 = vmul.f32 %v10337_v31, %v4168_v53  ;;  %v4215_v14 = vmul.f32 %v10337_v31, %v4169_v22  ;;  %v4216_v36 = vmul.f32 %v10337_v31, %v4170_v46 }
 0x3b7   : > { %v10536_v23 = vadd.f32 %v4209_v28, %v10230_v59  ;;  %v10539_v32 = vadd.f32 %v4210_v54, %v10233_v38  ;;  %v10542_v13 = vadd.f32 %v4211_v20, %v10236_v34  ;;  %v10545_v45 = vadd.f32 %v4212_v37, %v10239_v49  ;;  %v12140_v59 = vld [vmem:[#allocation49_spill] sm:$0xff]  ;;  %v12142_v38 = vld [vmem:[#allocation50_spill] sm:$0xff]  ;;  %v12157_v28 = vld [vmem:[#allocation48_spill] sm:$0xff] }
 0x3b8   : > { %v10548_v12 = vadd.f32 %v4213_v19, %v10242_v58  ;;  %v10551_v61 = vadd.f32 %v4214_v25, %v10245_v29  ;;  %v10554_v31 = vadd.f32 %v4215_v14, %v10248_v16  ;;  %v10557_v60 = vadd.f32 %v4216_v36, %v12140_v59  ;;  %v12159_v20 = vld [vmem:[#allocation52_spill] sm:$0xff]  ;;  %v12161_v25 = vld [vmem:[#allocation53_spill] sm:$0xff]  ;;  %v12163_v59 = vld [vmem:[#allocation54_spill] sm:$0xff] }
 0x3b9   : > { %v4227_v62 = vmul.f32 %v12142_v38, %v10442_v42  ;;  %v4228_v34 = vmul.f32 %v12142_v38, %v10447_v5  ;;  %v4229_v49 = vmul.f32 %v12142_v38, %v4165_v39  ;;  %v4230_v58 = vmul.f32 %v12142_v38, %v4166_v4  ;;  %v12143_v42 = vld [vmem:[#allocation47_spill] sm:$0xff]  ;;  %v12147_v39 = vld [vmem:[#allocation46_spill] sm:$0xff] }
 0x3ba   : > { %12141 = vst [vmem:[#allocation49_spill] sm:$0xff] %v10557_v60  ;;  %v4231_v29 = vmul.f32 %v12142_v38, %v4167_v33  ;;  %v4232_v16 = vmul.f32 %v12142_v38, %v4168_v53  ;;  %v4233_v52 = vmul.f32 %v12142_v38, %v4169_v22  ;;  %v4234_v24 = vmul.f32 %v12142_v38, %v4170_v46  ;;  %v12145_v5 = vld [vmem:[#allocation51_spill] sm:$0xff]  ;;  %v12151_v33 = vld [vmem:[#allocation21_spill] sm:$0xff]  ;;  %v12153_v22 = vld [vmem:[#allocation44_spill] sm:$0xff] }
 0x3bb   : > { %v10574_v3 = vadd.f32 %v4227_v62, %v12143_v42  ;;  %v10577_v44 = vadd.f32 %v4228_v34, %v12145_v5  ;;  %v10580_v4 = vadd.f32 %v4229_v49, %v12147_v39  ;;  %v10583_v55 = vadd.f32 %v4230_v58, %v12149_v43  ;;  %v12165_v34 = vld [vmem:[#allocation55_spill] sm:$0xff]  ;;  %v12171_v39 = vld [vmem:[#allocation25_spill] sm:$0xff] }
 0x3bc   : > { %v10588_v53 = vadd.f32 %v4231_v29, %v12151_v33  ;;  %v10591_v46 = vadd.f32 %v4232_v16, %v12153_v22  ;;  %v10594_v6 = vadd.f32 %v4233_v52, %v12155_v51  ;;  %v10597_v54 = vadd.f32 %v4234_v24, %v12157_v28  ;;  %v12167_v29 = vld [vmem:[#allocation24_spill] sm:$0xff]  ;;  %v12172_v43 = vld [vmem:[#allocation37_spill] sm:$0xff]  ;;  %v12175_v28 = vld [vmem:[#allocation43_spill] sm:$0xff] }
 0x3bd   : > { %12144 = vst [vmem:[#allocation50_spill] sm:$0xff] %v10574_v3  ;;  %v12160_v37 = vrot.slane %v10422_v57, 1  ;;  %v12162_v14 = vrot.slane %v10425_v47, 1  ;;  %v12164_v38 = vrot.slane %v10428_v7, 1  ;;  %v12166_v49 = vrot.slane %v10431_v56, 1  ;;  %v12168_v16 = vld [vmem:[#allocation56_spill] sm:$0xff] }
 0x3be   : > { %12146 = vst [vmem:[#allocation47_spill] sm:$0xff] %v10577_v44  ;;  %v4297_v52 = vmul.f32 %v12168_v16, %v12167_v29  ;;  %v12169_v24 = vld [vmem:[#allocation28_spill] sm:$0xff]  ;;  %v12170_v57 = vld [vmem:[#allocation33_spill] sm:$0xff]  ;;  %v4300_v47 = vmul.f32 %v12168_v16, %v12171_v39  ;;  %v4301_v7 = vmul.f32 %v12168_v16, %v12172_v43  ;;  %v12174_v56 = vld [vmem:[#allocation35_spill] sm:$0xff] }
 0x3bf   : > { %12148 = vst [vmem:[#allocation51_spill] sm:$0xff] %v10580_v4  ;;  %v4291_v19 = vadd.f32 %v12160_v37, %v12159_v20  ;;  %v4292_v36 = vadd.f32 %v12162_v14, %v12161_v25  ;;  %v4293_v62 = vadd.f32 %v12164_v38, %v12163_v59  ;;  %v4294_v58 = vadd.f32 %v12166_v49, %v12165_v34  ;;  %v12173_v33 = vld [vmem:[#allocation40_spill] sm:$0xff] }
 0x3c0   : > { %12150 = vst [vmem:[#allocation46_spill] sm:$0xff] %v10583_v55  ;;  %v4298_v42 = vmul.f32 %v12168_v16, %v12169_v24  ;;  %v4299_v5 = vmul.f32 %v12168_v16, %v12170_v57  ;;  %v4302_v22 = vmul.f32 %v12168_v16, %v12173_v33  ;;  %v4303_v51 = vmul.f32 %v12168_v16, %v12174_v56  ;;  %v12180_v55 = vld [vmem:[#allocation29_spill] sm:$0xff] }
 0x3c1   : > { %12152 = vst [vmem:[#allocation20_spill] sm:$0xff] %v10588_v53  ;;  %v4304_v20 = vmul.f32 %v12168_v16, %v12175_v28  ;;  %v4313_v37 = vrot.slane %v4297_v52, 2  ;;  %v4316_v59 = vrot.slane %v4300_v47, 2  ;;  %v4317_v38 = vrot.slane %v4301_v7, 2  ;;  %v12179_v53 = vld [vmem:[#allocation31_spill] sm:$0xff] }
 0x3c2   : > { %12154 = vst [vmem:[#allocation21_spill] sm:$0xff] %v10591_v46  ;;  %v4314_v25 = vrot.slane %v4298_v42, 2  ;;  %v4315_v14 = vrot.slane %v4299_v5, 2  ;;  %v4318_v34 = vrot.slane %v4302_v22, 2  ;;  %v4319_v49 = vrot.slane %v4303_v51, 2 }
 0x3c3   : > { %12156 = vst [vmem:[#allocation44_spill] sm:$0xff] %v10594_v6  ;;  %v4320_v43 = vrot.slane %v4304_v20, 2  ;;  %v4329_v33 = vadd.f32 %v4313_v37, %v10437_v27  ;;  %v4332_v16 = vadd.f32 %v4316_v59, %v10449_v50  ;;  %v4333_v52 = vadd.f32 %v4317_v38, %v4291_v19 }
 0x3c4   : > { %12158 = vst [vmem:[#allocation45_spill] sm:$0xff] %v10597_v54  ;;  %v4330_v39 = vadd.f32 %v4314_v25, %v10439_v41  ;;  %v4331_v56 = vadd.f32 %v4315_v14, %v10444_v2  ;;  %v4334_v42 = vadd.f32 %v4318_v34, %v4292_v36  ;;  %v4335_v28 = vadd.f32 %v4319_v49, %v4293_v62 }
 0x3c5   : > { %v4336_v5 = vadd.f32 %v4320_v43, %v4294_v58  ;;  %v4338_v47 = vstv %s10565_s14  ;;  %v10637_v7 = vstv %s10571_s16  ;;  %v10640_v22 = vstv %s10585_s21  ;;  %s11134_s16 = sld [smem:[#allocation8 + $0x3]]  ;;  %s445_s21 = sand.u32 1, %s5841_s28  }
 0x3c6   : > { %v10643_v51 = vstv %s10599_s22  ;;  %v10647_v27 = vadd.f32 %v4338_v47, %v4329_v33  ;;  %v10649_v2 = vadd.f32 %v4338_v47, %v4330_v39  ;;  %v10651_v41 = vadd.f32 %v4338_v47, %v4331_v56  ;;  %s5186_s22 = sshll.u32 %s445_s21, 4  ;;  %s5787_s14 = scalar_lea.hbm %s11285_s8, 32 }
 0x3c7   : > { %v10653_v50 = vadd.f32 %v4338_v47, %v4332_v16  ;;  %v10655_v19 = vadd.f32 %v4338_v47, %v4333_v52  ;;  %v10657_v36 = vadd.f32 %v4338_v47, %v4334_v42  ;;  %v10659_v62 = vadd.f32 %v4338_v47, %v4335_v28 }
 0x3c8   : > { %v10661_v58 = vadd.f32 %v4338_v47, %v4336_v5  ;;  %v4347_v43 = vmul.f32 %v10647_v27, %v10647_v27  ;;  %v4348_v33 = vmul.f32 %v10649_v2, %v10649_v2  ;;  %v4349_v39 = vmul.f32 %v10651_v41, %v10651_v41 }
 0x3c9   : > { %v4350_v56 = vmul.f32 %v10653_v50, %v10653_v50  ;;  %v4351_v20 = vmul.f32 %v10655_v19, %v10655_v19  ;;  %v4352_v28 = vmul.f32 %v10657_v36, %v10657_v36  ;;  %v4353_v37 = vmul.f32 %v10659_v62, %v10659_v62 }
 0x3ca   : > { %v4354_v25 = vmul.f32 %v10661_v58, %v10661_v58  ;;  %v4355_v14 = vmul.f32 %v4347_v43, %v10647_v27  ;;  %v4356_v59 = vmul.f32 %v4348_v33, %v10649_v2  ;;  %v4357_v38 = vmul.f32 %v4349_v39, %v10651_v41 }
 0x3cb   : > { %v4358_v34 = vmul.f32 %v4350_v56, %v10653_v50  ;;  %v4359_v49 = vmul.f32 %v4351_v20, %v10655_v19  ;;  %v4360_v16 = vmul.f32 %v4352_v28, %v10657_v36  ;;  %v4361_v52 = vmul.f32 %v4353_v37, %v10659_v62 }
 0x3cc   : > { %v4362_v42 = vmul.f32 %v4354_v25, %v10661_v58  ;;  %v4363_v5 = vmul.f32 0.044715, %v4355_v14  ;;  %v4364_v47 = vmul.f32 0.044715, %v4356_v59  ;;  %v4365_v43 = vmul.f32 0.044715, %v4357_v38 }
 0x3cd   : > { %v10692_v33 = vstv %s10633_s24  ;;  %v4366_v39 = vmul.f32 0.044715, %v4358_v34  ;;  %v4367_v57 = vmul.f32 0.044715, %v4359_v49  ;;  %v4368_v56 = vmul.f32 0.044715, %v4360_v16 }
 0x3ce   : > { %12176 = vst [vmem:[#allocation48_spill] sm:$0xff] %v10692_v33  ;;  %v4492_v24 = vstv %s10645_s25  ;;  %v4369_v29 = vmul.f32 0.044715, %v4361_v52  ;;  %v4370_v54 = vmul.f32 0.044715, %v4362_v42  ;;  %v4371_v20 = vadd.f32 %v4363_v5, %v10647_v27  ;;  %v12177_v5 = vld [vmem:[#allocation22_spill] sm:$0xff] }
 0x3cf   : > { %v4372_v28 = vadd.f32 %v4364_v47, %v10649_v2  ;;  %v4373_v37 = vadd.f32 %v4365_v43, %v10651_v41  ;;  %v4374_v25 = vadd.f32 %v4366_v39, %v10653_v50  ;;  %v4375_v14 = vadd.f32 %v4367_v57, %v10655_v19  ;;  %v12178_v57 = vld [vmem:[#allocation26_spill] sm:$0xff]  ;;  %s11167_s24 = scalar_lea.vmem [#allocation10], %s5186_s22  ;;  %s5328_s25 = sshll.u32 %s5849_s30, 4 }
 0x3d0   : > { %v4376_v59 = vadd.f32 %v4368_v56, %v10657_v36  ;;  %v4377_v38 = vadd.f32 %v4369_v29, %v10659_v62  ;;  %v4378_v34 = vadd.f32 %v4370_v54, %v10661_v58  ;;  %v4379_v49 = vmul.f32 0.7978846, %v4371_v20  ;;  %v12181_v20 = vld [vmem:[#allocation19_spill] sm:$0xff]  ;;  %s5005_s30 = sshll.u32 %s11167_s24, 4  ;;  %s5006_s30 = int_to_ptr.vmem [resolvable:$true] %s5005_s30 }
 0x3d1   : > { %v4380_v16 = vmul.f32 0.7978846, %v4372_v28  ;;  %v4381_v52 = vmul.f32 0.7978846, %v4373_v37  ;;  %v4382_v42 = vmul.f32 0.7978846, %v4374_v25  ;;  %v4493_v47 = vmul.f32 %v4492_v24, %v12177_v5 }
 0x3d2   : > { %v4383_v6 = vmul.f32 0.7978846, %v4375_v14  ;;  %v4384_v43 = vmul.f32 0.7978846, %v4376_v59  ;;  %v4385_v46 = vmul.f32 0.7978846, %v4377_v38  ;;  %5675 = vtanh.f32 %v4379_v49 }
 0x3d3   : > { %v4386_v39 = vmul.f32 0.7978846, %v4378_v34  ;;  %5677 = vtanh.f32 %v4380_v16  ;;  %v4494_v56 = vmul.f32 %v4492_v24, %v12178_v57  ;;  %v4495_v29 = vmul.f32 %v4492_v24, %v12179_v53  ;;  %v12183_v37 = vld [vmem:[#allocation38_spill] sm:$0xff]  ;;  %v12187_v59 = vld [vmem:[#allocation41_spill] sm:$0xff]  ;;  %v12190_v53 = vld [vmem:[#allocation23_spill] sm:$0xff] }
 0x3d4   : > { %v4496_v54 = vmul.f32 %v4492_v24, %v12180_v55  ;;  %5679 = vtanh.f32 %v4381_v52  ;;  %v10708_v28 = vmul.f32 %v4492_v24, %v12181_v20  ;;  %v10711_v25 = vmul.f32 %v4492_v24, %v12183_v37  ;;  %v12185_v14 = vld [vmem:[#allocation18_spill] sm:$0xff]  ;;  %v12191_v16 = vld [vmem:[#allocation27_spill] sm:$0xff]  ;;  %v12192_v57 = vld [vmem:[#allocation32_spill] sm:$0xff] }
 0x3d5   : > { %v10714_v5 = vmul.f32 %v4492_v24, %v12185_v14  ;;  %5681 = vtanh.f32 %v4382_v42  ;;  %v10717_v38 = vmul.f32 %v4492_v24, %v12187_v59  ;;  %v4502_v34 = vstv %s10683_s5  ;;  %v12193_v37 = vld [vmem:[#allocation30_spill] sm:$0xff]  ;;  %v12195_v42 = vld [vmem:[#allocation39_spill] sm:$0xff] }
 0x3d6   : > { %12182 = vst [vmem:[#allocation52_spill] sm:$0xff] %v10708_v28  ;;  %v10721_v49 = vstv %s10689_s9  ;;  %5683 = vtanh.f32 %v4383_v6  ;;  %v4503_v55 = vmul.f32 %v4502_v34, %v12190_v53  ;;  %v4504_v52 = vmul.f32 %v4502_v34, %v12191_v16  ;;  %v12194_v28 = vld [vmem:[#allocation36_spill] sm:$0xff]  ;;  %v12196_v59 = vld [vmem:[#allocation34_spill] sm:$0xff] }
 0x3d7   : > { %12184 = vst [vmem:[#allocation53_spill] sm:$0xff] %v10711_v25  ;;  %v4505_v20 = vmul.f32 %v4502_v34, %v12192_v57  ;;  %5685 = vtanh.f32 %v4384_v43  ;;  %v4506_v25 = vmul.f32 %v4502_v34, %v12193_v37  ;;  %v10728_v14 = vmul.f32 %v4502_v34, %v12194_v28  ;;  %v12197_v6 = vld [vmem:[#allocation42_spill] sm:$0xff] }
 0x3d8   : > { %12186 = vst [vmem:[#allocation54_spill] sm:$0xff] %v10714_v5  ;;  %v10731_v5 = vmul.f32 %v4502_v34, %v12195_v42  ;;  %v5676_v24 = vpop.eup %5675  ;;  %5687 = vtanh.f32 %v4385_v46  ;;  %v10737_v53 = vmul.f32 %v4502_v34, %v12197_v6  ;;  %v4519_v16 = vrot.slane %v4503_v55, 1 }
 0x3d9   : > { %12188 = vst [vmem:[#allocation55_spill] sm:$0xff] %v10717_v38  ;;  %v5678_v38 = vpop.eup %5677  ;;  %5689 = vtanh.f32 %v4386_v39  ;;  %v4395_v43 = vadd.f32 1.0, %v5676_v24  ;;  %v4520_v57 = vrot.slane %v4504_v52, 1  ;;  %v4521_v37 = vrot.slane %v4505_v20, 1 }
 0x3da   : > { %12189 = vst [vmem:[#allocation56_spill] sm:$0xff] %v10721_v49  ;;  %v10734_v49 = vmul.f32 %v4502_v34, %v12196_v59  ;;  %v5680_v4 = vpop.eup %5679  ;;  %v4396_v28 = vadd.f32 1.0, %v5678_v38  ;;  %v4522_v44 = vrot.slane %v4506_v25, 1  ;;  %v10743_v24 = vadd.f32 %v4519_v16, %v4493_v47 }
 0x3db   : > { %v5682_v46 = vpop.eup %5681  ;;  %v4397_v33 = vadd.f32 1.0, %v5680_v4  ;;  %v4403_v59 = vmul.f32 0.5, %v4395_v43  ;;  %v10745_v52 = vadd.f32 %v4520_v57, %v4494_v56  ;;  %v10750_v3 = vadd.f32 %v4521_v37, %v4495_v29 }
 0x3dc   : > { %v5684_v55 = vpop.eup %5683  ;;  %v4398_v6 = vadd.f32 1.0, %v5682_v46  ;;  %v4404_v39 = vmul.f32 0.5, %v4396_v28  ;;  %v10755_v46 = vadd.f32 %v4522_v44, %v4496_v54 }
 0x3dd   : > { %v5686_v38 = vpop.eup %5685  ;;  %v4399_v25 = vadd.f32 1.0, %v5684_v55  ;;  %v4405_v20 = vmul.f32 0.5, %v4397_v33  ;;  %v10748_v42 = vmul.f32 %v4403_v59, %v10647_v27 }
 0x3de   : > { %v5688_v4 = vpop.eup %5687  ;;  %v4400_v43 = vadd.f32 1.0, %v5686_v38  ;;  %v4406_v60 = vmul.f32 0.5, %v4398_v6  ;;  %v10753_v34 = vmul.f32 %v4404_v39, %v10649_v2 }
 0x3df   : > { %v5690_v47 = vpop.eup %5689  ;;  %v4401_v16 = vadd.f32 1.0, %v5688_v4  ;;  %v4407_v56 = vmul.f32 0.5, %v4399_v25  ;;  %v4413_v57 = vmul.f32 %v4405_v20, %v10651_v41  ;;  %v4421_v33 = vmul.f32 %v10637_v7, %v10748_v42 }
 0x3e0   : > { %v4402_v27 = vadd.f32 1.0, %v5690_v47  ;;  %v4408_v28 = vmul.f32 0.5, %v4400_v43  ;;  %v4414_v29 = vmul.f32 %v4406_v60, %v10653_v50  ;;  %v4422_v37 = vmul.f32 %v10637_v7, %v10753_v34 }
 0x3e1   : > { %v4409_v59 = vmul.f32 0.5, %v4401_v16  ;;  %v4415_v2 = vmul.f32 %v4407_v56, %v10655_v19  ;;  %v4423_v44 = vmul.f32 %v10637_v7, %v4413_v57  ;;  %v10766_v54 = vadd.f32 %v4421_v33, %v10460_v1 }
 0x3e2   : > { %v4410_v55 = vmul.f32 0.5, %v4402_v27  ;;  %v4416_v41 = vmul.f32 %v4408_v28, %v10657_v36  ;;  %v4424_v6 = vmul.f32 %v10637_v7, %v4414_v29  ;;  %v10771_v39 = vadd.f32 %v4422_v37, %v10465_v21 }
 0x3e3   : > { %v4417_v60 = vmul.f32 %v4409_v59, %v10659_v62  ;;  %v4425_v50 = vmul.f32 %v10637_v7, %v4415_v2  ;;  %v10776_v38 = vadd.f32 %v4423_v44, %v10470_v35  ;;  %v4439_v19 = vmul.f32 %v10640_v22, %v10748_v42 }
 0x3e4   : > { %v4418_v1 = vmul.f32 %v4410_v55, %v10661_v58  ;;  %v4426_v25 = vmul.f32 %v10637_v7, %v4416_v41  ;;  %v10783_v36 = vadd.f32 %v4424_v6, %v10477_v10  ;;  %v4440_v21 = vmul.f32 %v10640_v22, %v10753_v34 }
 0x3e5   : > { %v4427_v62 = vmul.f32 %v10637_v7, %v4417_v60  ;;  %v10789_v20 = vadd.f32 %v4425_v50, %v10483_v8  ;;  %v4441_v35 = vmul.f32 %v10640_v22, %v4413_v57  ;;  %v4442_v4 = vmul.f32 %v10640_v22, %v4414_v29 }
 0x3e6   : > { %v4428_v43 = vmul.f32 %v10637_v7, %v4418_v1  ;;  %v10795_v58 = vadd.f32 %v4426_v25, %v10489_v18  ;;  %v4443_v10 = vmul.f32 %v10640_v22, %v4415_v2  ;;  %v4444_v47 = vmul.f32 %v10640_v22, %v4416_v41 }
 0x3e7   : > { %v10800_v16 = vadd.f32 %v4427_v62, %v10494_v9  ;;  %v4445_v56 = vmul.f32 %v10640_v22, %v4417_v60  ;;  %v4446_v8 = vmul.f32 %v10640_v22, %v4418_v1  ;;  %v10805_v33 = vadd.f32 %v4439_v19, %v10499_v26 }
 0x3e8   : > { %v10808_v27 = vadd.f32 %v4428_v43, %v10502_v48  ;;  %v10811_v18 = vadd.f32 %v4440_v21, %v10505_v0  ;;  %v10814_v7 = vadd.f32 %v4441_v35, %v10508_v30  ;;  %v10817_v28 = vadd.f32 %v4442_v4, %v10511_v63  ;;  %v12200_v4 = vld [vmem:[#allocation50_spill] sm:$0xff] }
 0x3e9   : > { %v10820_v9 = vadd.f32 %v4443_v10, %v10514_v17  ;;  %v10823_v22 = vadd.f32 %v4444_v47, %v10517_v40  ;;  %v10826_v26 = vadd.f32 %v4445_v56, %v10520_v11  ;;  %v10829_v48 = vadd.f32 %v4446_v8, %v10523_v15  ;;  %v12201_v10 = vld [vmem:[#allocation47_spill] sm:$0xff] }
 0x3ea   : > { %v4457_v0 = vmul.f32 %v10643_v51, %v10748_v42  ;;  %v4458_v30 = vmul.f32 %v10643_v51, %v10753_v34  ;;  %v4459_v63 = vmul.f32 %v10643_v51, %v4413_v57  ;;  %v4460_v17 = vmul.f32 %v10643_v51, %v4414_v29  ;;  %v12202_v47 = vld [vmem:[#allocation51_spill] sm:$0xff] }
 0x3eb   : > { %v4461_v37 = vmul.f32 %v10643_v51, %v4415_v2  ;;  %v4462_v40 = vmul.f32 %v10643_v51, %v4416_v41  ;;  %v4463_v11 = vmul.f32 %v10643_v51, %v4417_v60  ;;  %v4464_v59 = vmul.f32 %v10643_v51, %v4418_v1 }
 0x3ec   : > { %v10842_v15 = vadd.f32 %v4457_v0, %v10536_v23  ;;  %v10845_v44 = vadd.f32 %v4458_v30, %v10539_v32  ;;  %v10848_v55 = vadd.f32 %v4459_v63, %v10542_v13  ;;  %v10851_v6 = vadd.f32 %v4460_v17, %v10545_v45  ;;  %v12198_v23 = vld [vmem:[#allocation49_spill] sm:$0xff]  ;;  %v12199_v32 = vld [vmem:[#allocation48_spill] sm:$0xff] }
 0x3ed   : > { %v10854_v50 = vadd.f32 %v4461_v37, %v10548_v12  ;;  %v10857_v19 = vadd.f32 %v4462_v40, %v10551_v61  ;;  %v10860_v51 = vadd.f32 %v4463_v11, %v10554_v31  ;;  %v10863_v25 = vadd.f32 %v4464_v59, %v12198_v23  ;;  %v12207_v0 = vld [vmem:[#allocation45_spill] sm:$0xff]  ;;  %v12209_v63 = vld [vmem:[#allocation52_spill] sm:$0xff]  ;;  %v12213_v23 = vld [vmem:[#allocation54_spill] sm:$0xff] }
 0x3ee   : > { %v4475_v21 = vmul.f32 %v12199_v32, %v10748_v42  ;;  %v4476_v13 = vmul.f32 %v12199_v32, %v10753_v34  ;;  %v4477_v45 = vmul.f32 %v12199_v32, %v4413_v57  ;;  %v4478_v12 = vmul.f32 %v12199_v32, %v4414_v29  ;;  %v12203_v57 = vld [vmem:[#allocation46_spill] sm:$0xff]  ;;  %v12204_v29 = vld [vmem:[#allocation20_spill] sm:$0xff]  ;;  %v12211_v40 = vld [vmem:[#allocation53_spill] sm:$0xff] }
 0x3ef   : > { %v4479_v62 = vmul.f32 %v12199_v32, %v4415_v2  ;;  %v4480_v61 = vmul.f32 %v12199_v32, %v4416_v41  ;;  %v4481_v31 = vmul.f32 %v12199_v32, %v4417_v60  ;;  %v4482_v35 = vmul.f32 %v12199_v32, %v4418_v1  ;;  %v12205_v41 = vld [vmem:[#allocation21_spill] sm:$0xff]  ;;  %v12206_v60 = vld [vmem:[#allocation44_spill] sm:$0xff] }
 0x3f0   : > { %v10876_v43 = vadd.f32 %v4475_v21, %v12200_v4  ;;  %v10879_v42 = vadd.f32 %v4476_v13, %v12201_v10  ;;  %v10882_v34 = vadd.f32 %v4477_v45, %v12202_v47  ;;  %v10885_v56 = vadd.f32 %v4478_v12, %v12203_v57  ;;  %v12215_v13 = vld [vmem:[#allocation55_spill] sm:$0xff]  ;;  %v12221_v47 = vld [vmem:[#allocation25_spill] sm:$0xff] }
 0x3f1   : > { %v10888_v2 = vadd.f32 %v4479_v62, %v12204_v29  ;;  %v10891_v8 = vadd.f32 %v4480_v61, %v12205_v41  ;;  %v10894_v1 = vadd.f32 %v4481_v31, %v12206_v60  ;;  %v10897_v30 = vadd.f32 %v4482_v35, %v12207_v0  ;;  %v12217_v62 = vld [vmem:[#allocation24_spill] sm:$0xff]  ;;  %v12222_v57 = vld [vmem:[#allocation37_spill] sm:$0xff]  ;;  %v12225_v0 = vld [vmem:[#allocation43_spill] sm:$0xff] }
 0x3f2   : > { %v12210_v17 = vrot.slane %v10728_v14, 1  ;;  %v12212_v11 = vrot.slane %v10731_v5, 1  ;;  %v12214_v32 = vrot.slane %v10734_v49, 1  ;;  %v12216_v45 = vrot.slane %v10737_v53, 1  ;;  %v12218_v61 = vld [vmem:[#allocation56_spill] sm:$0xff]  ;;  %v12220_v14 = vld [vmem:[#allocation33_spill] sm:$0xff] }
 0x3f3   : > { %12208 = vst [vmem:[#allocation22_spill] sm:$0xff] %v10897_v30  ;;  %v4545_v31 = vmul.f32 %v12218_v61, %v12217_v62  ;;  %v12219_v35 = vld [vmem:[#allocation28_spill] sm:$0xff]  ;;  %v4547_v10 = vmul.f32 %v12218_v61, %v12220_v14  ;;  %v4548_v5 = vmul.f32 %v12218_v61, %v12221_v47  ;;  %v4549_v49 = vmul.f32 %v12218_v61, %v12222_v57  ;;  %v12224_v53 = vld [vmem:[#allocation35_spill] sm:$0xff] }
 0x3f4   : > { %v4539_v37 = vadd.f32 %v12210_v17, %v12209_v63  ;;  %v4540_v59 = vadd.f32 %v12212_v11, %v12211_v40  ;;  %v4541_v21 = vadd.f32 %v12214_v32, %v12213_v23  ;;  %v4542_v12 = vadd.f32 %v12216_v45, %v12215_v13  ;;  %v12223_v29 = vld [vmem:[#allocation40_spill] sm:$0xff] }
 0x3f5   : > { %v4546_v4 = vmul.f32 %v12218_v61, %v12219_v35  ;;  %v4550_v41 = vmul.f32 %v12218_v61, %v12223_v29  ;;  %v4551_v60 = vmul.f32 %v12218_v61, %v12224_v53  ;;  %v4552_v63 = vmul.f32 %v12218_v61, %v12225_v0 }
 0x3f6   : > { %v4561_v17 = vrot.slane %v4545_v31, 2  ;;  %v4563_v11 = vrot.slane %v4547_v10, 2  ;;  %v4564_v23 = vrot.slane %v4548_v5, 2  ;;  %v4565_v32 = vrot.slane %v4549_v49, 2 }
 0x3f7   : > { %v4562_v40 = vrot.slane %v4546_v4, 2  ;;  %v4566_v13 = vrot.slane %v4550_v41, 2  ;;  %v4567_v45 = vrot.slane %v4551_v60, 2  ;;  %v4568_v62 = vrot.slane %v4552_v63, 2 }
 0x3f8   : > { %v4577_v35 = vadd.f32 %v4561_v17, %v10743_v24  ;;  %v4579_v47 = vadd.f32 %v4563_v11, %v10750_v3  ;;  %v4580_v57 = vadd.f32 %v4564_v23, %v10755_v46  ;;  %v4581_v29 = vadd.f32 %v4565_v32, %v4539_v37 }
 0x3f9   : > { %v4578_v14 = vadd.f32 %v4562_v40, %v10745_v52  ;;  %v4582_v53 = vadd.f32 %v4566_v13, %v4540_v59  ;;  %v4583_v30 = vadd.f32 %v4567_v45, %v4541_v21  ;;  %v4584_v61 = vadd.f32 %v4568_v62, %v4542_v12 }
 0x3fa   : > { %v4586_v31 = vstv %s5311_s13  ;;  %s5004_s13 = scalar_lea.hbm %s11285_s8, %s5328_s25 }
 0x3fb   : > { %v10931_v4 = vadd.f32 %v4586_v31, %v4577_v35  ;;  %v10933_v10 = vadd.f32 %v4586_v31, %v4578_v14  ;;  %v10935_v5 = vadd.f32 %v4586_v31, %v4579_v47  ;;  %v10937_v49 = vadd.f32 %v4586_v31, %v4580_v57 }
 0x3fc   : > { %v10939_v24 = vadd.f32 %v4586_v31, %v4581_v29  ;;  %v10941_v52 = vadd.f32 %v4586_v31, %v4582_v53  ;;  %v10943_v3 = vadd.f32 %v4586_v31, %v4583_v30  ;;  %v10945_v46 = vadd.f32 %v4586_v31, %v4584_v61 }
 0x3fd   : > { %v4595_v37 = vmul.f32 %v10931_v4, %v10931_v4  ;;  %v4596_v59 = vmul.f32 %v10933_v10, %v10933_v10  ;;  %v4597_v21 = vmul.f32 %v10935_v5, %v10935_v5  ;;  %v4598_v12 = vmul.f32 %v10937_v49, %v10937_v49 }
 0x3fe   : > { %v4599_v41 = vmul.f32 %v10939_v24, %v10939_v24  ;;  %v4600_v30 = vmul.f32 %v10941_v52, %v10941_v52  ;;  %v4601_v60 = vmul.f32 %v10943_v3, %v10943_v3  ;;  %v4602_v0 = vmul.f32 %v10945_v46, %v10945_v46 }
 0x3ff   : > { %v4603_v63 = vmul.f32 %v4595_v37, %v10931_v4  ;;  %v4604_v17 = vmul.f32 %v4596_v59, %v10933_v10  ;;  %v4605_v40 = vmul.f32 %v4597_v21, %v10935_v5  ;;  %v4606_v11 = vmul.f32 %v4598_v12, %v10937_v49 }
 0x400   : > { %v4607_v23 = vmul.f32 %v4599_v41, %v10939_v24  ;;  %v4608_v32 = vmul.f32 %v4600_v30, %v10941_v52  ;;  %v4609_v13 = vmul.f32 %v4601_v60, %v10943_v3  ;;  %v4610_v45 = vmul.f32 %v4602_v0, %v10945_v46 }
 0x401   : > { %v4611_v62 = vmul.f32 0.044715, %v4603_v63  ;;  %v4612_v35 = vmul.f32 0.044715, %v4604_v17  ;;  %v4613_v14 = vmul.f32 0.044715, %v4605_v40 }
 0x402   : > { %v4614_v47 = vmul.f32 0.044715, %v4606_v11  ;;  %v4615_v57 = vmul.f32 0.044715, %v4607_v23  ;;  %v4616_v29 = vmul.f32 0.044715, %v4608_v32 }
 0x403   : > { %v4617_v53 = vmul.f32 0.044715, %v4609_v13  ;;  %v4618_v61 = vmul.f32 0.044715, %v4610_v45  ;;  %v4619_v31 = vadd.f32 %v4611_v62, %v10931_v4  ;;  %v4620_v37 = vadd.f32 %v4612_v35, %v10933_v10 }
 0x404   : > { %v4621_v59 = vadd.f32 %v4613_v14, %v10935_v5  ;;  %v4622_v21 = vadd.f32 %v4614_v47, %v10937_v49  ;;  %v4623_v12 = vadd.f32 %v4615_v57, %v10939_v24  ;;  %v4624_v41 = vadd.f32 %v4616_v29, %v10941_v52 }
 0x405   : > { %v4625_v30 = vadd.f32 %v4617_v53, %v10943_v3  ;;  %v4627_v60 = vmul.f32 0.7978846, %v4619_v31  ;;  %v4628_v0 = vmul.f32 0.7978846, %v4620_v37  ;;  %v4626_v63 = vadd.f32 %v4618_v61, %v10945_v46 }
 0x406   : > { %v4629_v17 = vmul.f32 0.7978846, %v4621_v59  ;;  %v4630_v40 = vmul.f32 0.7978846, %v4622_v21  ;;  %v4631_v11 = vmul.f32 0.7978846, %v4623_v12  ;;  %v4668_v61 = vstv %s5312_s19 }
 0x407   : > { %5691 = vtanh.f32 %v4627_v60  ;;  %v4632_v23 = vmul.f32 0.7978846, %v4624_v41  ;;  %v4633_v32 = vmul.f32 0.7978846, %v4625_v30  ;;  %v4634_v13 = vmul.f32 0.7978846, %v4626_v63 }
 0x408   : > { %5693 = vtanh.f32 %v4628_v0  ;;  %v4686_v21 = vstv %s5313_s20  ;;  %v10979_v12 = vstv %s5314_s23  ;;  %v10984_v63 = vstv %s5315_s26  ;;  %s5007_s19 = sshll.u32 %s5004_s13, 4  ;;  %s4991_s20 = scalar_lea.sflag [#allocation3], %s445_s21  ;;  %s5008_s19 = int_to_ptr.hbm [resolvable:$true] %s5007_s19 }
 0x409   : > { %5695 = vtanh.f32 %v4629_v17  ;;  %s5781_s23 = sshra.s32 %s5008_s19, 4  ;;  %s5782_s23 = int_to_ptr.hbm [resolvable:$true] %s5781_s23 }
 0x40a   : > { %5697 = vtanh.f32 %v4630_v40  ;;  %s5783_s26 = scalar_lea.hbm %s5782_s23, 16  ;;  %p5788_p5 = scmp.lt.s32.totalorder %s5782_s23, %s11285_s8 }
 0x40b   : > { %5699 = vtanh.f32 %v4631_v11  ;;  %p5784_p1 = scmp.ne.s32.totalorder %s5782_s23, %s5783_s26  ;;  %p5789_p6 = scmp.lt.s32.totalorder %s5787_s14, %s5783_s26 }
 0x40c   : > { %5701 = vtanh.f32 %v4632_v23 }
 0x40d   : > { %v5692_v45 = vpop.eup %5691  ;;  %5703 = vtanh.f32 %v4633_v32  ;;  %v10989_v32 = vstv %s4740_s12  ;;  %p5785_p2 = pnand %p5784_p1, %p5955_p4  ;;  %p5790_p7 = por %p5789_p6, %p5788_p5 }
 0x40e   : > { %v5694_v62 = vpop.eup %5693  ;;  %5705 = vtanh.f32 %v4634_v13  ;;  %v4643_v35 = vadd.f32 1.0, %v5692_v45 }
 0x40f   : > { %v5696_v14 = vpop.eup %5695  ;;  %v4644_v47 = vadd.f32 1.0, %v5694_v62  ;;  %p5786_p3 = pneg %p5785_p2 }
 0x410   : > { %v5698_v57 = vpop.eup %5697  ;;  %v4645_v29 = vadd.f32 1.0, %v5696_v14  ;;  %v4651_v53 = vmul.f32 0.5, %v4643_v35 }
 0x411   : > { %v5700_v31 = vpop.eup %5699  ;;  %v4646_v37 = vadd.f32 1.0, %v5698_v57  ;;  %v4652_v59 = vmul.f32 0.5, %v4644_v47  ;;  %p5791_p9 = pnand %p5790_p7, %p5786_p3 }
 0x412   : > { %v5702_v41 = vpop.eup %5701  ;;  %v4647_v30 = vadd.f32 1.0, %v5700_v31  ;;  %v4653_v60 = vmul.f32 0.5, %v4645_v29  ;;  %v10982_v0 = vmul.f32 %v4651_v53, %v10931_v4 }
 0x413   : > { %v5704_v17 = vpop.eup %5703  ;;  %v4648_v40 = vadd.f32 1.0, %v5702_v41  ;;  %v4654_v11 = vmul.f32 0.5, %v4646_v37  ;;  %v10987_v23 = vmul.f32 %v4652_v59, %v10933_v10 }
 0x414   : > { %v5706_v13 = vpop.eup %5705  ;;  %v4649_v45 = vadd.f32 1.0, %v5704_v17  ;;  %v4655_v62 = vmul.f32 0.5, %v4647_v30  ;;  %v4661_v35 = vmul.f32 %v4653_v60, %v10935_v5  ;;  %v4669_v14 = vmul.f32 %v4668_v61, %v10982_v0 }
 0x415   : > { %v4650_v47 = vadd.f32 1.0, %v5706_v13  ;;  %v4656_v4 = vmul.f32 0.5, %v4648_v40  ;;  %v4662_v57 = vmul.f32 %v4654_v11, %v10937_v49  ;;  %v4670_v29 = vmul.f32 %v4668_v61, %v10987_v23 }
 0x416   : > { %v4657_v53 = vmul.f32 0.5, %v4649_v45  ;;  %v4663_v31 = vmul.f32 %v4655_v62, %v10939_v24  ;;  %v4671_v10 = vmul.f32 %v4668_v61, %v4661_v35  ;;  %v10997_v37 = vadd.f32 %v4669_v14, %v10766_v54 }
 0x417   : > { %v4658_v59 = vmul.f32 0.5, %v4650_v47  ;;  %v4664_v41 = vmul.f32 %v4656_v4, %v10941_v52  ;;  %v4672_v30 = vmul.f32 %v4668_v61, %v4662_v57  ;;  %v11001_v5 = vadd.f32 %v4670_v29, %v10771_v39 }
 0x418   : > { %v4665_v60 = vmul.f32 %v4657_v53, %v10943_v3  ;;  %v4673_v17 = vmul.f32 %v4668_v61, %v4663_v31  ;;  %v4679_v49 = vadd.f32 %v4671_v10, %v10776_v38  ;;  %v4687_v40 = vmul.f32 %v4686_v21, %v10982_v0 }
 0x419   : > { %v4666_v24 = vmul.f32 %v4658_v59, %v10945_v46  ;;  %v4674_v11 = vmul.f32 %v4668_v61, %v4664_v41  ;;  %v4680_v54 = vadd.f32 %v4672_v30, %v10783_v36  ;;  %v4688_v13 = vmul.f32 %v4686_v21, %v10987_v23 }
 0x41a   : > { %v4675_v45 = vmul.f32 %v4668_v61, %v4665_v60  ;;  %v4681_v52 = vadd.f32 %v4673_v17, %v10789_v20  ;;  %v4689_v62 = vmul.f32 %v4686_v21, %v4661_v35  ;;  %v4690_v39 = vmul.f32 %v4686_v21, %v4662_v57 }
 0x41b   : > { %v4676_v14 = vmul.f32 %v4668_v61, %v4666_v24  ;;  %v4682_v3 = vadd.f32 %v4674_v11, %v10795_v58  ;;  %v4691_v47 = vmul.f32 %v4686_v21, %v4663_v31  ;;  %v4692_v4 = vmul.f32 %v4686_v21, %v4664_v41 }
 0x41c   : > { %v4683_v38 = vadd.f32 %v4675_v45, %v10800_v16  ;;  %v4693_v29 = vmul.f32 %v4686_v21, %v4665_v60  ;;  %v4694_v53 = vmul.f32 %v4686_v21, %v4666_v24  ;;  %v11013_v46 = vadd.f32 %v4687_v40, %v10805_v33 }
 0x41d   : > { %v4684_v36 = vadd.f32 %v4676_v14, %v10808_v27  ;;  %v11017_v10 = vadd.f32 %v4688_v13, %v10811_v18  ;;  %v11020_v20 = vadd.f32 %v4689_v62, %v10814_v7  ;;  %v11023_v61 = vadd.f32 %v4690_v39, %v10817_v28 }
 0x41e   : > { %v11026_v58 = vadd.f32 %v4691_v47, %v10820_v9  ;;  %v11029_v16 = vadd.f32 %v4692_v4, %v10823_v22  ;;  %v11032_v33 = vadd.f32 %v4693_v29, %v10826_v26  ;;  %v11035_v27 = vadd.f32 %v4694_v53, %v10829_v48 }
 0x41f   : > { %v4705_v18 = vmul.f32 %v10979_v12, %v10982_v0  ;;  %v4706_v7 = vmul.f32 %v10979_v12, %v10987_v23  ;;  %v4707_v28 = vmul.f32 %v10979_v12, %v4661_v35  ;;  %v4708_v9 = vmul.f32 %v10979_v12, %v4662_v57 }
 0x420   : > { %v4709_v21 = vmul.f32 %v10979_v12, %v4663_v31  ;;  %v4710_v22 = vmul.f32 %v10979_v12, %v4664_v41  ;;  %v4711_v26 = vmul.f32 %v10979_v12, %v4665_v60  ;;  %v4712_v59 = vmul.f32 %v10979_v12, %v4666_v24 }
 0x421   : > { %v11048_v48 = vadd.f32 %v4705_v18, %v10842_v15  ;;  %v11051_v30 = vadd.f32 %v4706_v7, %v10845_v44  ;;  %v11054_v17 = vadd.f32 %v4707_v28, %v10848_v55  ;;  %v11057_v40 = vadd.f32 %v4708_v9, %v10851_v6 }
 0x422   : > { %v11060_v11 = vadd.f32 %v4709_v21, %v10854_v50  ;;  %v11063_v13 = vadd.f32 %v4710_v22, %v10857_v19  ;;  %v11066_v12 = vadd.f32 %v4711_v26, %v10860_v51  ;;  %v11069_v15 = vadd.f32 %v4712_v59, %v10863_v25  ;;  %v11086_v25 = vld [vmem:[%s477_s18] ss:$0 sm:$0xff]  ;;  %s11128_s18 = sld [smem:[#allocation8 + $0x2]] }
 0x423   : > { %v4723_v44 = vmul.f32 %v10984_v63, %v10982_v0  ;;  %v4724_v55 = vmul.f32 %v10984_v63, %v10987_v23  ;;  %v4725_v6 = vmul.f32 %v10984_v63, %v4661_v35  ;;  %v4726_v50 = vmul.f32 %v10984_v63, %v4662_v57 }
 0x424   : > { %v4727_v45 = vmul.f32 %v10984_v63, %v4663_v31  ;;  %v4728_v19 = vmul.f32 %v10984_v63, %v4664_v41  ;;  %v4729_v51 = vmul.f32 %v10984_v63, %v4665_v60  ;;  %v4730_v62 = vmul.f32 %v10984_v63, %v4666_v24 }
 0x425   : > { %v11089_v0 = vadd.f32 %v4723_v44, %v10876_v43  ;;  %v11092_v23 = vadd.f32 %v4724_v55, %v10879_v42  ;;  %v11095_v35 = vadd.f32 %v4725_v6, %v10882_v34  ;;  %v11098_v57 = vadd.f32 %v4726_v50, %v10885_v56  ;;  %v12226_v43 = vld [vmem:[#allocation22_spill] sm:$0xff] }
 0x426   : > { %v11101_v63 = vadd.f32 %v4727_v45, %v10888_v2  ;;  %v11104_v31 = vadd.f32 %v4728_v19, %v10891_v8  ;;  %v11107_v41 = vadd.f32 %v4729_v51, %v10894_v1  ;;  %v11110_v60 = vadd.f32 %v4730_v62, %v12226_v43 }
 0x427   : > { %v4742_v42 = vadd.f32 %v10989_v32, %v10997_v37  ;;  %v4743_v34 = vadd.f32 %v10989_v32, %v11001_v5  ;;  %v4744_v56 = vadd.f32 %v10989_v32, %v4679_v49  ;;  %v4745_v2 = vadd.f32 %v10989_v32, %v4680_v54 }
 0x428   : > { %v4746_v8 = vadd.f32 %v10989_v32, %v4681_v52  ;;  %v4747_v1 = vadd.f32 %v10989_v32, %v4682_v3  ;;  %v4748_v24 = vadd.f32 %v10989_v32, %v4683_v38  ;;  %v4749_v39 = vadd.f32 %v10989_v32, %v4684_v36 }
 0x429   : > { %v4753_v37 = vadd.f32 %v11086_v25, %v4742_v42  ;;  %v4754_v5 = vadd.f32 %v11086_v25, %v4743_v34  ;;  %v4755_v49 = vadd.f32 %v11086_v25, %v4744_v56  ;;  %v4756_v54 = vadd.f32 %v11086_v25, %v4745_v2 }
 0x42a   : > { %v4757_v52 = vadd.f32 %v11086_v25, %v4746_v8  ;;  %v4758_v14 = vadd.f32 %v11086_v25, %v4747_v1  ;;  %v4759_v32 = vadd.f32 %v11086_v25, %v4748_v24  ;;  %v4760_v3 = vadd.f32 %v11086_v25, %v4749_v39 }
 0x42b   : > { %v4761_v47 = vpack.c.bf16 %v4753_v37, %v4753_v37  ;;  %v4762_v4 = vpack.c.bf16 %v4754_v5, %v4754_v5  ;;  %v4763_v38 = vpack.c.bf16 %v4755_v49, %v4755_v49  ;;  %v4764_v29 = vpack.c.bf16 %v4756_v54, %v4756_v54 }
 0x42c   : > { %v4765_v53 = vpack.c.bf16 %v4757_v52, %v4757_v52  ;;  %v4766_v36 = vpack.c.bf16 %v4758_v14, %v4758_v14  ;;  %v4767_v18 = vpack.c.bf16 %v4759_v32, %v4759_v32  ;;  %v4768_v7 = vpack.c.bf16 %v4760_v3, %v4760_v3 }
 0x42d   : > { %v4777_v28 = vunpack.c.l.b16 %v4761_v47  ;;  %v4778_v9 = vunpack.c.l.b16 %v4762_v4  ;;  %v4779_v21 = vunpack.c.l.b16 %v4763_v38  ;;  %v4780_v22 = vunpack.c.l.b16 %v4764_v29 }
 0x42e   : > { %v4781_v26 = vunpack.c.l.b16 %v4765_v53  ;;  %v4782_v59 = vunpack.c.l.b16 %v4766_v36  ;;  %v4783_v44 = vunpack.c.l.b16 %v4767_v18  ;;  %v4784_v55 = vunpack.c.l.b16 %v4768_v7 }
 0x42f   : > { %v4785_v6 = vrot.slane %v4778_v9, 7  ;;  %v4788_v50 = vrot.slane %v4779_v21, 6  ;;  %v4791_v45 = vrot.slane %v4780_v22, 5  ;;  %v4811_v56 = vstv %s11122_s4 }
 0x430   : > { %v4794_v19 = vrot.slane %v4781_v26, 4  ;;  %v4797_v51 = vrot.slane %v4782_v59, 3  ;;  %v4800_v62 = vrot.slane %v4783_v44, 2  ;;  %v4803_v42 = vrot.slane %v4784_v55, 1 }
 0x431   : > { %v4787_v43 = vsel %vm4786_vm0, %v4785_v6, %v4777_v28  ;;  %v4871_v2 = vstv %s11128_s18  ;;  %v11142_v8 = vstv %s11134_s16  ;;  %v4812_v24 = vadd.f32 %v4811_v56, %v11013_v46 }
 0x432   : > { %v4790_v34 = vsel %vm4789_vm1, %v4788_v50, %v4787_v43  ;;  %v4813_v39 = vadd.f32 %v4811_v56, %v11017_v10  ;;  %v4814_v37 = vadd.f32 %v4811_v56, %v11020_v20  ;;  %v4815_v49 = vadd.f32 %v4811_v56, %v11023_v61 }
 0x433   : > { %v4793_v1 = vsel %vm4792_vm2, %v4791_v45, %v4790_v34  ;;  %v4816_v54 = vadd.f32 %v4811_v56, %v11026_v58  ;;  %v4817_v52 = vadd.f32 %v4811_v56, %v11029_v16  ;;  %v4818_v32 = vadd.f32 %v4811_v56, %v11032_v33 }
 0x434   : > { %v4796_v5 = vsel %vm4795_vm3, %v4794_v19, %v4793_v1  ;;  %v4819_v46 = vadd.f32 %v4811_v56, %v11035_v27  ;;  %v4820_v10 = vadd.f32 %v11086_v25, %v4812_v24  ;;  %v4821_v3 = vadd.f32 %v11086_v25, %v4813_v39 }
 0x435   : > { %v4799_v14 = vsel %vm4798_vm4, %v4797_v51, %v4796_v5  ;;  %v4822_v47 = vadd.f32 %v11086_v25, %v4814_v37  ;;  %v4823_v61 = vadd.f32 %v11086_v25, %v4815_v49  ;;  %v4824_v16 = vadd.f32 %v11086_v25, %v4816_v54 }
 0x436   : > { %v4802_v20 = vsel %vm4801_vm5, %v4800_v62, %v4799_v14  ;;  %v4825_v4 = vadd.f32 %v11086_v25, %v4817_v52  ;;  %v4826_v33 = vadd.f32 %v11086_v25, %v4818_v32  ;;  %v4827_v27 = vadd.f32 %v11086_v25, %v4819_v46 }
 0x437   : > { %v4805_v58 = vsel %vm4804_vm6, %v4803_v42, %v4802_v20  ;;  %v4828_v29 = vpack.c.bf16 %v4820_v10, %v4820_v10  ;;  %v4829_v53 = vpack.c.bf16 %v4821_v3, %v4821_v3  ;;  %v4830_v36 = vpack.c.bf16 %v4822_v47, %v4822_v47 }
 0x438   : > { %v4806_v38 = vpack.c.b16 %v4805_v58, %v4805_v58  ;;  %v4831_v18 = vpack.c.bf16 %v4823_v61, %v4823_v61  ;;  %v4832_v7 = vpack.c.bf16 %v4824_v16, %v4824_v16  ;;  %v4833_v28 = vpack.c.bf16 %v4825_v4, %v4825_v4 }
 0x439   : > { %v4834_v9 = vpack.c.bf16 %v4826_v33, %v4826_v33  ;;  %v4835_v21 = vpack.c.bf16 %v4827_v27, %v4827_v27  ;;  %v4844_v22 = vunpack.c.l.b16 %v4828_v29  ;;  %v4845_v26 = vunpack.c.l.b16 %v4829_v53 }
 0x43a   : > { %4809 = vst.msk [vmem:[%s11167_s24] sm:$0xf] %vm4808_vm7, %v4806_v38  ;;  %v4846_v59 = vunpack.c.l.b16 %v4830_v36  ;;  %v4847_v44 = vunpack.c.l.b16 %v4831_v18  ;;  %v4848_v55 = vunpack.c.l.b16 %v4832_v7  ;;  %v4849_v6 = vunpack.c.l.b16 %v4833_v28 }
 0x43b   : > { %v4850_v50 = vunpack.c.l.b16 %v4834_v9  ;;  %v4851_v45 = vunpack.c.l.b16 %v4835_v21  ;;  %v4852_v19 = vrot.slane %v4845_v26, 7  ;;  %v4872_v51 = vadd.f32 %v4871_v2, %v11048_v48 }
 0x43c   : > { %v4854_v62 = vrot.slane %v4846_v59, 6  ;;  %v4856_v43 = vrot.slane %v4847_v44, 5  ;;  %v4858_v42 = vrot.slane %v4848_v55, 4  ;;  %v4860_v34 = vrot.slane %v4849_v6, 3 }
 0x43d   : > { %v4853_v56 = vsel %vm4786_vm0, %v4852_v19, %v4844_v22  ;;  %v4862_v1 = vrot.slane %v4850_v50, 2  ;;  %v4864_v24 = vrot.slane %v4851_v45, 1  ;;  %v4873_v39 = vadd.f32 %v4871_v2, %v11051_v30 }
 0x43e   : > { %v4855_v37 = vsel %vm4789_vm1, %v4854_v62, %v4853_v56  ;;  %v4874_v5 = vadd.f32 %v4871_v2, %v11054_v17  ;;  %v4875_v49 = vadd.f32 %v4871_v2, %v11057_v40  ;;  %v4876_v54 = vadd.f32 %v4871_v2, %v11060_v11 }
 0x43f   : > { %v4857_v48 = vsel %vm4792_vm2, %v4856_v43, %v4855_v37  ;;  %v4877_v52 = vadd.f32 %v4871_v2, %v11063_v13  ;;  %v4878_v14 = vadd.f32 %v4871_v2, %v11066_v12  ;;  %v4879_v32 = vadd.f32 %v4871_v2, %v11069_v15 }
 0x440   : > { %v4859_v46 = vsel %vm4795_vm3, %v4858_v42, %v4857_v48  ;;  %v4880_v30 = vadd.f32 %v11086_v25, %v4872_v51  ;;  %v4881_v10 = vadd.f32 %v11086_v25, %v4873_v39  ;;  %v4882_v17 = vadd.f32 %v11086_v25, %v4874_v5 }
 0x441   : > { %v4861_v40 = vsel %vm4798_vm4, %v4860_v34, %v4859_v46  ;;  %v4883_v11 = vadd.f32 %v11086_v25, %v4875_v49  ;;  %v4884_v20 = vadd.f32 %v11086_v25, %v4876_v54  ;;  %v4885_v13 = vadd.f32 %v11086_v25, %v4877_v52 }
 0x442   : > { %v4863_v12 = vsel %vm4801_vm5, %v4862_v1, %v4861_v40  ;;  %v4886_v15 = vadd.f32 %v11086_v25, %v4878_v14  ;;  %v4887_v2 = vadd.f32 %v11086_v25, %v4879_v32  ;;  %v4888_v3 = vpack.c.bf16 %v4880_v30, %v4880_v30 }
 0x443   : > { %v4865_v47 = vsel %vm4804_vm6, %v4864_v24, %v4863_v12  ;;  %v4889_v61 = vpack.c.bf16 %v4881_v10, %v4881_v10  ;;  %v4890_v58 = vpack.c.bf16 %v4882_v17, %v4882_v17  ;;  %v4891_v16 = vpack.c.bf16 %v4883_v11, %v4883_v11 }
 0x444   : > { %v4866_v4 = vpack.c.b16 %v4865_v47, %v4865_v47  ;;  %v4892_v33 = vpack.c.bf16 %v4884_v20, %v4884_v20  ;;  %v4893_v38 = vpack.c.bf16 %v4885_v13, %v4885_v13  ;;  %v4894_v27 = vpack.c.bf16 %v4886_v15, %v4886_v15 }
 0x445   : > { %v4895_v29 = vpack.c.bf16 %v4887_v2, %v4887_v2  ;;  %v4904_v53 = vunpack.c.l.b16 %v4888_v3  ;;  %v4905_v36 = vunpack.c.l.b16 %v4889_v61  ;;  %v4906_v18 = vunpack.c.l.b16 %v4890_v58 }
 0x446   : > { %5317 = vst.msk [vmem:[%s11167_s24 + $0x4] sm:$0xf] %vm4808_vm7, %v4866_v4  ;;  %v4907_v7 = vunpack.c.l.b16 %v4891_v16  ;;  %v4908_v28 = vunpack.c.l.b16 %v4892_v33  ;;  %v4909_v9 = vunpack.c.l.b16 %v4893_v38  ;;  %v4910_v21 = vunpack.c.l.b16 %v4894_v27 }
 0x447   : > { %v4911_v22 = vunpack.c.l.b16 %v4895_v29  ;;  %v4912_v26 = vrot.slane %v4905_v36, 7  ;;  %v4914_v59 = vrot.slane %v4906_v18, 6  ;;  %v4932_v44 = vadd.f32 %v11142_v8, %v11089_v0 }
 0x448   : > { %v4916_v55 = vrot.slane %v4907_v7, 5  ;;  %v4918_v6 = vrot.slane %v4908_v28, 4  ;;  %v4920_v50 = vrot.slane %v4909_v9, 3  ;;  %v4922_v45 = vrot.slane %v4910_v21, 2 }
 0x449   : > { %v4913_v19 = vsel %vm4786_vm0, %v4912_v26, %v4904_v53  ;;  %v4924_v51 = vrot.slane %v4911_v22, 1  ;;  %v4933_v62 = vadd.f32 %v11142_v8, %v11092_v23  ;;  %v4934_v43 = vadd.f32 %v11142_v8, %v11095_v35 }
 0x44a   : > { %v4915_v42 = vsel %vm4789_vm1, %v4914_v59, %v4913_v19  ;;  %v4935_v34 = vadd.f32 %v11142_v8, %v11098_v57  ;;  %v4936_v0 = vadd.f32 %v11142_v8, %v11101_v63  ;;  %v4937_v56 = vadd.f32 %v11142_v8, %v11104_v31 }
 0x44b   : > { %v4917_v1 = vsel %vm4792_vm2, %v4916_v55, %v4915_v42  ;;  %v4938_v24 = vadd.f32 %v11142_v8, %v11107_v41  ;;  %v4939_v23 = vadd.f32 %v11142_v8, %v11110_v60  ;;  %v4940_v35 = vadd.f32 %v11086_v25, %v4932_v44 }
 0x44c   : > { %v4919_v39 = vsel %vm4795_vm3, %v4918_v6, %v4917_v1  ;;  %v4941_v57 = vadd.f32 %v11086_v25, %v4933_v62  ;;  %v4942_v37 = vadd.f32 %v11086_v25, %v4934_v43  ;;  %v4943_v63 = vadd.f32 %v11086_v25, %v4935_v34 }
 0x44d   : > { %v4921_v31 = vsel %vm4798_vm4, %v4920_v50, %v4919_v39  ;;  %v4944_v5 = vadd.f32 %v11086_v25, %v4936_v0  ;;  %v4945_v49 = vadd.f32 %v11086_v25, %v4937_v56  ;;  %v4946_v41 = vadd.f32 %v11086_v25, %v4938_v24 }
 0x44e   : > { %v4923_v60 = vsel %vm4801_vm5, %v4922_v45, %v4921_v31  ;;  %v4947_v8 = vadd.f32 %v11086_v25, %v4939_v23  ;;  %v4948_v54 = vpack.c.bf16 %v4940_v35, %v4940_v35  ;;  %v4949_v48 = vpack.c.bf16 %v4941_v57, %v4941_v57 }
 0x44f   : > { %v4925_v52 = vsel %vm4804_vm6, %v4924_v51, %v4923_v60  ;;  %v4950_v14 = vpack.c.bf16 %v4942_v37, %v4942_v37  ;;  %v4951_v32 = vpack.c.bf16 %v4943_v63, %v4943_v63  ;;  %v4952_v46 = vpack.c.bf16 %v4944_v5, %v4944_v5 }
 0x450   : > { %v4926_v30 = vpack.c.b16 %v4925_v52, %v4925_v52  ;;  %v4953_v10 = vpack.c.bf16 %v4945_v49, %v4945_v49  ;;  %v4954_v17 = vpack.c.bf16 %v4946_v41, %v4946_v41  ;;  %v4955_v40 = vpack.c.bf16 %v4947_v8, %v4947_v8 }
 0x451   : > { %v4965_v11 = vunpack.c.l.b16 %v4949_v48  ;;  %v4966_v20 = vunpack.c.l.b16 %v4950_v14  ;;  %v4967_v13 = vunpack.c.l.b16 %v4951_v32  ;;  %v4968_v12 = vunpack.c.l.b16 %v4952_v46 }
 0x452   : > { %5319 = vst.msk [vmem:[%s11167_s24 + $0x8] sm:$0xf] %vm4808_vm7, %v4926_v30  ;;  %v4969_v15 = vunpack.c.l.b16 %v4953_v10  ;;  %v4964_v25 = vunpack.c.l.b16 %v4948_v54  ;;  %v4971_v2 = vunpack.c.l.b16 %v4955_v40  ;;  %v4970_v61 = vunpack.c.l.b16 %v4954_v17 }
 0x453   : > { %v4972_v3 = vrot.slane %v4965_v11, 7  ;;  %v4974_v47 = vrot.slane %v4966_v20, 6  ;;  %v4978_v58 = vrot.slane %v4968_v12, 4  ;;  %v4976_v4 = vrot.slane %v4967_v13, 5 }
 0x454   : > { %v4980_v33 = vrot.slane %v4969_v15, 3  ;;  %v4984_v29 = vrot.slane %v4971_v2, 1  ;;  %v4982_v36 = vrot.slane %v4970_v61, 2 }
 0x455   : > { %v4973_v16 = vsel %vm4786_vm0, %v4972_v3, %v4964_v25 }
 0x456   : > { %v4975_v38 = vsel %vm4789_vm1, %v4974_v47, %v4973_v16 }
 0x457   : > { %v4977_v27 = vsel %vm4792_vm2, %v4976_v4, %v4975_v38 }
 0x458   : > { %v4979_v53 = vsel %vm4795_vm3, %v4978_v58, %v4977_v27 }
 0x459   : > { %v4981_v18 = vsel %vm4798_vm4, %v4980_v33, %v4979_v53 }
 0x45a   : > { %v4983_v7 = vsel %vm4801_vm5, %v4982_v36, %v4981_v18 }
 0x45b   : > { %v4985_v28 = vsel %vm4804_vm6, %v4984_v29, %v4983_v7 }
 0x45c   : > { %v4986_v9 = vpack.c.b16 %v4985_v28, %v4985_v28 }
 0x45e   : > { %5321 = vst.msk [vmem:[%s11167_s24 + $0xc] sm:$0xf] %vm4808_vm7, %v4986_v9 }
 0x45f   : > { %5794 = shalt.err (!%p5791_p9)
}
 0x460   : > { %s5868_s16 = smov 64   ;;  %s5869_s21 = smov 4  }
 0x461   : > { %5345 = dma.vmem_to_hbm [thread:$0]  (%p5955_p4), %s5006_s30, 256, %s5008_s19, %s4991_s20, %s5868_s16, %s5868_s16, %s5869_s21  }
 0x462 PF: > { %p5372_p10 = scmp.ge.s32.totalorder %s5857_s10, 2  ;;  %s5022_s22 = sand.u32 1, %s5837_s27  }
 0x463   : > { %s5023_s24 = scalar_lea.sflag [#allocation3], %s5022_s22 }
 0x464   : > { %p5361_p11 = pnand %p5372_p10, %p5962_p8 }
 0x466   : > { %p5362_p12 = pneg %p5361_p11 }
 0x468   : > { %5832 = dma.done.wait (%p5362_p12), %s5023_s24, 256  }
 0x469   : > { %5834 = vsyncadd (%p5362_p12), %s5023_s24, 4294967040  ;;  %s24_s10 = sadd.s32 1, %s5857_s10   ;;  %s12227_s25 = sld [smem:[#allocation17_spill]] }
 0x46a   : > { %p21_p13 = scmp.ge.s32.totalorder %s24_s10, 4   ;;  %s12228_s30 = sld [smem:[#allocation15_spill]] }
 0x46b   : > { %s12229_s9 = sld [smem:[#allocation16_spill]]  ;;  %s12230_s27 = smov %s5841_s28 }
 0x46c   : > { %s12231_s28 = smov %s5845_s29  ;;  %23 = sbr.rel (!%p21_p13) target bundleno = 10 (0xa), region = 116 }
 0x46f   : > { %s12232_s29 = smov %s12227_s25 }
 0x471   :  { %5029 = vsyncpa [#allocation3], 1 }
 0x472   :  { %5031 = vsyncpa [#allocation3 + $0x1], 1 }
 0x473   :  { %5032 = vsyncpa [#allocation4], 1 }
 0x474   :  { %5034 = vsyncpa [#allocation4 + $0x1], 1 }
 0x475   :  { %5035 = vsyncpa [#allocation6], 1 }
 0x476   :  { %5036 = vsyncpa [#allocation9], 1 }

</bundles_post_ra>
